<compile_context>
chip_gen: v7x
topology: tpu7x:2x2x1
jax: 0.10.0
libtpu: 0.0.40
codegen_flags: <defaults>
</compile_context>

<pallas_src>
import jax
import jax.numpy as jnp
import numpy as np
from jax.experimental import pallas as pl
from jax.experimental.pallas import tpu as pltpu

LANE = 128


def _round_up(x, m):
    return ((x + m - 1) // m) * m


# ----------------------------------------------------------------------------
# Pallas kernels
# ----------------------------------------------------------------------------
def _conv_relu_pool_kernel(x_ref, w_ref, b_ref, o_ref):
    """Fused conv-as-matmul + bias + ReLU + 2x2 maxpool.

    x_ref: (4, tp, K)  bf16  im2col patches; leading axis = the 4 corners of
                             each 2x2 pooling window, rows = pooled pixels.
    w_ref: (K, 128)    bf16  conv weights, output channels zero-padded to 128.
    b_ref: (1, 128)    f32   bias (padded).
    o_ref: (tp, 128)   bf16  pooled, NHWC-flattened, lane-dense output.
    """
    w = w_ref[...]
    m = jnp.dot(x_ref[0], w, preferred_element_type=jnp.float32)
    for c in range(1, 4):
        m = jnp.maximum(m, jnp.dot(x_ref[c], w, preferred_element_type=jnp.float32))
    # max over the 2x2 window commutes with (+bias) and ReLU (both monotone).
    o_ref[...] = jnp.maximum(m + b_ref[...], 0.0).astype(o_ref.dtype)


def _fc_fused_kernel(x_ref, w1_ref, b1_ref, w2_ref, b2_ref, o_ref, h_ref):
    """Fused fc1 + fc2 (no activation in between, matching the PyTorch model)."""
    h_ref[...] = (
        jnp.dot(x_ref[...], w1_ref[...], preferred_element_type=jnp.float32)
        + b1_ref[...]
    )
    o_ref[...] = (
        jnp.dot(h_ref[...], w2_ref[...], preferred_element_type=jnp.float32)
        + b2_ref[...]
    )


# ----------------------------------------------------------------------------
# Pallas wrappers
# ----------------------------------------------------------------------------
def conv_relu_pool_pallas(patches, w, b):
    """patches: (4, P, K) bf16, w: (K, 128) bf16, b: (1, 128) f32 -> (P, 128) bf16."""
    _, P, K = patches.shape
    cop = w.shape[1]
    tp = min(256, _round_up(P, 8))
    p_pad = _round_up(P, tp)
    if p_pad != P:
        patches = jnp.pad(patches, ((0, 0), (0, p_pad - P), (0, 0)))
    out = pl.pallas_call(
        _conv_relu_pool_kernel,
        out_shape=jax.ShapeDtypeStruct((p_pad, cop), jnp.bfloat16),
        grid=(p_pad // tp,),
        in_specs=[
            pl.BlockSpec((4, tp, K), lambda i: (0, i, 0)),
            pl.BlockSpec((K, cop), lambda i: (0, 0)),
            pl.BlockSpec((1, cop), lambda i: (0, 0)),
        ],
        out_specs=pl.BlockSpec((tp, cop), lambda i: (i, 0)),
        compiler_params=pltpu.CompilerParams(
            dimension_semantics=("parallel",),
            vmem_limit_bytes=32 * 1024 * 1024,
        ),
    )(patches, w, b)
    return out[:P]


def fc_fused_pallas(flat, w1, b1, w2, b2):
    """flat: (N, Kf) bf16 -> (N, 128) f32 via fused (fc1 + fc2) kernel."""
    n, kf = flat.shape
    hdim = w1.shape[1]
    cop = w2.shape[1]
    tb = min(128, _round_up(n, 8))
    n_pad = _round_up(n, tb)
    if n_pad != n:
        flat = jnp.pad(flat, ((0, n_pad - n), (0, 0)))
    out = pl.pallas_call(
        _fc_fused_kernel,
        out_shape=jax.ShapeDtypeStruct((n_pad, cop), jnp.float32),
        grid=(n_pad // tb,),
        in_specs=[
            pl.BlockSpec((tb, kf), lambda i: (i, 0)),
            pl.BlockSpec((kf, hdim), lambda i: (0, 0)),
            pl.BlockSpec((1, hdim), lambda i: (0, 0)),
            pl.BlockSpec((hdim, cop), lambda i: (0, 0)),
            pl.BlockSpec((1, cop), lambda i: (0, 0)),
        ],
        out_specs=pl.BlockSpec((tb, cop), lambda i: (i, 0)),
        scratch_shapes=[pltpu.VMEM((tb, hdim), jnp.float32)],
        compiler_params=pltpu.CompilerParams(
            dimension_semantics=("parallel",),
            vmem_limit_bytes=32 * 1024 * 1024,
        ),
    )(flat, w1, b1, w2, b2)
    return out[:n]


# ----------------------------------------------------------------------------
# Glue: pool-grouped im2col (pad / strided-slice / stack / reshape only)
# ----------------------------------------------------------------------------
def _pool_grouped_patches(x_nhwc, k=5, pad=2):
    """x: (N, H, W, C) -> (4, N*(H//2)*(W//2), k*k*C).

    Corner axis = the 4 conv-output pixels of each 2x2 pooling window; row
    ordering is (n, pooled_h, pooled_w); column ordering is (ky, kx, cin).
    """
    n, h, w, c = x_nhwc.shape
    ho, wo = h // 2, w // 2
    xp = jnp.pad(x_nhwc, ((0, 0), (pad, pad), (pad, pad), (0, 0)))
    corners = []
    for dy in range(2):
        for dx in range(2):
            taps = []
            for ky in range(k):
                for kx in range(k):
                    taps.append(xp[:, dy + ky:dy + ky + h:2, dx + kx:dx + kx + w:2, :])
            corner = jnp.stack(taps, axis=3)            # (N, Ho, Wo, k*k, C)
            corners.append(corner.reshape(n * ho * wo, k * k * c))
    return jnp.stack(corners, axis=0)                   # (4, P, k*k*C)


# ----------------------------------------------------------------------------
# Glue: weight / bias preparation (padding + permutation, done once under jit)
# ----------------------------------------------------------------------------
def _prep_conv_weight(w):
    """(Cout, Cin, KH, KW) -> (KH*KW*Cin, 128) bf16 with (ky, kx, cin) rows."""
    cout, cin, kh, kw = w.shape
    wt = jnp.transpose(w, (2, 3, 1, 0)).reshape(kh * kw * cin, cout)
    return jnp.pad(wt, ((0, 0), (0, LANE - cout))).astype(jnp.bfloat16)


def _prep_bias(b):
    return jnp.pad(b, (0, LANE - b.shape[0])).reshape(1, LANE).astype(jnp.float32)


def _prep_fc1(w, b):
    """fc1_w (500, 3136=(C64,H7,W7)) -> (7*7*128, 512) bf16 for NHWC-padded flat."""
    o = w.shape[0]
    op = _round_up(o, LANE)                              # 512
    wr = w.reshape(o, 64, 7, 7).transpose(2, 3, 1, 0)    # (7, 7, 64, 500)
    wr = jnp.pad(wr, ((0, 0), (0, 0), (0, LANE - 64), (0, op - o)))
    w1p = wr.reshape(7 * 7 * LANE, op).astype(jnp.bfloat16)
    b1p = jnp.pad(b, (0, op - o)).reshape(1, op).astype(jnp.float32)
    return w1p, b1p


def _prep_fc2(w, b):
    """fc2_w (10, 500) -> (512, 128) f32 (kept f32: tiny, preserves precision)."""
    o, i = w.shape
    ip = _round_up(i, LANE)                              # 512
    w2p = jnp.pad(w.T, ((0, ip - i), (0, LANE - o))).astype(jnp.float32)
    b2p = jnp.pad(b, (0, LANE - o)).reshape(1, LANE).astype(jnp.float32)
    return w2p, b2p


# ----------------------------------------------------------------------------
# LightNet forward
# ----------------------------------------------------------------------------
def lightnet_forward(x, params):
    n = x.shape[0]
    x_nhwc = jnp.transpose(x, (0, 2, 3, 1)).astype(jnp.bfloat16)   # (N, 28, 28, 1)

    # layer1: Conv2d(1, 32, 5, pad=2) + ReLU + MaxPool2d(2) — one fused kernel.
    p1 = _pool_grouped_patches(x_nhwc, 5, 2)                       # (4, N*196, 25)
    y1 = conv_relu_pool_pallas(p1, _prep_conv_weight(params["conv1_w"]),
                               _prep_bias(params["conv1_b"]))      # (N*196, 128)
    y1 = y1.reshape(n, 14, 14, LANE)[..., :32]                     # NHWC, real chans

    # layer2: Conv2d(32, 64, 5, pad=2) + ReLU + MaxPool2d(2) — one fused kernel.
    p2 = _pool_grouped_patches(y1, 5, 2)                           # (4, N*49, 800)
    y2 = conv_relu_pool_pallas(p2, _prep_conv_weight(params["conv2_w"]),
                               _prep_bias(params["conv2_b"]))      # (N*49, 128)

    # flatten (padded NHWC order; fc1 weights permuted/padded to match PyTorch).
    # TODO(synk): nn.Dropout() treated as inference-mode identity (no RNG mask).
    flat = y2.reshape(n, 7 * 7 * LANE)                             # (N, 6272) bf16

    w1p, b1p = _prep_fc1(params["fc1_w"], params["fc1_b"])
    w2p, b2p = _prep_fc2(params["fc2_w"], params["fc2_b"])
    out = fc_fused_pallas(flat, w1p, b1p, w2p, b2p)                # (N, 128) f32
    return out[:, :10]


# ----------------------------------------------------------------------------
# Pure-JAX reference (precision-matched: bf16 MXU operands, f32 accumulation)
# ----------------------------------------------------------------------------
def lightnet_reference(x, params):
    n = x.shape[0]
    f32 = jnp.float32

    def conv_relu_pool(inp, w, b):
        y = jax.lax.conv_general_dilated(
            inp.astype(jnp.bfloat16), w.astype(jnp.bfloat16),
            window_strides=(1, 1), padding=((2, 2), (2, 2)),
            dimension_numbers=("NCHW", "OIHW", "NCHW"),
            preferred_element_type=f32)
        y = jnp.maximum(y + b[None, :, None, None].astype(f32), 0.0)
        return jax.lax.reduce_window(
            y, -jnp.inf, jax.lax.max, (1, 1, 2, 2), (1, 1, 2, 2), "VALID")

    y = conv_relu_pool(x, params["conv1_w"], params["conv1_b"])
    y = conv_relu_pool(y, params["conv2_w"], params["conv2_b"])
    flat = y.reshape(n, -1)
    h = jax.lax.dot_general(
        flat.astype(jnp.bfloat16), params["fc1_w"].T.astype(jnp.bfloat16),
        (((1,), (0,)), ((), ())), preferred_element_type=f32) + params["fc1_b"]
    out = jnp.dot(h, params["fc2_w"].T.astype(f32),
                  precision=jax.lax.Precision.HIGHEST) + params["fc2_b"]
    return out


# ----------------------------------------------------------------------------
# Deterministic parameter init (shapes from LightNet.__init__)
# ----------------------------------------------------------------------------
def init_params(key):
    ks = jax.random.split(key, 8)

    def w_init(k, shape, fan_in):
        return jax.random.normal(k, shape, jnp.float32) / np.sqrt(fan_in)

    return {
        "conv1_w": w_init(ks[0], (32, 1, 5, 5), 1 * 5 * 5),
        "conv1_b": 0.01 * jax.random.normal(ks[1], (32,), jnp.float32),
        "conv2_w": w_init(ks[2], (64, 32, 5, 5), 32 * 5 * 5),
        "conv2_b": 0.01 * jax.random.normal(ks[3], (64,), jnp.float32),
        "fc1_w": w_init(ks[4], (500, 7 * 7 * 64), 7 * 7 * 64),
        "fc1_b": 0.01 * jax.random.normal(ks[5], (500,), jnp.float32),
        "fc2_w": w_init(ks[6], (10, 500), 500),
        "fc2_b": 0.01 * jax.random.normal(ks[7], (10,), jnp.float32),
    }


if __name__ == "__main__":
    key = jax.random.PRNGKey(0)
    pkey, xkey = jax.random.split(key)
    params = init_params(pkey)

    # 28x28 input is required by the 7*7*64 flatten feeding fc1.
    x = jax.random.normal(xkey, (2, 1, 28, 28), jnp.float32)

    out = jax.block_until_ready(jax.jit(lightnet_forward)(x, params))
    assert out.shape == (2, 10) and out.dtype == jnp.float32

    ref = jax.block_until_ready(jax.jit(lightnet_reference)(x, params))
    if not np.allclose(np.asarray(out), np.asarray(ref), rtol=1e-2, atol=1e-2):
        raise AssertionError("Pallas LightNet output mismatch vs JAX reference")

    print("KERNEL_OK")
</pallas_src>

<mosaic_0001>
module attributes {stable_mosaic.version = 11 : i64} {
  func.func @_conv_relu_pool_kernel(%arg0: i32, %arg1: memref<4x256x25xbf16, #tpu.memory_space<vmem>>, %arg2: memref<25x128xbf16, #tpu.memory_space<vmem>>, %arg3: memref<1x128xf32, #tpu.memory_space<vmem>>, %arg4: memref<256x128xbf16, #tpu.memory_space<vmem>>) attributes {dimension_semantics = [#tpu.dimension_semantics<parallel>], iteration_bounds = array<i64: 2>, scalar_prefetch = 0 : i64, scratch_operands = 0 : i64, tpu.core_type = #tpu.core_type<tc>, window_params = [{transform_indices = @transform_0, window_bounds = array<i64: 4, 256, 25>}, {pipeline_mode = #tpu.pipeline_mode<synchronous>, transform_indices = @transform_1, window_bounds = array<i64: 25, 128>}, {pipeline_mode = #tpu.pipeline_mode<synchronous>, transform_indices = @transform_2, window_bounds = array<i64: 1, 128>}, {transform_indices = @transform_3, window_bounds = array<i64: 256, 128>}]} {
    %c0 = arith.constant 0 : index
    %c0_0 = arith.constant 0 : index
    %0 = vector.load %arg2[%c0, %c0_0] : memref<25x128xbf16, #tpu.memory_space<vmem>>, vector<25x128xbf16>
    %c0_1 = arith.constant 0 : index
    %c0_2 = arith.constant 0 : index
    %c0_3 = arith.constant 0 : index
    %1 = vector.load %arg1[%c0_1, %c0_2, %c0_3] : memref<4x256x25xbf16, #tpu.memory_space<vmem>>, vector<1x256x25xbf16>
    %2 = vector.shape_cast %1 : vector<1x256x25xbf16> to vector<256x25xbf16>
    %cst = arith.constant dense<0.000000e+00> : vector<256x128xf32>
    %3 = tpu.matmul %2, %0, %cst {dimension_numbers = #tpu.dot_dimension_numbers<[1], [0], [0], [1], [0, 0, 1, 1], [], []>} : vector<256x25xbf16>, vector<25x128xbf16>, vector<256x128xf32> -> vector<256x128xf32>
    %c1 = arith.constant 1 : index
    %c0_4 = arith.constant 0 : index
    %c0_5 = arith.constant 0 : index
    %4 = vector.load %arg1[%c1, %c0_4, %c0_5] : memref<4x256x25xbf16, #tpu.memory_space<vmem>>, vector<1x256x25xbf16>
    %5 = vector.shape_cast %4 : vector<1x256x25xbf16> to vector<256x25xbf16>
    %cst_6 = arith.constant dense<0.000000e+00> : vector<256x128xf32>
    %6 = tpu.matmul %5, %0, %cst_6 {dimension_numbers = #tpu.dot_dimension_numbers<[1], [0], [0], [1], [0, 0, 1, 1], [], []>} : vector<256x25xbf16>, vector<25x128xbf16>, vector<256x128xf32> -> vector<256x128xf32>
    %7 = arith.maximumf %3, %6 : vector<256x128xf32>
    %c2 = arith.constant 2 : index
    %c0_7 = arith.constant 0 : index
    %c0_8 = arith.constant 0 : index
    %8 = vector.load %arg1[%c2, %c0_7, %c0_8] : memref<4x256x25xbf16, #tpu.memory_space<vmem>>, vector<1x256x25xbf16>
    %9 = vector.shape_cast %8 : vector<1x256x25xbf16> to vector<256x25xbf16>
    %cst_9 = arith.constant dense<0.000000e+00> : vector<256x128xf32>
    %10 = tpu.matmul %9, %0, %cst_9 {dimension_numbers = #tpu.dot_dimension_numbers<[1], [0], [0], [1], [0, 0, 1, 1], [], []>} : vector<256x25xbf16>, vector<25x128xbf16>, vector<256x128xf32> -> vector<256x128xf32>
    %11 = arith.maximumf %7, %10 : vector<256x128xf32>
    %c3 = arith.constant 3 : index
    %c0_10 = arith.constant 0 : index
    %c0_11 = arith.constant 0 : index
    %12 = vector.load %arg1[%c3, %c0_10, %c0_11] : memref<4x256x25xbf16, #tpu.memory_space<vmem>>, vector<1x256x25xbf16>
    %13 = vector.shape_cast %12 : vector<1x256x25xbf16> to vector<256x25xbf16>
    %cst_12 = arith.constant dense<0.000000e+00> : vector<256x128xf32>
    %14 = tpu.matmul %13, %0, %cst_12 {dimension_numbers = #tpu.dot_dimension_numbers<[1], [0], [0], [1], [0, 0, 1, 1], [], []>} : vector<256x25xbf16>, vector<25x128xbf16>, vector<256x128xf32> -> vector<256x128xf32>
    %15 = arith.maximumf %11, %14 : vector<256x128xf32>
    %c0_13 = arith.constant 0 : index
    %c0_14 = arith.constant 0 : index
    %16 = vector.load %arg3[%c0_13, %c0_14] : memref<1x128xf32, #tpu.memory_space<vmem>>, vector<1x128xf32>
    %17 = vector.broadcast %16 : vector<1x128xf32> to vector<256x128xf32>
    %18 = arith.addf %15, %17 : vector<256x128xf32>
    %cst_15 = arith.constant 0.000000e+00 : f32
    %19 = vector.broadcast %cst_15 : f32 to vector<256x128xf32>
    %20 = arith.maximumf %18, %19 : vector<256x128xf32>
    %21 = arith.truncf %20 : vector<256x128xf32> to vector<256x128xbf16>
    %c0_16 = arith.constant 0 : index
    %c0_17 = arith.constant 0 : index
    %22 = vector.load %arg4[%c0_16, %c0_17] : memref<256x128xbf16, #tpu.memory_space<vmem>>, vector<256x128xbf16>
    tpu.vector_store %arg4[%c0_16, %c0_17], %21 {strides = array<i32>} : memref<256x128xbf16, #tpu.memory_space<vmem>>, vector<256x128xbf16>,
    return
  }
  func.func @transform_0(%arg0: i32) -> (i32, i32, i32) {
    %c0_i32 = arith.constant 0 : i32
    %c0_i32_0 = arith.constant 0 : i32
    %c0_i32_1 = arith.constant 0 : i32
    return %c0_i32, %arg0, %c0_i32_0 : i32, i32, i32
  }
  func.func @transform_1(%arg0: i32) -> (i32, i32) {
    %c0_i32 = arith.constant 0 : i32
    %c0_i32_0 = arith.constant 0 : i32
    %c0_i32_1 = arith.constant 0 : i32
    return %c0_i32, %c0_i32_0 : i32, i32
  }
  func.func @transform_2(%arg0: i32) -> (i32, i32) {
    %c0_i32 = arith.constant 0 : i32
    %c0_i32_0 = arith.constant 0 : i32
    %c0_i32_1 = arith.constant 0 : i32
    return %c0_i32, %c0_i32_0 : i32, i32
  }
  func.func @transform_3(%arg0: i32) -> (i32, i32) {
    %c0_i32 = arith.constant 0 : i32
    %c0_i32_0 = arith.constant 0 : i32
    return %arg0, %c0_i32 : i32, i32
  }
}

module attributes {stable_mosaic.version = 11 : i64} {
  func.func @_conv_relu_pool_kernel(%arg0: i32, %arg1: memref<4x104x800xbf16, #tpu.memory_space<vmem>>, %arg2: memref<800x128xbf16, #tpu.memory_space<vmem>>, %arg3: memref<1x128xf32, #tpu.memory_space<vmem>>, %arg4: memref<104x128xbf16, #tpu.memory_space<vmem>>) attributes {dimension_semantics = [#tpu.dimension_semantics<parallel>], iteration_bounds = array<i64: 1>, scalar_prefetch = 0 : i64, scratch_operands = 0 : i64, tpu.core_type = #tpu.core_type<tc>, window_params = [{transform_indices = @transform_0, window_bounds = array<i64: 4, 104, 800>}, {pipeline_mode = #tpu.pipeline_mode<synchronous>, transform_indices = @transform_1, window_bounds = array<i64: 800, 128>}, {pipeline_mode = #tpu.pipeline_mode<synchronous>, transform_indices = @transform_2, window_bounds = array<i64: 1, 128>}, {transform_indices = @transform_3, window_bounds = array<i64: 104, 128>}]} {
    %c0 = arith.constant 0 : index
    %c0_0 = arith.constant 0 : index
    %0 = vector.load %arg2[%c0, %c0_0] : memref<800x128xbf16, #tpu.memory_space<vmem>>, vector<800x128xbf16>
    %c0_1 = arith.constant 0 : index
    %c0_2 = arith.constant 0 : index
    %c0_3 = arith.constant 0 : index
    %1 = vector.load %arg1[%c0_1, %c0_2, %c0_3] : memref<4x104x800xbf16, #tpu.memory_space<vmem>>, vector<1x104x800xbf16>
    %2 = vector.shape_cast %1 : vector<1x104x800xbf16> to vector<104x800xbf16>
    %cst = arith.constant dense<0.000000e+00> : vector<104x128xf32>
    %3 = tpu.matmul %2, %0, %cst {dimension_numbers = #tpu.dot_dimension_numbers<[1], [0], [0], [1], [0, 0, 1, 1], [], []>} : vector<104x800xbf16>, vector<800x128xbf16>, vector<104x128xf32> -> vector<104x128xf32>
    %c1 = arith.constant 1 : index
    %c0_4 = arith.constant 0 : index
    %c0_5 = arith.constant 0 : index
    %4 = vector.load %arg1[%c1, %c0_4, %c0_5] : memref<4x104x800xbf16, #tpu.memory_space<vmem>>, vector<1x104x800xbf16>
    %5 = vector.shape_cast %4 : vector<1x104x800xbf16> to vector<104x800xbf16>
    %cst_6 = arith.constant dense<0.000000e+00> : vector<104x128xf32>
    %6 = tpu.matmul %5, %0, %cst_6 {dimension_numbers = #tpu.dot_dimension_numbers<[1], [0], [0], [1], [0, 0, 1, 1], [], []>} : vector<104x800xbf16>, vector<800x128xbf16>, vector<104x128xf32> -> vector<104x128xf32>
    %7 = arith.maximumf %3, %6 : vector<104x128xf32>
    %c2 = arith.constant 2 : index
    %c0_7 = arith.constant 0 : index
    %c0_8 = arith.constant 0 : index
    %8 = vector.load %arg1[%c2, %c0_7, %c0_8] : memref<4x104x800xbf16, #tpu.memory_space<vmem>>, vector<1x104x800xbf16>
    %9 = vector.shape_cast %8 : vector<1x104x800xbf16> to vector<104x800xbf16>
    %cst_9 = arith.constant dense<0.000000e+00> : vector<104x128xf32>
    %10 = tpu.matmul %9, %0, %cst_9 {dimension_numbers = #tpu.dot_dimension_numbers<[1], [0], [0], [1], [0, 0, 1, 1], [], []>} : vector<104x800xbf16>, vector<800x128xbf16>, vector<104x128xf32> -> vector<104x128xf32>
    %11 = arith.maximumf %7, %10 : vector<104x128xf32>
    %c3 = arith.constant 3 : index
    %c0_10 = arith.constant 0 : index
    %c0_11 = arith.constant 0 : index
    %12 = vector.load %arg1[%c3, %c0_10, %c0_11] : memref<4x104x800xbf16, #tpu.memory_space<vmem>>, vector<1x104x800xbf16>
    %13 = vector.shape_cast %12 : vector<1x104x800xbf16> to vector<104x800xbf16>
    %cst_12 = arith.constant dense<0.000000e+00> : vector<104x128xf32>
    %14 = tpu.matmul %13, %0, %cst_12 {dimension_numbers = #tpu.dot_dimension_numbers<[1], [0], [0], [1], [0, 0, 1, 1], [], []>} : vector<104x800xbf16>, vector<800x128xbf16>, vector<104x128xf32> -> vector<104x128xf32>
    %15 = arith.maximumf %11, %14 : vector<104x128xf32>
    %c0_13 = arith.constant 0 : index
    %c0_14 = arith.constant 0 : index
    %16 = vector.load %arg3[%c0_13, %c0_14] : memref<1x128xf32, #tpu.memory_space<vmem>>, vector<1x128xf32>
    %17 = vector.broadcast %16 : vector<1x128xf32> to vector<104x128xf32>
    %18 = arith.addf %15, %17 : vector<104x128xf32>
    %cst_15 = arith.constant 0.000000e+00 : f32
    %19 = vector.broadcast %cst_15 : f32 to vector<104x128xf32>
    %20 = arith.maximumf %18, %19 : vector<104x128xf32>
    %21 = arith.truncf %20 : vector<104x128xf32> to vector<104x128xbf16>
    %c0_16 = arith.constant 0 : index
    %c0_17 = arith.constant 0 : index
    %22 = vector.load %arg4[%c0_16, %c0_17] : memref<104x128xbf16, #tpu.memory_space<vmem>>, vector<104x128xbf16>
    tpu.vector_store %arg4[%c0_16, %c0_17], %21 {strides = array<i32>} : memref<104x128xbf16, #tpu.memory_space<vmem>>, vector<104x128xbf16>,
    return
  }
  func.func @transform_0(%arg0: i32) -> (i32, i32, i32) {
    %c0_i32 = arith.constant 0 : i32
    %c0_i32_0 = arith.constant 0 : i32
    %c0_i32_1 = arith.constant 0 : i32
    return %c0_i32, %arg0, %c0_i32_0 : i32, i32, i32
  }
  func.func @transform_1(%arg0: i32) -> (i32, i32) {
    %c0_i32 = arith.constant 0 : i32
    %c0_i32_0 = arith.constant 0 : i32
    %c0_i32_1 = arith.constant 0 : i32
    return %c0_i32, %c0_i32_0 : i32, i32
  }
  func.func @transform_2(%arg0: i32) -> (i32, i32) {
    %c0_i32 = arith.constant 0 : i32
    %c0_i32_0 = arith.constant 0 : i32
    %c0_i32_1 = arith.constant 0 : i32
    return %c0_i32, %c0_i32_0 : i32, i32
  }
  func.func @transform_3(%arg0: i32) -> (i32, i32) {
    %c0_i32 = arith.constant 0 : i32
    %c0_i32_0 = arith.constant 0 : i32
    return %arg0, %c0_i32 : i32, i32
  }
}

module attributes {stable_mosaic.version = 11 : i64} {
  func.func @_fc_fused_kernel(%arg0: i32, %arg1: memref<8x6272xbf16, #tpu.memory_space<vmem>>, %arg2: memref<6272x512xbf16, #tpu.memory_space<vmem>>, %arg3: memref<1x512xf32, #tpu.memory_space<vmem>>, %arg4: memref<512x128xf32, #tpu.memory_space<vmem>>, %arg5: memref<1x128xf32, #tpu.memory_space<vmem>>, %arg6: memref<8x128xf32, #tpu.memory_space<vmem>>, %arg7: memref<8x512xf32, #tpu.memory_space<vmem>>) attributes {dimension_semantics = [#tpu.dimension_semantics<parallel>], iteration_bounds = array<i64: 1>, scalar_prefetch = 0 : i64, scratch_operands = 1 : i64, tpu.core_type = #tpu.core_type<tc>, window_params = [{transform_indices = @transform_0, window_bounds = array<i64: 8, 6272>}, {pipeline_mode = #tpu.pipeline_mode<synchronous>, transform_indices = @transform_1, window_bounds = array<i64: 6272, 512>}, {pipeline_mode = #tpu.pipeline_mode<synchronous>, transform_indices = @transform_2, window_bounds = array<i64: 1, 512>}, {pipeline_mode = #tpu.pipeline_mode<synchronous>, transform_indices = @transform_3, window_bounds = array<i64: 512, 128>}, {pipeline_mode = #tpu.pipeline_mode<synchronous>, transform_indices = @transform_4, window_bounds = array<i64: 1, 128>}, {transform_indices = @transform_5, window_bounds = array<i64: 8, 128>}]} {
    %c0 = arith.constant 0 : index
    %c0_0 = arith.constant 0 : index
    %0 = vector.load %arg1[%c0, %c0_0] : memref<8x6272xbf16, #tpu.memory_space<vmem>>, vector<8x6272xbf16>
    %c0_1 = arith.constant 0 : index
    %c0_2 = arith.constant 0 : index
    %1 = vector.load %arg2[%c0_1, %c0_2] : memref<6272x512xbf16, #tpu.memory_space<vmem>>, vector<6272x512xbf16>
    %cst = arith.constant dense<0.000000e+00> : vector<8x512xf32>
    %2 = tpu.matmul %0, %1, %cst {dimension_numbers = #tpu.dot_dimension_numbers<[1], [0], [0], [1], [0, 0, 1, 1], [], []>} : vector<8x6272xbf16>, vector<6272x512xbf16>, vector<8x512xf32> -> vector<8x512xf32>
    %c0_3 = arith.constant 0 : index
    %c0_4 = arith.constant 0 : index
    %3 = vector.load %arg3[%c0_3, %c0_4] : memref<1x512xf32, #tpu.memory_space<vmem>>, vector<1x512xf32>
    %4 = vector.broadcast %3 : vector<1x512xf32> to vector<8x512xf32>
    %5 = arith.addf %2, %4 : vector<8x512xf32>
    %c0_5 = arith.constant 0 : index
    %c0_6 = arith.constant 0 : index
    %6 = vector.load %arg7[%c0_5, %c0_6] : memref<8x512xf32, #tpu.memory_space<vmem>>, vector<8x512xf32>
    tpu.vector_store %arg7[%c0_5, %c0_6], %5 {strides = array<i32>} : memref<8x512xf32, #tpu.memory_space<vmem>>, vector<8x512xf32>,
    %c0_7 = arith.constant 0 : index
    %c0_8 = arith.constant 0 : index
    %7 = vector.load %arg7[%c0_7, %c0_8] : memref<8x512xf32, #tpu.memory_space<vmem>>, vector<8x512xf32>
    %c0_9 = arith.constant 0 : index
    %c0_10 = arith.constant 0 : index
    %8 = vector.load %arg4[%c0_9, %c0_10] : memref<512x128xf32, #tpu.memory_space<vmem>>, vector<512x128xf32>
    %cst_11 = arith.constant dense<0.000000e+00> : vector<8x128xf32>
    %9 = tpu.matmul %7, %8, %cst_11 {dimension_numbers = #tpu.dot_dimension_numbers<[1], [0], [0], [1], [0, 0, 1, 1], [], []>} : vector<8x512xf32>, vector<512x128xf32>, vector<8x128xf32> -> vector<8x128xf32>
    %c0_12 = arith.constant 0 : index
    %c0_13 = arith.constant 0 : index
    %10 = vector.load %arg5[%c0_12, %c0_13] : memref<1x128xf32, #tpu.memory_space<vmem>>, vector<1x128xf32>
    %11 = vector.broadcast %10 : vector<1x128xf32> to vector<8x128xf32>
    %12 = arith.addf %9, %11 : vector<8x128xf32>
    %c0_14 = arith.constant 0 : index
    %c0_15 = arith.constant 0 : index
    %13 = vector.load %arg6[%c0_14, %c0_15] : memref<8x128xf32, #tpu.memory_space<vmem>>, vector<8x128xf32>
    tpu.vector_store %arg6[%c0_14, %c0_15], %12 {strides = array<i32>} : memref<8x128xf32, #tpu.memory_space<vmem>>, vector<8x128xf32>,
    return
  }
  func.func @transform_0(%arg0: i32) -> (i32, i32) {
    %c0_i32 = arith.constant 0 : i32
    %c0_i32_0 = arith.constant 0 : i32
    return %arg0, %c0_i32 : i32, i32
  }
  func.func @transform_1(%arg0: i32) -> (i32, i32) {
    %c0_i32 = arith.constant 0 : i32
    %c0_i32_0 = arith.constant 0 : i32
    %c0_i32_1 = arith.constant 0 : i32
    return %c0_i32, %c0_i32_0 : i32, i32
  }
  func.func @transform_2(%arg0: i32) -> (i32, i32) {
    %c0_i32 = arith.constant 0 : i32
    %c0_i32_0 = arith.constant 0 : i32
    %c0_i32_1 = arith.constant 0 : i32
    return %c0_i32, %c0_i32_0 : i32, i32
  }
  func.func @transform_3(%arg0: i32) -> (i32, i32) {
    %c0_i32 = arith.constant 0 : i32
    %c0_i32_0 = arith.constant 0 : i32
    %c0_i32_1 = arith.constant 0 : i32
    return %c0_i32, %c0_i32_0 : i32, i32
  }
  func.func @transform_4(%arg0: i32) -> (i32, i32) {
    %c0_i32 = arith.constant 0 : i32
    %c0_i32_0 = arith.constant 0 : i32
    %c0_i32_1 = arith.constant 0 : i32
    return %c0_i32, %c0_i32_0 : i32, i32
  }
  func.func @transform_5(%arg0: i32) -> (i32, i32) {
    %c0_i32 = arith.constant 0 : i32
    %c0_i32_0 = arith.constant 0 : i32
    return %arg0, %c0_i32 : i32, i32
  }
}

</mosaic_0001>

<bundles_post_ra>
// kernel: lightnet_forward.3
= control target key start
LH: loop header
LB: loop body
LE: loop exit
PB: predicated region body
PF: predicated region fallthrough
CT: control target
= control target key end

     0   :  { %s3175_s12 = smov 0   ;;  %s3177_s13 = smov 0   ;;  %s3838_s0 = inlined_call_operand.vmem [shape: bf16[4,512,25], index: 0, kind: input, shape index: {}]   ;;  %s3839_s1 = inlined_call_operand.vmem [shape: bf16[25,128], index: 1, kind: input, shape index: {}]   ;;  %s3840_s2 = inlined_call_operand.vmem [shape: f32[1,128], index: 2, kind: input, shape index: {}]   ;;  %s3841_s3 = inlined_call_operand.vmem [shape: bf16[512,128], index: 3, kind: output, shape index: {}]  }
   0x1   :  { %s3179_s14 = smov 0  }
   0x2 LB: > { %s2423_s15 = sadd.s32 4294967295, %s3152_s14   ;;  %s3192_s16 = sadd.s32 1, %s3152_s14   ;;  %s3152_s14 = sphi %s3179_s14, %s3927_s14   ;;  %s3148_s13 = sphi %s3177_s13, %s3926_s13   ;;  %s3144_s12 = sphi %s3175_s12, %s3925_s12  }
   0x3   : > { %s17_s17 = ssub.s32 %s3152_s14, %s3192_s16  ;;  %s20_s18 = sadd.s32 1, %s3148_s13 }
   0x4   : > { %p18_p0 = scmp.eq.s32.totalorder %s17_s17, 0  ;;  %p27_p1 = scmp.ne.s32.totalorder %s3148_s13, %s3144_s12 }
   0x5   : > { %p28_p2 = scmp.eq.s32.totalorder %s3152_s14, 0  ;;  %p2426_p4 = scmp.ge.s32.totalorder %s3152_s14, 2 }
   0x6   : > { %s3201_s19 = scalar_select %p18_p0, %s3148_s13, %s20_s18  }
   0x7   : > { %p29_p3 = por %p28_p2, %p27_p1  ;;  %127 = sbr.rel (%p2426_p4) target bundleno = 50 (0x32), region = 24 }
   0xe   : > { %130 = sbr.rel (!%p29_p3) target bundleno = 50 (0x32), region = 28  ;;  %s132_s20 = sand.u32 (%p29_p3), 1, %s3148_s13  }
   0xf   : > { %s2695_s21 = sshll.u32 (%p29_p3), %s3152_s14, 7  ;;  %s2427_s22 = sshll.u32 (%p29_p3), %s132_s20, 9 }
  0x10   : > { %s3209_s25 = scalar_lea.vmem (%p29_p3), %s3838_s0, %s2695_s21  ;;  %s3214_s26 = scalar_lea.vmem (%p29_p3), [#allocation2], %s2427_s22 }
  0x11   : > { %v153_v0 = vld [vmem:[%s3209_s25] sm:$0xff] (%p29_p3)   ;;  %v157_v1 = vld [vmem:[%s3209_s25 + $0x8] sm:$0xff] (%p29_p3)   ;;  %v161_v2 = vld [vmem:[%s3209_s25 + $0x10] sm:$0xff] (%p29_p3)  }
  0x12   : > { %154 = vst [vmem:[%s3214_s26] sm:$0xff] (%p29_p3), %v153_v0   ;;  %158 = vst [vmem:[%s3214_s26 + $0x8] sm:$0xff] (%p29_p3), %v157_v1   ;;  %v165_v3 = vld [vmem:[%s3209_s25 + $0x18] sm:$0xff] (%p29_p3)   ;;  %v169_v4 = vld [vmem:[%s3209_s25 + $0x20] sm:$0xff] (%p29_p3)  }
  0x13   : > { %162 = vst [vmem:[%s3214_s26 + $0x10] sm:$0xff] (%p29_p3), %v161_v2   ;;  %v173_v5 = vld [vmem:[%s3209_s25 + $0x28] sm:$0xff] (%p29_p3)   ;;  %166 = vst [vmem:[%s3214_s26 + $0x18] sm:$0xff] (%p29_p3), %v165_v3   ;;  %v177_v6 = vld [vmem:[%s3209_s25 + $0x30] sm:$0xff] (%p29_p3)  }
  0x14   : > { %170 = vst [vmem:[%s3214_s26 + $0x20] sm:$0xff] (%p29_p3), %v169_v4   ;;  %174 = vst [vmem:[%s3214_s26 + $0x28] sm:$0xff] (%p29_p3), %v173_v5   ;;  %v181_v7 = vld [vmem:[%s3209_s25 + $0x38] sm:$0xff] (%p29_p3)   ;;  %v185_v8 = vld [vmem:[%s3209_s25 + $0x40] sm:$0xff] (%p29_p3)  }
  0x15   : > { %178 = vst [vmem:[%s3214_s26 + $0x30] sm:$0xff] %v177_v6   ;;  %182 = vst [vmem:[%s3214_s26 + $0x38] sm:$0xff] %v181_v7   ;;  %v189_v9 = vld [vmem:[%s3209_s25 + $0x48] sm:$0xff]   ;;  %v193_v10 = vld [vmem:[%s3209_s25 + $0x50] sm:$0xff]  }
  0x16   : > { %186 = vst [vmem:[%s3214_s26 + $0x40] sm:$0xff] %v185_v8   ;;  %v197_v11 = vld [vmem:[%s3209_s25 + $0x58] sm:$0xff]   ;;  %190 = vst [vmem:[%s3214_s26 + $0x48] sm:$0xff] %v189_v9   ;;  %v201_v12 = vld [vmem:[%s3209_s25 + $0x60] sm:$0xff]  }
  0x17   : > { %194 = vst [vmem:[%s3214_s26 + $0x50] sm:$0xff] %v193_v10   ;;  %198 = vst [vmem:[%s3214_s26 + $0x58] sm:$0xff] %v197_v11   ;;  %v205_v13 = vld [vmem:[%s3209_s25 + $0x68] sm:$0xff]   ;;  %v209_v14 = vld [vmem:[%s3209_s25 + $0x70] sm:$0xff]  }
  0x18   : > { %202 = vst [vmem:[%s3214_s26 + $0x60] sm:$0xff] %v201_v12   ;;  %206 = vst [vmem:[%s3214_s26 + $0x68] sm:$0xff] %v205_v13   ;;  %v213_v15 = vld [vmem:[%s3209_s25 + $0x78] sm:$0xff]   ;;  %v217_v16 = vld [vmem:[%s3209_s25 + $0x100] sm:$0xff]  }
  0x19   : > { %210 = vst [vmem:[%s3214_s26 + $0x70] sm:$0xff] %v209_v14   ;;  %v221_v17 = vld [vmem:[%s3209_s25 + $0x108] sm:$0xff]   ;;  %214 = vst [vmem:[%s3214_s26 + $0x78] sm:$0xff] %v213_v15   ;;  %v225_v18 = vld [vmem:[%s3209_s25 + $0x110] sm:$0xff]  }
  0x1a   : > { %218 = vst [vmem:[%s3214_s26 + $0x80] sm:$0xff] %v217_v16   ;;  %222 = vst [vmem:[%s3214_s26 + $0x88] sm:$0xff] %v221_v17   ;;  %v229_v19 = vld [vmem:[%s3209_s25 + $0x118] sm:$0xff]   ;;  %v233_v20 = vld [vmem:[%s3209_s25 + $0x120] sm:$0xff]  }
  0x1b   : > { %226 = vst [vmem:[%s3214_s26 + $0x90] sm:$0xff] %v225_v18   ;;  %230 = vst [vmem:[%s3214_s26 + $0x98] sm:$0xff] %v229_v19   ;;  %v237_v21 = vld [vmem:[%s3209_s25 + $0x128] sm:$0xff]   ;;  %v241_v22 = vld [vmem:[%s3209_s25 + $0x130] sm:$0xff]  }
  0x1c   : > { %234 = vst [vmem:[%s3214_s26 + $0xa0] sm:$0xff] %v233_v20   ;;  %v245_v23 = vld [vmem:[%s3209_s25 + $0x138] sm:$0xff]   ;;  %238 = vst [vmem:[%s3214_s26 + $0xa8] sm:$0xff] %v237_v21   ;;  %v249_v24 = vld [vmem:[%s3209_s25 + $0x140] sm:$0xff]  }
  0x1d   : > { %242 = vst [vmem:[%s3214_s26 + $0xb0] sm:$0xff] %v241_v22   ;;  %246 = vst [vmem:[%s3214_s26 + $0xb8] sm:$0xff] %v245_v23   ;;  %v253_v25 = vld [vmem:[%s3209_s25 + $0x148] sm:$0xff]   ;;  %v257_v26 = vld [vmem:[%s3209_s25 + $0x150] sm:$0xff]  }
  0x1e   : > { %250 = vst [vmem:[%s3214_s26 + $0xc0] sm:$0xff] %v249_v24   ;;  %254 = vst [vmem:[%s3214_s26 + $0xc8] sm:$0xff] %v253_v25   ;;  %v261_v27 = vld [vmem:[%s3209_s25 + $0x158] sm:$0xff]   ;;  %v265_v28 = vld [vmem:[%s3209_s25 + $0x160] sm:$0xff]  }
  0x1f   : > { %258 = vst [vmem:[%s3214_s26 + $0xd0] sm:$0xff] %v257_v26   ;;  %v269_v29 = vld [vmem:[%s3209_s25 + $0x168] sm:$0xff]   ;;  %262 = vst [vmem:[%s3214_s26 + $0xd8] sm:$0xff] %v261_v27   ;;  %v273_v30 = vld [vmem:[%s3209_s25 + $0x170] sm:$0xff]  }
  0x20   : > { %266 = vst [vmem:[%s3214_s26 + $0xe0] sm:$0xff] %v265_v28   ;;  %270 = vst [vmem:[%s3214_s26 + $0xe8] sm:$0xff] %v269_v29   ;;  %v277_v31 = vld [vmem:[%s3209_s25 + $0x178] sm:$0xff]   ;;  %v281_v32 = vld [vmem:[%s3209_s25 + $0x200] sm:$0xff]  }
  0x21   : > { %274 = vst [vmem:[%s3214_s26 + $0xf0] sm:$0xff] %v273_v30   ;;  %278 = vst [vmem:[%s3214_s26 + $0xf8] sm:$0xff] %v277_v31   ;;  %v285_v33 = vld [vmem:[%s3209_s25 + $0x208] sm:$0xff]   ;;  %v289_v34 = vld [vmem:[%s3209_s25 + $0x210] sm:$0xff]  }
  0x22   : > { %282 = vst [vmem:[%s3214_s26 + $0x100] sm:$0xff] %v281_v32   ;;  %v293_v35 = vld [vmem:[%s3209_s25 + $0x218] sm:$0xff]   ;;  %286 = vst [vmem:[%s3214_s26 + $0x108] sm:$0xff] %v285_v33   ;;  %v297_v36 = vld [vmem:[%s3209_s25 + $0x220] sm:$0xff]  }
  0x23   : > { %290 = vst [vmem:[%s3214_s26 + $0x110] sm:$0xff] %v289_v34   ;;  %294 = vst [vmem:[%s3214_s26 + $0x118] sm:$0xff] %v293_v35   ;;  %v301_v37 = vld [vmem:[%s3209_s25 + $0x228] sm:$0xff]   ;;  %v305_v38 = vld [vmem:[%s3209_s25 + $0x230] sm:$0xff]  }
  0x24   : > { %298 = vst [vmem:[%s3214_s26 + $0x120] sm:$0xff] %v297_v36   ;;  %302 = vst [vmem:[%s3214_s26 + $0x128] sm:$0xff] %v301_v37   ;;  %v309_v39 = vld [vmem:[%s3209_s25 + $0x238] sm:$0xff]   ;;  %v313_v40 = vld [vmem:[%s3209_s25 + $0x240] sm:$0xff]  }
  0x25   : > { %306 = vst [vmem:[%s3214_s26 + $0x130] sm:$0xff] %v305_v38   ;;  %v317_v41 = vld [vmem:[%s3209_s25 + $0x248] sm:$0xff]   ;;  %310 = vst [vmem:[%s3214_s26 + $0x138] sm:$0xff] %v309_v39   ;;  %v321_v42 = vld [vmem:[%s3209_s25 + $0x250] sm:$0xff]  }
  0x26   : > { %314 = vst [vmem:[%s3214_s26 + $0x140] sm:$0xff] %v313_v40   ;;  %318 = vst [vmem:[%s3214_s26 + $0x148] sm:$0xff] %v317_v41   ;;  %v325_v43 = vld [vmem:[%s3209_s25 + $0x258] sm:$0xff]   ;;  %v329_v44 = vld [vmem:[%s3209_s25 + $0x260] sm:$0xff]  }
  0x27   : > { %322 = vst [vmem:[%s3214_s26 + $0x150] sm:$0xff] %v321_v42   ;;  %326 = vst [vmem:[%s3214_s26 + $0x158] sm:$0xff] %v325_v43   ;;  %v333_v45 = vld [vmem:[%s3209_s25 + $0x268] sm:$0xff]   ;;  %v337_v46 = vld [vmem:[%s3209_s25 + $0x270] sm:$0xff]  }
  0x28   : > { %330 = vst [vmem:[%s3214_s26 + $0x160] sm:$0xff] %v329_v44   ;;  %v341_v47 = vld [vmem:[%s3209_s25 + $0x278] sm:$0xff]   ;;  %334 = vst [vmem:[%s3214_s26 + $0x168] sm:$0xff] %v333_v45   ;;  %v345_v48 = vld [vmem:[%s3209_s25 + $0x300] sm:$0xff]  }
  0x29   : > { %338 = vst [vmem:[%s3214_s26 + $0x170] sm:$0xff] %v337_v46   ;;  %342 = vst [vmem:[%s3214_s26 + $0x178] sm:$0xff] %v341_v47   ;;  %v349_v49 = vld [vmem:[%s3209_s25 + $0x308] sm:$0xff]   ;;  %v353_v50 = vld [vmem:[%s3209_s25 + $0x310] sm:$0xff]  }
  0x2a   : > { %346 = vst [vmem:[%s3214_s26 + $0x180] sm:$0xff] %v345_v48   ;;  %350 = vst [vmem:[%s3214_s26 + $0x188] sm:$0xff] %v349_v49   ;;  %v357_v51 = vld [vmem:[%s3209_s25 + $0x318] sm:$0xff]   ;;  %v361_v52 = vld [vmem:[%s3209_s25 + $0x320] sm:$0xff]  }
  0x2b   : > { %354 = vst [vmem:[%s3214_s26 + $0x190] sm:$0xff] %v353_v50   ;;  %v365_v53 = vld [vmem:[%s3209_s25 + $0x328] sm:$0xff]   ;;  %358 = vst [vmem:[%s3214_s26 + $0x198] sm:$0xff] %v357_v51   ;;  %v369_v54 = vld [vmem:[%s3209_s25 + $0x330] sm:$0xff]  }
  0x2c   : > { %362 = vst [vmem:[%s3214_s26 + $0x1a0] sm:$0xff] %v361_v52   ;;  %366 = vst [vmem:[%s3214_s26 + $0x1a8] sm:$0xff] %v365_v53   ;;  %v373_v55 = vld [vmem:[%s3209_s25 + $0x338] sm:$0xff]   ;;  %v377_v56 = vld [vmem:[%s3209_s25 + $0x340] sm:$0xff]  }
  0x2d   : > { %370 = vst [vmem:[%s3214_s26 + $0x1b0] sm:$0xff] %v369_v54   ;;  %374 = vst [vmem:[%s3214_s26 + $0x1b8] sm:$0xff] %v373_v55   ;;  %v381_v57 = vld [vmem:[%s3209_s25 + $0x348] sm:$0xff]   ;;  %v385_v58 = vld [vmem:[%s3209_s25 + $0x350] sm:$0xff]  }
  0x2e   : > { %378 = vst [vmem:[%s3214_s26 + $0x1c0] sm:$0xff] %v377_v56   ;;  %v389_v59 = vld [vmem:[%s3209_s25 + $0x358] sm:$0xff]   ;;  %382 = vst [vmem:[%s3214_s26 + $0x1c8] sm:$0xff] %v381_v57   ;;  %v393_v60 = vld [vmem:[%s3209_s25 + $0x360] sm:$0xff]  }
  0x2f   : > { %386 = vst [vmem:[%s3214_s26 + $0x1d0] sm:$0xff] %v385_v58   ;;  %390 = vst [vmem:[%s3214_s26 + $0x1d8] sm:$0xff] %v389_v59   ;;  %v397_v61 = vld [vmem:[%s3209_s25 + $0x368] sm:$0xff]   ;;  %v401_v62 = vld [vmem:[%s3209_s25 + $0x370] sm:$0xff]  }
  0x30   : > { %394 = vst [vmem:[%s3214_s26 + $0x1e0] sm:$0xff] %v393_v60   ;;  %398 = vst [vmem:[%s3214_s26 + $0x1e8] sm:$0xff] %v397_v61   ;;  %v405_v63 = vld [vmem:[%s3209_s25 + $0x378] sm:$0xff]  }
  0x31   : > { %402 = vst [vmem:[%s3214_s26 + $0x1f0] sm:$0xff] %v401_v62   ;;  %406 = vst [vmem:[%s3214_s26 + $0x1f8] sm:$0xff] %v405_v63  }
  0x32 PF: > { %p2430_p5 = scmp.ge.s32.totalorder %s3152_s14, 1  ;;  %p686_p6 = scmp.lt.s32.totalorder %s3152_s14, 3 }
  0x34   : > { %p687_p7 = pnand %p2430_p5, %p686_p6 }
  0x36   : > { %690 = sbr.rel (%p687_p7) target bundleno = 417 (0x1a1), region = 69 }
  0x3d   : > { %v3064_v0 = vld [vmem:[%s3839_s1] sm:$0xff]   ;;  %vm900_vm0 = vcmask 1043456   ;;  %v3065_v1 = vld [vmem:[%s3839_s1 + $0x8] sm:$0x1f]   ;;  %vm901_vm1 = vcmask 1044480   ;;  %s693_s4 = sand.u32 1, %s3144_s12  }
  0x3e   : > { %2895 = vmatprep.subr.bf16.mxu0 %v3064_v0  ;;  %2931 = vmatprep.subr.bf16.mxu1 %v3064_v0  ;;  %v3154_v2 = vmov 65535   ;;  %s2431_s5 = sshll.u32 %s693_s4, 9  ;;  %vm851_vm2 = vcmask 203776   ;;  %s2432_s7 = sshll.u32 %s2423_s15, 5 }
  0x3f   : > { %2896 = vmatpush3.bf16.msra.mxu0 %v3064_v0  ;;  %2932 = vmatpush3.bf16.msra.mxu1 %v3064_v0  ;;  %v902_v3 = vsel %vm900_vm0, 4294967295, %v3154_v2  ;;  %s3350_s6 = scalar_lea.vmem [#allocation2], %s2431_s5  ;;  %p718_p8 = scmp.lt.s32.totalorder %s2432_s7, 63 }
  0x40   : > { %v903_v4 = vsel %vm901_vm1, %v902_v3, 0  ;;  %v3066_v6 = vld [vmem:[%s3350_s6] sm:$0xff]   ;;  %v3068_v8 = vld [vmem:[%s3350_s6 + $0x8] sm:$0xff]   ;;  %v3070_v10 = vld [vmem:[%s3350_s6 + $0x10] sm:$0xff]  }
  0x41   : > { %v905_v5 = vand.u32 %v3065_v1, %v903_v4  ;;  %v3067_v7 = vld [vmem:[%s3350_s6 + $0x80] sm:$0xff]   ;;  %v3069_v9 = vld [vmem:[%s3350_s6 + $0x88] sm:$0xff]   ;;  %2899 = vmatprep.mubr.msk.bf16.mxu0 %vm851_vm2, %v3066_v6  ;;  %v3071_v11 = vld [vmem:[%s3350_s6 + $0x90] sm:$0xff]   ;;  %s3929_s7 = smov (!%p718_p8, %s2432_s7), 63 }
  0x42   : > { %2935 = vmatprep.mubr.msk.bf16.mxu1 %vm851_vm2, %v3067_v7  ;;  %v3072_v12 = vld [vmem:[%s3350_s6 + $0x18] sm:$0xff]   ;;  %v3074_v14 = vld [vmem:[%s3350_s6 + $0x20] sm:$0xff]   ;;  %v3076_v16 = vld [vmem:[%s3350_s6 + $0x28] sm:$0xff]   ;;  %s2433_s10 = sshll.u32 %s3929_s7, 2 }
  0x43   : > { %2897 = vmatprep.subr.bf16.mxu0 %v905_v5  ;;  %2933 = vmatprep.subr.bf16.mxu1 %v905_v5  ;;  %v3073_v13 = vld [vmem:[%s3350_s6 + $0x98] sm:$0xff]   ;;  %v3075_v15 = vld [vmem:[%s3350_s6 + $0xa0] sm:$0xff]   ;;  %v3077_v17 = vld [vmem:[%s3350_s6 + $0xa8] sm:$0xff]   ;;  %s3701_s14 = scalar_lea.vmem %s3841_s3, %s2433_s10 }
  0x44   : > { %2898 = vmatpush3.bf16.msra.mxu0 %v905_v5  ;;  %2934 = vmatpush3.bf16.msra.mxu1 %v905_v5  ;;  %v3078_v18 = vld [vmem:[%s3350_s6 + $0x30] sm:$0xff]   ;;  %v3080_v20 = vld [vmem:[%s3350_s6 + $0x38] sm:$0xff]   ;;  %v3082_v22 = vld [vmem:[%s3350_s6 + $0x40] sm:$0xff]  }
  0x45   : > { %2967 = vmatprep.subr.bf16.mxu0 %v3064_v0  ;;  %3003 = vmatprep.subr.bf16.mxu1 %v3064_v0  ;;  %v3079_v19 = vld [vmem:[%s3350_s6 + $0xb0] sm:$0xff]   ;;  %v3081_v21 = vld [vmem:[%s3350_s6 + $0xb8] sm:$0xff]   ;;  %v3083_v23 = vld [vmem:[%s3350_s6 + $0xc0] sm:$0xff]  }
  0x46   : > { %v3084_v24 = vld [vmem:[%s3350_s6 + $0x48] sm:$0xff]   ;;  %v3086_v26 = vld [vmem:[%s3350_s6 + $0x50] sm:$0xff]   ;;  %v3088_v28 = vld [vmem:[%s3350_s6 + $0x58] sm:$0xff]  }
  0x47   : > { %2900 = vmatmul.mubr.msk.bf16.vlgmr.msra.gmra.mrb[0].mxu0 %vm851_vm2, %v3068_v8  ;;  %2936 = vmatmul.mubr.msk.bf16.vlgmr.msra.gmra.mrb[0].mxu1 %vm851_vm2, %v3069_v9  ;;  %v3085_v25 = vld [vmem:[%s3350_s6 + $0xc8] sm:$0xff]   ;;  %v3087_v27 = vld [vmem:[%s3350_s6 + $0xd0] sm:$0xff]   ;;  %v3089_v29 = vld [vmem:[%s3350_s6 + $0xd8] sm:$0xff]  }
  0x48   : > { %2968 = vmatpush3.bf16.msra.mxu0 %v3064_v0  ;;  %3004 = vmatpush3.bf16.msra.mxu1 %v3064_v0  ;;  %v3090_v30 = vld [vmem:[%s3350_s6 + $0x60] sm:$0xff]   ;;  %v3092_v32 = vld [vmem:[%s3350_s6 + $0x68] sm:$0xff]   ;;  %v3094_v34 = vld [vmem:[%s3350_s6 + $0x70] sm:$0xff]  }
  0x49   : > { %2903 = vmatprep.mubr.msk.bf16.mxu0 %vm851_vm2, %v3070_v10  ;;  %2939 = vmatprep.mubr.msk.bf16.mxu1 %vm851_vm2, %v3071_v11  ;;  %v3091_v31 = vld [vmem:[%s3350_s6 + $0xe0] sm:$0xff]   ;;  %v3093_v33 = vld [vmem:[%s3350_s6 + $0xe8] sm:$0xff]   ;;  %v3095_v35 = vld [vmem:[%s3350_s6 + $0xf0] sm:$0xff]  }
  0x4a   : > { %2969 = vmatprep.subr.bf16.mxu0 %v905_v5  ;;  %3005 = vmatprep.subr.bf16.mxu1 %v905_v5  ;;  %v3096_v36 = vld [vmem:[%s3350_s6 + $0x78] sm:$0xff]   ;;  %v3098_v38 = vld [vmem:[%s3350_s6 + $0x100] sm:$0xff]   ;;  %v3100_v40 = vld [vmem:[%s3350_s6 + $0x108] sm:$0xff]  }
  0x4b   : > { %v3097_v37 = vld [vmem:[%s3350_s6 + $0xf8] sm:$0xff]   ;;  %v3099_v39 = vld [vmem:[%s3350_s6 + $0x180] sm:$0xff]   ;;  %v3101_v41 = vld [vmem:[%s3350_s6 + $0x188] sm:$0xff]  }
  0x4c   : > { %2970 = vmatpush3.bf16.msra.mxu0 %v905_v5  ;;  %3006 = vmatpush3.bf16.msra.mxu1 %v905_v5  ;;  %v3102_v42 = vld [vmem:[%s3350_s6 + $0x110] sm:$0xff]   ;;  %v3104_v44 = vld [vmem:[%s3350_s6 + $0x118] sm:$0xff]   ;;  %v3106_v46 = vld [vmem:[%s3350_s6 + $0x120] sm:$0xff]  }
  0x4d   : > { %v3103_v43 = vld [vmem:[%s3350_s6 + $0x190] sm:$0xff]   ;;  %v3105_v45 = vld [vmem:[%s3350_s6 + $0x198] sm:$0xff]   ;;  %v3107_v47 = vld [vmem:[%s3350_s6 + $0x1a0] sm:$0xff]  }
  0x4e   : > { %v3108_v48 = vld [vmem:[%s3350_s6 + $0x128] sm:$0xff]   ;;  %v3110_v50 = vld [vmem:[%s3350_s6 + $0x130] sm:$0xff]   ;;  %v3112_v52 = vld [vmem:[%s3350_s6 + $0x138] sm:$0xff]  }
  0x4f   : > { %2904 = vmatmul.mubr.msk.bf16.gmra.mrb[4].mxu0 %vm851_vm2, %v3072_v12  ;;  %2940 = vmatmul.mubr.msk.bf16.gmra.mrb[4].mxu1 %vm851_vm2, %v3073_v13  ;;  %v3109_v49 = vld [vmem:[%s3350_s6 + $0x1a8] sm:$0xff]   ;;  %v3111_v51 = vld [vmem:[%s3350_s6 + $0x1b0] sm:$0xff]   ;;  %v3113_v53 = vld [vmem:[%s3350_s6 + $0x1b8] sm:$0xff]  }
  0x50   : > { %2907 = vmatprep.mubr.msk.bf16.mxu0 %vm851_vm2, %v3074_v14  ;;  %2943 = vmatprep.mubr.msk.bf16.mxu1 %vm851_vm2, %v3075_v15  ;;  %v3114_v54 = vld [vmem:[%s3350_s6 + $0x140] sm:$0xff]   ;;  %v3116_v56 = vld [vmem:[%s3350_s6 + $0x148] sm:$0xff]   ;;  %v3118_v58 = vld [vmem:[%s3350_s6 + $0x150] sm:$0xff]  }
  0x51   : > { %v3115_v55 = vld [vmem:[%s3350_s6 + $0x1c0] sm:$0xff]   ;;  %v3117_v57 = vld [vmem:[%s3350_s6 + $0x1c8] sm:$0xff]   ;;  %v3119_v59 = vld [vmem:[%s3350_s6 + $0x1d0] sm:$0xff]  }
  0x52   : > { %v3120_v60 = vld [vmem:[%s3350_s6 + $0x158] sm:$0xff]   ;;  %v3122_v62 = vld [vmem:[%s3350_s6 + $0x160] sm:$0xff]   ;;  %v3124_v0 = vld [vmem:[%s3350_s6 + $0x168] sm:$0xff]  }
  0x53   : > { %v3121_v61 = vld [vmem:[%s3350_s6 + $0x1d8] sm:$0xff]   ;;  %v3123_v63 = vld [vmem:[%s3350_s6 + $0x1e0] sm:$0xff]   ;;  %v3125_v1 = vld [vmem:[%s3350_s6 + $0x1e8] sm:$0xff]  }
  0x54   : > { %v3126_v2 = vld [vmem:[%s3350_s6 + $0x170] sm:$0xff]   ;;  %v3128_v4 = vld [vmem:[%s3350_s6 + $0x178] sm:$0xff]  }
  0x55   : > { %v3127_v3 = vld [vmem:[%s3350_s6 + $0x1f0] sm:$0xff]   ;;  %v3129_v5 = vld [vmem:[%s3350_s6 + $0x1f8] sm:$0xff]  }
  0x57   : > { %2908 = vmatmul.mubr.msk.bf16.gmra.mrb[8].mxu0 %vm851_vm2, %v3076_v16  ;;  %2944 = vmatmul.mubr.msk.bf16.gmra.mrb[8].mxu1 %vm851_vm2, %v3077_v17 }
  0x58   : > { %2911 = vmatprep.mubr.msk.bf16.mxu0 %vm851_vm2, %v3078_v18  ;;  %2947 = vmatprep.mubr.msk.bf16.mxu1 %vm851_vm2, %v3079_v19 }
  0x5f   : > { %2912 = vmatmul.mubr.msk.bf16.gmra.mrb[12].mxu0 %vm851_vm2, %v3080_v20  ;;  %2948 = vmatmul.mubr.msk.bf16.gmra.mrb[12].mxu1 %vm851_vm2, %v3081_v21 }
  0x60   : > { %2915 = vmatprep.mubr.msk.bf16.mxu0 %vm851_vm2, %v3082_v22  ;;  %2951 = vmatprep.mubr.msk.bf16.mxu1 %vm851_vm2, %v3083_v23 }
  0x67   : > { %2916 = vmatmul.mubr.msk.bf16.gmra.mrb[16].mxu0 %vm851_vm2, %v3084_v24  ;;  %2952 = vmatmul.mubr.msk.bf16.gmra.mrb[16].mxu1 %vm851_vm2, %v3085_v25 }
  0x68   : > { %2919 = vmatprep.mubr.msk.bf16.mxu0 %vm851_vm2, %v3086_v26  ;;  %2955 = vmatprep.mubr.msk.bf16.mxu1 %vm851_vm2, %v3087_v27 }
  0x6f   : > { %2920 = vmatmul.mubr.msk.bf16.gmra.mrb[20].mxu0 %vm851_vm2, %v3088_v28  ;;  %2956 = vmatmul.mubr.msk.bf16.gmra.mrb[20].mxu1 %vm851_vm2, %v3089_v29 }
  0x70   : > { %2923 = vmatprep.mubr.msk.bf16.mxu0 %vm851_vm2, %v3090_v30  ;;  %2959 = vmatprep.mubr.msk.bf16.mxu1 %vm851_vm2, %v3091_v31 }
  0x77   : > { %2924 = vmatmul.mubr.msk.bf16.gmra.mrb[24].mxu0 %vm851_vm2, %v3092_v32  ;;  %2960 = vmatmul.mubr.msk.bf16.gmra.mrb[24].mxu1 %vm851_vm2, %v3093_v33 }
  0x78   : > { %2927 = vmatprep.mubr.msk.bf16.mxu0 %vm851_vm2, %v3094_v34  ;;  %2963 = vmatprep.mubr.msk.bf16.mxu1 %vm851_vm2, %v3095_v35 }
  0x7f   : > { %2928 = vmatmul.mubr.msk.bf16.gmra.mrb[28].mxu0 %vm851_vm2, %v3096_v36  ;;  %2964 = vmatmul.mubr.msk.bf16.gmra.mrb[28].mxu1 %vm851_vm2, %v3097_v37 }
  0x80   : > { %2971 = vmatprep.mubr.msk.bf16.mxu0 %vm851_vm2, %v3098_v38  ;;  %3007 = vmatprep.mubr.msk.bf16.mxu1 %vm851_vm2, %v3099_v39 }
  0x87   : > { %2972 = vmatmul.mubr.msk.bf16.vlgmr.msra.gmra.mrb[32].mxu0 %vm851_vm2, %v3100_v40  ;;  %3008 = vmatmul.mubr.msk.bf16.vlgmr.msra.gmra.mrb[32].mxu1 %vm851_vm2, %v3101_v41 }
  0x88   : > { %2975 = vmatprep.mubr.msk.bf16.mxu0 %vm851_vm2, %v3102_v42  ;;  %3011 = vmatprep.mubr.msk.bf16.mxu1 %vm851_vm2, %v3103_v43 }
  0x8f   : > { %2976 = vmatmul.mubr.msk.bf16.gmra.mrb[36].mxu0 %vm851_vm2, %v3104_v44  ;;  %3012 = vmatmul.mubr.msk.bf16.gmra.mrb[36].mxu1 %vm851_vm2, %v3105_v45 }
  0x90   : > { %2979 = vmatprep.mubr.msk.bf16.mxu0 %vm851_vm2, %v3106_v46  ;;  %3015 = vmatprep.mubr.msk.bf16.mxu1 %vm851_vm2, %v3107_v47 }
  0x97   : > { %2980 = vmatmul.mubr.msk.bf16.gmra.mrb[40].mxu0 %vm851_vm2, %v3108_v48  ;;  %3016 = vmatmul.mubr.msk.bf16.gmra.mrb[40].mxu1 %vm851_vm2, %v3109_v49 }
  0x98   : > { %2983 = vmatprep.mubr.msk.bf16.mxu0 %vm851_vm2, %v3110_v50  ;;  %3019 = vmatprep.mubr.msk.bf16.mxu1 %vm851_vm2, %v3111_v51 }
  0x9f   : > { %2984 = vmatmul.mubr.msk.bf16.gmra.mrb[44].mxu0 %vm851_vm2, %v3112_v52  ;;  %3020 = vmatmul.mubr.msk.bf16.gmra.mrb[44].mxu1 %vm851_vm2, %v3113_v53 }
  0xa0   : > { %2987 = vmatprep.mubr.msk.bf16.mxu0 %vm851_vm2, %v3114_v54  ;;  %3023 = vmatprep.mubr.msk.bf16.mxu1 %vm851_vm2, %v3115_v55 }
  0xa7   : > { %2988 = vmatmul.mubr.msk.bf16.gmra.mrb[48].mxu0 %vm851_vm2, %v3116_v56  ;;  %3024 = vmatmul.mubr.msk.bf16.gmra.mrb[48].mxu1 %vm851_vm2, %v3117_v57 }
  0xa8   : > { %2991 = vmatprep.mubr.msk.bf16.mxu0 %vm851_vm2, %v3118_v58  ;;  %3027 = vmatprep.mubr.msk.bf16.mxu1 %vm851_vm2, %v3119_v59 }
  0xaf   : > { %2992 = vmatmul.mubr.msk.bf16.gmra.mrb[52].mxu0 %vm851_vm2, %v3120_v60  ;;  %3028 = vmatmul.mubr.msk.bf16.gmra.mrb[52].mxu1 %vm851_vm2, %v3121_v61 }
  0xb0   : > { %2995 = vmatprep.mubr.msk.bf16.mxu0 %vm851_vm2, %v3122_v62  ;;  %3031 = vmatprep.mubr.msk.bf16.mxu1 %vm851_vm2, %v3123_v63  ;;  %v3680_v62 = vld [vmem:[%s3840_s2] ss:$0 sm:$0xff] }
  0xb7   : > { %2996 = vmatmul.mubr.msk.bf16.gmra.mrb[56].mxu0 %vm851_vm2, %v3124_v0  ;;  %3032 = vmatmul.mubr.msk.bf16.gmra.mrb[56].mxu1 %vm851_vm2, %v3125_v1 }
  0xb8   : > { %2999 = vmatprep.mubr.msk.bf16.mxu0 %vm851_vm2, %v3126_v2  ;;  %3035 = vmatprep.mubr.msk.bf16.mxu1 %vm851_vm2, %v3127_v3 }
  0xbf   : > { %3000 = vmatmul.mubr.msk.bf16.gmra.mrb[60].mxu0 %vm851_vm2, %v3128_v4  ;;  %3036 = vmatmul.mubr.msk.bf16.gmra.mrb[60].mxu1 %vm851_vm2, %v3129_v5 }
 0x11a   : > { %v3480_v6 = vpop.f32.mrb[0].mxu0  ;;  %v3482_v7 = vpop.f32.mrb[0].mxu1 }
 0x11b   : > { %v3486_v9 = vpop.f32.mrb[1].mxu0  ;;  %v3488_v10 = vpop.f32.mrb[1].mxu1  ;;  %v3876_v4 = vmax.f32 %v3480_v6, %v3482_v7 }
 0x11c   : > { %v3492_v12 = vpop.f32.mrb[2].mxu0  ;;  %v3494_v13 = vpop.f32.mrb[2].mxu1 }
 0x11d   : > { %v3498_v15 = vpop.f32.mrb[3].mxu0  ;;  %v3500_v16 = vpop.f32.mrb[3].mxu1 }
 0x122   : > { %v3504_v18 = vpop.f32.mrb[4].mxu0  ;;  %v3506_v19 = vpop.f32.mrb[4].mxu1 }
 0x123   : > { %v3510_v21 = vpop.f32.mrb[5].mxu0  ;;  %v3512_v22 = vpop.f32.mrb[5].mxu1 }
 0x124   : > { %v3516_v24 = vpop.f32.mrb[6].mxu0  ;;  %v3518_v25 = vpop.f32.mrb[6].mxu1 }
 0x125   : > { %v3522_v27 = vpop.f32.mrb[7].mxu0  ;;  %v3524_v28 = vpop.f32.mrb[7].mxu1 }
 0x12a   : > { %v3528_v30 = vpop.f32.mrb[8].mxu0  ;;  %v3530_v31 = vpop.f32.mrb[8].mxu1 }
 0x12b   : > { %v3534_v33 = vpop.f32.mrb[9].mxu0  ;;  %v3536_v34 = vpop.f32.mrb[9].mxu1 }
 0x12c   : > { %v3540_v36 = vpop.f32.mrb[10].mxu0  ;;  %v3542_v37 = vpop.f32.mrb[10].mxu1 }
 0x12d   : > { %v3546_v39 = vpop.f32.mrb[11].mxu0  ;;  %v3548_v40 = vpop.f32.mrb[11].mxu1 }
 0x132   : > { %v3552_v42 = vpop.f32.mrb[12].mxu0  ;;  %v3554_v43 = vpop.f32.mrb[12].mxu1 }
 0x133   : > { %v3558_v45 = vpop.f32.mrb[13].mxu0  ;;  %v3560_v46 = vpop.f32.mrb[13].mxu1 }
 0x134   : > { %v3564_v48 = vpop.f32.mrb[14].mxu0  ;;  %v3566_v49 = vpop.f32.mrb[14].mxu1 }
 0x135   : > { %v3570_v51 = vpop.f32.mrb[15].mxu0  ;;  %v3572_v52 = vpop.f32.mrb[15].mxu1 }
 0x13a   : > { %v3576_v54 = vpop.f32.mrb[16].mxu0  ;;  %v3578_v55 = vpop.f32.mrb[16].mxu1 }
 0x13b   : > { %v3582_v57 = vpop.f32.mrb[17].mxu0  ;;  %v3584_v58 = vpop.f32.mrb[17].mxu1 }
 0x13c   : > { %v3588_v60 = vpop.f32.mrb[18].mxu0  ;;  %v3590_v61 = vpop.f32.mrb[18].mxu1 }
 0x13d   : > { %v3594_v63 = vpop.f32.mrb[19].mxu0  ;;  %v3596_v0 = vpop.f32.mrb[19].mxu1 }
 0x142   : > { %v3600_v2 = vpop.f32.mrb[20].mxu0  ;;  %v3602_v3 = vpop.f32.mrb[20].mxu1 }
 0x143   : > { %v3606_v5 = vpop.f32.mrb[21].mxu0  ;;  %v3608_v59 = vpop.f32.mrb[21].mxu1 }
 0x144   : > { %v3612_v56 = vpop.f32.mrb[22].mxu0  ;;  %v3614_v53 = vpop.f32.mrb[22].mxu1 }
 0x145   : > { %v3618_v50 = vpop.f32.mrb[23].mxu0  ;;  %v3620_v47 = vpop.f32.mrb[23].mxu1 }
 0x146   : > { %3859 = vst [vmem:[#allocation3_spill] sm:$0xff] %v3620_v47 }
 0x14a   : > { %v3624_v44 = vpop.f32.mrb[24].mxu0  ;;  %v3626_v41 = vpop.f32.mrb[24].mxu1 }
 0x14b   : > { %3860 = vst [vmem:[#allocation4_spill] sm:$0xff] %v3624_v44  ;;  %3861 = vst [vmem:[#allocation5_spill] sm:$0xff] %v3626_v41  ;;  %v3630_v38 = vpop.f32.mrb[25].mxu0  ;;  %v3632_v35 = vpop.f32.mrb[25].mxu1 }
 0x14c   : > { %3862 = vst [vmem:[#allocation6_spill] sm:$0xff] %v3630_v38  ;;  %3863 = vst [vmem:[#allocation7_spill] sm:$0xff] %v3632_v35  ;;  %v3636_v32 = vpop.f32.mrb[26].mxu0  ;;  %v3638_v29 = vpop.f32.mrb[26].mxu1  ;;  %v3878_v35 = vmax.f32 %v3492_v12, %v3494_v13 }
 0x14d   : > { %3864 = vst [vmem:[#allocation8_spill] sm:$0xff] %v3636_v32  ;;  %3865 = vst [vmem:[#allocation9_spill] sm:$0xff] %v3638_v29  ;;  %v3642_v26 = vpop.f32.mrb[27].mxu0  ;;  %v3644_v23 = vpop.f32.mrb[27].mxu1 }
 0x14e   : > { %3866 = vst [vmem:[#allocation10_spill] sm:$0xff] %v3642_v26  ;;  %3867 = vst [vmem:[#allocation11_spill] sm:$0xff] %v3644_v23 }
 0x152   : > { %v3648_v20 = vpop.f32.mrb[28].mxu0  ;;  %v3650_v17 = vpop.f32.mrb[28].mxu1 }
 0x153   : > { %3868 = vst [vmem:[#allocation12_spill] sm:$0xff] %v3648_v20  ;;  %3869 = vst [vmem:[#allocation13_spill] sm:$0xff] %v3650_v17  ;;  %v3654_v14 = vpop.f32.mrb[29].mxu0  ;;  %v3656_v11 = vpop.f32.mrb[29].mxu1 }
 0x154   : > { %3870 = vst [vmem:[#allocation14_spill] sm:$0xff] %v3654_v14  ;;  %3871 = vst [vmem:[#allocation15_spill] sm:$0xff] %v3656_v11  ;;  %v3660_v8 = vpop.f32.mrb[30].mxu0  ;;  %v3662_v29 = vpop.f32.mrb[30].mxu1 }
 0x155   : > { %3872 = vst [vmem:[#allocation16_spill] sm:$0xff] %v3660_v8  ;;  %3873 = vst [vmem:[#allocation17_spill] sm:$0xff] %v3662_v29  ;;  %v3666_v23 = vpop.f32.mrb[31].mxu0  ;;  %v3668_v26 = vpop.f32.mrb[31].mxu1  ;;  %v3877_v29 = vmax.f32 %v3486_v9, %v3488_v10 }
 0x156   : > { %3874 = vst [vmem:[#allocation18_spill] sm:$0xff] %v3666_v23  ;;  %3875 = vst [vmem:[#allocation19_spill] sm:$0xff] %v3668_v26 }
 0x15a   : > { %v2973_v17 = vpop.f32.mrb[32].mxu0  ;;  %v3009_v20 = vpop.f32.mrb[32].mxu1 }
 0x15b   : > { %v1746_v11 = vmax.f32 %v3876_v4, %v2973_v17  ;;  %v1617_v14 = vpop.f32.mrb[33].mxu0  ;;  %v1971_v32 = vpop.f32.mrb[33].mxu1  ;;  %v3879_v4 = vmax.f32 %v3498_v15, %v3500_v16 }
 0x15c   : > { %v1744_v1 = vmax.f32 %v3877_v29, %v1617_v14  ;;  %v2974_v26 = vpop.f32.mrb[34].mxu0  ;;  %v3010_v23 = vpop.f32.mrb[34].mxu1  ;;  %v3880_v29 = vmax.f32 %v3504_v18, %v3506_v19  ;;  %v3882_v19 = vmax.f32 %v3516_v24, %v3518_v25 }
 0x15d   : > { %v2100_v8 = vmax.f32 %v1746_v11, %v3009_v20  ;;  %v1747_v38 = vmax.f32 %v3878_v35, %v2974_v26  ;;  %v1620_v6 = vpop.f32.mrb[35].mxu0  ;;  %v1974_v7 = vpop.f32.mrb[35].mxu1  ;;  %v3881_v35 = vmax.f32 %v3510_v21, %v3512_v22 }
 0x15e   : > { %v2098_v17 = vmax.f32 %v1744_v1, %v1971_v32  ;;  %v1745_v41 = vmax.f32 %v3879_v4, %v1620_v6 }
 0x15f   : > { %v2139_v44 = vadd.f32 %v3680_v62, %v2100_v8  ;;  %v2101_v47 = vmax.f32 %v1747_v38, %v3010_v23 }
 0x160   : > { %v2137_v9 = vadd.f32 %v3680_v62, %v2098_v17  ;;  %v2099_v10 = vmax.f32 %v1745_v41, %v1974_v7 }
 0x161   : > { %v2140_v11 = vadd.f32 %v3680_v62, %v2101_v47  ;;  %v2171_v20 = vmax.f32 %v2139_v44, 0.0 }
 0x162   : > { %v2138_v12 = vadd.f32 %v3680_v62, %v2099_v10  ;;  %v2977_v13 = vpop.f32.mrb[36].mxu0  ;;  %v3013_v14 = vpop.f32.mrb[36].mxu1  ;;  %v2169_v8 = vmax.f32 %v2137_v9, 0.0  ;;  %v3883_v9 = vmax.f32 %v3522_v27, %v3524_v28  ;;  %v3884_v27 = vmax.f32 %v3528_v30, %v3530_v31 }
 0x163   : > { %v2172_v26 = vmax.f32 %v2140_v11, 0.0  ;;  %v1750_v15 = vmax.f32 %v3880_v29, %v2977_v13  ;;  %v1633_v16 = vpop.f32.mrb[37].mxu0  ;;  %v1987_v32 = vpop.f32.mrb[37].mxu1 }
 0x164   : > { %v2170_v23 = vmax.f32 %v2138_v12, 0.0  ;;  %v1748_v38 = vmax.f32 %v3881_v35, %v1633_v16  ;;  %v2978_v41 = vpop.f32.mrb[38].mxu0  ;;  %v3014_v44 = vpop.f32.mrb[38].mxu1 }
 0x165   : > { %v2736_v47 = vpack.c.bf16 %v2172_v26, %v2171_v20  ;;  %v2104_v18 = vmax.f32 %v1750_v15, %v3013_v14  ;;  %v1751_v1 = vmax.f32 %v3882_v19, %v2978_v41  ;;  %v1636_v6 = vpop.f32.mrb[39].mxu0  ;;  %v1990_v7 = vpop.f32.mrb[39].mxu1 }
 0x166   : > { %v2731_v17 = vpack.c.bf16 %v2170_v23, %v2169_v8  ;;  %v2102_v4 = vmax.f32 %v1748_v38, %v1987_v32  ;;  %v1749_v10 = vmax.f32 %v3883_v9, %v1636_v6  ;;  %v3885_v8 = vmax.f32 %v3534_v33, %v3536_v34 }
 0x167   : > { %2808 = vst [vmem:[%s3701_s14 + $0x8] sm:$0xff] %v2736_v47   ;;  %v2143_v21 = vadd.f32 %v3680_v62, %v2104_v18  ;;  %v2105_v22 = vmax.f32 %v1751_v1, %v3014_v44  ;;  %v3886_v47 = vmax.f32 %v3540_v36, %v3542_v37  ;;  %v3887_v6 = vmax.f32 %v3546_v39, %v3548_v40 }
 0x168   : > { %2732 = vst [vmem:[%s3701_s14] sm:$0xff] %v2731_v17   ;;  %v2141_v11 = vadd.f32 %v3680_v62, %v2102_v4  ;;  %v2103_v12 = vmax.f32 %v1749_v10, %v1990_v7  ;;  %v3888_v39 = vmax.f32 %v3552_v42, %v3554_v43 }
 0x169   : > { %v2144_v13 = vadd.f32 %v3680_v62, %v2105_v22  ;;  %v2175_v20 = vmax.f32 %v2143_v21, 0.0 }
 0x16a   : > { %v2142_v24 = vadd.f32 %v3680_v62, %v2103_v12  ;;  %v2981_v25 = vpop.f32.mrb[40].mxu0  ;;  %v3017_v14 = vpop.f32.mrb[40].mxu1  ;;  %v2173_v16 = vmax.f32 %v2141_v11, 0.0 }
 0x16b   : > { %v2176_v26 = vmax.f32 %v2144_v13, 0.0  ;;  %v1754_v28 = vmax.f32 %v3884_v27, %v2981_v25  ;;  %v1649_v29 = vpop.f32.mrb[41].mxu0  ;;  %v2003_v15 = vpop.f32.mrb[41].mxu1  ;;  %v3889_v25 = vmax.f32 %v3558_v45, %v3560_v46 }
 0x16c   : > { %v2174_v32 = vmax.f32 %v2142_v24, 0.0  ;;  %v1752_v23 = vmax.f32 %v3885_v8, %v1649_v29  ;;  %v2982_v35 = vpop.f32.mrb[42].mxu0  ;;  %v3018_v38 = vpop.f32.mrb[42].mxu1  ;;  %v3890_v29 = vmax.f32 %v3564_v48, %v3566_v49  ;;  %v3891_v8 = vmax.f32 %v3570_v51, %v3572_v52 }
 0x16d   : > { %v2746_v41 = vpack.c.bf16 %v2176_v26, %v2175_v20  ;;  %v2108_v44 = vmax.f32 %v1754_v28, %v3017_v14  ;;  %v1755_v18 = vmax.f32 %v3886_v47, %v2982_v35  ;;  %v1652_v30 = vpop.f32.mrb[43].mxu0  ;;  %v2006_v31 = vpop.f32.mrb[43].mxu1  ;;  %v3892_v51 = vmax.f32 %v3576_v54, %v3578_v55 }
 0x16e   : > { %v2741_v19 = vpack.c.bf16 %v2174_v32, %v2173_v16  ;;  %v2106_v1 = vmax.f32 %v1752_v23, %v2003_v15  ;;  %v1753_v7 = vmax.f32 %v3887_v6, %v1652_v30  ;;  %v3893_v6 = vmax.f32 %v3582_v57, %v3584_v58 }
 0x16f   : > { %2810 = vst [vmem:[%s3701_s14 + $0x18] sm:$0xff] %v2746_v41   ;;  %v2147_v33 = vadd.f32 %v3680_v62, %v2108_v44  ;;  %v2109_v34 = vmax.f32 %v1755_v18, %v3018_v38 }
 0x170   : > { %2809 = vst [vmem:[%s3701_s14 + $0x10] sm:$0xff] %v2741_v19   ;;  %v2145_v17 = vadd.f32 %v3680_v62, %v2106_v1  ;;  %v2107_v4 = vmax.f32 %v1753_v7, %v2006_v31 }
 0x171   : > { %v2148_v9 = vadd.f32 %v3680_v62, %v2109_v34  ;;  %v2179_v21 = vmax.f32 %v2147_v33, 0.0 }
 0x172   : > { %v2146_v36 = vadd.f32 %v3680_v62, %v2107_v4  ;;  %v2985_v37 = vpop.f32.mrb[44].mxu0  ;;  %v3021_v10 = vpop.f32.mrb[44].mxu1  ;;  %v2177_v13 = vmax.f32 %v2145_v17, 0.0 }
 0x173   : > { %v2180_v22 = vmax.f32 %v2148_v9, 0.0  ;;  %v1758_v40 = vmax.f32 %v3888_v39, %v2985_v37  ;;  %v1665_v11 = vpop.f32.mrb[45].mxu0  ;;  %v2019_v12 = vpop.f32.mrb[45].mxu1  ;;  %v3894_v9 = vmax.f32 %v3588_v60, %v3590_v61 }
 0x174   : > { %v2178_v24 = vmax.f32 %v2146_v36, 0.0  ;;  %v1756_v14 = vmax.f32 %v3889_v25, %v1665_v11  ;;  %v2986_v20 = vpop.f32.mrb[46].mxu0  ;;  %v3022_v26 = vpop.f32.mrb[46].mxu1 }
 0x175   : > { %v2756_v27 = vpack.c.bf16 %v2180_v22, %v2179_v21  ;;  %v2112_v28 = vmax.f32 %v1758_v40, %v3021_v10  ;;  %v1759_v15 = vmax.f32 %v3890_v29, %v2986_v20  ;;  %v1668_v42 = vpop.f32.mrb[47].mxu0  ;;  %v2022_v43 = vpop.f32.mrb[47].mxu1  ;;  %v3895_v21 = vmax.f32 %v3594_v63, %v3596_v0 }
 0x176   : > { %v2751_v16 = vpack.c.bf16 %v2178_v24, %v2177_v13  ;;  %v2110_v32 = vmax.f32 %v1756_v14, %v2019_v12  ;;  %v1757_v23 = vmax.f32 %v3891_v8, %v1668_v42  ;;  %v3896_v63 = vmax.f32 %v3600_v2, %v3602_v3 }
 0x177   : > { %2812 = vst [vmem:[%s3701_s14 + $0x28] sm:$0xff] %v2756_v27   ;;  %v2151_v45 = vadd.f32 %v3680_v62, %v2112_v28  ;;  %v2113_v46 = vmax.f32 %v1759_v15, %v3022_v26  ;;  %v3897_v27 = vmax.f32 %v3606_v5, %v3608_v59 }
 0x178   : > { %2811 = vst [vmem:[%s3701_s14 + $0x20] sm:$0xff] %v2751_v16   ;;  %v2149_v35 = vadd.f32 %v3680_v62, %v2110_v32  ;;  %v2111_v38 = vmax.f32 %v1757_v23, %v2022_v43  ;;  %v3898_v16 = vmax.f32 %v3612_v56, %v3614_v53 }
 0x179   : > { %v2152_v41 = vadd.f32 %v3680_v62, %v2113_v46  ;;  %v2183_v47 = vmax.f32 %v2151_v45, 0.0  ;;  %v3899_v45 = vld [vmem:[#allocation3_spill] sm:$0xff] }
 0x17a   : > { %v2150_v48 = vadd.f32 %v3680_v62, %v2111_v38  ;;  %v2989_v49 = vpop.f32.mrb[48].mxu0  ;;  %v3025_v44 = vpop.f32.mrb[48].mxu1  ;;  %v2181_v19 = vmax.f32 %v2149_v35, 0.0  ;;  %v3900_v46 = vmax.f32 %v3618_v50, %v3899_v45 }
 0x17b   : > { %v2184_v18 = vmax.f32 %v2152_v41, 0.0  ;;  %v1762_v52 = vmax.f32 %v3892_v51, %v2989_v49  ;;  %v1681_v30 = vpop.f32.mrb[49].mxu0  ;;  %v2035_v31 = vpop.f32.mrb[49].mxu1  ;;  %v3902_v51 = vld [vmem:[#allocation5_spill] sm:$0xff] }
 0x17c   : > { %v2182_v1 = vmax.f32 %v2150_v48, 0.0  ;;  %v1760_v7 = vmax.f32 %v3893_v6, %v1681_v30  ;;  %v2990_v33 = vpop.f32.mrb[50].mxu0  ;;  %v3026_v34 = vpop.f32.mrb[50].mxu1  ;;  %v3904_v6 = vld [vmem:[#allocation6_spill] sm:$0xff] }
 0x17d   : > { %v2766_v17 = vpack.c.bf16 %v2184_v18, %v2183_v47  ;;  %v2116_v4 = vmax.f32 %v1762_v52, %v3025_v44  ;;  %v1763_v36 = vmax.f32 %v3894_v9, %v2990_v33  ;;  %v1684_v54 = vpop.f32.mrb[51].mxu0  ;;  %v2038_v55 = vpop.f32.mrb[51].mxu1  ;;  %v3901_v18 = vld [vmem:[#allocation4_spill] sm:$0xff] }
 0x17e   : > { %v2761_v37 = vpack.c.bf16 %v2182_v1, %v2181_v19  ;;  %v2114_v10 = vmax.f32 %v1760_v7, %v2035_v31  ;;  %v1761_v22 = vmax.f32 %v3895_v21, %v1684_v54  ;;  %v3903_v50 = vmax.f32 %v3901_v18, %v3902_v51  ;;  %v3905_v7 = vld [vmem:[#allocation7_spill] sm:$0xff]  ;;  %v3907_v54 = vld [vmem:[#allocation8_spill] sm:$0xff] }
 0x17f   : > { %2814 = vst [vmem:[%s3701_s14 + $0x38] sm:$0xff] %v2766_v17   ;;  %v2155_v57 = vadd.f32 %v3680_v62, %v2116_v4  ;;  %v2117_v58 = vmax.f32 %v1763_v36, %v3026_v34  ;;  %v3906_v33 = vmax.f32 %v3904_v6, %v3905_v7  ;;  %v3923_v18 = vld [vmem:[#allocation19_spill] sm:$0xff] }
 0x180   : > { %2813 = vst [vmem:[%s3701_s14 + $0x30] sm:$0xff] %v2761_v37   ;;  %v2153_v39 = vadd.f32 %v3680_v62, %v2114_v10  ;;  %v2115_v40 = vmax.f32 %v1761_v22, %v2038_v55  ;;  %v3908_v55 = vld [vmem:[#allocation9_spill] sm:$0xff] }
 0x181   : > { %v2156_v11 = vadd.f32 %v3680_v62, %v2117_v58  ;;  %v2187_v13 = vmax.f32 %v2155_v57, 0.0  ;;  %v3909_v37 = vmax.f32 %v3907_v54, %v3908_v55 }
 0x182   : > { %v2154_v60 = vadd.f32 %v3680_v62, %v2115_v40  ;;  %v2993_v61 = vpop.f32.mrb[52].mxu0  ;;  %v3029_v12 = vpop.f32.mrb[52].mxu1  ;;  %v2185_v20 = vmax.f32 %v2153_v39, 0.0  ;;  %v3910_v39 = vld [vmem:[#allocation10_spill] sm:$0xff]  ;;  %v3911_v40 = vld [vmem:[#allocation11_spill] sm:$0xff] }
 0x183   : > { %v2188_v24 = vmax.f32 %v2156_v11, 0.0  ;;  %v1766_v0 = vmax.f32 %v3896_v63, %v2993_v61  ;;  %v1697_v25 = vpop.f32.mrb[53].mxu0  ;;  %v2051_v14 = vpop.f32.mrb[53].mxu1  ;;  %v3912_v11 = vmax.f32 %v3910_v39, %v3911_v40 }
 0x184   : > { %v2186_v26 = vmax.f32 %v2154_v60, 0.0  ;;  %v1764_v28 = vmax.f32 %v3897_v27, %v1697_v25  ;;  %v2994_v29 = vpop.f32.mrb[54].mxu0  ;;  %v3030_v15 = vpop.f32.mrb[54].mxu1  ;;  %v3913_v27 = vld [vmem:[#allocation12_spill] sm:$0xff] }
 0x185   : > { %v2776_v42 = vpack.c.bf16 %v2188_v24, %v2187_v13  ;;  %v2120_v43 = vmax.f32 %v1766_v0, %v3029_v12  ;;  %v1767_v32 = vmax.f32 %v3898_v16, %v2994_v29  ;;  %v1700_v2 = vpop.f32.mrb[55].mxu0  ;;  %v2054_v3 = vpop.f32.mrb[55].mxu1 }
 0x186   : > { %v2771_v8 = vpack.c.bf16 %v2186_v26, %v2185_v20  ;;  %v2118_v23 = vmax.f32 %v1764_v28, %v2051_v14  ;;  %v1765_v35 = vmax.f32 %v3900_v46, %v1700_v2  ;;  %v3914_v28 = vld [vmem:[#allocation13_spill] sm:$0xff]  ;;  %v3916_v2 = vld [vmem:[#allocation14_spill] sm:$0xff] }
 0x187   : > { %2816 = vst [vmem:[%s3701_s14 + $0x48] sm:$0xff] %v2776_v42   ;;  %v2159_v59 = vadd.f32 %v3680_v62, %v2120_v43  ;;  %v2121_v5 = vmax.f32 %v1767_v32, %v3030_v15  ;;  %v3915_v29 = vmax.f32 %v3913_v27, %v3914_v28 }
 0x188   : > { %2815 = vst [vmem:[%s3701_s14 + $0x40] sm:$0xff] %v2771_v8   ;;  %v2157_v38 = vadd.f32 %v3680_v62, %v2118_v23  ;;  %v2119_v41 = vmax.f32 %v1765_v35, %v2054_v3  ;;  %v3917_v3 = vld [vmem:[#allocation15_spill] sm:$0xff] }
 0x189   : > { %v2160_v48 = vadd.f32 %v3680_v62, %v2121_v5  ;;  %v2191_v44 = vmax.f32 %v2159_v59, 0.0  ;;  %v3918_v8 = vmax.f32 %v3916_v2, %v3917_v3  ;;  %v3919_v5 = vld [vmem:[#allocation16_spill] sm:$0xff] }
 0x18a   : > { %v2158_v53 = vadd.f32 %v3680_v62, %v2119_v41  ;;  %v2997_v56 = vpop.f32.mrb[56].mxu0  ;;  %v3033_v49 = vpop.f32.mrb[56].mxu1  ;;  %v2189_v19 = vmax.f32 %v2157_v38, 0.0  ;;  %v3920_v38 = vld [vmem:[#allocation17_spill] sm:$0xff] }
 0x18b   : > { %v2192_v47 = vmax.f32 %v2160_v48, 0.0  ;;  %v1770_v52 = vmax.f32 %v3903_v50, %v2997_v56  ;;  %v1713_v30 = vpop.f32.mrb[57].mxu0  ;;  %v2067_v31 = vpop.f32.mrb[57].mxu1  ;;  %v3921_v41 = vmax.f32 %v3919_v5, %v3920_v38 }
 0x18c   : > { %v2190_v1 = vmax.f32 %v2158_v53, 0.0  ;;  %v1768_v34 = vmax.f32 %v3906_v33, %v1713_v30  ;;  %v2998_v17 = vpop.f32.mrb[58].mxu0  ;;  %v3034_v4 = vpop.f32.mrb[58].mxu1 }
 0x18d   : > { %v2786_v9 = vpack.c.bf16 %v2192_v47, %v2191_v44  ;;  %v2124_v36 = vmax.f32 %v1770_v52, %v3033_v49  ;;  %v1771_v10 = vmax.f32 %v3909_v37, %v2998_v17  ;;  %v1716_v21 = vpop.f32.mrb[59].mxu0  ;;  %v2070_v22 = vpop.f32.mrb[59].mxu1  ;;  %v3922_v47 = vld [vmem:[#allocation18_spill] sm:$0xff] }
 0x18e   : > { %v2781_v57 = vpack.c.bf16 %v2190_v1, %v2189_v19  ;;  %v2122_v58 = vmax.f32 %v1768_v34, %v2067_v31  ;;  %v1769_v60 = vmax.f32 %v3912_v11, %v1716_v21  ;;  %v3924_v51 = vmax.f32 %v3922_v47, %v3923_v18 }
 0x18f   : > { %2818 = vst [vmem:[%s3701_s14 + $0x58] sm:$0xff] %v2786_v9   ;;  %v2163_v61 = vadd.f32 %v3680_v62, %v2124_v36  ;;  %v2125_v12 = vmax.f32 %v1771_v10, %v3034_v4 }
 0x190   : > { %2817 = vst [vmem:[%s3701_s14 + $0x50] sm:$0xff] %v2781_v57   ;;  %v2161_v13 = vadd.f32 %v3680_v62, %v2122_v58  ;;  %v2123_v24 = vmax.f32 %v1769_v60, %v2070_v22 }
 0x191   : > { %v2164_v63 = vadd.f32 %v3680_v62, %v2125_v12  ;;  %v2195_v20 = vmax.f32 %v2163_v61, 0.0 }
 0x192   : > { %v2162_v0 = vadd.f32 %v3680_v62, %v2123_v24  ;;  %v3001_v25 = vpop.f32.mrb[60].mxu0  ;;  %v3037_v14 = vpop.f32.mrb[60].mxu1  ;;  %v2193_v16 = vmax.f32 %v2161_v13, 0.0 }
 0x193   : > { %v2196_v26 = vmax.f32 %v2164_v63, 0.0  ;;  %v1774_v15 = vmax.f32 %v3915_v29, %v3001_v25  ;;  %v1729_v42 = vpop.f32.mrb[61].mxu0  ;;  %v2083_v43 = vpop.f32.mrb[61].mxu1 }
 0x194   : > { %v2194_v32 = vmax.f32 %v2162_v0, 0.0  ;;  %v1772_v23 = vmax.f32 %v3918_v8, %v1729_v42  ;;  %v3002_v45 = vpop.f32.mrb[62].mxu0  ;;  %v3038_v46 = vpop.f32.mrb[62].mxu1 }
 0x195   : > { %v2796_v35 = vpack.c.bf16 %v2196_v26, %v2195_v20  ;;  %v2128_v59 = vmax.f32 %v1774_v15, %v3037_v14  ;;  %v1775_v48 = vmax.f32 %v3921_v41, %v3002_v45  ;;  %v1732_v53 = vpop.f32.mrb[63].mxu0  ;;  %v2086_v56 = vpop.f32.mrb[63].mxu1 }
 0x196   : > { %v2791_v49 = vpack.c.bf16 %v2194_v32, %v2193_v16  ;;  %v2126_v44 = vmax.f32 %v1772_v23, %v2083_v43  ;;  %v1773_v50 = vmax.f32 %v3924_v51, %v1732_v53 }
 0x197   : > { %2820 = vst [vmem:[%s3701_s14 + $0x68] sm:$0xff] %v2796_v35   ;;  %v2167_v52 = vadd.f32 %v3680_v62, %v2128_v59  ;;  %v2129_v30 = vmax.f32 %v1775_v48, %v3038_v46 }
 0x198   : > { %2819 = vst [vmem:[%s3701_s14 + $0x60] sm:$0xff] %v2791_v49   ;;  %v2165_v31 = vadd.f32 %v3680_v62, %v2126_v44  ;;  %v2127_v19 = vmax.f32 %v1773_v50, %v2086_v56 }
 0x199   : > { %v2168_v1 = vadd.f32 %v3680_v62, %v2129_v30  ;;  %v2199_v7 = vmax.f32 %v2167_v52, 0.0 }
 0x19a   : > { %v2166_v6 = vadd.f32 %v3680_v62, %v2127_v19  ;;  %v2197_v34 = vmax.f32 %v2165_v31, 0.0 }
 0x19b   : > { %v2200_v33 = vmax.f32 %v2168_v1, 0.0 }
 0x19c   : > { %v2198_v17 = vmax.f32 %v2166_v6, 0.0 }
 0x19d   : > { %v2806_v4 = vpack.c.bf16 %v2200_v33, %v2199_v7 }
 0x19e   : > { %v2801_v9 = vpack.c.bf16 %v2198_v17, %v2197_v34 }
 0x19f   : > { %2822 = vst [vmem:[%s3701_s14 + $0x78] sm:$0xff] %v2806_v4  }
 0x1a0   : > { %2821 = vst [vmem:[%s3701_s14 + $0x70] sm:$0xff] %v2801_v9  }
 0x1a1 PF: > { %p10_p9 = scmp.ge.s32.totalorder %s3192_s16, 4   ;;  %s3925_s12 = smov %s3148_s13 }
 0x1a2   : > { %s3926_s13 = smov %s3201_s19  ;;  %s3927_s14 = smov %s3192_s16 }
 0x1a3   :  { %12 = sbr.rel (!%p10_p9) target bundleno = 2 (0x2), region = 111 }

// kernel: lightnet_forward.4
= control target key start
LH: loop header
LB: loop body
LE: loop exit
PB: predicated region body
PF: predicated region fallthrough
CT: control target
= control target key end

     0   :  { %v6640_v36 = vmov 0.0   ;;  %vm4920_vm0 = vmmov 0   ;;  %vm701_vm1 = vcmask 261120   ;;  %s6636_s1 = inlined_call_operand.vmem [shape: bf16[800,128], index: 1, kind: input, shape index: {}]   ;;  %s6637_s0 = inlined_call_operand.vmem [shape: bf16[4,104,800], index: 0, kind: input, shape index: {}]   ;;  %s6638_s2 = inlined_call_operand.vmem [shape: f32[1,128], index: 2, kind: input, shape index: {}]   ;;  %s6639_s3 = inlined_call_operand.vmem [shape: bf16[104,128], index: 3, kind: output, shape index: {}]  }
   0x1   :  { %v4944_v0 = vld [vmem:[%s6636_s1 + $0x40] sm:$0xff]   ;;  %v4967_v4 = vld [vmem:[%s6636_s1 + $0x48] sm:$0xff]   ;;  %v4991_v8 = vld [vmem:[%s6636_s1 + $0x50] sm:$0xff]  }
   0x2   :  { %v4949_v1 = vld [vmem:[%s6636_s1 + $0xc0] sm:$0xff]   ;;  %3689 = vmatprep.subr.bf16.mxu0 %v4944_v0  ;;  %v4973_v5 = vld [vmem:[%s6636_s1 + $0xc8] sm:$0xff]   ;;  %v4997_v9 = vld [vmem:[%s6636_s1 + $0xd0] sm:$0xff]  }
   0x3   :  { %v4955_v2 = vld [vmem:[%s6636_s1] sm:$0xff]   ;;  %3747 = vmatprep.subr.bf16.mxu1 %v4949_v1  ;;  %v4979_v6 = vld [vmem:[%s6636_s1 + $0x8] sm:$0xff]   ;;  %v5003_v10 = vld [vmem:[%s6636_s1 + $0x10] sm:$0xff]  }
   0x4   :  { %v4961_v3 = vld [vmem:[%s6636_s1 + $0x80] sm:$0xff]   ;;  %3690 = vmatpush3.bf16.msra.mxu0 %v4955_v2  ;;  %v4985_v7 = vld [vmem:[%s6636_s1 + $0x88] sm:$0xff]   ;;  %v5009_v11 = vld [vmem:[%s6636_s1 + $0x90] sm:$0xff]  }
   0x5   :  { %3748 = vmatpush3.bf16.msra.mxu1 %v4961_v3  ;;  %3691 = vmatprep.subr.bf16.mxu0 %v4967_v4  ;;  %v5015_v12 = vld [vmem:[%s6636_s1 + $0x58] sm:$0xff]   ;;  %v5039_v16 = vld [vmem:[%s6636_s1 + $0x60] sm:$0xff]   ;;  %v5063_v20 = vld [vmem:[%s6636_s1 + $0x68] sm:$0xff]  }
   0x6   :  { %3749 = vmatprep.subr.bf16.mxu1 %v4973_v5  ;;  %v5021_v13 = vld [vmem:[%s6636_s1 + $0xd8] sm:$0xff]   ;;  %v5045_v17 = vld [vmem:[%s6636_s1 + $0xe0] sm:$0xff]   ;;  %v5069_v21 = vld [vmem:[%s6636_s1 + $0xe8] sm:$0xff]  }
   0x7   :  { %v5027_v14 = vld [vmem:[%s6636_s1 + $0x18] sm:$0xff]   ;;  %v5051_v18 = vld [vmem:[%s6636_s1 + $0x20] sm:$0xff]   ;;  %v5075_v22 = vld [vmem:[%s6636_s1 + $0x28] sm:$0xff]  }
   0x8   :  { %3692 = vmatpush3.bf16.msra.mxu0 %v4979_v6  ;;  %v5033_v15 = vld [vmem:[%s6636_s1 + $0x98] sm:$0xff]   ;;  %v5057_v19 = vld [vmem:[%s6636_s1 + $0xa0] sm:$0xff]   ;;  %v5081_v23 = vld [vmem:[%s6636_s1 + $0xa8] sm:$0xff]  }
   0x9   :  { %3750 = vmatpush3.bf16.msra.mxu1 %v4985_v7  ;;  %3693 = vmatprep.subr.bf16.mxu0 %v4991_v8  ;;  %v5087_v24 = vld [vmem:[%s6636_s1 + $0x70] sm:$0xff]   ;;  %v5111_v28 = vld [vmem:[%s6636_s1 + $0x78] sm:$0xff]   ;;  %v4585_v33 = vld [vmem:[%s6637_s0 + $0x4] ss:$28 sps:$4 sm:$0xff]  }
   0xa   :  { %3751 = vmatprep.subr.bf16.mxu1 %v4997_v9  ;;  %v5093_v25 = vld [vmem:[%s6636_s1 + $0xf0] sm:$0xff]   ;;  %v5117_v29 = vld [vmem:[%s6636_s1 + $0xf8] sm:$0xff]   ;;  %v4586_v34 = vld [vmem:[%s6637_s0 + $0x8] ss:$28 sps:$4 sm:$0xff]   ;;  %755 = vmatprep.mubr.bf16.mxu0 %v4585_v33 }
   0xb   :  { %v5099_v26 = vld [vmem:[%s6636_s1 + $0x30] sm:$0xff]   ;;  %v5123_v30 = vld [vmem:[%s6636_s1 + $0x38] sm:$0xff]   ;;  %v4588_v35 = vld [vmem:[%s6637_s0 + $0xc] ss:$28 sps:$4 sm:$0xff]  }
   0xc   :  { %3694 = vmatpush3.bf16.msra.mxu0 %v5003_v10  ;;  %v5105_v27 = vld [vmem:[%s6636_s1 + $0xb0] sm:$0xff]   ;;  %v5129_v31 = vld [vmem:[%s6636_s1 + $0xb8] sm:$0xff]   ;;  %v5149_v37 = vld [vmem:[%s6636_s1 + $0x140] sm:$0xff]   ;;  %843 = vmatprep.mubr.bf16.mxu1 %v4588_v35 }
   0xd   :  { %3752 = vmatpush3.bf16.msra.mxu1 %v5009_v11  ;;  %3695 = vmatprep.subr.bf16.mxu0 %v5015_v12  ;;  %v4583_v32 = vld [vmem:[%s6637_s0] ss:$28 sps:$4 sm:$0xff]   ;;  %v5173_v42 = vld [vmem:[%s6636_s1 + $0x148] sm:$0xff]   ;;  %v4597_v43 = vld [vmem:[%s6637_s0 + $0x38] ss:$28 sps:$4 sm:$0xff]  }
   0xe   :  { %3753 = vmatprep.subr.bf16.mxu1 %v5021_v13  ;;  %v5154_v38 = vld [vmem:[%s6636_s1 + $0x100] sm:$0xff]   ;;  %v4592_v40 = vld [vmem:[%s6637_s0 + $0x3c] ss:$28 sps:$4 sm:$0xff]   ;;  %v5186_v45 = vld [vmem:[%s6636_s1 + $0x108] sm:$0xff]  }
   0xf   :  { %v5160_v39 = vld [vmem:[%s6636_s1 + $0x180] sm:$0xff]   ;;  %v5191_v46 = vld [vmem:[%s6636_s1 + $0x150] sm:$0xff]   ;;  %v4603_v48 = vld [vmem:[%s6637_s0 + $0x7c] ss:$28 sps:$4 sm:$0xff]  }
  0x10   :  { %3696 = vmatpush3.bf16.msra.mxu0 %v5027_v14  ;;  %v4594_v41 = vld [vmem:[%s6637_s0 + $0x44] ss:$28 sps:$4 sm:$0xff]   ;;  %v4601_v47 = vld [vmem:[%s6637_s0 + $0x74] ss:$28 sps:$4 sm:$0xff]   ;;  %v5215_v52 = vld [vmem:[%s6636_s1 + $0x158] sm:$0xff]  }
  0x11   :  { %3754 = vmatpush3.bf16.msra.mxu1 %v5033_v15  ;;  %3697 = vmatprep.subr.bf16.mxu0 %v5039_v16  ;;  %v4598_v44 = vld [vmem:[%s6637_s0 + $0x40] ss:$28 sps:$4 sm:$0xff]   ;;  %v5204_v49 = vld [vmem:[%s6636_s1 + $0x110] sm:$0xff]   ;;  %v4610_v54 = vld [vmem:[%s6637_s0 + $0xac] ss:$28 sps:$4 sm:$0xff]  }
  0x12   :  { %3755 = vmatprep.subr.bf16.mxu1 %v5045_v17  ;;  %v4606_v50 = vld [vmem:[%s6637_s0 + $0x70] ss:$28 sps:$4 sm:$0xff]   ;;  %v4607_v51 = vld [vmem:[%s6637_s0 + $0x78] ss:$28 sps:$4 sm:$0xff]   ;;  %v5233_v56 = vld [vmem:[%s6636_s1 + $0x160] sm:$0xff]  }
  0x13   :  { %v5220_v53 = vld [vmem:[%s6636_s1 + $0x118] sm:$0xff]   ;;  %v4612_v55 = vld [vmem:[%s6637_s0 + $0xb4] ss:$28 sps:$4 sm:$0xff]   ;;  %v5239_v57 = vld [vmem:[%s6636_s1 + $0x120] sm:$0xff]  }
  0x14   :  { %3698 = vmatpush3.bf16.msra.mxu0 %v5051_v18  ;;  %v4614_v58 = vld [vmem:[%s6637_s0 + $0xa8] ss:$28 sps:$4 sm:$0xff]   ;;  %v4615_v59 = vld [vmem:[%s6637_s0 + $0xb0] ss:$28 sps:$4 sm:$0xff]   ;;  %v4622_v33 = vld [vmem:[%s6637_s0 + $0xe0] ss:$28 sps:$4 sm:$0xff]  }
  0x15   :  { %3756 = vmatpush3.bf16.msra.mxu1 %v5057_v19  ;;  %3699 = vmatprep.subr.bf16.mxu0 %v5063_v20  ;;  %v4618_v60 = vld [vmem:[%s6637_s0 + $0xe4] ss:$28 sps:$4 sm:$0xff]   ;;  %v4620_v61 = vld [vmem:[%s6637_s0 + $0xec] ss:$28 sps:$4 sm:$0xff]  }
  0x16   :  { %3757 = vmatprep.subr.bf16.mxu1 %v5069_v21  ;;  %v5258_v62 = vld [vmem:[%s6636_s1 + $0x188] sm:$0xff]  }
  0x17   :  { %v5263_v63 = vld [vmem:[%s6636_s1 + $0x168] sm:$0xff]  }
  0x18   :  { %3700 = vmatpush3.bf16.msra.mxu0 %v5075_v22  ;;  %v4623_v35 = vld [vmem:[%s6637_s0 + $0xe8] ss:$28 sps:$4 sm:$0xff]  }
  0x19   :  { %3758 = vmatpush3.bf16.msra.mxu1 %v5081_v23  ;;  %3701 = vmatprep.subr.bf16.mxu0 %v5087_v24 }
  0x1a   :  { %3759 = vmatprep.subr.bf16.mxu1 %v5093_v25 }
  0x1c   :  { %3702 = vmatpush3.bf16.msra.mxu0 %v5099_v26 }
  0x1d   :  { %3760 = vmatpush3.bf16.msra.mxu1 %v5105_v27  ;;  %3703 = vmatprep.subr.bf16.mxu0 %v5111_v28 }
  0x1e   :  { %3761 = vmatprep.subr.bf16.mxu1 %v5117_v29 }
  0x20   :  { %3704 = vmatpush3.bf16.msra.mxu0 %v5123_v30 }
  0x21   :  { %3762 = vmatpush3.bf16.msra.mxu1 %v5129_v31  ;;  %3805 = vmatprep.subr.bf16.mxu0 %v5149_v37 }
  0x22   :  { %4421 = vmatprep.subr.bf16.mxu1 %v6640_v36 }
  0x23   :  { %756 = vmatmul.mubr.bf16.vlgmr.msra.gmra.mrb[0].mxu0 %v4583_v32  ;;  %v5269_v32 = vld [vmem:[%s6636_s1 + $0x128] sm:$0xff]  }
  0x24   :  { %844 = vmatmul.mubr.bf16.vlgmr.msra.gmra.mrb[0].mxu1 %v4586_v34  ;;  %3806 = vmatpush3.bf16.msra.mxu0 %v5154_v38  ;;  %v5279_v34 = vld [vmem:[%s6636_s1 + $0x170] sm:$0xff]  }
  0x25   :  { %4422 = vmatpush3.bf16.msra.mxu1 %v5160_v39  ;;  %763 = vmatprep.mubr.bf16.mxu0 %v4592_v40  ;;  %v5287_v40 = vld [vmem:[%s6636_s1 + $0x130] sm:$0xff]  }
  0x26   :  { %4423 = vmatprep.subr.bf16.mxu1 %v6640_v36  ;;  %851 = vmatprep.mubr.bf16.mxu1 %v4594_v41  ;;  %v4627_v41 = vld [vmem:[%s6637_s0 + $0x11c] ss:$28 sps:$4 sm:$0xff]  }
  0x27   :  { %3807 = vmatprep.subr.bf16.mxu0 %v5173_v42 }
  0x28   :  { %3808 = vmatpush3.bf16.msra.mxu0 %v5186_v45 }
  0x29   :  { %3809 = vmatprep.subr.bf16.mxu0 %v5191_v46  ;;  %4424 = vmatpush3.bf16.msra.mxu1 %v5258_v62 }
  0x2a   :  { %3930 = vmatprep.subr.bf16.mxu1 %v4949_v1  ;;  %v5306_v1 = vld [vmem:[%s6636_s1 + $0x138] sm:$0xff]  }
  0x2b   :  { %764 = vmatmul.mubr.bf16.gmra.mrb[4].mxu0 %v4597_v43  ;;  %v4629_v43 = vld [vmem:[%s6637_s0 + $0x124] ss:$28 sps:$4 sm:$0xff]  }
  0x2c   :  { %852 = vmatmul.mubr.bf16.gmra.mrb[4].mxu1 %v4598_v44  ;;  %771 = vmatprep.mubr.bf16.mxu0 %v4601_v47  ;;  %v5300_v44 = vld [vmem:[%s6636_s1 + $0x178] sm:$0xff]   ;;  %v163_v47 = vld [vmem:[%s6637_s0 + $0x150] sm:$0xff] }
  0x2d   :  { %859 = vmatprep.mubr.bf16.mxu1 %v4603_v48  ;;  %3810 = vmatpush3.bf16.msra.mxu0 %v5204_v49  ;;  %v164_v48 = vld [vmem:[%s6637_s0 + $0x158] sm:$0xff] }
  0x2e   :  { %3811 = vmatprep.subr.bf16.mxu0 %v5215_v52 }
  0x31   :  { %3812 = vmatpush3.bf16.msra.mxu0 %v5220_v53 }
  0x32   :  { %3813 = vmatprep.subr.bf16.mxu0 %v5233_v56 }
  0x33   :  { %772 = vmatmul.mubr.bf16.gmra.mrb[8].mxu0 %v4606_v50  ;;  %v4631_v50 = vld [vmem:[%s6637_s0 + $0x118] ss:$28 sps:$4 sm:$0xff]  }
  0x34   :  { %860 = vmatmul.mubr.bf16.gmra.mrb[8].mxu1 %v4607_v51  ;;  %779 = vmatprep.mubr.bf16.mxu0 %v4610_v54  ;;  %v4632_v51 = vld [vmem:[%s6637_s0 + $0x120] ss:$28 sps:$4 sm:$0xff]   ;;  %v3240_v54 = vcombine.high %v163_v47, %v163_v47 }
  0x35   :  { %867 = vmatprep.mubr.bf16.mxu1 %v4612_v55  ;;  %3814 = vmatpush3.bf16.msra.mxu0 %v5239_v57  ;;  %v3242_v55 = vcombine.high %v164_v48, %v164_v48 }
  0x36   :  { %3815 = vmatprep.subr.bf16.mxu0 %v5263_v63 }
  0x39   :  { %3816 = vmatpush3.bf16.msra.mxu0 %v5269_v32 }
  0x3a   :  { %3817 = vmatprep.subr.bf16.mxu0 %v5279_v34 }
  0x3b   :  { %780 = vmatmul.mubr.bf16.gmra.mrb[12].mxu0 %v4614_v58  ;;  %v3239_v58 = vcombine.low %v163_v47, %v163_v47  ;;  %v4708_v47 = vld [vmem:[%s6637_s0 + $0x17c] ss:$28 sps:$4 sm:$0xff]  }
  0x3c   :  { %868 = vmatmul.mubr.bf16.gmra.mrb[12].mxu1 %v4615_v59  ;;  %787 = vmatprep.mubr.bf16.mxu0 %v4618_v60  ;;  %v3241_v59 = vcombine.low %v164_v48, %v164_v48  ;;  %v4641_v60 = vld [vmem:[%s6637_s0 + $0x10] ss:$28 sps:$4 sm:$0xff]   ;;  %v4711_v48 = vld [vmem:[%s6637_s0 + $0x184] ss:$28 sps:$4 sm:$0xff]  }
  0x3d   :  { %875 = vmatprep.mubr.bf16.mxu1 %v4620_v61  ;;  %3818 = vmatpush3.bf16.msra.mxu0 %v5287_v40  ;;  %v4644_v61 = vld [vmem:[%s6637_s0 + $0x18] ss:$28 sps:$4 sm:$0xff]  }
  0x3e   :  { %3819 = vmatprep.subr.bf16.mxu0 %v5300_v44 }
  0x41   :  { %3820 = vmatpush3.bf16.msra.mxu0 %v5306_v1 }
  0x42   :  { %3872 = vmatprep.subr.bf16.mxu0 %v4944_v0  ;;  %v4643_v0 = vld [vmem:[%s6637_s0 + $0x14] ss:$28 sps:$4 sm:$0xff]  }
  0x43   :  { %788 = vmatmul.mubr.bf16.gmra.mrb[16].mxu0 %v4622_v33  ;;  %v4645_v33 = vld [vmem:[%s6637_s0 + $0x4c] ss:$28 sps:$4 sm:$0xff]  }
  0x44   :  { %876 = vmatmul.mubr.bf16.gmra.mrb[16].mxu1 %v4623_v35  ;;  %795 = vmatprep.mubr.bf16.mxu0 %v4627_v41  ;;  %v4647_v35 = vld [vmem:[%s6637_s0 + $0x48] ss:$28 sps:$4 sm:$0xff]   ;;  %v4648_v41 = vld [vmem:[%s6637_s0 + $0x50] ss:$28 sps:$4 sm:$0xff]  }
  0x45   :  { %883 = vmatprep.mubr.bf16.mxu1 %v4629_v43 }
  0x4b   :  { %796 = vmatmul.mubr.bf16.gmra.mrb[20].mxu0 %v4631_v50  ;;  %v4712_v50 = vld [vmem:[%s6637_s0 + $0x1b8] ss:$28 sps:$4 sm:$0xff]  }
  0x4c   :  { %884 = vmatmul.mubr.bf16.gmra.mrb[20].mxu1 %v4632_v51  ;;  %803 = vmatprep.mubr.bf16.mxu0 %v3240_v54  ;;  %v5562_v51 = vld [vmem:[%s6636_s1] sm:$0xff]  }
  0x4d   :  { %891 = vmatprep.mubr.bf16.mxu1 %v3242_v55  ;;  %v5568_v54 = vld [vmem:[%s6636_s1 + $0x80] sm:$0xff]   ;;  %v5576_v55 = vld [vmem:[%s6636_s1 + $0x48] sm:$0xff]  }
  0x53   :  { %804 = vmatmul.mubr.bf16.gmra.mrb[24].mxu0 %v3239_v58  ;;  %v4714_v58 = vld [vmem:[%s6637_s0 + $0x1b4] ss:$28 sps:$4 sm:$0xff]  }
  0x54   :  { %892 = vmatmul.mubr.bf16.gmra.mrb[24].mxu1 %v3241_v59  ;;  %931 = vmatprep.mubr.bf16.mxu0 %v4643_v0  ;;  %v5585_v59 = vld [vmem:[%s6636_s1 + $0xc8] sm:$0xff]   ;;  %v4715_v0 = vld [vmem:[%s6637_s0 + $0x1bc] ss:$28 sps:$4 sm:$0xff]  }
  0x55   :  { %4425 = vmatprep.mubr.msk.bf16.mxu1 %vm4920_vm0, %v6640_v36 }
  0x5b   :  { %932 = vmatmul.mubr.bf16.vlgmr.msra.gmra.mrb[28].mxu0 %v4641_v60  ;;  %v5594_v60 = vld [vmem:[%s6636_s1 + $0x8] sm:$0xff]  }
  0x5c   :  { %4426 = vmatmul.mubr.msk.bf16.vlgmr.msra.gmra.mrb[28].mxu1 %vm701_vm1, %v4644_v61  ;;  %3873 = vmatpush3.bf16.msra.mxu0 %v4955_v2  ;;  %v4649_v2 = vld [vmem:[%s6637_s0 + $0x84] ss:$28 sps:$4 sm:$0xff]   ;;  %v4716_v61 = vld [vmem:[%s6637_s0 + $0x1f0] ss:$28 sps:$4 sm:$0xff]  }
  0x5d   :  { %3931 = vmatpush3.bf16.msra.mxu1 %v4961_v3  ;;  %939 = vmatprep.mubr.bf16.mxu0 %v4645_v33  ;;  %v4651_v3 = vld [vmem:[%s6637_s0 + $0x80] ss:$28 sps:$4 sm:$0xff]   ;;  %v5603_v33 = vld [vmem:[%s6636_s1 + $0x88] sm:$0xff]  }
  0x5e   :  { %4429 = vmatprep.mubr.msk.bf16.mxu1 %vm4920_vm0, %v6640_v36  ;;  %3874 = vmatprep.subr.bf16.mxu0 %v4967_v4  ;;  %v4652_v4 = vld [vmem:[%s6637_s0 + $0x88] ss:$28 sps:$4 sm:$0xff]  }
  0x5f   :  { %3932 = vmatprep.subr.bf16.mxu1 %v4973_v5  ;;  %v4653_v5 = vld [vmem:[%s6637_s0 + $0xbc] ss:$28 sps:$4 sm:$0xff]  }
  0x60   :  { %3875 = vmatpush3.bf16.msra.mxu0 %v4979_v6  ;;  %v4655_v6 = vld [vmem:[%s6637_s0 + $0xb8] ss:$28 sps:$4 sm:$0xff]  }
  0x61   :  { %3933 = vmatpush3.bf16.msra.mxu1 %v4985_v7  ;;  %3876 = vmatprep.subr.bf16.mxu0 %v4991_v8  ;;  %v4656_v7 = vld [vmem:[%s6637_s0 + $0xc0] ss:$28 sps:$4 sm:$0xff]   ;;  %v4657_v8 = vld [vmem:[%s6637_s0 + $0xf4] ss:$28 sps:$4 sm:$0xff]  }
  0x62   :  { %3934 = vmatprep.subr.bf16.mxu1 %v4997_v9  ;;  %v4659_v9 = vld [vmem:[%s6637_s0 + $0xf0] ss:$28 sps:$4 sm:$0xff]  }
  0x63   :  { %940 = vmatmul.mubr.bf16.gmra.mrb[32].mxu0 %v4647_v35  ;;  %v5609_v35 = vld [vmem:[%s6636_s1 + $0x50] sm:$0xff]  }
  0x64   :  { %4430 = vmatmul.mubr.msk.bf16.gmra.mrb[32].mxu1 %vm701_vm1, %v4648_v41  ;;  %947 = vmatprep.mubr.bf16.mxu0 %v4649_v2  ;;  %v5615_v41 = vld [vmem:[%s6636_s1 + $0xd0] sm:$0xff]  }
  0x65   :  { %4433 = vmatprep.mubr.msk.bf16.mxu1 %vm4920_vm0, %v6640_v36  ;;  %3877 = vmatpush3.bf16.msra.mxu0 %v5003_v10  ;;  %v4660_v10 = vld [vmem:[%s6637_s0 + $0xf8] ss:$28 sps:$4 sm:$0xff]  }
  0x66   :  { %3935 = vmatpush3.bf16.msra.mxu1 %v5009_v11  ;;  %3878 = vmatprep.subr.bf16.mxu0 %v5015_v12  ;;  %v4661_v11 = vld [vmem:[%s6637_s0 + $0x12c] ss:$28 sps:$4 sm:$0xff]   ;;  %v165_v12 = vld [vmem:[%s6637_s0 + $0x160] sm:$0xff]  ;;  %v5624_v2 = vld [vmem:[%s6636_s1 + $0x10] sm:$0xff]  }
  0x67   :  { %3936 = vmatprep.subr.bf16.mxu1 %v5021_v13  ;;  %v4663_v13 = vld [vmem:[%s6637_s0 + $0x128] ss:$28 sps:$4 sm:$0xff]  }
  0x69   :  { %3879 = vmatpush3.bf16.msra.mxu0 %v5027_v14  ;;  %v4664_v14 = vld [vmem:[%s6637_s0 + $0x130] ss:$28 sps:$4 sm:$0xff]  }
  0x6a   :  { %3937 = vmatpush3.bf16.msra.mxu1 %v5033_v15  ;;  %3880 = vmatprep.subr.bf16.mxu0 %v5039_v16  ;;  %v3244_v15 = vcombine.high %v165_v12, %v165_v12  ;;  %v4667_v16 = vld [vmem:[%s6637_s0 + $0x168] ss:$0 sps:$4 sm:$0xff]  }
  0x6b   :  { %948 = vmatmul.mubr.bf16.gmra.mrb[36].mxu0 %v4651_v3  ;;  %3938 = vmatprep.subr.bf16.mxu1 %v5045_v17  ;;  %v4670_v17 = vld [vmem:[%s6637_s0 + $0x170] ss:$28 sps:$4 sm:$0xff]  }
  0x6c   :  { %4434 = vmatmul.mubr.msk.bf16.gmra.mrb[36].mxu1 %vm701_vm1, %v4652_v4  ;;  %955 = vmatprep.mubr.bf16.mxu0 %v4653_v5  ;;  %v5630_v3 = vld [vmem:[%s6636_s1 + $0x90] sm:$0xff]   ;;  %v5636_v4 = vld [vmem:[%s6636_s1 + $0x58] sm:$0xff]   ;;  %v4718_v5 = vld [vmem:[%s6637_s0 + $0x1ec] ss:$28 sps:$4 sm:$0xff]  }
  0x6d   :  { %4437 = vmatprep.mubr.msk.bf16.mxu1 %vm4920_vm0, %v6640_v36  ;;  %3881 = vmatpush3.bf16.msra.mxu0 %v5051_v18  ;;  %v3243_v18 = vcombine.low %v165_v12, %v165_v12  ;;  %v5675_v12 = vld [vmem:[%s6636_s1 + $0xe0] sm:$0xff]  }
  0x6e   :  { %3939 = vmatpush3.bf16.msra.mxu1 %v5057_v19  ;;  %3882 = vmatprep.subr.bf16.mxu0 %v5063_v20  ;;  %v4673_v19 = vld [vmem:[%s6637_s0 + $0x178] ss:$28 sps:$4 sm:$0xff]   ;;  %v4668_v20 = vld [vmem:[%s6637_s0 + $0x16c] ss:$28 sps:$4 sm:$0xff]  }
  0x6f   :  { %3940 = vmatprep.subr.bf16.mxu1 %v5069_v21  ;;  %v4671_v21 = vld [vmem:[%s6637_s0 + $0x174] ss:$28 sps:$4 sm:$0xff]  }
  0x71   :  { %3883 = vmatpush3.bf16.msra.mxu0 %v5075_v22  ;;  %v4674_v22 = vld [vmem:[%s6637_s0 + $0x1a8] ss:$28 sps:$4 sm:$0xff]  }
  0x72   :  { %3941 = vmatpush3.bf16.msra.mxu1 %v5081_v23  ;;  %3884 = vmatprep.subr.bf16.mxu0 %v5087_v24  ;;  %v4676_v23 = vld [vmem:[%s6637_s0 + $0x1b0] ss:$28 sps:$4 sm:$0xff]   ;;  %v4678_v24 = vld [vmem:[%s6637_s0 + $0x1a4] ss:$28 sps:$4 sm:$0xff]  }
  0x73   :  { %956 = vmatmul.mubr.bf16.gmra.mrb[40].mxu0 %v4655_v6  ;;  %3942 = vmatprep.subr.bf16.mxu1 %v5093_v25  ;;  %v4679_v25 = vld [vmem:[%s6637_s0 + $0x1ac] ss:$28 sps:$4 sm:$0xff]   ;;  %v5645_v6 = vld [vmem:[%s6636_s1 + $0xd8] sm:$0xff]  }
  0x74   :  { %4438 = vmatmul.mubr.msk.bf16.gmra.mrb[40].mxu1 %vm701_vm1, %v4656_v7  ;;  %963 = vmatprep.mubr.bf16.mxu0 %v4657_v8  ;;  %v4719_v7 = vld [vmem:[%s6637_s0 + $0x1f4] ss:$28 sps:$4 sm:$0xff]   ;;  %v4720_v8 = vld [vmem:[%s6637_s0 + $0x228] ss:$28 sps:$4 sm:$0xff]  }
  0x75   :  { %4441 = vmatprep.mubr.msk.bf16.mxu1 %vm4920_vm0, %v6640_v36  ;;  %3885 = vmatpush3.bf16.msra.mxu0 %v5099_v26  ;;  %v4680_v26 = vld [vmem:[%s6637_s0 + $0x1e0] ss:$28 sps:$4 sm:$0xff]  }
  0x76   :  { %3943 = vmatpush3.bf16.msra.mxu1 %v5105_v27  ;;  %3886 = vmatprep.subr.bf16.mxu0 %v5111_v28  ;;  %v4682_v27 = vld [vmem:[%s6637_s0 + $0x1e8] ss:$28 sps:$4 sm:$0xff]  }
  0x77   :  { %3944 = vmatprep.subr.bf16.mxu1 %v5117_v29  ;;  %v5476_v28 = vld [vmem:[%s6636_s1 + $0xc0] sm:$0xff]   ;;  %v4684_v29 = vld [vmem:[%s6637_s0 + $0x1dc] ss:$28 sps:$4 sm:$0xff]  }
  0x79   :  { %3887 = vmatpush3.bf16.msra.mxu0 %v5123_v30  ;;  %v4685_v30 = vld [vmem:[%s6637_s0 + $0x1e4] ss:$28 sps:$4 sm:$0xff]  }
  0x7a   :  { %3945 = vmatpush3.bf16.msra.mxu1 %v5129_v31  ;;  %3988 = vmatprep.subr.bf16.mxu0 %v5149_v37  ;;  %v4686_v31 = vld [vmem:[%s6637_s0 + $0x218] ss:$28 sps:$4 sm:$0xff]   ;;  %v4688_v37 = vld [vmem:[%s6637_s0 + $0x220] ss:$28 sps:$4 sm:$0xff]  }
  0x7b   :  { %964 = vmatmul.mubr.bf16.gmra.mrb[44].mxu0 %v4659_v9  ;;  %4453 = vmatprep.subr.bf16.mxu1 %v6640_v36  ;;  %v5657_v9 = vld [vmem:[%s6636_s1 + $0x18] sm:$0xff]  }
  0x7c   :  { %4442 = vmatmul.mubr.msk.bf16.gmra.mrb[44].mxu1 %vm701_vm1, %v4660_v10  ;;  %971 = vmatprep.mubr.bf16.mxu0 %v4661_v11  ;;  %v5663_v10 = vld [vmem:[%s6636_s1 + $0x98] sm:$0xff]   ;;  %v5669_v11 = vld [vmem:[%s6636_s1 + $0x60] sm:$0xff]  }
  0x7d   :  { %4445 = vmatprep.mubr.msk.bf16.mxu1 %vm4920_vm0, %v6640_v36 }
  0x83   :  { %972 = vmatmul.mubr.bf16.gmra.mrb[48].mxu0 %v4663_v13  ;;  %v5684_v13 = vld [vmem:[%s6636_s1 + $0x20] sm:$0xff]  }
  0x84   :  { %4446 = vmatmul.mubr.msk.bf16.gmra.mrb[48].mxu1 %vm701_vm1, %v4664_v14  ;;  %979 = vmatprep.mubr.bf16.mxu0 %v3244_v15  ;;  %v5690_v14 = vld [vmem:[%s6636_s1 + $0xa0] sm:$0xff]   ;;  %v5696_v15 = vld [vmem:[%s6636_s1 + $0x68] sm:$0xff]  }
  0x85   :  { %4449 = vmatprep.mubr.msk.bf16.mxu1 %vm4920_vm0, %v6640_v36 }
  0x8b   :  { %980 = vmatmul.mubr.bf16.gmra.mrb[52].mxu0 %v3243_v18  ;;  %v4723_v18 = vld [vmem:[%s6637_s0 + $0x22c] ss:$28 sps:$4 sm:$0xff]  }
  0x8c   :  { %4450 = vmatmul.mubr.msk.bf16.gmra.mrb[52].mxu1 %vm701_vm1, %v4667_v16  ;;  %1415 = vmatprep.mubr.bf16.mxu0 %v4670_v17  ;;  %v4722_v16 = vld [vmem:[%s6637_s0 + $0x224] ss:$28 sps:$4 sm:$0xff]   ;;  %v5705_v17 = vld [vmem:[%s6636_s1 + $0xe8] sm:$0xff]  }
  0x8d   :  { %1503 = vmatprep.mubr.bf16.mxu1 %v4673_v19  ;;  %v4724_v19 = vld [vmem:[%s6637_s0 + $0x260] ss:$28 sps:$4 sm:$0xff]  }
  0x93   :  { %1416 = vmatmul.mubr.bf16.vlgmr.msra.gmra.mrb[56].mxu0 %v4668_v20  ;;  %v5717_v20 = vld [vmem:[%s6636_s1 + $0x28] sm:$0xff]  }
  0x94   :  { %1504 = vmatmul.mubr.bf16.vlgmr.msra.gmra.mrb[56].mxu1 %v4671_v21  ;;  %3989 = vmatpush3.bf16.msra.mxu0 %v5154_v38  ;;  %v4690_v38 = vld [vmem:[%s6637_s0 + $0x214] ss:$28 sps:$4 sm:$0xff]   ;;  %v5723_v21 = vld [vmem:[%s6636_s1 + $0xa8] sm:$0xff]  }
  0x95   :  { %4454 = vmatpush3.bf16.msra.mxu1 %v5160_v39  ;;  %1423 = vmatprep.mubr.bf16.mxu0 %v4674_v22  ;;  %v4691_v39 = vld [vmem:[%s6637_s0 + $0x21c] ss:$28 sps:$4 sm:$0xff]   ;;  %v5729_v22 = vld [vmem:[%s6636_s1 + $0x70] sm:$0xff]  }
  0x96   :  { %1511 = vmatprep.mubr.bf16.mxu1 %v4676_v23  ;;  %3990 = vmatprep.subr.bf16.mxu0 %v5173_v42  ;;  %v4692_v42 = vld [vmem:[%s6637_s0 + $0x250] ss:$28 sps:$4 sm:$0xff]  }
  0x97   :  { %4455 = vmatprep.subr.bf16.mxu1 %v6640_v36  ;;  %v5735_v23 = vld [vmem:[%s6636_s1 + $0xf0] sm:$0xff]  }
  0x98   :  { %3991 = vmatpush3.bf16.msra.mxu0 %v5186_v45  ;;  %v4694_v45 = vld [vmem:[%s6637_s0 + $0x258] ss:$28 sps:$4 sm:$0xff]  }
  0x99   :  { %3992 = vmatprep.subr.bf16.mxu0 %v5191_v46  ;;  %4456 = vmatpush3.bf16.msra.mxu1 %v5258_v62  ;;  %v4696_v46 = vld [vmem:[%s6637_s0 + $0x24c] ss:$28 sps:$4 sm:$0xff]  }
  0x9a   :  { %4113 = vmatprep.subr.bf16.mxu1 %v5476_v28  ;;  %v3352_v62 = vld [vmem:[%s6637_s0 + $0x2c4] sm:$0xff] }
  0x9b   :  { %1424 = vmatmul.mubr.bf16.gmra.mrb[60].mxu0 %v4678_v24  ;;  %v5744_v24 = vld [vmem:[%s6636_s1 + $0x30] sm:$0xff]  }
  0x9c   :  { %1512 = vmatmul.mubr.bf16.gmra.mrb[60].mxu1 %v4679_v25  ;;  %1431 = vmatprep.mubr.bf16.mxu0 %v4680_v26  ;;  %v5750_v25 = vld [vmem:[%s6636_s1 + $0xb0] sm:$0xff]   ;;  %v5756_v26 = vld [vmem:[%s6636_s1 + $0x78] sm:$0xff]  }
  0x9d   :  { %1519 = vmatprep.mubr.bf16.mxu1 %v4682_v27  ;;  %3993 = vmatpush3.bf16.msra.mxu0 %v5204_v49  ;;  %v4697_v49 = vld [vmem:[%s6637_s0 + $0x254] ss:$28 sps:$4 sm:$0xff]   ;;  %v4726_v27 = vld [vmem:[%s6637_s0 + $0x25c] ss:$28 sps:$4 sm:$0xff]  }
  0x9e   :  { %3994 = vmatprep.subr.bf16.mxu0 %v5215_v52  ;;  %v4698_v52 = vld [vmem:[%s6637_s0 + $0x288] ss:$28 sps:$4 sm:$0xff]  }
  0xa1   :  { %3995 = vmatpush3.bf16.msra.mxu0 %v5220_v53  ;;  %v4700_v53 = vld [vmem:[%s6637_s0 + $0x290] ss:$28 sps:$4 sm:$0xff]  }
  0xa2   :  { %3996 = vmatprep.subr.bf16.mxu0 %v5233_v56  ;;  %v5529_v56 = vld [vmem:[%s6636_s1 + $0x40] sm:$0xff]  }
  0xa3   :  { %1432 = vmatmul.mubr.bf16.gmra.mrb[64].mxu0 %v4684_v29  ;;  %v5765_v29 = vld [vmem:[%s6636_s1 + $0xf8] sm:$0xff]  }
  0xa4   :  { %1520 = vmatmul.mubr.bf16.gmra.mrb[64].mxu1 %v4685_v30  ;;  %1439 = vmatprep.mubr.bf16.mxu0 %v4686_v31  ;;  %v4727_v30 = vld [vmem:[%s6637_s0 + $0x264] ss:$28 sps:$4 sm:$0xff]   ;;  %v4728_v31 = vld [vmem:[%s6637_s0 + $0x298] ss:$28 sps:$4 sm:$0xff]  }
  0xa5   :  { %1527 = vmatprep.mubr.bf16.mxu1 %v4688_v37  ;;  %3997 = vmatpush3.bf16.msra.mxu0 %v5239_v57  ;;  %v3351_v57 = vld [vmem:[%s6637_s0 + $0x2bc] sm:$0xff] }
  0xa6   :  { %3998 = vmatprep.subr.bf16.mxu0 %v5263_v63  ;;  %v4702_v63 = vld [vmem:[%s6637_s0 + $0x284] ss:$28 sps:$4 sm:$0xff]   ;;  %v3397_v43 = vcombine.low %v3351_v57, %v3351_v57  ;;  %v5777_v37 = vld [vmem:[%s6636_s1 + $0x38] sm:$0xff]  }
  0xa9   :  { %3999 = vmatpush3.bf16.msra.mxu0 %v5269_v32  ;;  %v4703_v32 = vld [vmem:[%s6637_s0 + $0x28c] ss:$28 sps:$4 sm:$0xff]  }
  0xaa   :  { %4000 = vmatprep.subr.bf16.mxu0 %v5279_v34  ;;  %v3398_v34 = vcombine.high %v3351_v57, %v3351_v57 }
  0xab   :  { %1440 = vmatmul.mubr.bf16.gmra.mrb[68].mxu0 %v4690_v38  ;;  %v5783_v38 = vld [vmem:[%s6636_s1 + $0xb8] sm:$0xff]  }
  0xac   :  { %1528 = vmatmul.mubr.bf16.gmra.mrb[68].mxu1 %v4691_v39  ;;  %1447 = vmatprep.mubr.bf16.mxu0 %v4692_v42  ;;  %v5789_v39 = vld [vmem:[%s6636_s1 + $0x140] sm:$0xff]   ;;  %v3353_v42 = vld [vmem:[%s6637_s0 + $0x2cc] sm:$0xff] }
  0xad   :  { %1535 = vmatprep.mubr.bf16.mxu1 %v4694_v45  ;;  %4001 = vmatpush3.bf16.msra.mxu0 %v5287_v40  ;;  %v3400_v40 = vcombine.high %v3352_v62, %v3352_v62  ;;  %v4730_v45 = vld [vmem:[%s6637_s0 + $0x294] ss:$28 sps:$4 sm:$0xff]  }
  0xae   :  { %4002 = vmatprep.subr.bf16.mxu0 %v5300_v44  ;;  %v3399_v44 = vcombine.low %v3352_v62, %v3352_v62  ;;  %v3401_v62 = vcombine.low %v3353_v42, %v3353_v42 }
  0xb1   :  { %4003 = vmatpush3.bf16.msra.mxu0 %v5306_v1  ;;  %v4710_v1 = vld [vmem:[%s6637_s0 + $0x180] ss:$28 sps:$4 sm:$0xff]  }
  0xb2   :  { %4055 = vmatprep.subr.bf16.mxu0 %v5529_v56 }
  0xb3   :  { %1448 = vmatmul.mubr.bf16.gmra.mrb[72].mxu0 %v4696_v46  ;;  %v4731_v46 = vld [vmem:[%s6637_s0 + $0x29c] ss:$28 sps:$4 sm:$0xff]  }
  0xb4   :  { %1536 = vmatmul.mubr.bf16.gmra.mrb[72].mxu1 %v4697_v49  ;;  %1455 = vmatprep.mubr.bf16.mxu0 %v4698_v52  ;;  %v3402_v49 = vcombine.high %v3353_v42, %v3353_v42 }
  0xb5   :  { %1543 = vmatprep.mubr.bf16.mxu1 %v4700_v53 }
  0xbb   :  { %1456 = vmatmul.mubr.bf16.gmra.mrb[76].mxu0 %v4702_v63 }
  0xbc   :  { %1544 = vmatmul.mubr.bf16.gmra.mrb[76].mxu1 %v4703_v32  ;;  %1463 = vmatprep.mubr.bf16.mxu0 %v3398_v34 }
  0xbd   :  { %1551 = vmatprep.mubr.bf16.mxu1 %v3400_v40  ;;  %v4734_v40 = vld [vmem:[%s6637_s0 + $0x2d4] ss:$0 sps:$4 sm:$0xff]  }
  0xc3   :  { %1464 = vmatmul.mubr.bf16.gmra.mrb[80].mxu0 %v3397_v43  ;;  %v4737_v43 = vld [vmem:[%s6637_s0 + $0x2dc] ss:$28 sps:$4 sm:$0xff]  }
  0xc4   :  { %1552 = vmatmul.mubr.bf16.gmra.mrb[80].mxu1 %v3399_v44  ;;  %1591 = vmatprep.mubr.bf16.mxu0 %v4710_v1 }
  0xc5   :  { %4457 = vmatprep.mubr.msk.bf16.mxu1 %vm4920_vm0, %v6640_v36 }
  0xcb   :  { %1592 = vmatmul.mubr.bf16.vlgmr.msra.gmra.mrb[84].mxu0 %v4708_v47 }
  0xcc   :  { %4458 = vmatmul.mubr.msk.bf16.vlgmr.msra.gmra.mrb[84].mxu1 %vm701_vm1, %v4711_v48  ;;  %4056 = vmatpush3.bf16.msra.mxu0 %v5562_v51  ;;  %v4740_v48 = vld [vmem:[%s6637_s0 + $0x2e4] ss:$28 sps:$4 sm:$0xff]  }
  0xcd   :  { %4114 = vmatpush3.bf16.msra.mxu1 %v5568_v54  ;;  %1599 = vmatprep.mubr.bf16.mxu0 %v4712_v50 }
  0xce   :  { %4461 = vmatprep.mubr.msk.bf16.mxu1 %vm4920_vm0, %v6640_v36  ;;  %4057 = vmatprep.subr.bf16.mxu0 %v5576_v55 }
  0xcf   :  { %4115 = vmatprep.subr.bf16.mxu1 %v5585_v59 }
  0xd0   :  { %4058 = vmatpush3.bf16.msra.mxu0 %v5594_v60 }
  0xd1   :  { %4116 = vmatpush3.bf16.msra.mxu1 %v5603_v33  ;;  %4059 = vmatprep.subr.bf16.mxu0 %v5609_v35 }
  0xd2   :  { %4117 = vmatprep.subr.bf16.mxu1 %v5615_v41 }
  0xd3   :  { %1600 = vmatmul.mubr.bf16.gmra.mrb[88].mxu0 %v4714_v58 }
  0xd4   :  { %4462 = vmatmul.mubr.msk.bf16.gmra.mrb[88].mxu1 %vm701_vm1, %v4715_v0  ;;  %1607 = vmatprep.mubr.bf16.mxu0 %v4716_v61 }
  0xd5   :  { %4465 = vmatprep.mubr.msk.bf16.mxu1 %vm4920_vm0, %v6640_v36  ;;  %4060 = vmatpush3.bf16.msra.mxu0 %v5624_v2 }
  0xd6   :  { %4118 = vmatpush3.bf16.msra.mxu1 %v5630_v3  ;;  %4061 = vmatprep.subr.bf16.mxu0 %v5636_v4 }
  0xd7   :  { %4119 = vmatprep.subr.bf16.mxu1 %v5645_v6 }
  0xd9   :  { %4062 = vmatpush3.bf16.msra.mxu0 %v5657_v9 }
  0xda   :  { %4120 = vmatpush3.bf16.msra.mxu1 %v5663_v10  ;;  %4063 = vmatprep.subr.bf16.mxu0 %v5669_v11 }
  0xdb   :  { %1608 = vmatmul.mubr.bf16.gmra.mrb[92].mxu0 %v4718_v5  ;;  %4121 = vmatprep.subr.bf16.mxu1 %v5675_v12 }
  0xdc   :  { %4466 = vmatmul.mubr.msk.bf16.gmra.mrb[92].mxu1 %vm701_vm1, %v4719_v7  ;;  %1615 = vmatprep.mubr.bf16.mxu0 %v4720_v8 }
  0xdd   :  { %4469 = vmatprep.mubr.msk.bf16.mxu1 %vm4920_vm0, %v6640_v36  ;;  %4064 = vmatpush3.bf16.msra.mxu0 %v5684_v13 }
  0xde   :  { %4122 = vmatpush3.bf16.msra.mxu1 %v5690_v14  ;;  %4065 = vmatprep.subr.bf16.mxu0 %v5696_v15 }
  0xdf   :  { %4123 = vmatprep.subr.bf16.mxu1 %v5705_v17 }
  0xe1   :  { %4066 = vmatpush3.bf16.msra.mxu0 %v5717_v20 }
  0xe2   :  { %4124 = vmatpush3.bf16.msra.mxu1 %v5723_v21  ;;  %4067 = vmatprep.subr.bf16.mxu0 %v5729_v22 }
  0xe3   :  { %1616 = vmatmul.mubr.bf16.gmra.mrb[96].mxu0 %v4722_v16  ;;  %4125 = vmatprep.subr.bf16.mxu1 %v5735_v23 }
  0xe4   :  { %4470 = vmatmul.mubr.msk.bf16.gmra.mrb[96].mxu1 %vm701_vm1, %v4723_v18  ;;  %1623 = vmatprep.mubr.bf16.mxu0 %v4724_v19  ;;  %v4735_v18 = vld [vmem:[%s6637_s0 + $0x2d8] ss:$28 sps:$4 sm:$0xff]  }
  0xe5   :  { %4473 = vmatprep.mubr.msk.bf16.mxu1 %vm4920_vm0, %v6640_v36  ;;  %4068 = vmatpush3.bf16.msra.mxu0 %v5744_v24 }
  0xe6   :  { %4126 = vmatpush3.bf16.msra.mxu1 %v5750_v25  ;;  %4069 = vmatprep.subr.bf16.mxu0 %v5756_v26 }
  0xe7   :  { %4127 = vmatprep.subr.bf16.mxu1 %v5765_v29 }
  0xe9   :  { %4070 = vmatpush3.bf16.msra.mxu0 %v5777_v37 }
  0xea   :  { %4128 = vmatpush3.bf16.msra.mxu1 %v5783_v38  ;;  %4171 = vmatprep.subr.bf16.mxu0 %v5789_v39 }
  0xeb   :  { %1624 = vmatmul.mubr.bf16.gmra.mrb[100].mxu0 %v4726_v27  ;;  %4485 = vmatprep.subr.bf16.mxu1 %v6640_v36 }
  0xec   :  { %4474 = vmatmul.mubr.msk.bf16.gmra.mrb[100].mxu1 %vm701_vm1, %v4727_v30  ;;  %1631 = vmatprep.mubr.bf16.mxu0 %v4728_v31  ;;  %v4738_v31 = vld [vmem:[%s6637_s0 + $0x2e0] ss:$28 sps:$4 sm:$0xff]  }
  0xed   :  { %4477 = vmatprep.mubr.msk.bf16.mxu1 %vm4920_vm0, %v6640_v36 }
  0xf3   :  { %1632 = vmatmul.mubr.bf16.gmra.mrb[104].mxu0 %v4730_v45 }
  0xf4   :  { %4478 = vmatmul.mubr.msk.bf16.gmra.mrb[104].mxu1 %vm701_vm1, %v4731_v46  ;;  %1639 = vmatprep.mubr.bf16.mxu0 %v3402_v49  ;;  %v4741_v49 = vld [vmem:[%s6637_s0 + $0x314] ss:$28 sps:$4 sm:$0xff]  }
  0xf5   :  { %4481 = vmatprep.mubr.msk.bf16.mxu1 %vm4920_vm0, %v6640_v36 }
  0xf6   :  { %v3705_v52 = vpop.f32.mrb[0].mxu0 }
  0xf7   :  { %v3763_v53 = vpop.f32.mrb[0].mxu1  ;;  %v3706_v57 = vpop.f32.mrb[1].mxu0 }
  0xf8   :  { %v3707_v63 = vadd.f32 %v3706_v57, %v3705_v52  ;;  %v3764_v32 = vpop.f32.mrb[1].mxu1  ;;  %v3708_v34 = vpop.f32.mrb[2].mxu0  ;;  %v4743_v57 = vld [vmem:[%s6637_s0 + $0x31c] ss:$28 sps:$4 sm:$0xff]  }
  0xf9   :  { %v3765_v44 = vadd.f32 %v3764_v32, %v3763_v53  ;;  %v3766_v1 = vpop.f32.mrb[2].mxu1  ;;  %v3709_v47 = vpop.f32.mrb[3].mxu0  ;;  %v5839_v32 = vld [vmem:[%s6636_s1 + $0x100] sm:$0xff]  }
  0xfa   :  { %v3710_v50 = vadd.f32 %v3709_v47, %v3708_v34  ;;  %v3767_v58 = vpop.f32.mrb[3].mxu1  ;;  %6659 = vst [vmem:[#allocation2_spill] sm:$0xff] %v5839_v32 }
  0xfb   :  { %v5817_v0 = vadd.f32 %v3765_v44, %v3707_v63  ;;  %v3768_v61 = vadd.f32 %v3767_v58, %v3766_v1  ;;  %1640 = vmatmul.mubr.bf16.gmra.mrb[108].mxu0 %v3401_v62  ;;  %v5853_v44 = vld [vmem:[%s6636_s1 + $0x148] sm:$0xff]  }
  0xfc   :  { %4482 = vmatmul.mubr.msk.bf16.gmra.mrb[108].mxu1 %vm701_vm1, %v4734_v40  ;;  %2088 = vmatprep.mubr.bf16.mxu0 %v4737_v43  ;;  %v5847_v40 = vld [vmem:[%s6636_s1 + $0x180] sm:$0xff]   ;;  %6661 = vst [vmem:[#allocation4_spill] sm:$0xff] %v5853_v44 }
  0xfd   :  { %v5820_v5 = vadd.f32 %v3768_v61, %v3710_v50  ;;  %2176 = vmatprep.mubr.bf16.mxu1 %v4740_v48  ;;  %6660 = vst [vmem:[#allocation3_spill] sm:$0xff] %v5847_v40  ;;  %v4745_v48 = vld [vmem:[%s6637_s0 + $0x310] ss:$28 sps:$4 sm:$0xff]  }
  0xfe   :  { %v3711_v7 = vpop.f32.mrb[4].mxu0 }
  0xff   :  { %v3769_v8 = vpop.f32.mrb[4].mxu1  ;;  %v3712_v16 = vpop.f32.mrb[5].mxu0 }
 0x100   :  { %v3713_v19 = vadd.f32 %v3712_v16, %v3711_v7  ;;  %v3770_v27 = vpop.f32.mrb[5].mxu1  ;;  %v3714_v30 = vpop.f32.mrb[6].mxu0  ;;  %v4746_v7 = vld [vmem:[%s6637_s0 + $0x318] ss:$28 sps:$4 sm:$0xff]   ;;  %v4747_v16 = vld [vmem:[%s6637_s0 + $0x34c] ss:$28 sps:$4 sm:$0xff]  }
 0x101   :  { %v3771_v42 = vadd.f32 %v3770_v27, %v3769_v8  ;;  %v3772_v45 = vpop.f32.mrb[6].mxu1  ;;  %v3715_v46 = vpop.f32.mrb[7].mxu0  ;;  %v5866_v8 = vld [vmem:[%s6636_s1 + $0x108] sm:$0xff]  }
 0x102   :  { %v3716_v52 = vadd.f32 %v3715_v46, %v3714_v30  ;;  %v3773_v53 = vpop.f32.mrb[7].mxu1  ;;  %6662 = vst [vmem:[#allocation5_spill] sm:$0xff] %v5866_v8  ;;  %v5875_v30 = vld [vmem:[%s6636_s1 + $0x150] sm:$0xff]  }
 0x103   :  { %v5834_v62 = vadd.f32 %v3771_v42, %v3713_v19  ;;  %v3774_v63 = vadd.f32 %v3773_v53, %v3772_v45  ;;  %2089 = vmatmul.mubr.bf16.vlgmr.msra.gmra.mrb[112].mxu0 %v4735_v18  ;;  %6663 = vst [vmem:[#allocation6_spill] sm:$0xff] %v5875_v30  ;;  %v5884_v42 = vld [vmem:[%s6636_s1 + $0x188] sm:$0xff]  }
 0x104   :  { %2177 = vmatmul.mubr.bf16.vlgmr.msra.gmra.mrb[112].mxu1 %v4738_v31  ;;  %4172 = vmatpush3.bf16.msra.mxu0 %v5839_v32  ;;  %v4749_v31 = vld [vmem:[%s6637_s0 + $0x354] ss:$28 sps:$4 sm:$0xff]   ;;  %6664 = vst [vmem:[#allocation7_spill] sm:$0xff] %v5884_v42 }
 0x105   :  { %v5842_v34 = vadd.f32 %v3774_v63, %v3716_v52  ;;  %4486 = vmatpush3.bf16.msra.mxu1 %v5847_v40  ;;  %2096 = vmatprep.mubr.bf16.mxu0 %v4741_v49 }
 0x106   :  { %v3717_v43 = vpop.f32.mrb[8].mxu0  ;;  %2184 = vmatprep.mubr.bf16.mxu1 %v4743_v57  ;;  %4173 = vmatprep.subr.bf16.mxu0 %v5853_v44  ;;  %v5895_v57 = vld [vmem:[%s6636_s1 + $0x110] sm:$0xff]  }
 0x107   :  { %v3775_v1 = vpop.f32.mrb[8].mxu1  ;;  %v3718_v47 = vpop.f32.mrb[9].mxu0  ;;  %4487 = vmatprep.subr.bf16.mxu1 %v6640_v36  ;;  %6665 = vst [vmem:[#allocation8_spill] sm:$0xff] %v5895_v57 }
 0x108   :  { %v3719_v50 = vadd.f32 %v3718_v47, %v3717_v43  ;;  %v3776_v58 = vpop.f32.mrb[9].mxu1  ;;  %v3720_v61 = vpop.f32.mrb[10].mxu0  ;;  %4174 = vmatpush3.bf16.msra.mxu0 %v5866_v8  ;;  %v4751_v47 = vld [vmem:[%s6637_s0 + $0x348] ss:$28 sps:$4 sm:$0xff]  }
 0x109   :  { %v3777_v18 = vadd.f32 %v3776_v58, %v3775_v1  ;;  %v3778_v19 = vpop.f32.mrb[10].mxu1  ;;  %v3721_v27 = vpop.f32.mrb[11].mxu0  ;;  %4175 = vmatprep.subr.bf16.mxu0 %v5875_v30  ;;  %4488 = vmatpush3.bf16.msra.mxu1 %v5884_v42 }
 0x10a   :  { %v3722_v45 = vadd.f32 %v3721_v27, %v3720_v61  ;;  %v3779_v46 = vpop.f32.mrb[11].mxu1  ;;  %4296 = vmatprep.subr.bf16.mxu1 %v5476_v28  ;;  %v5901_v28 = vld [vmem:[%s6636_s1 + $0x158] sm:$0xff]   ;;  %v4752_v61 = vld [vmem:[%s6637_s0 + $0x350] ss:$28 sps:$4 sm:$0xff]  }
 0x10b   :  { %v5888_v49 = vadd.f32 %v3777_v18, %v3719_v50  ;;  %v3780_v52 = vadd.f32 %v3779_v46, %v3778_v19  ;;  %2097 = vmatmul.mubr.bf16.gmra.mrb[116].mxu0 %v4745_v48  ;;  %6666 = vst [vmem:[#allocation9_spill] sm:$0xff] %v5901_v28  ;;  %v5916_v27 = vld [vmem:[%s6636_s1 + $0x118] sm:$0xff]  }
 0x10c   :  { %2185 = vmatmul.mubr.bf16.gmra.mrb[116].mxu1 %v4746_v7  ;;  %2104 = vmatprep.mubr.bf16.mxu0 %v4747_v16  ;;  %v4753_v7 = vld [vmem:[%s6637_s0 + $0x384] ss:$28 sps:$4 sm:$0xff]   ;;  %6667 = vst [vmem:[#allocation10_spill] sm:$0xff] %v5916_v27 }
 0x10d   :  { %v5890_v53 = vadd.f32 %v3780_v52, %v3722_v45  ;;  %2192 = vmatprep.mubr.bf16.mxu1 %v4749_v31  ;;  %4176 = vmatpush3.bf16.msra.mxu0 %v5895_v57  ;;  %v4755_v31 = vld [vmem:[%s6637_s0 + $0x38c] ss:$28 sps:$4 sm:$0xff]   ;;  %v5925_v52 = vld [vmem:[%s6636_s1 + $0x160] sm:$0xff]  }
 0x10e   :  { %v3723_v63 = vpop.f32.mrb[12].mxu0  ;;  %4177 = vmatprep.subr.bf16.mxu0 %v5901_v28  ;;  %6668 = vst [vmem:[#allocation11_spill] sm:$0xff] %v5925_v52  ;;  %v3459_v57 = vld [vmem:[%s6637_s0 + $0x428] sm:$0xff] }
 0x10f   :  { %v3781_v43 = vpop.f32.mrb[12].mxu1  ;;  %v3724_v1 = vpop.f32.mrb[13].mxu0 }
 0x110   :  { %v3725_v48 = vadd.f32 %v3724_v1, %v3723_v63  ;;  %v3782_v50 = vpop.f32.mrb[13].mxu1  ;;  %v3726_v58 = vpop.f32.mrb[14].mxu0 }
 0x111   :  { %v3783_v16 = vadd.f32 %v3782_v50, %v3781_v43  ;;  %v3784_v18 = vpop.f32.mrb[14].mxu1  ;;  %v3727_v19 = vpop.f32.mrb[15].mxu0  ;;  %4178 = vmatpush3.bf16.msra.mxu0 %v5916_v27  ;;  %v5935_v50 = vld [vmem:[%s6636_s1 + $0x120] sm:$0xff]  }
 0x112   :  { %v3728_v45 = vadd.f32 %v3727_v19, %v3726_v58  ;;  %v3785_v46 = vpop.f32.mrb[15].mxu1  ;;  %4179 = vmatprep.subr.bf16.mxu0 %v5925_v52  ;;  %6669 = vst [vmem:[#allocation12_spill] sm:$0xff] %v5935_v50  ;;  %v5965_v52 = vld [vmem:[%s6636_s1 + $0x170] sm:$0xff]  }
 0x113   :  { %v5928_v63 = vadd.f32 %v3783_v16, %v3725_v48  ;;  %v3786_v43 = vadd.f32 %v3785_v46, %v3784_v18  ;;  %2105 = vmatmul.mubr.bf16.gmra.mrb[120].mxu0 %v4751_v47  ;;  %v5941_v48 = vld [vmem:[%s6636_s1 + $0x168] sm:$0xff]   ;;  %6672 = vst [vmem:[#allocation15_spill] sm:$0xff] %v5965_v52 }
 0x114   :  { %2193 = vmatmul.mubr.bf16.gmra.mrb[120].mxu1 %v4752_v61  ;;  %2112 = vmatprep.mubr.bf16.mxu0 %v4753_v7  ;;  %6670 = vst [vmem:[#allocation13_spill] sm:$0xff] %v5941_v48  ;;  %v4757_v7 = vld [vmem:[%s6637_s0 + $0x380] ss:$28 sps:$4 sm:$0xff]  }
 0x115   :  { %v5930_v1 = vadd.f32 %v3786_v43, %v3728_v45  ;;  %2200 = vmatprep.mubr.bf16.mxu1 %v4755_v31  ;;  %4180 = vmatpush3.bf16.msra.mxu0 %v5935_v50  ;;  %v4758_v31 = vld [vmem:[%s6637_s0 + $0x388] ss:$28 sps:$4 sm:$0xff]   ;;  %v4759_v45 = vld [vmem:[%s6637_s0 + $0x3bc] ss:$28 sps:$4 sm:$0xff]  }
 0x116   :  { %v3729_v58 = vpop.f32.mrb[16].mxu0  ;;  %4181 = vmatprep.subr.bf16.mxu0 %v5941_v48  ;;  %v4761_v48 = vld [vmem:[%s6637_s0 + $0x3c4] ss:$28 sps:$4 sm:$0xff]  }
 0x117   :  { %v3787_v47 = vpop.f32.mrb[16].mxu1  ;;  %v3730_v61 = vpop.f32.mrb[17].mxu0 }
 0x118   :  { %v3731_v16 = vadd.f32 %v3730_v61, %v3729_v58  ;;  %v3788_v18 = vpop.f32.mrb[17].mxu1  ;;  %v3732_v19 = vpop.f32.mrb[18].mxu0  ;;  %v5959_v58 = vld [vmem:[%s6636_s1 + $0x128] sm:$0xff]  }
 0x119   :  { %v3789_v46 = vadd.f32 %v3788_v18, %v3787_v47  ;;  %v3790_v43 = vpop.f32.mrb[18].mxu1  ;;  %v3733_v36 = vpop.f32.mrb[19].mxu0  ;;  %6671 = vst [vmem:[#allocation14_spill] sm:$0xff] %v5959_v58  ;;  %4182 = vmatpush3.bf16.msra.mxu0 %v5959_v58 }
 0x11a   :  { %v3734_v61 = vadd.f32 %v3733_v36, %v3732_v19  ;;  %v3791_v50 = vpop.f32.mrb[19].mxu1  ;;  %4183 = vmatprep.subr.bf16.mxu0 %v5965_v52  ;;  %v5975_v36 = vld [vmem:[%s6636_s1 + $0x130] sm:$0xff]   ;;  %v4767_v52 = vld [vmem:[%s6637_s0 + $0x3fc] ss:$28 sps:$4 sm:$0xff]  }
 0x11b   :  { %v5968_v47 = vadd.f32 %v3789_v46, %v3731_v16  ;;  %v3792_v18 = vadd.f32 %v3791_v50, %v3790_v43  ;;  %2113 = vmatmul.mubr.bf16.gmra.mrb[124].mxu0 %v4757_v7  ;;  %6673 = vst [vmem:[#allocation16_spill] sm:$0xff] %v5975_v36  ;;  %v5981_v16 = vld [vmem:[%s6636_s1 + $0x178] sm:$0xff]  }
 0x11c   :  { %2201 = vmatmul.mubr.bf16.gmra.mrb[124].mxu1 %v4758_v31  ;;  %2120 = vmatprep.mubr.bf16.mxu0 %v4759_v45  ;;  %6674 = vst [vmem:[#allocation17_spill] sm:$0xff] %v5981_v16  ;;  %v4764_v43 = vld [vmem:[%s6637_s0 + $0x3c0] ss:$28 sps:$4 sm:$0xff]  }
 0x11d   :  { %v5970_v27 = vadd.f32 %v3792_v18, %v3734_v61  ;;  %2208 = vmatprep.mubr.bf16.mxu1 %v4761_v48  ;;  %4184 = vmatpush3.bf16.msra.mxu0 %v5975_v36  ;;  %v4763_v48 = vld [vmem:[%s6637_s0 + $0x3b8] ss:$28 sps:$4 sm:$0xff]  }
 0x11e   :  { %v3735_v19 = vpop.f32.mrb[20].mxu0  ;;  %4185 = vmatprep.subr.bf16.mxu0 %v5981_v16  ;;  %v4765_v61 = vld [vmem:[%s6637_s0 + $0x3f4] ss:$28 sps:$4 sm:$0xff]  }
 0x11f   :  { %v3793_v50 = vpop.f32.mrb[20].mxu1  ;;  %v3736_v7 = vpop.f32.mrb[21].mxu0 }
 0x120   :  { %v3737_v31 = vadd.f32 %v3736_v7, %v3735_v19  ;;  %v3794_v45 = vpop.f32.mrb[21].mxu1  ;;  %v3738_v46 = vpop.f32.mrb[22].mxu0  ;;  %v5999_v19 = vld [vmem:[%s6636_s1 + $0x138] sm:$0xff]  }
 0x121   :  { %v3795_v18 = vadd.f32 %v3794_v45, %v3793_v50  ;;  %v3796_v36 = vpop.f32.mrb[22].mxu1  ;;  %v3739_v16 = vpop.f32.mrb[23].mxu0  ;;  %6675 = vst [vmem:[#allocation18_spill] sm:$0xff] %v5999_v19  ;;  %4186 = vmatpush3.bf16.msra.mxu0 %v5999_v19 }
 0x122   :  { %v3740_v7 = vadd.f32 %v3739_v16, %v3738_v46  ;;  %v3797_v58 = vpop.f32.mrb[23].mxu1  ;;  %4238 = vmatprep.subr.bf16.mxu0 %v5529_v56  ;;  %v3460_v16 = vld [vmem:[%s6637_s0 + $0x430] sm:$0xff] }
 0x123   :  { %v6003_v28 = vadd.f32 %v3795_v18, %v3737_v31  ;;  %v3798_v50 = vadd.f32 %v3797_v58, %v3796_v36  ;;  %2121 = vmatmul.mubr.bf16.gmra.mrb[128].mxu0 %v4763_v48  ;;  %v4769_v58 = vld [vmem:[%s6637_s0 + $0x3f0] ss:$28 sps:$4 sm:$0xff]  }
 0x124   :  { %2209 = vmatmul.mubr.bf16.gmra.mrb[128].mxu1 %v4764_v43  ;;  %2128 = vmatprep.mubr.bf16.mxu0 %v4765_v61  ;;  %v3506_v43 = vcombine.high %v3459_v57, %v3459_v57 }
 0x125   :  { %v6005_v45 = vadd.f32 %v3798_v50, %v3740_v7  ;;  %2216 = vmatprep.mubr.bf16.mxu1 %v4767_v52  ;;  %v4770_v52 = vld [vmem:[%s6637_s0 + $0x3f8] ss:$28 sps:$4 sm:$0xff]   ;;  %v3508_v50 = vcombine.high %v3460_v16, %v3460_v16 }
 0x126   :  { %v3741_v42 = vpop.f32.mrb[24].mxu0 }
 0x127   :  { %6676 = vst [vmem:[#allocation19_spill] sm:$0xff] %v6005_v45  ;;  %v3799_v46 = vpop.f32.mrb[24].mxu1  ;;  %v3742_v56 = vpop.f32.mrb[25].mxu0  ;;  %v3507_v45 = vcombine.low %v3460_v16, %v3460_v16 }
 0x128   :  { %v3743_v36 = vadd.f32 %v3742_v56, %v3741_v42  ;;  %v3800_v48 = vpop.f32.mrb[25].mxu1  ;;  %v3744_v31 = vpop.f32.mrb[26].mxu0 }
 0x129   :  { %v3801_v61 = vadd.f32 %v3800_v48, %v3799_v46  ;;  %v3745_v18 = vpop.f32.mrb[27].mxu0  ;;  %v3802_v7 = vpop.f32.mrb[26].mxu1  ;;  %v3505_v31 = vcombine.low %v3459_v57, %v3459_v57  ;;  %v4777_v46 = vld [vmem:[%s6637_s0 + $0x2ec] ss:$28 sps:$4 sm:$0xff]  }
 0x12a   :  { %v3803_v19 = vpop.f32.mrb[27].mxu1 }
 0x12b   :  { %v6019_v30 = vadd.f32 %v3801_v61, %v3743_v36  ;;  %2129 = vmatmul.mubr.bf16.gmra.mrb[132].mxu0 %v4769_v58 }
 0x12c   :  { %2217 = vmatmul.mubr.bf16.gmra.mrb[132].mxu1 %v4770_v52  ;;  %2136 = vmatprep.mubr.bf16.mxu0 %v3506_v43 }
 0x12d   :  { %2224 = vmatprep.mubr.bf16.mxu1 %v3508_v50 }
 0x12e   :  { %v3821_v8 = vpop.f32.mrb[28].mxu0 }
 0x12f   :  { %v3822_v42 = vpop.f32.mrb[29].mxu0  ;;  %v1021_v56 = vpop.f32.mrb[28].mxu1 }
 0x130   :  { %v3823_v44 = vadd.f32 %v3822_v42, %v3821_v8  ;;  %v3824_v40 = vpop.f32.mrb[30].mxu0  ;;  %v4427_v32 = vpop.f32.mrb[29].mxu1  ;;  %v6677_v8 = vmov 0.0   ;;  %v4779_v42 = vld [vmem:[%s6637_s0 + $0x324] ss:$28 sps:$4 sm:$0xff]  }
 0x131   :  { %v3825_v48 = vpop.f32.mrb[31].mxu0  ;;  %v1024_v19 = vpop.f32.mrb[30].mxu1 }
 0x132   :  { %v3826_v36 = vadd.f32 %v3825_v48, %v3824_v40  ;;  %v934_v58 = vadd.f32 %v3823_v44, %v5817_v0  ;;  %v4428_v52 = vpop.f32.mrb[31].mxu1  ;;  %v4775_v0 = vld [vmem:[%s6637_s0 + $0x2e8] ss:$28 sps:$4 sm:$0xff]  }
 0x133   :  { %2137 = vmatmul.mubr.bf16.gmra.mrb[136].mxu0 %v3505_v31 }
 0x134   :  { %v6025_v43 = vadd.f32 %v1021_v56, %v934_v58  ;;  %v937_v61 = vadd.f32 %v3826_v36, %v5820_v5  ;;  %2225 = vmatmul.mubr.bf16.gmra.mrb[136].mxu1 %v3507_v45  ;;  %2264 = vmatprep.mubr.bf16.mxu0 %v4777_v46  ;;  %v4778_v5 = vld [vmem:[%s6637_s0 + $0x2f0] ss:$28 sps:$4 sm:$0xff]  }
 0x135   :  { %4489 = vmatprep.mubr.msk.bf16.mxu1 %vm4920_vm0, %v6677_v8 }
 0x136   :  { %v6030_v32 = vadd.f32 %v1024_v19, %v937_v61  ;;  %v3827_v57 = vpop.f32.mrb[32].mxu0 }
 0x137   :  { %v3828_v16 = vpop.f32.mrb[33].mxu0  ;;  %v1029_v18 = vpop.f32.mrb[32].mxu1 }
 0x138   :  { %v3829_v40 = vadd.f32 %v3828_v16, %v3827_v57  ;;  %v3830_v44 = vpop.f32.mrb[34].mxu0  ;;  %v4431_v7 = vpop.f32.mrb[33].mxu1  ;;  %v4782_v57 = vld [vmem:[%s6637_s0 + $0x328] ss:$28 sps:$4 sm:$0xff]  }
 0x139   :  { %v3831_v45 = vpop.f32.mrb[35].mxu0  ;;  %v1032_v50 = vpop.f32.mrb[34].mxu1 }
 0x13a   :  { %v3832_v56 = vadd.f32 %v3831_v45, %v3830_v44  ;;  %v942_v31 = vadd.f32 %v3829_v40, %v5834_v62  ;;  %v4432_v46 = vpop.f32.mrb[35].mxu1 }
 0x13b   :  { %2265 = vmatmul.mubr.bf16.vlgmr.msra.gmra.mrb[140].mxu0 %v4775_v0 }
 0x13c   :  { %v6042_v48 = vadd.f32 %v1029_v18, %v942_v31  ;;  %v945_v19 = vadd.f32 %v3832_v56, %v5842_v34  ;;  %4490 = vmatmul.mubr.msk.bf16.vlgmr.msra.gmra.mrb[140].mxu1 %vm701_vm1, %v4778_v5  ;;  %4239 = vmatpush3.bf16.msra.mxu0 %v5562_v51  ;;  %v4781_v34 = vld [vmem:[%s6637_s0 + $0x320] ss:$28 sps:$4 sm:$0xff]  }
 0x13d   :  { %4297 = vmatpush3.bf16.msra.mxu1 %v5568_v54  ;;  %2272 = vmatprep.mubr.bf16.mxu0 %v4779_v42 }
 0x13e   :  { %v6048_v36 = vadd.f32 %v1032_v50, %v945_v19  ;;  %v3833_v58 = vpop.f32.mrb[36].mxu0  ;;  %4493 = vmatprep.mubr.msk.bf16.mxu1 %vm4920_vm0, %v6677_v8  ;;  %4240 = vmatprep.subr.bf16.mxu0 %v5576_v55  ;;  %v4783_v55 = vld [vmem:[%s6637_s0 + $0x35c] ss:$28 sps:$4 sm:$0xff]  }
 0x13f   :  { %v3834_v62 = vpop.f32.mrb[37].mxu0  ;;  %v1037_v52 = vpop.f32.mrb[36].mxu1  ;;  %4298 = vmatprep.subr.bf16.mxu1 %v5585_v59 }
 0x140   :  { %v3835_v51 = vadd.f32 %v3834_v62, %v3833_v58  ;;  %v3836_v61 = vpop.f32.mrb[38].mxu0  ;;  %v4435_v54 = vpop.f32.mrb[37].mxu1  ;;  %4241 = vmatpush3.bf16.msra.mxu0 %v5594_v60 }
 0x141   :  { %v3837_v16 = vpop.f32.mrb[39].mxu0  ;;  %v1040_v18 = vpop.f32.mrb[38].mxu1  ;;  %4299 = vmatpush3.bf16.msra.mxu1 %v5603_v33  ;;  %4242 = vmatprep.subr.bf16.mxu0 %v5609_v35 }
 0x142   :  { %v3838_v59 = vadd.f32 %v3837_v16, %v3836_v61  ;;  %v950_v0 = vadd.f32 %v3835_v51, %v5888_v49  ;;  %v4436_v40 = vpop.f32.mrb[39].mxu1  ;;  %4300 = vmatprep.subr.bf16.mxu1 %v5615_v41 }
 0x143   :  { %2273 = vmatmul.mubr.bf16.gmra.mrb[144].mxu0 %v4781_v34 }
 0x144   :  { %v6068_v44 = vadd.f32 %v1037_v52, %v950_v0  ;;  %v953_v60 = vadd.f32 %v3838_v59, %v5890_v53  ;;  %4494 = vmatmul.mubr.msk.bf16.gmra.mrb[144].mxu1 %vm701_vm1, %v4782_v57  ;;  %2280 = vmatprep.mubr.bf16.mxu0 %v4783_v55  ;;  %v4785_v53 = vld [vmem:[%s6637_s0 + $0x358] ss:$28 sps:$4 sm:$0xff]   ;;  %v6678_v0 = vld [vmem:[#allocation19_spill] sm:$0xff] }
 0x145   :  { %4497 = vmatprep.mubr.msk.bf16.mxu1 %vm4920_vm0, %v6677_v8  ;;  %4243 = vmatpush3.bf16.msra.mxu0 %v5624_v2  ;;  %v4786_v2 = vld [vmem:[%s6637_s0 + $0x360] ss:$28 sps:$4 sm:$0xff]  }
 0x146   :  { %v6075_v33 = vadd.f32 %v1040_v18, %v953_v60  ;;  %v3839_v35 = vpop.f32.mrb[40].mxu0  ;;  %4301 = vmatpush3.bf16.msra.mxu1 %v5630_v3  ;;  %4244 = vmatprep.subr.bf16.mxu0 %v5636_v4  ;;  %v4787_v3 = vld [vmem:[%s6637_s0 + $0x394] ss:$28 sps:$4 sm:$0xff]  }
 0x147   :  { %v3840_v41 = vpop.f32.mrb[41].mxu0  ;;  %v1045_v49 = vpop.f32.mrb[40].mxu1  ;;  %4302 = vmatprep.subr.bf16.mxu1 %v5645_v6 }
 0x148   :  { %v3841_v7 = vadd.f32 %v3840_v41, %v3839_v35  ;;  %v3842_v5 = vpop.f32.mrb[42].mxu0  ;;  %v4439_v45 = vpop.f32.mrb[41].mxu1  ;;  %v4797_v35 = vld [vmem:[%s6637_s0 + $0x400] ss:$28 sps:$4 sm:$0xff]  }
 0x149   :  { %v3843_v4 = vpop.f32.mrb[43].mxu0  ;;  %v1048_v50 = vpop.f32.mrb[42].mxu1  ;;  %4245 = vmatpush3.bf16.msra.mxu0 %v5657_v9 }
 0x14a   :  { %v3844_v42 = vadd.f32 %v3843_v4, %v3842_v5  ;;  %v958_v56 = vadd.f32 %v3841_v7, %v5928_v63  ;;  %v4440_v31 = vpop.f32.mrb[43].mxu1  ;;  %4303 = vmatpush3.bf16.msra.mxu1 %v5663_v10  ;;  %4246 = vmatprep.subr.bf16.mxu0 %v5669_v11  ;;  %v4789_v63 = vld [vmem:[%s6637_s0 + $0x390] ss:$28 sps:$4 sm:$0xff]   ;;  %v4798_v7 = vld [vmem:[%s6637_s0 + $0x408] ss:$28 sps:$4 sm:$0xff]  }
 0x14b   :  { %2281 = vmatmul.mubr.bf16.gmra.mrb[148].mxu0 %v4785_v53  ;;  %4304 = vmatprep.subr.bf16.mxu1 %v5675_v12 }
 0x14c   :  { %v6094_v6 = vadd.f32 %v1045_v49, %v958_v56  ;;  %v961_v46 = vadd.f32 %v3844_v42, %v5930_v1  ;;  %4498 = vmatmul.mubr.msk.bf16.gmra.mrb[148].mxu1 %vm701_vm1, %v4786_v2  ;;  %2288 = vmatprep.mubr.bf16.mxu0 %v4787_v3 }
 0x14d   :  { %4501 = vmatprep.mubr.msk.bf16.mxu1 %vm4920_vm0, %v6677_v8  ;;  %4247 = vmatpush3.bf16.msra.mxu0 %v5684_v13  ;;  %v4790_v13 = vld [vmem:[%s6637_s0 + $0x398] ss:$28 sps:$4 sm:$0xff]  }
 0x14e   :  { %v6101_v9 = vadd.f32 %v1048_v50, %v961_v46  ;;  %v3845_v10 = vpop.f32.mrb[44].mxu0  ;;  %4305 = vmatpush3.bf16.msra.mxu1 %v5690_v14  ;;  %4248 = vmatprep.subr.bf16.mxu0 %v5696_v15  ;;  %v4791_v14 = vld [vmem:[%s6637_s0 + $0x3cc] ss:$28 sps:$4 sm:$0xff]  }
 0x14f   :  { %v3846_v11 = vpop.f32.mrb[45].mxu0  ;;  %v1053_v12 = vpop.f32.mrb[44].mxu1  ;;  %4306 = vmatprep.subr.bf16.mxu1 %v5705_v17 }
 0x150   :  { %v3847_v1 = vadd.f32 %v3846_v11, %v3845_v10  ;;  %v3848_v19 = vpop.f32.mrb[46].mxu0  ;;  %v4443_v58 = vpop.f32.mrb[45].mxu1 }
 0x151   :  { %v3849_v15 = vpop.f32.mrb[47].mxu0  ;;  %v1056_v62 = vpop.f32.mrb[46].mxu1  ;;  %4249 = vmatpush3.bf16.msra.mxu0 %v5717_v20 }
 0x152   :  { %v3850_v52 = vadd.f32 %v3849_v15, %v3848_v19  ;;  %v966_v34 = vadd.f32 %v3847_v1, %v5968_v47  ;;  %v4444_v51 = vpop.f32.mrb[47].mxu1  ;;  %4307 = vmatpush3.bf16.msra.mxu1 %v5723_v21  ;;  %4250 = vmatprep.subr.bf16.mxu0 %v5729_v22 }
 0x153   :  { %2289 = vmatmul.mubr.bf16.gmra.mrb[152].mxu0 %v4789_v63  ;;  %4308 = vmatprep.subr.bf16.mxu1 %v5735_v23  ;;  %v4804_v63 = vld [vmem:[%s6637_s0 + $0x448] ss:$28 sps:$4 sm:$0xff]  }
 0x154   :  { %v6120_v17 = vadd.f32 %v1053_v12, %v966_v34  ;;  %v969_v61 = vadd.f32 %v3850_v52, %v5970_v27  ;;  %4502 = vmatmul.mubr.msk.bf16.gmra.mrb[152].mxu1 %vm701_vm1, %v4790_v13  ;;  %2296 = vmatprep.mubr.bf16.mxu0 %v4791_v14  ;;  %v4793_v27 = vld [vmem:[%s6637_s0 + $0x3c8] ss:$28 sps:$4 sm:$0xff]   ;;  %v4807_v13 = vld [vmem:[%s6637_s0 + $0x450] ss:$28 sps:$4 sm:$0xff]  }
 0x155   :  { %4505 = vmatprep.mubr.msk.bf16.mxu1 %vm4920_vm0, %v6677_v8  ;;  %4251 = vmatpush3.bf16.msra.mxu0 %v5744_v24  ;;  %v4794_v24 = vld [vmem:[%s6637_s0 + $0x3d0] ss:$28 sps:$4 sm:$0xff]  }
 0x156   :  { %v6127_v20 = vadd.f32 %v1056_v62, %v969_v61  ;;  %v3851_v21 = vpop.f32.mrb[48].mxu0  ;;  %4309 = vmatpush3.bf16.msra.mxu1 %v5750_v25  ;;  %4252 = vmatprep.subr.bf16.mxu0 %v5756_v26  ;;  %v4795_v25 = vld [vmem:[%s6637_s0 + $0x404] ss:$28 sps:$4 sm:$0xff]  }
 0x157   :  { %v3852_v22 = vpop.f32.mrb[49].mxu0  ;;  %v1061_v23 = vpop.f32.mrb[48].mxu1  ;;  %4310 = vmatprep.subr.bf16.mxu1 %v5765_v29 }
 0x158   :  { %v3853_v47 = vadd.f32 %v3852_v22, %v3851_v21  ;;  %v3854_v54 = vpop.f32.mrb[50].mxu0  ;;  %v4447_v57 = vpop.f32.mrb[49].mxu1  ;;  %v4802_v22 = vld [vmem:[%s6637_s0 + $0x444] ss:$28 sps:$4 sm:$0xff]  }
 0x159   :  { %v3855_v26 = vpop.f32.mrb[51].mxu0  ;;  %v1064_v55 = vpop.f32.mrb[50].mxu1  ;;  %4253 = vmatpush3.bf16.msra.mxu0 %v5777_v37  ;;  %v3461_v37 = vld [vmem:[%s6637_s0 + $0x438] sm:$0xff] }
 0x15a   :  { %v3856_v16 = vadd.f32 %v3855_v26, %v3854_v54  ;;  %v974_v18 = vadd.f32 %v3853_v47, %v6003_v28  ;;  %v4448_v59 = vpop.f32.mrb[51].mxu1  ;;  %4311 = vmatpush3.bf16.msra.mxu1 %v5783_v38  ;;  %4354 = vmatprep.subr.bf16.mxu0 %v5789_v39  ;;  %v3510_v5 = vcombine.high %v3461_v37, %v3461_v37  ;;  %v4805_v54 = vld [vmem:[%s6637_s0 + $0x44c] ss:$28 sps:$4 sm:$0xff]   ;;  %v4808_v26 = vld [vmem:[%s6637_s0 + $0x480] ss:$28 sps:$4 sm:$0xff]  }
 0x15b   :  { %2297 = vmatmul.mubr.bf16.gmra.mrb[156].mxu0 %v4793_v27  ;;  %4517 = vmatprep.subr.bf16.mxu1 %v6677_v8  ;;  %v3509_v46 = vcombine.low %v3461_v37, %v3461_v37 }
 0x15c   :  { %v6146_v29 = vadd.f32 %v1061_v23, %v974_v18  ;;  %v977_v40 = vadd.f32 %v3856_v16, %v6678_v0  ;;  %4506 = vmatmul.mubr.msk.bf16.gmra.mrb[156].mxu1 %vm701_vm1, %v4794_v24  ;;  %2304 = vmatprep.mubr.bf16.mxu0 %v4795_v25  ;;  %v4810_v18 = vld [vmem:[%s6637_s0 + $0x488] ss:$28 sps:$4 sm:$0xff]  }
 0x15d   :  { %4509 = vmatprep.mubr.msk.bf16.mxu1 %vm4920_vm0, %v6677_v8 }
 0x15e   :  { %v6155_v38 = vadd.f32 %v1064_v55, %v977_v40  ;;  %v3857_v39 = vpop.f32.mrb[52].mxu0  ;;  %v6679_v40 = vld [vmem:[#allocation2_spill] sm:$0xff] }
 0x15f   :  { %v3858_v28 = vpop.f32.mrb[53].mxu0  ;;  %v1069_v60 = vpop.f32.mrb[52].mxu1 }
 0x160   :  { %v3859_v41 = vadd.f32 %v3858_v28, %v3857_v39  ;;  %v3860_v49 = vpop.f32.mrb[54].mxu0  ;;  %v4451_v53 = vpop.f32.mrb[53].mxu1  ;;  %v6680_v39 = vld [vmem:[#allocation3_spill] sm:$0xff] }
 0x161   :  { %v3861_v45 = vpop.f32.mrb[55].mxu0  ;;  %v1072_v2 = vpop.f32.mrb[54].mxu1  ;;  %v4812_v49 = vld [vmem:[%s6637_s0 + $0x47c] ss:$28 sps:$4 sm:$0xff]  }
 0x162   :  { %v982_v3 = vadd.f32 %v3859_v41, %v6019_v30  ;;  %v4452_v4 = vpop.f32.mrb[55].mxu1  ;;  %v4801_v30 = vld [vmem:[%s6637_s0 + $0x440] ss:$0 sps:$4 sm:$0xff]   ;;  %v6682_v2 = vld [vmem:[#allocation5_spill] sm:$0xff] }
 0x163   :  { %2305 = vmatmul.mubr.bf16.gmra.mrb[160].mxu0 %v4797_v35  ;;  %v4813_v45 = vld [vmem:[%s6637_s0 + $0x484] ss:$28 sps:$4 sm:$0xff]  }
 0x164   :  { %v6164_v50 = vadd.f32 %v1069_v60, %v982_v3  ;;  %4510 = vmatmul.mubr.msk.bf16.gmra.mrb[160].mxu1 %vm701_vm1, %v4798_v7  ;;  %2312 = vmatprep.mubr.bf16.mxu0 %v3510_v5  ;;  %v6681_v60 = vld [vmem:[#allocation4_spill] sm:$0xff] }
 0x165   :  { %4513 = vmatprep.mubr.msk.bf16.mxu1 %vm4920_vm0, %v6677_v8  ;;  %v4814_v3 = vld [vmem:[%s6637_s0 + $0x4b8] ss:$28 sps:$4 sm:$0xff]  }
 0x166   :  { %v3888_v42 = vpop.f32.mrb[56].mxu0 }
 0x167   :  { %v3946_v56 = vpop.f32.mrb[56].mxu1  ;;  %v3889_v31 = vpop.f32.mrb[57].mxu0 }
 0x168   :  { %v3890_v10 = vadd.f32 %v3889_v31, %v3888_v42  ;;  %v3947_v11 = vpop.f32.mrb[57].mxu1  ;;  %v3891_v12 = vpop.f32.mrb[58].mxu0  ;;  %v6683_v31 = vld [vmem:[#allocation6_spill] sm:$0xff] }
 0x169   :  { %v3948_v1 = vadd.f32 %v3947_v11, %v3946_v56  ;;  %v3949_v19 = vpop.f32.mrb[58].mxu1  ;;  %v3892_v58 = vpop.f32.mrb[59].mxu0 }
 0x16a   :  { %v3893_v14 = vadd.f32 %v3892_v58, %v3891_v12  ;;  %v3950_v15 = vpop.f32.mrb[59].mxu1 }
 0x16b   :  { %v6178_v62 = vadd.f32 %v3948_v1, %v3890_v10  ;;  %v3951_v52 = vadd.f32 %v3950_v15, %v3949_v19  ;;  %2313 = vmatmul.mubr.bf16.gmra.mrb[164].mxu0 %v3509_v46  ;;  %v4816_v46 = vld [vmem:[%s6637_s0 + $0x4c0] ss:$28 sps:$4 sm:$0xff]   ;;  %v6684_v10 = vld [vmem:[#allocation7_spill] sm:$0xff]  ;;  %v6685_v19 = vld [vmem:[#allocation8_spill] sm:$0xff] }
 0x16c   :  { %4514 = vmatmul.mubr.msk.bf16.gmra.mrb[164].mxu1 %vm701_vm1, %v4801_v30  ;;  %2761 = vmatprep.mubr.bf16.mxu0 %v4804_v63 }
 0x16d   :  { %v6181_v34 = vadd.f32 %v3951_v52, %v3893_v14  ;;  %2849 = vmatprep.mubr.bf16.mxu1 %v4807_v13  ;;  %v6686_v13 = vld [vmem:[#allocation9_spill] sm:$0xff]  ;;  %v4818_v52 = vld [vmem:[%s6637_s0 + $0x4b4] ss:$28 sps:$4 sm:$0xff]  }
 0x16e   :  { %v3894_v51 = vpop.f32.mrb[60].mxu0 }
 0x16f   :  { %v3952_v61 = vpop.f32.mrb[60].mxu1  ;;  %v3895_v21 = vpop.f32.mrb[61].mxu0 }
 0x170   :  { %v3896_v23 = vadd.f32 %v3895_v21, %v3894_v51  ;;  %v3953_v27 = vpop.f32.mrb[61].mxu1  ;;  %v3897_v47 = vpop.f32.mrb[62].mxu0 }
 0x171   :  { %v3954_v57 = vadd.f32 %v3953_v27, %v3952_v61  ;;  %v3955_v24 = vpop.f32.mrb[62].mxu1  ;;  %v3898_v25 = vpop.f32.mrb[63].mxu0 }
 0x172   :  { %v3899_v55 = vadd.f32 %v3898_v25, %v3897_v47  ;;  %v3956_v16 = vpop.f32.mrb[63].mxu1 }
 0x173   :  { %v6195_v59 = vadd.f32 %v3954_v57, %v3896_v23  ;;  %v3957_v0 = vadd.f32 %v3956_v16, %v3955_v24  ;;  %2762 = vmatmul.mubr.bf16.vlgmr.msra.gmra.mrb[168].mxu0 %v4802_v22  ;;  %v4819_v22 = vld [vmem:[%s6637_s0 + $0x4bc] ss:$28 sps:$4 sm:$0xff]   ;;  %v4820_v23 = vld [vmem:[%s6637_s0 + $0x4f0] ss:$28 sps:$4 sm:$0xff]   ;;  %v6687_v57 = vld [vmem:[#allocation10_spill] sm:$0xff] }
 0x174   :  { %2850 = vmatmul.mubr.bf16.vlgmr.msra.gmra.mrb[168].mxu1 %v4805_v54  ;;  %4355 = vmatpush3.bf16.msra.mxu0 %v6679_v40  ;;  %v4822_v24 = vld [vmem:[%s6637_s0 + $0x4f8] ss:$28 sps:$4 sm:$0xff]  }
 0x175   :  { %v6198_v37 = vadd.f32 %v3957_v0, %v3899_v55  ;;  %4518 = vmatpush3.bf16.msra.mxu1 %v6680_v39  ;;  %2769 = vmatprep.mubr.bf16.mxu0 %v4808_v26  ;;  %v6688_v55 = vld [vmem:[#allocation11_spill] sm:$0xff]  ;;  %v6689_v40 = vld [vmem:[#allocation12_spill] sm:$0xff] }
 0x176   :  { %v3900_v28 = vpop.f32.mrb[64].mxu0  ;;  %2857 = vmatprep.mubr.bf16.mxu1 %v4810_v18  ;;  %4356 = vmatprep.subr.bf16.mxu0 %v6681_v60 }
 0x177   :  { %v3958_v35 = vpop.f32.mrb[64].mxu1  ;;  %v3901_v41 = vpop.f32.mrb[65].mxu0  ;;  %4519 = vmatprep.subr.bf16.mxu1 %v6677_v8 }
 0x178   :  { %v3902_v53 = vadd.f32 %v3901_v41, %v3900_v28  ;;  %v3959_v7 = vpop.f32.mrb[65].mxu1  ;;  %v3903_v5 = vpop.f32.mrb[66].mxu0  ;;  %4357 = vmatpush3.bf16.msra.mxu0 %v6682_v2  ;;  %v6690_v28 = vld [vmem:[#allocation13_spill] sm:$0xff]  ;;  %v4824_v41 = vld [vmem:[%s6637_s0 + $0x4ec] ss:$28 sps:$4 sm:$0xff]  }
 0x179   :  { %v3960_v4 = vadd.f32 %v3959_v7, %v3958_v35  ;;  %v3961_v42 = vpop.f32.mrb[66].mxu1  ;;  %v3904_v56 = vpop.f32.mrb[67].mxu0  ;;  %4358 = vmatprep.subr.bf16.mxu0 %v6683_v31  ;;  %4520 = vmatpush3.bf16.msra.mxu1 %v6684_v10  ;;  %v6692_v10 = vld [vmem:[#allocation15_spill] sm:$0xff] }
 0x17a   :  { %v3905_v11 = vadd.f32 %v3904_v56, %v3903_v5  ;;  %v3962_v12 = vpop.f32.mrb[67].mxu1  ;;  %v4825_v5 = vld [vmem:[%s6637_s0 + $0x4f4] ss:$28 sps:$4 sm:$0xff]   ;;  %v6691_v56 = vld [vmem:[#allocation14_spill] sm:$0xff] }
 0x17b   :  { %v6218_v30 = vadd.f32 %v3960_v4, %v3902_v53  ;;  %v3963_v63 = vadd.f32 %v3962_v12, %v3961_v42  ;;  %2770 = vmatmul.mubr.bf16.gmra.mrb[172].mxu0 %v4812_v49  ;;  %v4828_v42 = vld [vmem:[%s6637_s0 + $0x530] ss:$28 sps:$4 sm:$0xff]  }
 0x17c   :  { %2858 = vmatmul.mubr.bf16.gmra.mrb[172].mxu1 %v4813_v45  ;;  %2777 = vmatprep.mubr.bf16.mxu0 %v4814_v3  ;;  %v4826_v45 = vld [vmem:[%s6637_s0 + $0x528] ss:$28 sps:$4 sm:$0xff]  }
 0x17d   :  { %v6220_v1 = vadd.f32 %v3963_v63, %v3905_v11  ;;  %2865 = vmatprep.mubr.bf16.mxu1 %v4816_v46  ;;  %4359 = vmatpush3.bf16.msra.mxu0 %v6685_v19  ;;  %v6693_v19 = vld [vmem:[#allocation16_spill] sm:$0xff] }
 0x17e   :  { %v3906_v58 = vpop.f32.mrb[68].mxu0  ;;  %4360 = vmatprep.subr.bf16.mxu0 %v6686_v13  ;;  %v6694_v13 = vld [vmem:[#allocation17_spill] sm:$0xff] }
 0x17f   :  { %v3964_v14 = vpop.f32.mrb[68].mxu1  ;;  %v3907_v15 = vpop.f32.mrb[69].mxu0 }
 0x180   :  { %v3908_v51 = vadd.f32 %v3907_v15, %v3906_v58  ;;  %v3965_v61 = vpop.f32.mrb[69].mxu1  ;;  %v3909_v21 = vpop.f32.mrb[70].mxu0 }
 0x181   :  { %v3966_v27 = vadd.f32 %v3965_v61, %v3964_v14  ;;  %v3967_v47 = vpop.f32.mrb[70].mxu1  ;;  %v3910_v54 = vpop.f32.mrb[71].mxu0  ;;  %4361 = vmatpush3.bf16.msra.mxu0 %v6687_v57  ;;  %v4834_v57 = vld [vmem:[%s6637_s0 + $0x568] ss:$28 sps:$4 sm:$0xff]  }
 0x182   :  { %v3911_v25 = vadd.f32 %v3910_v54, %v3909_v21  ;;  %v3968_v26 = vpop.f32.mrb[71].mxu1  ;;  %4362 = vmatprep.subr.bf16.mxu0 %v6688_v55 }
 0x183   :  { %v6238_v16 = vadd.f32 %v3966_v27, %v3908_v51  ;;  %v3969_v18 = vadd.f32 %v3968_v26, %v3967_v47  ;;  %2778 = vmatmul.mubr.bf16.gmra.mrb[176].mxu0 %v4818_v52  ;;  %v4830_v52 = vld [vmem:[%s6637_s0 + $0x524] ss:$28 sps:$4 sm:$0xff]  }
 0x184   :  { %2866 = vmatmul.mubr.bf16.gmra.mrb[176].mxu1 %v4819_v22  ;;  %2785 = vmatprep.mubr.bf16.mxu0 %v4820_v23  ;;  %v4831_v22 = vld [vmem:[%s6637_s0 + $0x52c] ss:$28 sps:$4 sm:$0xff]   ;;  %v4832_v23 = vld [vmem:[%s6637_s0 + $0x560] ss:$28 sps:$4 sm:$0xff]  }
 0x185   :  { %v6240_v0 = vadd.f32 %v3969_v18, %v3911_v25  ;;  %2873 = vmatprep.mubr.bf16.mxu1 %v4822_v24  ;;  %4363 = vmatpush3.bf16.msra.mxu0 %v6689_v40  ;;  %v6695_v24 = vld [vmem:[#allocation18_spill] sm:$0xff] }
 0x186   :  { %v3912_v39 = vpop.f32.mrb[72].mxu0  ;;  %4364 = vmatprep.subr.bf16.mxu0 %v6690_v28 }
 0x187   :  { %v3970_v60 = vpop.f32.mrb[72].mxu1  ;;  %v3913_v35 = vpop.f32.mrb[73].mxu0 }
 0x188   :  { %v3914_v49 = vadd.f32 %v3913_v35, %v3912_v39  ;;  %v3971_v53 = vpop.f32.mrb[73].mxu1  ;;  %v3915_v7 = vpop.f32.mrb[74].mxu0  ;;  %v3567_v39 = vld [vmem:[%s6637_s0 + $0x594] sm:$0xff] }
 0x189   :  { %v3972_v2 = vadd.f32 %v3971_v53, %v3970_v60  ;;  %v3973_v3 = vpop.f32.mrb[74].mxu1  ;;  %v3916_v4 = vpop.f32.mrb[75].mxu0  ;;  %4365 = vmatpush3.bf16.msra.mxu0 %v6691_v56  ;;  %v3568_v60 = vld [vmem:[%s6637_s0 + $0x59c] sm:$0xff] }
 0x18a   :  { %v3917_v31 = vadd.f32 %v3916_v4, %v3915_v7  ;;  %v3974_v46 = vpop.f32.mrb[75].mxu1  ;;  %4366 = vmatprep.subr.bf16.mxu0 %v6692_v10  ;;  %v3616_v56 = vcombine.high %v3568_v60, %v3568_v60 }
 0x18b   :  { %v6258_v11 = vadd.f32 %v3972_v2, %v3914_v49  ;;  %v3975_v12 = vadd.f32 %v3974_v46, %v3973_v3  ;;  %2786 = vmatmul.mubr.bf16.gmra.mrb[180].mxu0 %v4824_v41  ;;  %v4836_v49 = vld [vmem:[%s6637_s0 + $0x55c] ss:$28 sps:$4 sm:$0xff]   ;;  %v3614_v2 = vcombine.high %v3567_v39, %v3567_v39 }
 0x18c   :  { %2874 = vmatmul.mubr.bf16.gmra.mrb[180].mxu1 %v4825_v5  ;;  %2793 = vmatprep.mubr.bf16.mxu0 %v4826_v45  ;;  %v4837_v45 = vld [vmem:[%s6637_s0 + $0x564] ss:$28 sps:$4 sm:$0xff]  }
 0x18d   :  { %v6260_v63 = vadd.f32 %v3975_v12, %v3917_v31  ;;  %2881 = vmatprep.mubr.bf16.mxu1 %v4828_v42  ;;  %4367 = vmatpush3.bf16.msra.mxu0 %v6693_v19 }
 0x18e   :  { %v3918_v58 = vpop.f32.mrb[76].mxu0  ;;  %4368 = vmatprep.subr.bf16.mxu0 %v6694_v13 }
 0x18f   :  { %v3976_v14 = vpop.f32.mrb[76].mxu1  ;;  %v3919_v15 = vpop.f32.mrb[77].mxu0 }
 0x190   :  { %v3920_v51 = vadd.f32 %v3919_v15, %v3918_v58  ;;  %v3977_v61 = vpop.f32.mrb[77].mxu1  ;;  %v3921_v21 = vpop.f32.mrb[78].mxu0  ;;  %v3613_v58 = vcombine.low %v3567_v39, %v3567_v39 }
 0x191   :  { %v3978_v27 = vadd.f32 %v3977_v61, %v3976_v14  ;;  %v3979_v47 = vpop.f32.mrb[78].mxu1  ;;  %v3922_v54 = vpop.f32.mrb[79].mxu0  ;;  %4369 = vmatpush3.bf16.msra.mxu0 %v6695_v24 }
 0x192   :  { %v3923_v25 = vadd.f32 %v3922_v54, %v3921_v21  ;;  %v3980_v26 = vpop.f32.mrb[79].mxu1 }
 0x193   :  { %v6277_v55 = vadd.f32 %v3978_v27, %v3920_v51  ;;  %v3981_v18 = vadd.f32 %v3980_v26, %v3979_v47  ;;  %2794 = vmatmul.mubr.bf16.gmra.mrb[184].mxu0 %v4830_v52  ;;  %v3615_v52 = vcombine.low %v3568_v60, %v3568_v60  ;;  %v4844_v51 = vld [vmem:[%s6637_s0 + $0x458] ss:$28 sps:$4 sm:$0xff]  }
 0x194   :  { %2882 = vmatmul.mubr.bf16.gmra.mrb[184].mxu1 %v4831_v22  ;;  %2801 = vmatprep.mubr.bf16.mxu0 %v4832_v23 }
 0x195   :  { %v6279_v40 = vadd.f32 %v3981_v18, %v3923_v25  ;;  %2889 = vmatprep.mubr.bf16.mxu1 %v4834_v57 }
 0x196   :  { %v3924_v28 = vpop.f32.mrb[80].mxu0 }
 0x197   :  { %v3982_v35 = vpop.f32.mrb[80].mxu1  ;;  %v3925_v41 = vpop.f32.mrb[81].mxu0 }
 0x198   :  { %v3926_v53 = vadd.f32 %v3925_v41, %v3924_v28  ;;  %v3983_v7 = vpop.f32.mrb[81].mxu1  ;;  %v3927_v5 = vpop.f32.mrb[82].mxu0  ;;  %v4846_v41 = vld [vmem:[%s6637_s0 + $0x490] ss:$28 sps:$4 sm:$0xff]  }
 0x199   :  { %v3984_v3 = vadd.f32 %v3983_v7, %v3982_v35  ;;  %v3928_v4 = vpop.f32.mrb[83].mxu0  ;;  %v3985_v42 = vpop.f32.mrb[82].mxu1  ;;  %v4845_v35 = vld [vmem:[%s6637_s0 + $0x45c] ss:$28 sps:$4 sm:$0xff]  }
 0x19a   :  { %v3986_v31 = vpop.f32.mrb[83].mxu1 }
 0x19b   :  { %v6293_v46 = vadd.f32 %v3984_v3, %v3926_v53  ;;  %2802 = vmatmul.mubr.bf16.gmra.mrb[188].mxu0 %v4836_v49 }
 0x19c   :  { %2890 = vmatmul.mubr.bf16.gmra.mrb[188].mxu1 %v4837_v45  ;;  %2809 = vmatprep.mubr.bf16.mxu0 %v3614_v2 }
 0x19d   :  { %2897 = vmatprep.mubr.bf16.mxu1 %v3616_v56 }
 0x19e   :  { %v4004_v10 = vpop.f32.mrb[84].mxu0 }
 0x19f   :  { %v4005_v12 = vpop.f32.mrb[85].mxu0  ;;  %v1681_v19 = vpop.f32.mrb[84].mxu1 }
 0x1a0   :  { %v4006_v13 = vadd.f32 %v4005_v12, %v4004_v10  ;;  %v4007_v14 = vpop.f32.mrb[86].mxu0  ;;  %v4459_v15 = vpop.f32.mrb[85].mxu1  ;;  %v4848_v10 = vld [vmem:[%s6637_s0 + $0x48c] ss:$28 sps:$4 sm:$0xff]  }
 0x1a1   :  { %v4008_v61 = vpop.f32.mrb[87].mxu0  ;;  %v1684_v21 = vpop.f32.mrb[86].mxu1 }
 0x1a2   :  { %v4009_v22 = vadd.f32 %v4008_v61, %v4007_v14  ;;  %v1594_v23 = vadd.f32 %v4006_v13, %v6178_v62  ;;  %v4460_v27 = vpop.f32.mrb[87].mxu1  ;;  %v4842_v62 = vld [vmem:[%s6637_s0 + $0x454] ss:$28 sps:$4 sm:$0xff]   ;;  %v4850_v14 = vld [vmem:[%s6637_s0 + $0x4c8] ss:$28 sps:$4 sm:$0xff]  }
 0x1a3   :  { %2810 = vmatmul.mubr.bf16.gmra.mrb[192].mxu0 %v3613_v58  ;;  %v4849_v13 = vld [vmem:[%s6637_s0 + $0x494] ss:$28 sps:$4 sm:$0xff]  }
 0x1a4   :  { %v6299_v47 = vadd.f32 %v1681_v19, %v1594_v23  ;;  %v1597_v54 = vadd.f32 %v4009_v22, %v6181_v34  ;;  %2898 = vmatmul.mubr.bf16.gmra.mrb[192].mxu1 %v3615_v52  ;;  %2937 = vmatprep.mubr.bf16.mxu0 %v4844_v51 }
 0x1a5   :  { %4521 = vmatprep.mubr.msk.bf16.mxu1 %vm4920_vm0, %v6677_v8 }
 0x1a6   :  { %v1735_v57 = vmax.f32 %v6025_v43, %v6299_v47  ;;  %v6306_v24 = vadd.f32 %v1684_v21, %v1597_v54  ;;  %v4010_v25 = vpop.f32.mrb[88].mxu0 }
 0x1a7   :  { %v4011_v26 = vpop.f32.mrb[89].mxu0  ;;  %v1689_v18 = vpop.f32.mrb[88].mxu1 }
 0x1a8   :  { %v1736_v34 = vmax.f32 %v6030_v32, %v6306_v24  ;;  %v4012_v39 = vadd.f32 %v4011_v26, %v4010_v25  ;;  %v4013_v28 = vpop.f32.mrb[90].mxu0  ;;  %v4463_v60 = vpop.f32.mrb[89].mxu1 }
 0x1a9   :  { %v4014_v49 = vpop.f32.mrb[91].mxu0  ;;  %v1692_v53 = vpop.f32.mrb[90].mxu1  ;;  %v4853_v60 = vld [vmem:[%s6637_s0 + $0x4cc] ss:$28 sps:$4 sm:$0xff]  }
 0x1aa   :  { %v4015_v7 = vadd.f32 %v4014_v49, %v4013_v28  ;;  %v1602_v5 = vadd.f32 %v4012_v39, %v6195_v59  ;;  %v4464_v45 = vpop.f32.mrb[91].mxu1 }
 0x1ab   :  { %2938 = vmatmul.mubr.bf16.vlgmr.msra.gmra.mrb[196].mxu0 %v4842_v62 }
 0x1ac   :  { %v6320_v2 = vadd.f32 %v1689_v18, %v1602_v5  ;;  %v1605_v3 = vadd.f32 %v4015_v7, %v6198_v37  ;;  %4522 = vmatmul.mubr.msk.bf16.vlgmr.msra.gmra.mrb[196].mxu1 %vm701_vm1, %v4845_v35  ;;  %2945 = vmatprep.mubr.bf16.mxu0 %v4846_v41  ;;  %v4852_v18 = vld [vmem:[%s6637_s0 + $0x4c4] ss:$28 sps:$4 sm:$0xff]  }
 0x1ad   :  { %4525 = vmatprep.mubr.msk.bf16.mxu1 %vm4920_vm0, %v6677_v8  ;;  %v4854_v35 = vld [vmem:[%s6637_s0 + $0x500] ss:$28 sps:$4 sm:$0xff]  }
 0x1ae   :  { %v1737_v4 = vmax.f32 %v6042_v48, %v6320_v2  ;;  %v6328_v42 = vadd.f32 %v1692_v53, %v1605_v3  ;;  %v4016_v56 = vpop.f32.mrb[92].mxu0 }
 0x1af   :  { %v4017_v31 = vpop.f32.mrb[93].mxu0  ;;  %v1697_v59 = vpop.f32.mrb[92].mxu1 }
 0x1b0   :  { %v1738_v37 = vmax.f32 %v6048_v36, %v6328_v42  ;;  %v4018_v12 = vadd.f32 %v4017_v31, %v4016_v56  ;;  %v4019_v19 = vpop.f32.mrb[94].mxu0  ;;  %v4467_v58 = vpop.f32.mrb[93].mxu1 }
 0x1b1   :  { %v4020_v15 = vpop.f32.mrb[95].mxu0  ;;  %v1700_v52 = vpop.f32.mrb[94].mxu1 }
 0x1b2   :  { %v4021_v51 = vadd.f32 %v4020_v15, %v4019_v19  ;;  %v1610_v61 = vadd.f32 %v4018_v12, %v6218_v30  ;;  %v4468_v21 = vpop.f32.mrb[95].mxu1  ;;  %v4856_v12 = vld [vmem:[%s6637_s0 + $0x4fc] ss:$28 sps:$4 sm:$0xff]  }
 0x1b3   :  { %2946 = vmatmul.mubr.bf16.gmra.mrb[200].mxu0 %v4848_v10  ;;  %v4858_v15 = vld [vmem:[%s6637_s0 + $0x538] ss:$28 sps:$4 sm:$0xff]  }
 0x1b4   :  { %v6342_v22 = vadd.f32 %v1697_v59, %v1610_v61  ;;  %v1613_v23 = vadd.f32 %v4021_v51, %v6220_v1  ;;  %4526 = vmatmul.mubr.msk.bf16.gmra.mrb[200].mxu1 %vm701_vm1, %v4849_v13  ;;  %2953 = vmatprep.mubr.bf16.mxu0 %v4850_v14  ;;  %v4857_v14 = vld [vmem:[%s6637_s0 + $0x504] ss:$28 sps:$4 sm:$0xff]  }
 0x1b5   :  { %4529 = vmatprep.mubr.msk.bf16.mxu1 %vm4920_vm0, %v6677_v8 }
 0x1b6   :  { %v1739_v27 = vmax.f32 %v6068_v44, %v6342_v22  ;;  %v6350_v54 = vadd.f32 %v1700_v52, %v1613_v23  ;;  %v4022_v25 = vpop.f32.mrb[96].mxu0 }
 0x1b7   :  { %v4023_v26 = vpop.f32.mrb[97].mxu0  ;;  %v1705_v30 = vpop.f32.mrb[96].mxu1 }
 0x1b8   :  { %v4024_v62 = vadd.f32 %v4023_v26, %v4022_v25  ;;  %v4025_v39 = vpop.f32.mrb[98].mxu0  ;;  %v4471_v28 = vpop.f32.mrb[97].mxu1 }
 0x1b9   :  { %v4026_v41 = vpop.f32.mrb[99].mxu0  ;;  %v1708_v49 = vpop.f32.mrb[98].mxu1  ;;  %v4860_v28 = vld [vmem:[%s6637_s0 + $0x534] ss:$28 sps:$4 sm:$0xff]  }
 0x1ba   :  { %v4027_v53 = vadd.f32 %v4026_v41, %v4025_v39  ;;  %v1618_v7 = vadd.f32 %v4024_v62, %v6238_v16  ;;  %v4472_v5 = vpop.f32.mrb[99].mxu1 }
 0x1bb   :  { %2954 = vmatmul.mubr.bf16.gmra.mrb[204].mxu0 %v4852_v18 }
 0x1bc   :  { %v6364_v45 = vadd.f32 %v1705_v30, %v1618_v7  ;;  %v1621_v3 = vadd.f32 %v4027_v53, %v6240_v0  ;;  %4530 = vmatmul.mubr.msk.bf16.gmra.mrb[204].mxu1 %vm701_vm1, %v4853_v60  ;;  %2961 = vmatprep.mubr.bf16.mxu0 %v4854_v35  ;;  %v4862_v53 = vld [vmem:[%s6637_s0 + $0x570] ss:$28 sps:$4 sm:$0xff]  }
 0x1bd   :  { %4533 = vmatprep.mubr.msk.bf16.mxu1 %vm4920_vm0, %v6677_v8 }
 0x1be   :  { %v6372_v31 = vadd.f32 %v1708_v49, %v1621_v3  ;;  %v4028_v59 = vpop.f32.mrb[100].mxu0  ;;  %v4861_v49 = vld [vmem:[%s6637_s0 + $0x53c] ss:$28 sps:$4 sm:$0xff]  }
 0x1bf   :  { %v4029_v10 = vpop.f32.mrb[101].mxu0  ;;  %v1713_v16 = vpop.f32.mrb[100].mxu1 }
 0x1c0   :  { %v4030_v19 = vadd.f32 %v4029_v10, %v4028_v59  ;;  %v4031_v58 = vpop.f32.mrb[102].mxu0  ;;  %v4475_v13 = vpop.f32.mrb[101].mxu1 }
 0x1c1   :  { %v4032_v52 = vpop.f32.mrb[103].mxu0  ;;  %v1716_v51 = vpop.f32.mrb[102].mxu1 }
 0x1c2   :  { %v4033_v61 = vadd.f32 %v4032_v52, %v4031_v58  ;;  %v1626_v21 = vadd.f32 %v4030_v19, %v6258_v11  ;;  %v4476_v23 = vpop.f32.mrb[103].mxu1  ;;  %v3569_v19 = vld [vmem:[%s6637_s0 + $0x5a4] sm:$0xff] }
 0x1c3   :  { %2962 = vmatmul.mubr.bf16.gmra.mrb[208].mxu0 %v4856_v12  ;;  %v4865_v23 = vld [vmem:[%s6637_s0 + $0x574] ss:$28 sps:$4 sm:$0xff]  }
 0x1c4   :  { %v6386_v25 = vadd.f32 %v1713_v16, %v1626_v21  ;;  %v1629_v26 = vadd.f32 %v4033_v61, %v6260_v63  ;;  %4534 = vmatmul.mubr.msk.bf16.gmra.mrb[208].mxu1 %vm701_vm1, %v4857_v14  ;;  %2969 = vmatprep.mubr.bf16.mxu0 %v4858_v15 }
 0x1c5   :  { %4537 = vmatprep.mubr.msk.bf16.mxu1 %vm4920_vm0, %v6677_v8 }
 0x1c6   :  { %v6394_v18 = vadd.f32 %v1716_v51, %v1629_v26  ;;  %v4034_v62 = vpop.f32.mrb[104].mxu0  ;;  %v3618_v26 = vcombine.high %v3569_v19, %v3569_v19 }
 0x1c7   :  { %v4035_v39 = vpop.f32.mrb[105].mxu0  ;;  %v1721_v11 = vpop.f32.mrb[104].mxu1 }
 0x1c8   :  { %v4036_v60 = vadd.f32 %v4035_v39, %v4034_v62  ;;  %v4037_v35 = vpop.f32.mrb[106].mxu0  ;;  %v4479_v41 = vpop.f32.mrb[105].mxu1 }
 0x1c9   :  { %v4038_v7 = vpop.f32.mrb[107].mxu0  ;;  %v1724_v5 = vpop.f32.mrb[106].mxu1 }
 0x1ca   :  { %v4039_v3 = vadd.f32 %v4038_v7, %v4037_v35  ;;  %v1634_v59 = vadd.f32 %v4036_v60, %v6277_v55  ;;  %v4480_v10 = vpop.f32.mrb[107].mxu1  ;;  %v3617_v7 = vcombine.low %v3569_v19, %v3569_v19 }
 0x1cb   :  { %2970 = vmatmul.mubr.bf16.gmra.mrb[212].mxu0 %v4860_v28 }
 0x1cc   :  { %v6408_v16 = vadd.f32 %v1721_v11, %v1634_v59  ;;  %v1637_v12 = vadd.f32 %v4039_v3, %v6279_v40  ;;  %4538 = vmatmul.mubr.msk.bf16.gmra.mrb[212].mxu1 %vm701_vm1, %v4861_v49  ;;  %2977 = vmatprep.mubr.bf16.mxu0 %v4862_v53  ;;  %v4864_v40 = vld [vmem:[%s6637_s0 + $0x56c] ss:$28 sps:$4 sm:$0xff]  }
 0x1cd   :  { %4541 = vmatprep.mubr.msk.bf16.mxu1 %vm4920_vm0, %v6677_v8  ;;  %v4868_v59 = vld [vmem:[%s6637_s0 + $0x5ac] ss:$0 sps:$4 sm:$0xff]  }
 0x1ce   :  { %v6419_v55 = vadd.f32 %v1724_v5, %v1637_v12  ;;  %v4040_v13 = vpop.f32.mrb[108].mxu0 }
 0x1cf   :  { %v4041_v14 = vpop.f32.mrb[109].mxu0  ;;  %v1729_v15 = vpop.f32.mrb[108].mxu1 }
 0x1d0   :  { %v4042_v51 = vadd.f32 %v4041_v14, %v4040_v13  ;;  %v4043_v61 = vpop.f32.mrb[110].mxu0  ;;  %v4483_v21 = vpop.f32.mrb[109].mxu1 }
 0x1d1   :  { %v4044_v62 = vpop.f32.mrb[111].mxu0  ;;  %v1732_v39 = vpop.f32.mrb[110].mxu1 }
 0x1d2   :  { %v1642_v11 = vadd.f32 %v4042_v51, %v6293_v46  ;;  %v4484_v28 = vpop.f32.mrb[111].mxu1 }
 0x1d3   :  { %2978 = vmatmul.mubr.bf16.gmra.mrb[216].mxu0 %v4864_v40 }
 0x1d4   :  { %v6430_v60 = vadd.f32 %v1729_v15, %v1642_v11  ;;  %4542 = vmatmul.mubr.msk.bf16.gmra.mrb[216].mxu1 %vm701_vm1, %v4865_v23  ;;  %2985 = vmatprep.mubr.bf16.mxu0 %v3618_v26 }
 0x1d5   :  { %4545 = vmatprep.mubr.msk.bf16.mxu1 %vm4920_vm0, %v6677_v8 }
 0x1d6   :  { %v4071_v41 = vpop.f32.mrb[112].mxu0 }
 0x1d7   :  { %v4129_v49 = vpop.f32.mrb[112].mxu1  ;;  %v4072_v53 = vpop.f32.mrb[113].mxu0 }
 0x1d8   :  { %v4073_v5 = vadd.f32 %v4072_v53, %v4071_v41  ;;  %v4130_v3 = vpop.f32.mrb[113].mxu1  ;;  %v4074_v46 = vpop.f32.mrb[114].mxu0 }
 0x1d9   :  { %v4131_v10 = vadd.f32 %v4130_v3, %v4129_v49  ;;  %v4132_v12 = vpop.f32.mrb[114].mxu1  ;;  %v4075_v13 = vpop.f32.mrb[115].mxu0 }
 0x1da   :  { %v4076_v14 = vadd.f32 %v4075_v13, %v4074_v46  ;;  %v4133_v15 = vpop.f32.mrb[115].mxu1 }
 0x1db   :  { %v6440_v8 = vadd.f32 %v4131_v10, %v4073_v5  ;;  %v4134_v40 = vadd.f32 %v4133_v15, %v4132_v12  ;;  %2986 = vmatmul.mubr.bf16.gmra.mrb[220].mxu0 %v3617_v7 }
 0x1dc   :  { %4546 = vmatmul.mubr.msk.bf16.gmra.mrb[220].mxu1 %vm701_vm1, %v4868_v59 }
 0x1dd   :  { %v6443_v51 = vadd.f32 %v4134_v40, %v4076_v14 }
 0x1de   :  { %v4077_v19 = vpop.f32.mrb[116].mxu0 }
 0x1df   :  { %v4135_v61 = vpop.f32.mrb[116].mxu1  ;;  %v4078_v21 = vpop.f32.mrb[117].mxu0 }
 0x1e0   :  { %v4079_v23 = vadd.f32 %v4078_v21, %v4077_v19  ;;  %v4136_v26 = vpop.f32.mrb[117].mxu1  ;;  %v4080_v62 = vpop.f32.mrb[118].mxu0 }
 0x1e1   :  { %v4137_v39 = vadd.f32 %v4136_v26, %v4135_v61  ;;  %v4138_v11 = vpop.f32.mrb[118].mxu1  ;;  %v4081_v28 = vpop.f32.mrb[119].mxu0 }
 0x1e2   :  { %v4082_v41 = vadd.f32 %v4081_v28, %v4080_v62  ;;  %v4139_v49 = vpop.f32.mrb[119].mxu1 }
 0x1e3   :  { %v6445_v53 = vadd.f32 %v4137_v39, %v4079_v23  ;;  %v4140_v5 = vadd.f32 %v4139_v49, %v4138_v11 }
 0x1e5   :  { %v6447_v3 = vadd.f32 %v4140_v5, %v4082_v41 }
 0x1e6   :  { %v4083_v7 = vpop.f32.mrb[120].mxu0 }
 0x1e7   :  { %v4141_v46 = vpop.f32.mrb[120].mxu1  ;;  %v4084_v59 = vpop.f32.mrb[121].mxu0 }
 0x1e8   :  { %v4085_v10 = vadd.f32 %v4084_v59, %v4083_v7  ;;  %v4142_v12 = vpop.f32.mrb[121].mxu1  ;;  %v4086_v13 = vpop.f32.mrb[122].mxu0 }
 0x1e9   :  { %v4143_v14 = vadd.f32 %v4142_v12, %v4141_v46  ;;  %v4144_v15 = vpop.f32.mrb[122].mxu1  ;;  %v4087_v40 = vpop.f32.mrb[123].mxu0 }
 0x1ea   :  { %v4088_v19 = vadd.f32 %v4087_v40, %v4086_v13  ;;  %v4145_v61 = vpop.f32.mrb[123].mxu1 }
 0x1eb   :  { %v6449_v21 = vadd.f32 %v4143_v14, %v4085_v10  ;;  %v4146_v26 = vadd.f32 %v4145_v61, %v4144_v15 }
 0x1ed   :  { %v6451_v62 = vadd.f32 %v4146_v26, %v4088_v19 }
 0x1ee   :  { %v4089_v23 = vpop.f32.mrb[124].mxu0 }
 0x1ef   :  { %v4147_v39 = vpop.f32.mrb[124].mxu1  ;;  %v4090_v11 = vpop.f32.mrb[125].mxu0 }
 0x1f0   :  { %v4091_v28 = vadd.f32 %v4090_v11, %v4089_v23  ;;  %v4148_v41 = vpop.f32.mrb[125].mxu1  ;;  %v4092_v49 = vpop.f32.mrb[126].mxu0 }
 0x1f1   :  { %v4149_v5 = vadd.f32 %v4148_v41, %v4147_v39  ;;  %v4150_v7 = vpop.f32.mrb[126].mxu1  ;;  %v4093_v59 = vpop.f32.mrb[127].mxu0 }
 0x1f2   :  { %v4094_v35 = vadd.f32 %v4093_v59, %v4092_v49  ;;  %v4151_v46 = vpop.f32.mrb[127].mxu1 }
 0x1f3   :  { %v6453_v12 = vadd.f32 %v4149_v5, %v4091_v28  ;;  %v4152_v13 = vadd.f32 %v4151_v46, %v4150_v7 }
 0x1f5   :  { %v6455_v40 = vadd.f32 %v4152_v13, %v4094_v35 }
 0x1f6   :  { %v4095_v10 = vpop.f32.mrb[128].mxu0 }
 0x1f7   :  { %v4153_v14 = vpop.f32.mrb[128].mxu1  ;;  %v4096_v15 = vpop.f32.mrb[129].mxu0 }
 0x1f8   :  { %v4097_v19 = vadd.f32 %v4096_v15, %v4095_v10  ;;  %v4154_v61 = vpop.f32.mrb[129].mxu1  ;;  %v4098_v26 = vpop.f32.mrb[130].mxu0 }
 0x1f9   :  { %v4155_v52 = vadd.f32 %v4154_v61, %v4153_v14  ;;  %v4156_v23 = vpop.f32.mrb[130].mxu1  ;;  %v4099_v11 = vpop.f32.mrb[131].mxu0 }
 0x1fa   :  { %v4100_v58 = vadd.f32 %v4099_v11, %v4098_v26  ;;  %v4157_v39 = vpop.f32.mrb[131].mxu1 }
 0x1fb   :  { %v6457_v41 = vadd.f32 %v4155_v52, %v4097_v19  ;;  %v4158_v49 = vadd.f32 %v4157_v39, %v4156_v23 }
 0x1fd   :  { %v6459_v59 = vadd.f32 %v4158_v49, %v4100_v58 }
 0x1fe   :  { %v4101_v28 = vpop.f32.mrb[132].mxu0 }
 0x1ff   :  { %v4159_v5 = vpop.f32.mrb[132].mxu1  ;;  %v4102_v35 = vpop.f32.mrb[133].mxu0 }
 0x200   :  { %v4103_v7 = vadd.f32 %v4102_v35, %v4101_v28  ;;  %v4160_v46 = vpop.f32.mrb[133].mxu1  ;;  %v4104_v13 = vpop.f32.mrb[134].mxu0 }
 0x201   :  { %v4161_v63 = vadd.f32 %v4160_v46, %v4159_v5  ;;  %v4162_v10 = vpop.f32.mrb[134].mxu1  ;;  %v4105_v15 = vpop.f32.mrb[135].mxu0 }
 0x202   :  { %v4106_v30 = vadd.f32 %v4105_v15, %v4104_v13  ;;  %v4163_v14 = vpop.f32.mrb[135].mxu1 }
 0x203   :  { %v6461_v61 = vadd.f32 %v4161_v63, %v4103_v7  ;;  %v4164_v26 = vadd.f32 %v4163_v14, %v4162_v10 }
 0x205   :  { %v6463_v11 = vadd.f32 %v4164_v26, %v4106_v30 }
 0x206   :  { %v4107_v52 = vpop.f32.mrb[136].mxu0 }
 0x207   :  { %v4165_v19 = vpop.f32.mrb[136].mxu1  ;;  %v4108_v58 = vpop.f32.mrb[137].mxu0 }
 0x208   :  { %v4109_v23 = vadd.f32 %v4108_v58, %v4107_v52  ;;  %v4166_v39 = vpop.f32.mrb[137].mxu1  ;;  %v4110_v49 = vpop.f32.mrb[138].mxu0 }
 0x209   :  { %v4167_v0 = vadd.f32 %v4166_v39, %v4165_v19  ;;  %v4111_v28 = vpop.f32.mrb[139].mxu0  ;;  %v4168_v35 = vpop.f32.mrb[138].mxu1 }
 0x20a   :  { %v4169_v56 = vpop.f32.mrb[139].mxu1 }
 0x20b   :  { %v6465_v5 = vadd.f32 %v4167_v0, %v4109_v23 }
 0x20e   :  { %v4187_v46 = vpop.f32.mrb[140].mxu0 }
 0x20f   :  { %v4188_v13 = vpop.f32.mrb[141].mxu0  ;;  %v2354_v15 = vpop.f32.mrb[140].mxu1 }
 0x210   :  { %v4189_v63 = vadd.f32 %v4188_v13, %v4187_v46  ;;  %v4190_v7 = vpop.f32.mrb[142].mxu0  ;;  %v4491_v10 = vpop.f32.mrb[141].mxu1 }
 0x211   :  { %v4191_v30 = vpop.f32.mrb[143].mxu0  ;;  %v2357_v14 = vpop.f32.mrb[142].mxu1 }
 0x212   :  { %v4192_v26 = vadd.f32 %v4191_v30, %v4190_v7  ;;  %v2267_v1 = vadd.f32 %v4189_v63, %v6440_v8  ;;  %v4492_v52 = vpop.f32.mrb[143].mxu1 }
 0x214   :  { %v2355_v58 = vadd.f32 %v2354_v15, %v2267_v1  ;;  %v2270_v19 = vadd.f32 %v4192_v26, %v6443_v51 }
 0x216   :  { %v6472_v56 = vmax.f32 %v1735_v57, %v2355_v58  ;;  %v2358_v0 = vadd.f32 %v2357_v14, %v2270_v19  ;;  %v4193_v23 = vpop.f32.mrb[144].mxu0 }
 0x217   :  { %v4194_v39 = vpop.f32.mrb[145].mxu0  ;;  %v2362_v49 = vpop.f32.mrb[144].mxu1 }
 0x218   :  { %v6477_v28 = vmax.f32 %v1736_v34, %v2358_v0  ;;  %v4195_v35 = vadd.f32 %v4194_v39, %v4193_v23  ;;  %v4196_v8 = vpop.f32.mrb[146].mxu0  ;;  %v4495_v46 = vpop.f32.mrb[145].mxu1  ;;  %v6696_v23 = vmax.f32 %v6075_v33, %v6350_v54 }
 0x219   :  { %v4197_v1 = vpop.f32.mrb[147].mxu0  ;;  %v2365_v13 = vpop.f32.mrb[146].mxu1 }
 0x21a   :  { %v4198_v51 = vadd.f32 %v4197_v1, %v4196_v8  ;;  %v2275_v15 = vadd.f32 %v4195_v35, %v6445_v53  ;;  %v4496_v43 = vpop.f32.mrb[147].mxu1 }
 0x21c   :  { %v2363_v47 = vadd.f32 %v2362_v49, %v2275_v15  ;;  %v2278_v57 = vadd.f32 %v4198_v51, %v6447_v3 }
 0x21e   :  { %v6484_v63 = vmax.f32 %v1737_v4, %v2363_v47  ;;  %v2366_v32 = vadd.f32 %v2365_v13, %v2278_v57  ;;  %v4199_v24 = vpop.f32.mrb[148].mxu0  ;;  %v6697_v13 = vmax.f32 %v6094_v6, %v6364_v45  ;;  %v6698_v47 = vmax.f32 %v6101_v9, %v6372_v31 }
 0x21f   :  { %v4200_v34 = vpop.f32.mrb[149].mxu0  ;;  %v2370_v7 = vpop.f32.mrb[148].mxu1 }
 0x220   :  { %v6489_v10 = vmax.f32 %v1738_v37, %v2366_v32  ;;  %v4201_v30 = vadd.f32 %v4200_v34, %v4199_v24  ;;  %v4202_v53 = vpop.f32.mrb[150].mxu0  ;;  %v4499_v14 = vpop.f32.mrb[149].mxu1 }
 0x221   :  { %v4203_v26 = vpop.f32.mrb[151].mxu0  ;;  %v2373_v52 = vpop.f32.mrb[150].mxu1  ;;  %v6699_v14 = vmax.f32 %v6120_v17, %v6386_v25 }
 0x222   :  { %v4204_v3 = vadd.f32 %v4203_v26, %v4202_v53  ;;  %v2283_v58 = vadd.f32 %v4201_v30, %v6449_v21  ;;  %v4500_v48 = vpop.f32.mrb[151].mxu1 }
 0x224   :  { %v2371_v2 = vadd.f32 %v2370_v7, %v2283_v58  ;;  %v2286_v4 = vadd.f32 %v4204_v3, %v6451_v62  ;;  %v6700_v58 = vmax.f32 %v6127_v20, %v6394_v18 }
 0x226   :  { %v6496_v19 = vmax.f32 %v1739_v27, %v2371_v2  ;;  %v2374_v36 = vadd.f32 %v2373_v52, %v2286_v4  ;;  %v4205_v42 = vpop.f32.mrb[152].mxu0 }
 0x227   :  { %v4206_v37 = vpop.f32.mrb[153].mxu0  ;;  %v2378_v0 = vpop.f32.mrb[152].mxu1 }
 0x228   :  { %v6501_v39 = vmax.f32 %v6696_v23, %v2374_v36  ;;  %v4207_v49 = vadd.f32 %v4206_v37, %v4205_v42  ;;  %v4208_v21 = vpop.f32.mrb[154].mxu0  ;;  %v4503_v35 = vpop.f32.mrb[153].mxu1  ;;  %v6701_v23 = vmax.f32 %v6146_v29, %v6408_v16  ;;  %v6703_v16 = vmax.f32 %v6164_v50, %v6430_v60 }
 0x229   :  { %v4209_v8 = vpop.f32.mrb[155].mxu0  ;;  %v2381_v46 = vpop.f32.mrb[154].mxu1 }
 0x22a   :  { %v4210_v62 = vadd.f32 %v4209_v8, %v4208_v21  ;;  %v2291_v1 = vadd.f32 %v4207_v49, %v6453_v12  ;;  %v4504_v44 = vpop.f32.mrb[155].mxu1  ;;  %v6702_v8 = vmax.f32 %v6155_v38, %v6419_v55 }
 0x22c   :  { %v2379_v22 = vadd.f32 %v2378_v0, %v2291_v1  ;;  %v2294_v27 = vadd.f32 %v4210_v62, %v6455_v40 }
 0x22e   :  { %v6508_v51 = vmax.f32 %v6697_v13, %v2379_v22  ;;  %v2382_v33 = vadd.f32 %v2381_v46, %v2294_v27  ;;  %v4211_v54 = vpop.f32.mrb[156].mxu0 }
 0x22f   :  { %v4212_v15 = vpop.f32.mrb[157].mxu0  ;;  %v2386_v43 = vpop.f32.mrb[156].mxu1 }
 0x230   :  { %v6513_v57 = vmax.f32 %v6698_v47, %v2382_v33  ;;  %v4213_v32 = vadd.f32 %v4212_v15, %v4211_v54  ;;  %v4214_v12 = vpop.f32.mrb[158].mxu0  ;;  %v4507_v24 = vpop.f32.mrb[157].mxu1 }
 0x231   :  { %v4215_v34 = vpop.f32.mrb[159].mxu0  ;;  %v2389_v7 = vpop.f32.mrb[158].mxu1 }
 0x232   :  { %v4216_v40 = vadd.f32 %v4215_v34, %v4214_v12  ;;  %v2299_v30 = vadd.f32 %v4213_v32, %v6457_v41  ;;  %v4508_v6 = vpop.f32.mrb[159].mxu1 }
 0x234   :  { %v2387_v45 = vadd.f32 %v2386_v43, %v2299_v30  ;;  %v2302_v53 = vadd.f32 %v4216_v40, %v6459_v59 }
 0x236   :  { %v6520_v26 = vmax.f32 %v6699_v14, %v2387_v45  ;;  %v2390_v9 = vadd.f32 %v2389_v7, %v2302_v53  ;;  %v4217_v31 = vpop.f32.mrb[160].mxu0 }
 0x237   :  { %v4218_v52 = vpop.f32.mrb[161].mxu0  ;;  %v2394_v3 = vpop.f32.mrb[160].mxu1 }
 0x238   :  { %v6525_v48 = vmax.f32 %v6700_v58, %v2390_v9  ;;  %v4219_v2 = vadd.f32 %v4218_v52, %v4217_v31  ;;  %v4220_v41 = vpop.f32.mrb[162].mxu0  ;;  %v4511_v4 = vpop.f32.mrb[161].mxu1 }
 0x239   :  { %v4221_v36 = vpop.f32.mrb[163].mxu0  ;;  %v2397_v42 = vpop.f32.mrb[162].mxu1 }
 0x23a   :  { %v4222_v59 = vadd.f32 %v4221_v36, %v4220_v41  ;;  %v2307_v37 = vadd.f32 %v4219_v2, %v6461_v61  ;;  %v4512_v17 = vpop.f32.mrb[163].mxu1 }
 0x23c   :  { %v2395_v25 = vadd.f32 %v2394_v3, %v2307_v37  ;;  %v2310_v0 = vadd.f32 %v4222_v59, %v6463_v11 }
 0x23e   :  { %v6532_v49 = vmax.f32 %v6701_v23, %v2395_v25  ;;  %v2398_v20 = vadd.f32 %v2397_v42, %v2310_v0  ;;  %v4223_v18 = vpop.f32.mrb[164].mxu0 }
 0x23f   :  { %v4224_v21 = vpop.f32.mrb[165].mxu0  ;;  %v2402_v35 = vpop.f32.mrb[164].mxu1 }
 0x240   :  { %v6537_v46 = vmax.f32 %v6702_v8, %v2398_v20  ;;  %v4225_v62 = vadd.f32 %v4224_v21, %v4223_v18  ;;  %v4226_v61 = vpop.f32.mrb[166].mxu0  ;;  %v4515_v1 = vpop.f32.mrb[165].mxu1 }
 0x241   :  { %v4227_v44 = vpop.f32.mrb[167].mxu0  ;;  %v2405_v22 = vpop.f32.mrb[166].mxu1 }
 0x242   :  { %v2315_v11 = vadd.f32 %v4225_v62, %v6465_v5  ;;  %v4516_v27 = vpop.f32.mrb[167].mxu1 }
 0x244   :  { %v2403_v29 = vadd.f32 %v2402_v35, %v2315_v11 }
 0x246   :  { %v6543_v13 = vmax.f32 %v6703_v16, %v2403_v29  ;;  %v4254_v33 = vpop.f32.mrb[168].mxu0 }
 0x247   :  { %v4312_v54 = vpop.f32.mrb[168].mxu1  ;;  %v4255_v15 = vpop.f32.mrb[169].mxu0 }
 0x248   :  { %v4256_v38 = vadd.f32 %v4255_v15, %v4254_v33  ;;  %v4313_v55 = vpop.f32.mrb[169].mxu1  ;;  %v4257_v43 = vpop.f32.mrb[170].mxu0 }
 0x249   :  { %v4314_v47 = vadd.f32 %v4313_v55, %v4312_v54  ;;  %v4315_v32 = vpop.f32.mrb[170].mxu1  ;;  %v4258_v12 = vpop.f32.mrb[171].mxu0 }
 0x24a   :  { %v4259_v24 = vadd.f32 %v4258_v12, %v4257_v43  ;;  %v4316_v34 = vpop.f32.mrb[171].mxu1 }
 0x24b   :  { %v6545_v7 = vadd.f32 %v4314_v47, %v4256_v38  ;;  %v4317_v5 = vadd.f32 %v4316_v34, %v4315_v32 }
 0x24d   :  { %v6547_v40 = vadd.f32 %v4317_v5, %v4259_v24 }
 0x24e   :  { %v4260_v30 = vpop.f32.mrb[172].mxu0 }
 0x24f   :  { %v4318_v50 = vpop.f32.mrb[172].mxu1  ;;  %v4261_v60 = vpop.f32.mrb[173].mxu0 }
 0x250   :  { %v4262_v6 = vadd.f32 %v4261_v60, %v4260_v30  ;;  %v4319_v45 = vpop.f32.mrb[173].mxu1  ;;  %v4263_v53 = vpop.f32.mrb[174].mxu0 }
 0x251   :  { %v4320_v14 = vadd.f32 %v4319_v45, %v4318_v50  ;;  %v4321_v9 = vpop.f32.mrb[174].mxu1  ;;  %v4264_v31 = vpop.f32.mrb[175].mxu0 }
 0x252   :  { %v4265_v52 = vadd.f32 %v4264_v31, %v4263_v53  ;;  %v4322_v3 = vpop.f32.mrb[175].mxu1 }
 0x253   :  { %v6549_v58 = vadd.f32 %v4320_v14, %v4262_v6  ;;  %v4323_v2 = vadd.f32 %v4322_v3, %v4321_v9 }
 0x255   :  { %v6551_v41 = vadd.f32 %v4323_v2, %v4265_v52 }
 0x256   :  { %v4266_v4 = vpop.f32.mrb[176].mxu0 }
 0x257   :  { %v4324_v36 = vpop.f32.mrb[176].mxu1  ;;  %v4267_v42 = vpop.f32.mrb[177].mxu0 }
 0x258   :  { %v4268_v59 = vadd.f32 %v4267_v42, %v4266_v4  ;;  %v4325_v37 = vpop.f32.mrb[177].mxu1  ;;  %v4269_v17 = vpop.f32.mrb[178].mxu0 }
 0x259   :  { %v4326_v25 = vadd.f32 %v4325_v37, %v4324_v36  ;;  %v4327_v0 = vpop.f32.mrb[178].mxu1  ;;  %v4270_v23 = vpop.f32.mrb[179].mxu0 }
 0x25a   :  { %v4271_v20 = vadd.f32 %v4270_v23, %v4269_v17  ;;  %v4328_v18 = vpop.f32.mrb[179].mxu1 }
 0x25b   :  { %v6553_v21 = vadd.f32 %v4326_v25, %v4268_v59  ;;  %v4329_v35 = vadd.f32 %v4328_v18, %v4327_v0 }
 0x25d   :  { %v6555_v8 = vadd.f32 %v4329_v35, %v4271_v20 }
 0x25e   :  { %v4272_v62 = vpop.f32.mrb[180].mxu0 }
 0x25f   :  { %v4330_v61 = vpop.f32.mrb[180].mxu1  ;;  %v4273_v1 = vpop.f32.mrb[181].mxu0 }
 0x260   :  { %v4274_v44 = vadd.f32 %v4273_v1, %v4272_v62  ;;  %v4331_v22 = vpop.f32.mrb[181].mxu1  ;;  %v4275_v11 = vpop.f32.mrb[182].mxu0 }
 0x261   :  { %v4332_v27 = vadd.f32 %v4331_v22, %v4330_v61  ;;  %v4333_v29 = vpop.f32.mrb[182].mxu1  ;;  %v4276_v16 = vpop.f32.mrb[183].mxu0 }
 0x262   :  { %v4277_v33 = vadd.f32 %v4276_v16, %v4275_v11  ;;  %v4334_v54 = vpop.f32.mrb[183].mxu1 }
 0x263   :  { %v6557_v15 = vadd.f32 %v4332_v27, %v4274_v44  ;;  %v4335_v38 = vadd.f32 %v4334_v54, %v4333_v29 }
 0x265   :  { %v6559_v55 = vadd.f32 %v4335_v38, %v4277_v33 }
 0x266   :  { %v4278_v43 = vpop.f32.mrb[184].mxu0 }
 0x267   :  { %v4336_v47 = vpop.f32.mrb[184].mxu1  ;;  %v4279_v32 = vpop.f32.mrb[185].mxu0 }
 0x268   :  { %v4280_v12 = vadd.f32 %v4279_v32, %v4278_v43  ;;  %v4337_v24 = vpop.f32.mrb[185].mxu1  ;;  %v4281_v34 = vpop.f32.mrb[186].mxu0 }
 0x269   :  { %v4338_v5 = vadd.f32 %v4337_v24, %v4336_v47  ;;  %v4339_v30 = vpop.f32.mrb[186].mxu1  ;;  %v4282_v50 = vpop.f32.mrb[187].mxu0 }
 0x26a   :  { %v4283_v60 = vadd.f32 %v4282_v50, %v4281_v34  ;;  %v4340_v6 = vpop.f32.mrb[187].mxu1 }
 0x26b   :  { %v6561_v45 = vadd.f32 %v4338_v5, %v4280_v12  ;;  %v4341_v53 = vadd.f32 %v4340_v6, %v4339_v30 }
 0x26d   :  { %v6563_v14 = vadd.f32 %v4341_v53, %v4283_v60  ;;  %v6576_v60 = vld [vmem:[%s6638_s2] ss:$0 sm:$0xff] }
 0x26e   :  { %v4284_v9 = vpop.f32.mrb[188].mxu0 }
 0x26f   :  { %v4342_v31 = vpop.f32.mrb[188].mxu1  ;;  %v4285_v52 = vpop.f32.mrb[189].mxu0 }
 0x270   :  { %v4286_v3 = vadd.f32 %v4285_v52, %v4284_v9  ;;  %v4343_v2 = vpop.f32.mrb[189].mxu1  ;;  %v4287_v4 = vpop.f32.mrb[190].mxu0 }
 0x271   :  { %v4344_v36 = vadd.f32 %v4343_v2, %v4342_v31  ;;  %v4345_v42 = vpop.f32.mrb[190].mxu1  ;;  %v4288_v59 = vpop.f32.mrb[191].mxu0 }
 0x272   :  { %v4289_v37 = vadd.f32 %v4288_v59, %v4287_v4  ;;  %v4346_v17 = vpop.f32.mrb[191].mxu1 }
 0x273   :  { %v6565_v25 = vadd.f32 %v4344_v36, %v4286_v3  ;;  %v4347_v0 = vadd.f32 %v4346_v17, %v4345_v42 }
 0x275   :  { %v6567_v23 = vadd.f32 %v4347_v0, %v4289_v37 }
 0x276   :  { %v4290_v20 = vpop.f32.mrb[192].mxu0 }
 0x277   :  { %v4348_v18 = vpop.f32.mrb[192].mxu1  ;;  %v4291_v35 = vpop.f32.mrb[193].mxu0 }
 0x278   :  { %v4292_v62 = vadd.f32 %v4291_v35, %v4290_v20  ;;  %v4349_v61 = vpop.f32.mrb[193].mxu1  ;;  %v4293_v1 = vpop.f32.mrb[194].mxu0 }
 0x279   :  { %v4350_v44 = vadd.f32 %v4349_v61, %v4348_v18  ;;  %v4294_v22 = vpop.f32.mrb[195].mxu0  ;;  %v4351_v11 = vpop.f32.mrb[194].mxu1 }
 0x27a   :  { %v4352_v27 = vpop.f32.mrb[195].mxu1 }
 0x27b   :  { %v6569_v29 = vadd.f32 %v4350_v44, %v4292_v62 }
 0x27e   :  { %v4370_v16 = vpop.f32.mrb[196].mxu0 }
 0x27f   :  { %v4371_v33 = vpop.f32.mrb[197].mxu0  ;;  %v3027_v54 = vpop.f32.mrb[196].mxu1 }
 0x280   :  { %v4372_v38 = vadd.f32 %v4371_v33, %v4370_v16  ;;  %v4373_v43 = vpop.f32.mrb[198].mxu0  ;;  %v4523_v47 = vpop.f32.mrb[197].mxu1 }
 0x281   :  { %v4374_v32 = vpop.f32.mrb[199].mxu0  ;;  %v3030_v12 = vpop.f32.mrb[198].mxu1 }
 0x282   :  { %v4375_v24 = vadd.f32 %v4374_v32, %v4373_v43  ;;  %v2940_v34 = vadd.f32 %v4372_v38, %v6545_v7  ;;  %v4524_v5 = vpop.f32.mrb[199].mxu1 }
 0x284   :  { %v3028_v30 = vadd.f32 %v3027_v54, %v2940_v34  ;;  %v2943_v50 = vadd.f32 %v4375_v24, %v6547_v40 }
 0x286   :  { %v3081_v6 = vmax.f32 %v6472_v56, %v3028_v30  ;;  %v3031_v53 = vadd.f32 %v3030_v12, %v2943_v50  ;;  %v4376_v9 = vpop.f32.mrb[200].mxu0 }
 0x287   :  { %v4377_v31 = vpop.f32.mrb[201].mxu0  ;;  %v3035_v52 = vpop.f32.mrb[200].mxu1 }
 0x288   :  { %v3101_v3 = vadd.f32 %v6576_v60, %v3081_v6  ;;  %v3082_v2 = vmax.f32 %v6477_v28, %v3031_v53  ;;  %v4378_v7 = vadd.f32 %v4377_v31, %v4376_v9  ;;  %v4379_v4 = vpop.f32.mrb[202].mxu0  ;;  %v4527_v36 = vpop.f32.mrb[201].mxu1 }
 0x289   :  { %v4380_v42 = vpop.f32.mrb[203].mxu0  ;;  %v3038_v40 = vpop.f32.mrb[202].mxu1 }
 0x28a   :  { %v3102_v59 = vadd.f32 %v6576_v60, %v3082_v2  ;;  %v4381_v37 = vadd.f32 %v4380_v42, %v4379_v4  ;;  %v2948_v17 = vadd.f32 %v4378_v7, %v6549_v58  ;;  %v4528_v0 = vpop.f32.mrb[203].mxu1  ;;  %v3114_v56 = vmax.f32 %v3101_v3, 0.0 }
 0x28c   :  { %v3115_v20 = vmax.f32 %v3102_v59, 0.0  ;;  %v3036_v18 = vadd.f32 %v3035_v52, %v2948_v17  ;;  %v2951_v35 = vadd.f32 %v4381_v37, %v6551_v41 }
 0x28e   :  { %v3657_v62 = vpack.c.bf16 %v3115_v20, %v3114_v56  ;;  %v3083_v61 = vmax.f32 %v6484_v63, %v3036_v18  ;;  %v3039_v28 = vadd.f32 %v3038_v40, %v2951_v35  ;;  %v4382_v1 = vpop.f32.mrb[204].mxu0 }
 0x28f   :  { %v4383_v44 = vpop.f32.mrb[205].mxu0  ;;  %v3043_v22 = vpop.f32.mrb[204].mxu1 }
 0x290   :  { %3658 = vst [vmem:[%s6639_s3] sm:$0xff] %v3657_v62   ;;  %v3103_v11 = vadd.f32 %v6576_v60, %v3083_v61  ;;  %v3084_v58 = vmax.f32 %v6489_v10, %v3039_v28  ;;  %v4384_v27 = vadd.f32 %v4383_v44, %v4382_v1  ;;  %v4385_v16 = vpop.f32.mrb[206].mxu0  ;;  %v4531_v33 = vpop.f32.mrb[205].mxu1 }
 0x291   :  { %v4386_v54 = vpop.f32.mrb[207].mxu0  ;;  %v3046_v41 = vpop.f32.mrb[206].mxu1 }
 0x292   :  { %v3104_v38 = vadd.f32 %v6576_v60, %v3084_v58  ;;  %v4387_v63 = vadd.f32 %v4386_v54, %v4385_v16  ;;  %v2956_v43 = vadd.f32 %v4384_v27, %v6553_v21  ;;  %v4532_v47 = vpop.f32.mrb[207].mxu1  ;;  %v3116_v32 = vmax.f32 %v3103_v11, 0.0 }
 0x294   :  { %v3117_v12 = vmax.f32 %v3104_v38, 0.0  ;;  %v3044_v24 = vadd.f32 %v3043_v22, %v2956_v43  ;;  %v2959_v34 = vadd.f32 %v4387_v63, %v6555_v8 }
 0x296   :  { %v3662_v5 = vpack.c.bf16 %v3117_v12, %v3116_v32  ;;  %v3085_v30 = vmax.f32 %v6496_v19, %v3044_v24  ;;  %v3047_v10 = vadd.f32 %v3046_v41, %v2959_v34  ;;  %v4388_v50 = vpop.f32.mrb[208].mxu0 }
 0x297   :  { %v4389_v6 = vpop.f32.mrb[209].mxu0  ;;  %v3051_v53 = vpop.f32.mrb[208].mxu1 }
 0x298   :  { %3684 = vst [vmem:[%s6639_s3 + $0x8] sm:$0xff] %v3662_v5   ;;  %v3105_v9 = vadd.f32 %v6576_v60, %v3085_v30  ;;  %v3086_v21 = vmax.f32 %v6501_v39, %v3047_v10  ;;  %v4390_v31 = vadd.f32 %v4389_v6, %v4388_v50  ;;  %v4391_v52 = vpop.f32.mrb[210].mxu0  ;;  %v4535_v3 = vpop.f32.mrb[209].mxu1 }
 0x299   :  { %v4392_v2 = vpop.f32.mrb[211].mxu0  ;;  %v3054_v8 = vpop.f32.mrb[210].mxu1 }
 0x29a   :  { %v3106_v7 = vadd.f32 %v6576_v60, %v3086_v21  ;;  %v4393_v19 = vadd.f32 %v4392_v2, %v4391_v52  ;;  %v2964_v4 = vadd.f32 %v4390_v31, %v6557_v15  ;;  %v4536_v36 = vpop.f32.mrb[211].mxu1  ;;  %v3118_v42 = vmax.f32 %v3105_v9, 0.0 }
 0x29c   :  { %v3119_v40 = vmax.f32 %v3106_v7, 0.0  ;;  %v3052_v59 = vadd.f32 %v3051_v53, %v2964_v4  ;;  %v2967_v37 = vadd.f32 %v4393_v19, %v6559_v55 }
 0x29e   :  { %v3667_v17 = vpack.c.bf16 %v3119_v40, %v3118_v42  ;;  %v3087_v0 = vmax.f32 %v6508_v51, %v3052_v59  ;;  %v3055_v39 = vadd.f32 %v3054_v8, %v2967_v37  ;;  %v4394_v56 = vpop.f32.mrb[212].mxu0 }
 0x29f   :  { %v4395_v20 = vpop.f32.mrb[213].mxu0  ;;  %v3059_v18 = vpop.f32.mrb[212].mxu1 }
 0x2a0   :  { %3685 = vst [vmem:[%s6639_s3 + $0x10] sm:$0xff] %v3667_v17   ;;  %v3107_v35 = vadd.f32 %v6576_v60, %v3087_v0  ;;  %v3088_v15 = vmax.f32 %v6513_v57, %v3055_v39  ;;  %v4396_v62 = vadd.f32 %v4395_v20, %v4394_v56  ;;  %v4397_v61 = vpop.f32.mrb[214].mxu0  ;;  %v4539_v28 = vpop.f32.mrb[213].mxu1 }
 0x2a1   :  { %v4398_v1 = vpop.f32.mrb[215].mxu0  ;;  %v3062_v55 = vpop.f32.mrb[214].mxu1 }
 0x2a2   :  { %v3108_v44 = vadd.f32 %v6576_v60, %v3088_v15  ;;  %v4399_v51 = vadd.f32 %v4398_v1, %v4397_v61  ;;  %v2972_v22 = vadd.f32 %v4396_v62, %v6561_v45  ;;  %v4540_v11 = vpop.f32.mrb[215].mxu1  ;;  %v3120_v58 = vmax.f32 %v3107_v35, 0.0 }
 0x2a4   :  { %v3121_v27 = vmax.f32 %v3108_v44, 0.0  ;;  %v3060_v16 = vadd.f32 %v3059_v18, %v2972_v22  ;;  %v2975_v33 = vadd.f32 %v4399_v51, %v6563_v14 }
 0x2a6   :  { %v3672_v54 = vpack.c.bf16 %v3121_v27, %v3120_v58  ;;  %v3089_v41 = vmax.f32 %v6520_v26, %v3060_v16  ;;  %v3063_v57 = vadd.f32 %v3062_v55, %v2975_v33  ;;  %v4400_v38 = vpop.f32.mrb[216].mxu0 }
 0x2a7   :  { %v4401_v63 = vpop.f32.mrb[217].mxu0  ;;  %v3067_v43 = vpop.f32.mrb[216].mxu1 }
 0x2a8   :  { %3686 = vst [vmem:[%s6639_s3 + $0x18] sm:$0xff] %v3672_v54   ;;  %v3109_v47 = vadd.f32 %v6576_v60, %v3089_v41  ;;  %v3090_v45 = vmax.f32 %v6525_v48, %v3063_v57  ;;  %v4402_v32 = vadd.f32 %v4401_v63, %v4400_v38  ;;  %v4403_v12 = vpop.f32.mrb[218].mxu0  ;;  %v4543_v24 = vpop.f32.mrb[217].mxu1 }
 0x2a9   :  { %v4404_v34 = vpop.f32.mrb[219].mxu0  ;;  %v3070_v14 = vpop.f32.mrb[218].mxu1 }
 0x2aa   :  { %v3110_v5 = vadd.f32 %v6576_v60, %v3090_v45  ;;  %v4405_v26 = vadd.f32 %v4404_v34, %v4403_v12  ;;  %v2980_v30 = vadd.f32 %v4402_v32, %v6565_v25  ;;  %v4544_v10 = vpop.f32.mrb[219].mxu1  ;;  %v3122_v50 = vmax.f32 %v3109_v47, 0.0 }
 0x2ac   :  { %v3123_v6 = vmax.f32 %v3110_v5, 0.0  ;;  %v3068_v53 = vadd.f32 %v3067_v43, %v2980_v30  ;;  %v2983_v9 = vadd.f32 %v4405_v26, %v6567_v23 }
 0x2ae   :  { %v3677_v21 = vpack.c.bf16 %v3123_v6, %v3122_v50  ;;  %v3091_v31 = vmax.f32 %v6532_v49, %v3068_v53  ;;  %v3071_v48 = vadd.f32 %v3070_v14, %v2983_v9  ;;  %v4406_v52 = vpop.f32.mrb[220].mxu0 }
 0x2af   :  { %v4407_v3 = vpop.f32.mrb[221].mxu0  ;;  %v3075_v2 = vpop.f32.mrb[220].mxu1 }
 0x2b0   :  { %3687 = vst [vmem:[%s6639_s3 + $0x20] sm:$0xff] %v3677_v21   ;;  %v3111_v8 = vadd.f32 %v6576_v60, %v3091_v31  ;;  %v3092_v25 = vmax.f32 %v6537_v46, %v3071_v48  ;;  %v4408_v7 = vadd.f32 %v4407_v3, %v4406_v52  ;;  %v4409_v19 = vpop.f32.mrb[222].mxu0  ;;  %v4547_v4 = vpop.f32.mrb[221].mxu1 }
 0x2b1   :  { %v4410_v36 = vpop.f32.mrb[223].mxu0  ;;  %v3078_v23 = vpop.f32.mrb[222].mxu1 }
 0x2b2   :  { %v3112_v42 = vadd.f32 %v6576_v60, %v3092_v25  ;;  %v2988_v49 = vadd.f32 %v4408_v7, %v6569_v29  ;;  %v4548_v40 = vpop.f32.mrb[223].mxu1  ;;  %v3124_v59 = vmax.f32 %v3111_v8, 0.0 }
 0x2b4   :  { %v3125_v37 = vmax.f32 %v3112_v42, 0.0  ;;  %v3076_v17 = vadd.f32 %v3075_v2, %v2988_v49 }
 0x2b6   :  { %v3682_v0 = vpack.c.bf16 %v3125_v37, %v3124_v59  ;;  %v3093_v39 = vmax.f32 %v6543_v13, %v3076_v17 }
 0x2b8   :  { %3688 = vst [vmem:[%s6639_s3 + $0x28] sm:$0xff] %v3682_v0   ;;  %v3113_v46 = vadd.f32 %v6576_v60, %v3093_v39 }
 0x2ba   :  { %v3126_v56 = vmax.f32 %v3113_v46, 0.0 }
 0x2bc   :  { %v3653_v20 = vpack.c.bf16 %v3126_v56, %v3126_v56 }
 0x2be   :  { %3192 = vst [vmem:[%s6639_s3 + $0x30] sm:$0xf] %v3653_v20 }

// kernel: lightnet_forward.5
= control target key start
LH: loop header
LB: loop body
LE: loop exit
PB: predicated region body
PF: predicated region fallthrough
CT: control target
= control target key end

     0   :  { %s21421_s1 = inlined_call_operand.vmem [shape: bf16[6272,512], index: 1, kind: input, shape index: {}]   ;;  %s21422_s0 = inlined_call_operand.vmem [shape: bf16[8,6272], index: 0, kind: input, shape index: {}]   ;;  %s21423_s3 = inlined_call_operand.vmem [shape: f32[512,128], index: 3, kind: input, shape index: {}]   ;;  %s21424_s2 = inlined_call_operand.vmem [shape: f32[1,512], index: 2, kind: input, shape index: {}]   ;;  %s21425_s4 = inlined_call_operand.vmem [shape: f32[1,128], index: 4, kind: input, shape index: {}]   ;;  %s21426_s5 = inlined_call_operand.vmem [shape: f32[8,128], index: 5, kind: output, shape index: {}]  }
   0x1   :  { %v13871_v0 = vld [vmem:[%s21421_s1 + $0x4] ss:$16 sps:$4 sm:$0xff]   ;;  %v13873_v1 = vld [vmem:[%s21421_s1 + $0xc] ss:$16 sps:$4 sm:$0xff]   ;;  %v13875_v2 = vld [vmem:[%s21421_s1] ss:$16 sps:$4 sm:$0xff]  }
   0x2   :  { %9648 = vmatprep.subr.bf16.mxu0 %v13871_v0  ;;  %v13876_v3 = vld [vmem:[%s21421_s1 + $0x8] ss:$16 sps:$4 sm:$0xff]   ;;  %10673 = vmatprep.subr.bf16.mxu1 %v13873_v1  ;;  %v13877_v4 = vld [vmem:[%s21421_s1 + $0x24] ss:$16 sps:$4 sm:$0xff]   ;;  %v13879_v5 = vld [vmem:[%s21421_s1 + $0x2c] ss:$16 sps:$4 sm:$0xff]  }
   0x3   :  { %9649 = vmatpush1.bf16.msra.mxu0 %v13875_v2  ;;  %10674 = vmatpush1.bf16.msra.mxu1 %v13876_v3  ;;  %v13881_v6 = vld [vmem:[%s21421_s1 + $0x20] ss:$16 sps:$4 sm:$0xff]   ;;  %v13882_v7 = vld [vmem:[%s21421_s1 + $0x28] ss:$16 sps:$4 sm:$0xff]   ;;  %v13883_v8 = vld [vmem:[%s21421_s1 + $0x44] ss:$16 sps:$4 sm:$0xff]  }
   0x4   :  { %9650 = vmatprep.subr.bf16.mxu0 %v13877_v4  ;;  %10675 = vmatprep.subr.bf16.mxu1 %v13879_v5  ;;  %v13885_v9 = vld [vmem:[%s21421_s1 + $0x4c] ss:$16 sps:$4 sm:$0xff]   ;;  %v13887_v10 = vld [vmem:[%s21421_s1 + $0x40] ss:$16 sps:$4 sm:$0xff]   ;;  %v13888_v11 = vld [vmem:[%s21421_s1 + $0x48] ss:$16 sps:$4 sm:$0xff]  }
   0x5   :  { %v13889_v12 = vld [vmem:[%s21421_s1 + $0x64] ss:$16 sps:$4 sm:$0xff]   ;;  %v13891_v13 = vld [vmem:[%s21421_s1 + $0x6c] ss:$16 sps:$4 sm:$0xff]   ;;  %v13893_v14 = vld [vmem:[%s21421_s1 + $0x60] ss:$16 sps:$4 sm:$0xff]  }
   0x6   :  { %v13894_v15 = vld [vmem:[%s21421_s1 + $0x68] ss:$16 sps:$4 sm:$0xff]   ;;  %v13895_v16 = vld [vmem:[%s21421_s1 + $0x84] ss:$16 sps:$4 sm:$0xff]   ;;  %v13897_v17 = vld [vmem:[%s21421_s1 + $0x8c] ss:$16 sps:$4 sm:$0xff]  }
   0x7   :  { %9651 = vmatpush1.bf16.msra.mxu0 %v13881_v6  ;;  %10676 = vmatpush1.bf16.msra.mxu1 %v13882_v7  ;;  %v13899_v18 = vld [vmem:[%s21421_s1 + $0x80] ss:$16 sps:$4 sm:$0xff]   ;;  %v13900_v19 = vld [vmem:[%s21421_s1 + $0x88] ss:$16 sps:$4 sm:$0xff]   ;;  %v13901_v20 = vld [vmem:[%s21421_s1 + $0xa4] ss:$16 sps:$4 sm:$0xff]  }
   0x8   :  { %9652 = vmatprep.subr.bf16.mxu0 %v13883_v8  ;;  %10677 = vmatprep.subr.bf16.mxu1 %v13885_v9  ;;  %v13903_v21 = vld [vmem:[%s21421_s1 + $0xac] ss:$16 sps:$4 sm:$0xff]   ;;  %v13905_v22 = vld [vmem:[%s21421_s1 + $0xa0] ss:$16 sps:$4 sm:$0xff]   ;;  %v13906_v23 = vld [vmem:[%s21421_s1 + $0xa8] ss:$16 sps:$4 sm:$0xff]  }
   0x9   :  { %v13907_v24 = vld [vmem:[%s21421_s1 + $0xc4] ss:$16 sps:$4 sm:$0xff]   ;;  %v13909_v25 = vld [vmem:[%s21421_s1 + $0xcc] ss:$16 sps:$4 sm:$0xff]   ;;  %v13911_v26 = vld [vmem:[%s21421_s1 + $0xc0] ss:$16 sps:$4 sm:$0xff]  }
   0xa   :  { %v13912_v27 = vld [vmem:[%s21421_s1 + $0xc8] ss:$16 sps:$4 sm:$0xff]   ;;  %v13913_v28 = vld [vmem:[%s21421_s1 + $0xe4] ss:$16 sps:$4 sm:$0xff]   ;;  %v13915_v29 = vld [vmem:[%s21421_s1 + $0xec] ss:$16 sps:$4 sm:$0xff]  }
   0xb   :  { %9653 = vmatpush1.bf16.msra.mxu0 %v13887_v10  ;;  %10678 = vmatpush1.bf16.msra.mxu1 %v13888_v11  ;;  %v13917_v30 = vld [vmem:[%s21421_s1 + $0xe0] ss:$16 sps:$4 sm:$0xff]   ;;  %v13918_v31 = vld [vmem:[%s21421_s1 + $0xe8] ss:$16 sps:$4 sm:$0xff]   ;;  %v13919_v32 = vld [vmem:[%s21421_s1 + $0x104] ss:$16 sps:$4 sm:$0xff]  }
   0xc   :  { %9654 = vmatprep.subr.bf16.mxu0 %v13889_v12  ;;  %10679 = vmatprep.subr.bf16.mxu1 %v13891_v13  ;;  %v13921_v33 = vld [vmem:[%s21421_s1 + $0x10c] ss:$16 sps:$4 sm:$0xff]   ;;  %v13923_v34 = vld [vmem:[%s21421_s1 + $0x100] ss:$16 sps:$4 sm:$0xff]   ;;  %v13924_v35 = vld [vmem:[%s21421_s1 + $0x108] ss:$16 sps:$4 sm:$0xff]  }
   0xd   :  { %v13925_v36 = vld [vmem:[%s21421_s1 + $0x124] ss:$16 sps:$4 sm:$0xff]   ;;  %v13927_v37 = vld [vmem:[%s21421_s1 + $0x12c] ss:$16 sps:$4 sm:$0xff]   ;;  %v13929_v38 = vld [vmem:[%s21421_s1 + $0x120] ss:$16 sps:$4 sm:$0xff]  }
   0xe   :  { %v13930_v39 = vld [vmem:[%s21421_s1 + $0x128] ss:$16 sps:$4 sm:$0xff]   ;;  %v13931_v40 = vld [vmem:[%s21421_s1 + $0x144] ss:$16 sps:$4 sm:$0xff]   ;;  %v13933_v41 = vld [vmem:[%s21421_s1 + $0x14c] ss:$16 sps:$4 sm:$0xff]  }
   0xf   :  { %9655 = vmatpush1.bf16.msra.mxu0 %v13893_v14  ;;  %10680 = vmatpush1.bf16.msra.mxu1 %v13894_v15  ;;  %v13935_v42 = vld [vmem:[%s21421_s1 + $0x140] ss:$16 sps:$4 sm:$0xff]   ;;  %v13936_v43 = vld [vmem:[%s21421_s1 + $0x148] ss:$16 sps:$4 sm:$0xff]   ;;  %v13937_v44 = vld [vmem:[%s21421_s1 + $0x164] ss:$16 sps:$4 sm:$0xff]  }
  0x10   :  { %9656 = vmatprep.subr.bf16.mxu0 %v13895_v16  ;;  %10681 = vmatprep.subr.bf16.mxu1 %v13897_v17  ;;  %v13939_v45 = vld [vmem:[%s21421_s1 + $0x16c] ss:$16 sps:$4 sm:$0xff]   ;;  %v21_v46 = vld [vmem:[%s21422_s0] sm:$0xff]  ;;  %v13942_v49 = vld [vmem:[%s21421_s1 + $0x168] ss:$16 sps:$4 sm:$0xff]  }
  0x11   :  { %v13941_v47 = vld [vmem:[%s21421_s1 + $0x160] ss:$16 sps:$4 sm:$0xff]   ;;  %v11923_v48 = vcombine.high %v21_v46, %v21_v46  ;;  %v13943_v50 = vld [vmem:[%s21421_s1 + $0x184] ss:$16 sps:$4 sm:$0xff]   ;;  %v13945_v51 = vld [vmem:[%s21421_s1 + $0x18c] ss:$16 sps:$4 sm:$0xff]   ;;  %v11922_v4 = vcombine.low %v21_v46, %v21_v46 }
  0x12   :  { %v13947_v52 = vld [vmem:[%s21421_s1 + $0x180] ss:$16 sps:$4 sm:$0xff]   ;;  %v13948_v53 = vld [vmem:[%s21421_s1 + $0x188] ss:$16 sps:$4 sm:$0xff]   ;;  %v13949_v54 = vld [vmem:[%s21421_s1 + $0x1a4] ss:$16 sps:$4 sm:$0xff]  }
  0x13   :  { %9657 = vmatpush1.bf16.msra.mxu0 %v13899_v18  ;;  %10682 = vmatpush1.bf16.msra.mxu1 %v13900_v19  ;;  %v13951_v55 = vld [vmem:[%s21421_s1 + $0x1ac] ss:$16 sps:$4 sm:$0xff]   ;;  %v13953_v56 = vld [vmem:[%s21421_s1 + $0x1a0] ss:$16 sps:$4 sm:$0xff]   ;;  %v13954_v57 = vld [vmem:[%s21421_s1 + $0x1a8] ss:$16 sps:$4 sm:$0xff]  }
  0x14   :  { %9658 = vmatprep.subr.bf16.mxu0 %v13901_v20  ;;  %10683 = vmatprep.subr.bf16.mxu1 %v13903_v21  ;;  %v13955_v58 = vld [vmem:[%s21421_s1 + $0x1c4] ss:$16 sps:$4 sm:$0xff]   ;;  %v13957_v59 = vld [vmem:[%s21421_s1 + $0x1cc] ss:$16 sps:$4 sm:$0xff]   ;;  %v13959_v60 = vld [vmem:[%s21421_s1 + $0x1c0] ss:$16 sps:$4 sm:$0xff]  }
  0x15   :  { %9680 = vmatprep.mubr.bf16.mxu0 %v11923_v48  ;;  %10705 = vmatprep.mubr.bf16.mxu1 %v11923_v48  ;;  %v13960_v61 = vld [vmem:[%s21421_s1 + $0x1c8] ss:$16 sps:$4 sm:$0xff]   ;;  %v13961_v62 = vld [vmem:[%s21421_s1 + $0x1e4] ss:$16 sps:$4 sm:$0xff]   ;;  %v13963_v63 = vld [vmem:[%s21421_s1 + $0x1ec] ss:$16 sps:$4 sm:$0xff]  }
  0x16   :  { %v13965_v0 = vld [vmem:[%s21421_s1 + $0x1e0] ss:$16 sps:$4 sm:$0xff]   ;;  %v13966_v1 = vld [vmem:[%s21421_s1 + $0x1e8] ss:$16 sps:$4 sm:$0xff]   ;;  %v13971_v2 = vld [vmem:[%s21421_s1 + $0x204] ss:$16 sps:$4 sm:$0xff]  }
  0x17   :  { %9659 = vmatpush1.bf16.msra.mxu0 %v13905_v22  ;;  %10684 = vmatpush1.bf16.msra.mxu1 %v13906_v23  ;;  %v13974_v3 = vld [vmem:[%s21421_s1 + $0x20c] ss:$16 sps:$4 sm:$0xff]   ;;  %v13969_v5 = vld [vmem:[%s21421_s1 + $0x200] ss:$16 sps:$4 sm:$0xff]   ;;  %v13972_v6 = vld [vmem:[%s21421_s1 + $0x208] ss:$16 sps:$4 sm:$0xff]  }
  0x18   :  { %9660 = vmatprep.subr.bf16.mxu0 %v13907_v24  ;;  %10685 = vmatprep.subr.bf16.mxu1 %v13909_v25  ;;  %v13977_v7 = vld [vmem:[%s21421_s1 + $0x224] ss:$16 sps:$4 sm:$0xff]   ;;  %v13980_v8 = vld [vmem:[%s21421_s1 + $0x22c] ss:$16 sps:$4 sm:$0xff]   ;;  %v13975_v9 = vld [vmem:[%s21421_s1 + $0x220] ss:$16 sps:$4 sm:$0xff]  }
  0x19   :  { %v13978_v10 = vld [vmem:[%s21421_s1 + $0x228] ss:$16 sps:$4 sm:$0xff]   ;;  %v13983_v11 = vld [vmem:[%s21421_s1 + $0x244] ss:$16 sps:$4 sm:$0xff]   ;;  %v13986_v12 = vld [vmem:[%s21421_s1 + $0x24c] ss:$16 sps:$4 sm:$0xff]  }
  0x1a   :  { %v13981_v13 = vld [vmem:[%s21421_s1 + $0x240] ss:$16 sps:$4 sm:$0xff]   ;;  %v13984_v14 = vld [vmem:[%s21421_s1 + $0x248] ss:$16 sps:$4 sm:$0xff]   ;;  %v13989_v15 = vld [vmem:[%s21421_s1 + $0x264] ss:$16 sps:$4 sm:$0xff]  }
  0x1b   :  { %9661 = vmatpush1.bf16.msra.mxu0 %v13911_v26  ;;  %10686 = vmatpush1.bf16.msra.mxu1 %v13912_v27  ;;  %v13992_v16 = vld [vmem:[%s21421_s1 + $0x26c] ss:$16 sps:$4 sm:$0xff]   ;;  %v13987_v17 = vld [vmem:[%s21421_s1 + $0x260] ss:$16 sps:$4 sm:$0xff]   ;;  %v13990_v18 = vld [vmem:[%s21421_s1 + $0x268] ss:$16 sps:$4 sm:$0xff]  }
  0x1c   :  { %9662 = vmatprep.subr.bf16.mxu0 %v13913_v28  ;;  %10687 = vmatprep.subr.bf16.mxu1 %v13915_v29  ;;  %v13995_v19 = vld [vmem:[%s21421_s1 + $0x284] ss:$16 sps:$4 sm:$0xff]   ;;  %v13998_v20 = vld [vmem:[%s21421_s1 + $0x28c] ss:$16 sps:$4 sm:$0xff]   ;;  %v13993_v21 = vld [vmem:[%s21421_s1 + $0x280] ss:$16 sps:$4 sm:$0xff]  }
  0x1d   :  { %v13996_v22 = vld [vmem:[%s21421_s1 + $0x288] ss:$16 sps:$4 sm:$0xff]   ;;  %v14001_v23 = vld [vmem:[%s21421_s1 + $0x2a4] ss:$16 sps:$4 sm:$0xff]   ;;  %v14004_v24 = vld [vmem:[%s21421_s1 + $0x2ac] ss:$16 sps:$4 sm:$0xff]  }
  0x1e   :  { %v13999_v25 = vld [vmem:[%s21421_s1 + $0x2a0] ss:$16 sps:$4 sm:$0xff]   ;;  %v14002_v26 = vld [vmem:[%s21421_s1 + $0x2a8] ss:$16 sps:$4 sm:$0xff]   ;;  %v14007_v27 = vld [vmem:[%s21421_s1 + $0x2c4] ss:$16 sps:$4 sm:$0xff]  }
  0x1f   :  { %9663 = vmatpush1.bf16.msra.mxu0 %v13917_v30  ;;  %10688 = vmatpush1.bf16.msra.mxu1 %v13918_v31  ;;  %v14010_v28 = vld [vmem:[%s21421_s1 + $0x2cc] ss:$16 sps:$4 sm:$0xff]   ;;  %v14005_v31 = vld [vmem:[%s21421_s1 + $0x2c0] ss:$16 sps:$4 sm:$0xff]   ;;  %v14032_v48 = vld [vmem:[%s21421_s1 + $0x348] ss:$16 sps:$4 sm:$0xff]  }
  0x20   :  { %9664 = vmatprep.subr.bf16.mxu0 %v13919_v32  ;;  %10689 = vmatprep.subr.bf16.mxu1 %v13921_v33  ;;  %v16579_v29 = vld [vmem:[%s21422_s0 + $0x8] sm:$0xff]  ;;  %v14013_v33 = vld [vmem:[%s21421_s1 + $0x2e4] ss:$16 sps:$4 sm:$0xff]  }
  0x21   :  { %v11925_v30 = vcombine.high %v16579_v29, %v16579_v29  ;;  %v14008_v32 = vld [vmem:[%s21421_s1 + $0x2c8] ss:$16 sps:$4 sm:$0xff]   ;;  %v14034_v46 = vld [vmem:[%s21421_s1 + $0x34c] ss:$16 sps:$4 sm:$0xff]  }
  0x23   :  { %9665 = vmatpush1.bf16.msra.mxu0 %v13923_v34  ;;  %10690 = vmatpush1.bf16.msra.mxu1 %v13924_v35  ;;  %v14016_v34 = vld [vmem:[%s21421_s1 + $0x2ec] ss:$16 sps:$4 sm:$0xff]   ;;  %v14011_v35 = vld [vmem:[%s21421_s1 + $0x2e0] ss:$16 sps:$4 sm:$0xff]  }
  0x24   :  { %9666 = vmatprep.subr.bf16.mxu0 %v13925_v36  ;;  %10691 = vmatprep.subr.bf16.mxu1 %v13927_v37  ;;  %v14014_v36 = vld [vmem:[%s21421_s1 + $0x2e8] ss:$16 sps:$4 sm:$0xff]   ;;  %v14019_v37 = vld [vmem:[%s21421_s1 + $0x304] ss:$16 sps:$4 sm:$0xff]  }
  0x27   :  { %9667 = vmatpush1.bf16.msra.mxu0 %v13929_v38  ;;  %10692 = vmatpush1.bf16.msra.mxu1 %v13930_v39  ;;  %v14022_v38 = vld [vmem:[%s21421_s1 + $0x30c] ss:$16 sps:$4 sm:$0xff]   ;;  %v14017_v39 = vld [vmem:[%s21421_s1 + $0x300] ss:$16 sps:$4 sm:$0xff]  }
  0x28   :  { %9668 = vmatprep.subr.bf16.mxu0 %v13931_v40  ;;  %10693 = vmatprep.subr.bf16.mxu1 %v13933_v41  ;;  %v14020_v40 = vld [vmem:[%s21421_s1 + $0x308] ss:$16 sps:$4 sm:$0xff]   ;;  %v14025_v41 = vld [vmem:[%s21421_s1 + $0x324] ss:$16 sps:$4 sm:$0xff]  }
  0x2b   :  { %9669 = vmatpush1.bf16.msra.mxu0 %v13935_v42  ;;  %10694 = vmatpush1.bf16.msra.mxu1 %v13936_v43  ;;  %v14028_v42 = vld [vmem:[%s21421_s1 + $0x32c] ss:$16 sps:$4 sm:$0xff]   ;;  %v14023_v43 = vld [vmem:[%s21421_s1 + $0x320] ss:$16 sps:$4 sm:$0xff]  }
  0x2c   :  { %9670 = vmatprep.subr.bf16.mxu0 %v13937_v44  ;;  %10695 = vmatprep.subr.bf16.mxu1 %v13939_v45  ;;  %v14026_v44 = vld [vmem:[%s21421_s1 + $0x328] ss:$16 sps:$4 sm:$0xff]   ;;  %v14031_v45 = vld [vmem:[%s21421_s1 + $0x344] ss:$16 sps:$4 sm:$0xff]  }
  0x2f   :  { %9671 = vmatpush1.bf16.msra.mxu0 %v13941_v47  ;;  %10696 = vmatpush1.bf16.msra.mxu1 %v13942_v49  ;;  %v14029_v47 = vld [vmem:[%s21421_s1 + $0x340] ss:$16 sps:$4 sm:$0xff]   ;;  %v14037_v49 = vld [vmem:[%s21421_s1 + $0x364] ss:$16 sps:$4 sm:$0xff]  }
  0x30   :  { %9672 = vmatprep.subr.bf16.mxu0 %v13943_v50  ;;  %10697 = vmatprep.subr.bf16.mxu1 %v13945_v51  ;;  %v14040_v50 = vld [vmem:[%s21421_s1 + $0x36c] ss:$16 sps:$4 sm:$0xff]   ;;  %v14035_v51 = vld [vmem:[%s21421_s1 + $0x360] ss:$16 sps:$4 sm:$0xff]  }
  0x33   :  { %9673 = vmatpush1.bf16.msra.mxu0 %v13947_v52  ;;  %10698 = vmatpush1.bf16.msra.mxu1 %v13948_v53  ;;  %v14038_v52 = vld [vmem:[%s21421_s1 + $0x368] ss:$16 sps:$4 sm:$0xff]   ;;  %v14043_v53 = vld [vmem:[%s21421_s1 + $0x384] ss:$16 sps:$4 sm:$0xff]  }
  0x34   :  { %9674 = vmatprep.subr.bf16.mxu0 %v13949_v54  ;;  %10699 = vmatprep.subr.bf16.mxu1 %v13951_v55  ;;  %v14046_v54 = vld [vmem:[%s21421_s1 + $0x38c] ss:$16 sps:$4 sm:$0xff]   ;;  %v14041_v55 = vld [vmem:[%s21421_s1 + $0x380] ss:$16 sps:$4 sm:$0xff]  }
  0x37   :  { %9675 = vmatpush1.bf16.msra.mxu0 %v13953_v56  ;;  %10700 = vmatpush1.bf16.msra.mxu1 %v13954_v57  ;;  %v14044_v56 = vld [vmem:[%s21421_s1 + $0x388] ss:$16 sps:$4 sm:$0xff]   ;;  %v14049_v57 = vld [vmem:[%s21421_s1 + $0x3a4] ss:$16 sps:$4 sm:$0xff]  }
  0x38   :  { %9676 = vmatprep.subr.bf16.mxu0 %v13955_v58  ;;  %10701 = vmatprep.subr.bf16.mxu1 %v13957_v59  ;;  %v14052_v58 = vld [vmem:[%s21421_s1 + $0x3ac] ss:$16 sps:$4 sm:$0xff]   ;;  %v14047_v59 = vld [vmem:[%s21421_s1 + $0x3a0] ss:$16 sps:$4 sm:$0xff]  }
  0x3b   :  { %9677 = vmatpush1.bf16.msra.mxu0 %v13959_v60  ;;  %10702 = vmatpush1.bf16.msra.mxu1 %v13960_v61  ;;  %v14050_v60 = vld [vmem:[%s21421_s1 + $0x3a8] ss:$16 sps:$4 sm:$0xff]   ;;  %v14055_v61 = vld [vmem:[%s21421_s1 + $0x3c4] ss:$16 sps:$4 sm:$0xff]  }
  0x3c   :  { %9678 = vmatprep.subr.bf16.mxu0 %v13961_v62  ;;  %10703 = vmatprep.subr.bf16.mxu1 %v13963_v63  ;;  %v14058_v62 = vld [vmem:[%s21421_s1 + $0x3cc] ss:$16 sps:$4 sm:$0xff]   ;;  %v14053_v63 = vld [vmem:[%s21421_s1 + $0x3c0] ss:$16 sps:$4 sm:$0xff]  }
  0x3f   :  { %9679 = vmatpush1.bf16.msra.mxu0 %v13965_v0  ;;  %10704 = vmatpush1.bf16.msra.mxu1 %v13966_v1  ;;  %v14056_v0 = vld [vmem:[%s21421_s1 + $0x3c8] ss:$16 sps:$4 sm:$0xff]   ;;  %v14061_v1 = vld [vmem:[%s21421_s1 + $0x3e4] ss:$16 sps:$4 sm:$0xff]  }
  0x40   :  { %9689 = vmatprep.subr.bf16.mxu0 %v13971_v2  ;;  %10714 = vmatprep.subr.bf16.mxu1 %v13974_v3  ;;  %v14064_v2 = vld [vmem:[%s21421_s1 + $0x3ec] ss:$16 sps:$4 sm:$0xff]   ;;  %v14059_v3 = vld [vmem:[%s21421_s1 + $0x3e0] ss:$16 sps:$4 sm:$0xff]  }
  0x42   :  { %9681 = vmatmul.mubr.bf16.vlgmr.msra.gmra.mrb[0].mxu0 %v11922_v4  ;;  %10706 = vmatmul.mubr.bf16.vlgmr.msra.gmra.mrb[0].mxu1 %v11922_v4  ;;  %v14062_v4 = vld [vmem:[%s21421_s1 + $0x3e8] ss:$16 sps:$4 sm:$0xff]  }
  0x43   :  { %9690 = vmatpush1.bf16.msra.mxu0 %v13969_v5  ;;  %10715 = vmatpush1.bf16.msra.mxu1 %v13972_v6  ;;  %v14069_v5 = vld [vmem:[%s21421_s1 + $0x404] ss:$16 sps:$4 sm:$0xff]   ;;  %v14072_v6 = vld [vmem:[%s21421_s1 + $0x40c] ss:$16 sps:$4 sm:$0xff]  }
  0x44   :  { %9691 = vmatprep.subr.bf16.mxu0 %v13977_v7  ;;  %10716 = vmatprep.subr.bf16.mxu1 %v13980_v8  ;;  %v11924_v7 = vcombine.low %v16579_v29, %v16579_v29  ;;  %v14067_v8 = vld [vmem:[%s21421_s1 + $0x400] ss:$16 sps:$4 sm:$0xff]   ;;  %v14102_v29 = vld [vmem:[%s21421_s1 + $0x4ac] ss:$16 sps:$4 sm:$0xff]  }
  0x45   :  { %9721 = vmatprep.mubr.bf16.mxu0 %v11925_v30  ;;  %10746 = vmatprep.mubr.bf16.mxu1 %v11925_v30  ;;  %v14097_v30 = vld [vmem:[%s21421_s1 + $0x4a0] ss:$16 sps:$4 sm:$0xff]  }
  0x47   :  { %9692 = vmatpush1.bf16.msra.mxu0 %v13975_v9  ;;  %10717 = vmatpush1.bf16.msra.mxu1 %v13978_v10  ;;  %v14070_v9 = vld [vmem:[%s21421_s1 + $0x408] ss:$16 sps:$4 sm:$0xff]   ;;  %v14075_v10 = vld [vmem:[%s21421_s1 + $0x424] ss:$16 sps:$4 sm:$0xff]  }
  0x48   :  { %9693 = vmatprep.subr.bf16.mxu0 %v13983_v11  ;;  %10718 = vmatprep.subr.bf16.mxu1 %v13986_v12  ;;  %v16717_v11 = vld [vmem:[%s21422_s0 + $0x10] sm:$0xff]  ;;  %v14078_v12 = vld [vmem:[%s21421_s1 + $0x42c] ss:$16 sps:$4 sm:$0xff]  }
  0x4b   :  { %9694 = vmatpush1.bf16.msra.mxu0 %v13981_v13  ;;  %10719 = vmatpush1.bf16.msra.mxu1 %v13984_v14  ;;  %v11927_v13 = vcombine.high %v16717_v11, %v16717_v11  ;;  %v14073_v14 = vld [vmem:[%s21421_s1 + $0x420] ss:$16 sps:$4 sm:$0xff]  }
  0x4c   :  { %9695 = vmatprep.subr.bf16.mxu0 %v13989_v15  ;;  %10720 = vmatprep.subr.bf16.mxu1 %v13992_v16  ;;  %v14076_v15 = vld [vmem:[%s21421_s1 + $0x428] ss:$16 sps:$4 sm:$0xff]   ;;  %v14081_v16 = vld [vmem:[%s21421_s1 + $0x444] ss:$16 sps:$4 sm:$0xff]  }
  0x4f   :  { %9696 = vmatpush1.bf16.msra.mxu0 %v13987_v17  ;;  %10721 = vmatpush1.bf16.msra.mxu1 %v13990_v18  ;;  %v14084_v17 = vld [vmem:[%s21421_s1 + $0x44c] ss:$16 sps:$4 sm:$0xff]   ;;  %v14079_v18 = vld [vmem:[%s21421_s1 + $0x440] ss:$16 sps:$4 sm:$0xff]  }
  0x50   :  { %9697 = vmatprep.subr.bf16.mxu0 %v13995_v19  ;;  %10722 = vmatprep.subr.bf16.mxu1 %v13998_v20  ;;  %v14082_v19 = vld [vmem:[%s21421_s1 + $0x448] ss:$16 sps:$4 sm:$0xff]   ;;  %v14087_v20 = vld [vmem:[%s21421_s1 + $0x464] ss:$16 sps:$4 sm:$0xff]  }
  0x53   :  { %9698 = vmatpush1.bf16.msra.mxu0 %v13993_v21  ;;  %10723 = vmatpush1.bf16.msra.mxu1 %v13996_v22  ;;  %v14090_v21 = vld [vmem:[%s21421_s1 + $0x46c] ss:$16 sps:$4 sm:$0xff]   ;;  %v14085_v22 = vld [vmem:[%s21421_s1 + $0x460] ss:$16 sps:$4 sm:$0xff]  }
  0x54   :  { %9699 = vmatprep.subr.bf16.mxu0 %v14001_v23  ;;  %10724 = vmatprep.subr.bf16.mxu1 %v14004_v24  ;;  %v14088_v23 = vld [vmem:[%s21421_s1 + $0x468] ss:$16 sps:$4 sm:$0xff]   ;;  %v14093_v24 = vld [vmem:[%s21421_s1 + $0x484] ss:$16 sps:$4 sm:$0xff]  }
  0x57   :  { %9700 = vmatpush1.bf16.msra.mxu0 %v13999_v25  ;;  %10725 = vmatpush1.bf16.msra.mxu1 %v14002_v26  ;;  %v14096_v25 = vld [vmem:[%s21421_s1 + $0x48c] ss:$16 sps:$4 sm:$0xff]   ;;  %v14091_v26 = vld [vmem:[%s21421_s1 + $0x480] ss:$16 sps:$4 sm:$0xff]  }
  0x58   :  { %9701 = vmatprep.subr.bf16.mxu0 %v14007_v27  ;;  %10726 = vmatprep.subr.bf16.mxu1 %v14010_v28  ;;  %v14094_v27 = vld [vmem:[%s21421_s1 + $0x488] ss:$16 sps:$4 sm:$0xff]   ;;  %v14099_v28 = vld [vmem:[%s21421_s1 + $0x4a4] ss:$16 sps:$4 sm:$0xff]  }
  0x5b   :  { %9702 = vmatpush1.bf16.msra.mxu0 %v14005_v31  ;;  %10727 = vmatpush1.bf16.msra.mxu1 %v14008_v32  ;;  %v14100_v31 = vld [vmem:[%s21421_s1 + $0x4a8] ss:$16 sps:$4 sm:$0xff]   ;;  %v14105_v32 = vld [vmem:[%s21421_s1 + $0x4c4] ss:$16 sps:$4 sm:$0xff]  }
  0x5c   :  { %9703 = vmatprep.subr.bf16.mxu0 %v14013_v33  ;;  %10728 = vmatprep.subr.bf16.mxu1 %v14016_v34  ;;  %v14108_v33 = vld [vmem:[%s21421_s1 + $0x4cc] ss:$16 sps:$4 sm:$0xff]   ;;  %v14103_v34 = vld [vmem:[%s21421_s1 + $0x4c0] ss:$16 sps:$4 sm:$0xff]  }
  0x5f   :  { %9704 = vmatpush1.bf16.msra.mxu0 %v14011_v35  ;;  %10729 = vmatpush1.bf16.msra.mxu1 %v14014_v36  ;;  %v14106_v35 = vld [vmem:[%s21421_s1 + $0x4c8] ss:$16 sps:$4 sm:$0xff]   ;;  %v14111_v36 = vld [vmem:[%s21421_s1 + $0x4e4] ss:$16 sps:$4 sm:$0xff]  }
  0x60   :  { %9705 = vmatprep.subr.bf16.mxu0 %v14019_v37  ;;  %10730 = vmatprep.subr.bf16.mxu1 %v14022_v38  ;;  %v14114_v37 = vld [vmem:[%s21421_s1 + $0x4ec] ss:$16 sps:$4 sm:$0xff]   ;;  %v14109_v38 = vld [vmem:[%s21421_s1 + $0x4e0] ss:$16 sps:$4 sm:$0xff]  }
  0x63   :  { %9706 = vmatpush1.bf16.msra.mxu0 %v14017_v39  ;;  %10731 = vmatpush1.bf16.msra.mxu1 %v14020_v40  ;;  %v14112_v39 = vld [vmem:[%s21421_s1 + $0x4e8] ss:$16 sps:$4 sm:$0xff]   ;;  %v14117_v40 = vld [vmem:[%s21421_s1 + $0x504] ss:$16 sps:$4 sm:$0xff]  }
  0x64   :  { %9707 = vmatprep.subr.bf16.mxu0 %v14025_v41  ;;  %10732 = vmatprep.subr.bf16.mxu1 %v14028_v42  ;;  %v14120_v41 = vld [vmem:[%s21421_s1 + $0x50c] ss:$16 sps:$4 sm:$0xff]   ;;  %v14115_v42 = vld [vmem:[%s21421_s1 + $0x500] ss:$16 sps:$4 sm:$0xff]  }
  0x67   :  { %9708 = vmatpush1.bf16.msra.mxu0 %v14023_v43  ;;  %10733 = vmatpush1.bf16.msra.mxu1 %v14026_v44  ;;  %v14118_v43 = vld [vmem:[%s21421_s1 + $0x508] ss:$16 sps:$4 sm:$0xff]   ;;  %v14123_v44 = vld [vmem:[%s21421_s1 + $0x524] ss:$16 sps:$4 sm:$0xff]  }
  0x68   :  { %9709 = vmatprep.subr.bf16.mxu0 %v14031_v45  ;;  %10734 = vmatprep.subr.bf16.mxu1 %v14034_v46  ;;  %v14126_v45 = vld [vmem:[%s21421_s1 + $0x52c] ss:$16 sps:$4 sm:$0xff]   ;;  %v14121_v46 = vld [vmem:[%s21421_s1 + $0x520] ss:$16 sps:$4 sm:$0xff]  }
  0x6b   :  { %9710 = vmatpush1.bf16.msra.mxu0 %v14029_v47  ;;  %10735 = vmatpush1.bf16.msra.mxu1 %v14032_v48  ;;  %v14124_v47 = vld [vmem:[%s21421_s1 + $0x528] ss:$16 sps:$4 sm:$0xff]   ;;  %v14129_v48 = vld [vmem:[%s21421_s1 + $0x544] ss:$16 sps:$4 sm:$0xff]  }
  0x6c   :  { %9711 = vmatprep.subr.bf16.mxu0 %v14037_v49  ;;  %10736 = vmatprep.subr.bf16.mxu1 %v14040_v50  ;;  %v14132_v49 = vld [vmem:[%s21421_s1 + $0x54c] ss:$16 sps:$4 sm:$0xff]   ;;  %v14127_v50 = vld [vmem:[%s21421_s1 + $0x540] ss:$16 sps:$4 sm:$0xff]  }
  0x6f   :  { %9712 = vmatpush1.bf16.msra.mxu0 %v14035_v51  ;;  %10737 = vmatpush1.bf16.msra.mxu1 %v14038_v52  ;;  %v14130_v51 = vld [vmem:[%s21421_s1 + $0x548] ss:$16 sps:$4 sm:$0xff]   ;;  %v14135_v52 = vld [vmem:[%s21421_s1 + $0x564] ss:$16 sps:$4 sm:$0xff]  }
  0x70   :  { %9713 = vmatprep.subr.bf16.mxu0 %v14043_v53  ;;  %10738 = vmatprep.subr.bf16.mxu1 %v14046_v54  ;;  %v14138_v53 = vld [vmem:[%s21421_s1 + $0x56c] ss:$16 sps:$4 sm:$0xff]   ;;  %v14133_v54 = vld [vmem:[%s21421_s1 + $0x560] ss:$16 sps:$4 sm:$0xff]  }
  0x73   :  { %9714 = vmatpush1.bf16.msra.mxu0 %v14041_v55  ;;  %10739 = vmatpush1.bf16.msra.mxu1 %v14044_v56  ;;  %v14136_v55 = vld [vmem:[%s21421_s1 + $0x568] ss:$16 sps:$4 sm:$0xff]   ;;  %v14141_v56 = vld [vmem:[%s21421_s1 + $0x584] ss:$16 sps:$4 sm:$0xff]  }
  0x74   :  { %9715 = vmatprep.subr.bf16.mxu0 %v14049_v57  ;;  %10740 = vmatprep.subr.bf16.mxu1 %v14052_v58  ;;  %v14144_v57 = vld [vmem:[%s21421_s1 + $0x58c] ss:$16 sps:$4 sm:$0xff]   ;;  %v14139_v58 = vld [vmem:[%s21421_s1 + $0x580] ss:$16 sps:$4 sm:$0xff]  }
  0x77   :  { %9716 = vmatpush1.bf16.msra.mxu0 %v14047_v59  ;;  %10741 = vmatpush1.bf16.msra.mxu1 %v14050_v60  ;;  %v14142_v59 = vld [vmem:[%s21421_s1 + $0x588] ss:$16 sps:$4 sm:$0xff]   ;;  %v14147_v60 = vld [vmem:[%s21421_s1 + $0x5a4] ss:$16 sps:$4 sm:$0xff]  }
  0x78   :  { %9717 = vmatprep.subr.bf16.mxu0 %v14055_v61  ;;  %10742 = vmatprep.subr.bf16.mxu1 %v14058_v62  ;;  %v14150_v61 = vld [vmem:[%s21421_s1 + $0x5ac] ss:$16 sps:$4 sm:$0xff]   ;;  %v14145_v62 = vld [vmem:[%s21421_s1 + $0x5a0] ss:$16 sps:$4 sm:$0xff]  }
  0x7b   :  { %9718 = vmatpush1.bf16.msra.mxu0 %v14053_v63  ;;  %10743 = vmatpush1.bf16.msra.mxu1 %v14056_v0  ;;  %v14148_v63 = vld [vmem:[%s21421_s1 + $0x5a8] ss:$16 sps:$4 sm:$0xff]   ;;  %v14153_v0 = vld [vmem:[%s21421_s1 + $0x5c4] ss:$16 sps:$4 sm:$0xff]  }
  0x7c   :  { %9719 = vmatprep.subr.bf16.mxu0 %v14061_v1  ;;  %10744 = vmatprep.subr.bf16.mxu1 %v14064_v2  ;;  %v14156_v1 = vld [vmem:[%s21421_s1 + $0x5cc] ss:$16 sps:$4 sm:$0xff]   ;;  %v14151_v2 = vld [vmem:[%s21421_s1 + $0x5c0] ss:$16 sps:$4 sm:$0xff]  }
  0x7f   :  { %9720 = vmatpush1.bf16.msra.mxu0 %v14059_v3  ;;  %10745 = vmatpush1.bf16.msra.mxu1 %v14062_v4  ;;  %v14154_v3 = vld [vmem:[%s21421_s1 + $0x5c8] ss:$16 sps:$4 sm:$0xff]   ;;  %v14159_v4 = vld [vmem:[%s21421_s1 + $0x5e4] ss:$16 sps:$4 sm:$0xff]  }
  0x80   :  { %9730 = vmatprep.subr.bf16.mxu0 %v14069_v5  ;;  %10755 = vmatprep.subr.bf16.mxu1 %v14072_v6  ;;  %v14162_v5 = vld [vmem:[%s21421_s1 + $0x5ec] ss:$16 sps:$4 sm:$0xff]   ;;  %v14157_v6 = vld [vmem:[%s21421_s1 + $0x5e0] ss:$16 sps:$4 sm:$0xff]  }
  0x82   :  { %9722 = vmatmul.mubr.bf16.vlgmr.msra.gmra.mrb[0].mxu0 %v11924_v7  ;;  %10747 = vmatmul.mubr.bf16.vlgmr.msra.gmra.mrb[0].mxu1 %v11924_v7  ;;  %v14160_v7 = vld [vmem:[%s21421_s1 + $0x5e8] ss:$16 sps:$4 sm:$0xff]  }
  0x83   :  { %9731 = vmatpush1.bf16.msra.mxu0 %v14067_v8  ;;  %10756 = vmatpush1.bf16.msra.mxu1 %v14070_v9  ;;  %v14167_v8 = vld [vmem:[%s21421_s1 + $0x604] ss:$16 sps:$4 sm:$0xff]   ;;  %v14170_v9 = vld [vmem:[%s21421_s1 + $0x60c] ss:$16 sps:$4 sm:$0xff]  }
  0x84   :  { %9732 = vmatprep.subr.bf16.mxu0 %v14075_v10  ;;  %10757 = vmatprep.subr.bf16.mxu1 %v14078_v12  ;;  %v14165_v10 = vld [vmem:[%s21421_s1 + $0x600] ss:$16 sps:$4 sm:$0xff]   ;;  %v11926_v12 = vcombine.low %v16717_v11, %v16717_v11  ;;  %v14176_v11 = vld [vmem:[%s21421_s1 + $0x62c] ss:$16 sps:$4 sm:$0xff]  }
  0x85   :  { %9762 = vmatprep.mubr.bf16.mxu0 %v11927_v13  ;;  %10787 = vmatprep.mubr.bf16.mxu1 %v11927_v13  ;;  %v14168_v13 = vld [vmem:[%s21421_s1 + $0x608] ss:$16 sps:$4 sm:$0xff]  }
  0x87   :  { %9733 = vmatpush1.bf16.msra.mxu0 %v14073_v14  ;;  %10758 = vmatpush1.bf16.msra.mxu1 %v14076_v15  ;;  %v16915_v14 = vld [vmem:[%s21422_s0 + $0x18] sm:$0xff]  ;;  %v14173_v15 = vld [vmem:[%s21421_s1 + $0x624] ss:$16 sps:$4 sm:$0xff]  }
  0x88   :  { %9734 = vmatprep.subr.bf16.mxu0 %v14081_v16  ;;  %10759 = vmatprep.subr.bf16.mxu1 %v14084_v17  ;;  %v11929_v16 = vcombine.high %v16915_v14, %v16915_v14  ;;  %v14171_v17 = vld [vmem:[%s21421_s1 + $0x620] ss:$16 sps:$4 sm:$0xff]  }
  0x8b   :  { %9735 = vmatpush1.bf16.msra.mxu0 %v14079_v18  ;;  %10760 = vmatpush1.bf16.msra.mxu1 %v14082_v19  ;;  %v14174_v18 = vld [vmem:[%s21421_s1 + $0x628] ss:$16 sps:$4 sm:$0xff]   ;;  %v14179_v19 = vld [vmem:[%s21421_s1 + $0x644] ss:$16 sps:$4 sm:$0xff]  }
  0x8c   :  { %9736 = vmatprep.subr.bf16.mxu0 %v14087_v20  ;;  %10761 = vmatprep.subr.bf16.mxu1 %v14090_v21  ;;  %v14182_v20 = vld [vmem:[%s21421_s1 + $0x64c] ss:$16 sps:$4 sm:$0xff]   ;;  %v14177_v21 = vld [vmem:[%s21421_s1 + $0x640] ss:$16 sps:$4 sm:$0xff]  }
  0x8f   :  { %9737 = vmatpush1.bf16.msra.mxu0 %v14085_v22  ;;  %10762 = vmatpush1.bf16.msra.mxu1 %v14088_v23  ;;  %v14180_v22 = vld [vmem:[%s21421_s1 + $0x648] ss:$16 sps:$4 sm:$0xff]   ;;  %v14185_v23 = vld [vmem:[%s21421_s1 + $0x664] ss:$16 sps:$4 sm:$0xff]  }
  0x90   :  { %9738 = vmatprep.subr.bf16.mxu0 %v14093_v24  ;;  %10763 = vmatprep.subr.bf16.mxu1 %v14096_v25  ;;  %v14188_v24 = vld [vmem:[%s21421_s1 + $0x66c] ss:$16 sps:$4 sm:$0xff]   ;;  %v14183_v25 = vld [vmem:[%s21421_s1 + $0x660] ss:$16 sps:$4 sm:$0xff]  }
  0x93   :  { %9739 = vmatpush1.bf16.msra.mxu0 %v14091_v26  ;;  %10764 = vmatpush1.bf16.msra.mxu1 %v14094_v27  ;;  %v14186_v26 = vld [vmem:[%s21421_s1 + $0x668] ss:$16 sps:$4 sm:$0xff]   ;;  %v14191_v27 = vld [vmem:[%s21421_s1 + $0x684] ss:$16 sps:$4 sm:$0xff]  }
  0x94   :  { %9740 = vmatprep.subr.bf16.mxu0 %v14099_v28  ;;  %10765 = vmatprep.subr.bf16.mxu1 %v14102_v29  ;;  %v14194_v28 = vld [vmem:[%s21421_s1 + $0x68c] ss:$16 sps:$4 sm:$0xff]   ;;  %v14189_v29 = vld [vmem:[%s21421_s1 + $0x680] ss:$16 sps:$4 sm:$0xff]  }
  0x97   :  { %9741 = vmatpush1.bf16.msra.mxu0 %v14097_v30  ;;  %10766 = vmatpush1.bf16.msra.mxu1 %v14100_v31  ;;  %v14192_v30 = vld [vmem:[%s21421_s1 + $0x688] ss:$16 sps:$4 sm:$0xff]   ;;  %v14197_v31 = vld [vmem:[%s21421_s1 + $0x6a4] ss:$16 sps:$4 sm:$0xff]  }
  0x98   :  { %9742 = vmatprep.subr.bf16.mxu0 %v14105_v32  ;;  %10767 = vmatprep.subr.bf16.mxu1 %v14108_v33  ;;  %v14200_v32 = vld [vmem:[%s21421_s1 + $0x6ac] ss:$16 sps:$4 sm:$0xff]   ;;  %v14195_v33 = vld [vmem:[%s21421_s1 + $0x6a0] ss:$16 sps:$4 sm:$0xff]  }
  0x9b   :  { %9743 = vmatpush1.bf16.msra.mxu0 %v14103_v34  ;;  %10768 = vmatpush1.bf16.msra.mxu1 %v14106_v35  ;;  %v14198_v34 = vld [vmem:[%s21421_s1 + $0x6a8] ss:$16 sps:$4 sm:$0xff]   ;;  %v14203_v35 = vld [vmem:[%s21421_s1 + $0x6c4] ss:$16 sps:$4 sm:$0xff]  }
  0x9c   :  { %9744 = vmatprep.subr.bf16.mxu0 %v14111_v36  ;;  %10769 = vmatprep.subr.bf16.mxu1 %v14114_v37  ;;  %v14206_v36 = vld [vmem:[%s21421_s1 + $0x6cc] ss:$16 sps:$4 sm:$0xff]   ;;  %v14201_v37 = vld [vmem:[%s21421_s1 + $0x6c0] ss:$16 sps:$4 sm:$0xff]  }
  0x9f   :  { %9745 = vmatpush1.bf16.msra.mxu0 %v14109_v38  ;;  %10770 = vmatpush1.bf16.msra.mxu1 %v14112_v39  ;;  %v14204_v38 = vld [vmem:[%s21421_s1 + $0x6c8] ss:$16 sps:$4 sm:$0xff]   ;;  %v14209_v39 = vld [vmem:[%s21421_s1 + $0x6e4] ss:$16 sps:$4 sm:$0xff]  }
  0xa0   :  { %9746 = vmatprep.subr.bf16.mxu0 %v14117_v40  ;;  %10771 = vmatprep.subr.bf16.mxu1 %v14120_v41  ;;  %v14212_v40 = vld [vmem:[%s21421_s1 + $0x6ec] ss:$16 sps:$4 sm:$0xff]   ;;  %v14207_v41 = vld [vmem:[%s21421_s1 + $0x6e0] ss:$16 sps:$4 sm:$0xff]  }
  0xa3   :  { %9747 = vmatpush1.bf16.msra.mxu0 %v14115_v42  ;;  %10772 = vmatpush1.bf16.msra.mxu1 %v14118_v43  ;;  %v14210_v42 = vld [vmem:[%s21421_s1 + $0x6e8] ss:$16 sps:$4 sm:$0xff]   ;;  %v14215_v43 = vld [vmem:[%s21421_s1 + $0x704] ss:$16 sps:$4 sm:$0xff]  }
  0xa4   :  { %9748 = vmatprep.subr.bf16.mxu0 %v14123_v44  ;;  %10773 = vmatprep.subr.bf16.mxu1 %v14126_v45  ;;  %v14218_v44 = vld [vmem:[%s21421_s1 + $0x70c] ss:$16 sps:$4 sm:$0xff]   ;;  %v14213_v45 = vld [vmem:[%s21421_s1 + $0x700] ss:$16 sps:$4 sm:$0xff]  }
  0xa7   :  { %9749 = vmatpush1.bf16.msra.mxu0 %v14121_v46  ;;  %10774 = vmatpush1.bf16.msra.mxu1 %v14124_v47  ;;  %v14216_v46 = vld [vmem:[%s21421_s1 + $0x708] ss:$16 sps:$4 sm:$0xff]   ;;  %v14221_v47 = vld [vmem:[%s21421_s1 + $0x724] ss:$16 sps:$4 sm:$0xff]  }
  0xa8   :  { %9750 = vmatprep.subr.bf16.mxu0 %v14129_v48  ;;  %10775 = vmatprep.subr.bf16.mxu1 %v14132_v49  ;;  %v14224_v48 = vld [vmem:[%s21421_s1 + $0x72c] ss:$16 sps:$4 sm:$0xff]   ;;  %v14219_v49 = vld [vmem:[%s21421_s1 + $0x720] ss:$16 sps:$4 sm:$0xff]  }
  0xab   :  { %9751 = vmatpush1.bf16.msra.mxu0 %v14127_v50  ;;  %10776 = vmatpush1.bf16.msra.mxu1 %v14130_v51  ;;  %v14222_v50 = vld [vmem:[%s21421_s1 + $0x728] ss:$16 sps:$4 sm:$0xff]   ;;  %v14227_v51 = vld [vmem:[%s21421_s1 + $0x744] ss:$16 sps:$4 sm:$0xff]  }
  0xac   :  { %9752 = vmatprep.subr.bf16.mxu0 %v14135_v52  ;;  %10777 = vmatprep.subr.bf16.mxu1 %v14138_v53  ;;  %v14230_v52 = vld [vmem:[%s21421_s1 + $0x74c] ss:$16 sps:$4 sm:$0xff]   ;;  %v14225_v53 = vld [vmem:[%s21421_s1 + $0x740] ss:$16 sps:$4 sm:$0xff]  }
  0xaf   :  { %9753 = vmatpush1.bf16.msra.mxu0 %v14133_v54  ;;  %10778 = vmatpush1.bf16.msra.mxu1 %v14136_v55  ;;  %v14228_v54 = vld [vmem:[%s21421_s1 + $0x748] ss:$16 sps:$4 sm:$0xff]   ;;  %v14233_v55 = vld [vmem:[%s21421_s1 + $0x764] ss:$16 sps:$4 sm:$0xff]  }
  0xb0   :  { %9754 = vmatprep.subr.bf16.mxu0 %v14141_v56  ;;  %10779 = vmatprep.subr.bf16.mxu1 %v14144_v57  ;;  %v14236_v56 = vld [vmem:[%s21421_s1 + $0x76c] ss:$16 sps:$4 sm:$0xff]   ;;  %v14231_v57 = vld [vmem:[%s21421_s1 + $0x760] ss:$16 sps:$4 sm:$0xff]  }
  0xb3   :  { %9755 = vmatpush1.bf16.msra.mxu0 %v14139_v58  ;;  %10780 = vmatpush1.bf16.msra.mxu1 %v14142_v59  ;;  %v14234_v58 = vld [vmem:[%s21421_s1 + $0x768] ss:$16 sps:$4 sm:$0xff]   ;;  %v14239_v59 = vld [vmem:[%s21421_s1 + $0x784] ss:$16 sps:$4 sm:$0xff]  }
  0xb4   :  { %9756 = vmatprep.subr.bf16.mxu0 %v14147_v60  ;;  %10781 = vmatprep.subr.bf16.mxu1 %v14150_v61  ;;  %v14242_v60 = vld [vmem:[%s21421_s1 + $0x78c] ss:$16 sps:$4 sm:$0xff]   ;;  %v14237_v61 = vld [vmem:[%s21421_s1 + $0x780] ss:$16 sps:$4 sm:$0xff]  }
  0xb7   :  { %9757 = vmatpush1.bf16.msra.mxu0 %v14145_v62  ;;  %10782 = vmatpush1.bf16.msra.mxu1 %v14148_v63  ;;  %v14240_v62 = vld [vmem:[%s21421_s1 + $0x788] ss:$16 sps:$4 sm:$0xff]   ;;  %v14245_v63 = vld [vmem:[%s21421_s1 + $0x7a4] ss:$16 sps:$4 sm:$0xff]  }
  0xb8   :  { %9758 = vmatprep.subr.bf16.mxu0 %v14153_v0  ;;  %10783 = vmatprep.subr.bf16.mxu1 %v14156_v1  ;;  %v14248_v0 = vld [vmem:[%s21421_s1 + $0x7ac] ss:$16 sps:$4 sm:$0xff]   ;;  %v14243_v1 = vld [vmem:[%s21421_s1 + $0x7a0] ss:$16 sps:$4 sm:$0xff]  }
  0xbb   :  { %9759 = vmatpush1.bf16.msra.mxu0 %v14151_v2  ;;  %10784 = vmatpush1.bf16.msra.mxu1 %v14154_v3  ;;  %v14246_v2 = vld [vmem:[%s21421_s1 + $0x7a8] ss:$16 sps:$4 sm:$0xff]   ;;  %v14251_v3 = vld [vmem:[%s21421_s1 + $0x7c4] ss:$16 sps:$4 sm:$0xff]  }
  0xbc   :  { %9760 = vmatprep.subr.bf16.mxu0 %v14159_v4  ;;  %10785 = vmatprep.subr.bf16.mxu1 %v14162_v5  ;;  %v14254_v4 = vld [vmem:[%s21421_s1 + $0x7cc] ss:$16 sps:$4 sm:$0xff]   ;;  %v14249_v5 = vld [vmem:[%s21421_s1 + $0x7c0] ss:$16 sps:$4 sm:$0xff]  }
  0xbf   :  { %9761 = vmatpush1.bf16.msra.mxu0 %v14157_v6  ;;  %10786 = vmatpush1.bf16.msra.mxu1 %v14160_v7  ;;  %v14252_v6 = vld [vmem:[%s21421_s1 + $0x7c8] ss:$16 sps:$4 sm:$0xff]   ;;  %v14257_v7 = vld [vmem:[%s21421_s1 + $0x7e4] ss:$16 sps:$4 sm:$0xff]  }
  0xc0   :  { %9771 = vmatprep.subr.bf16.mxu0 %v14167_v8  ;;  %10796 = vmatprep.subr.bf16.mxu1 %v14170_v9  ;;  %v14260_v8 = vld [vmem:[%s21421_s1 + $0x7ec] ss:$16 sps:$4 sm:$0xff]   ;;  %v14255_v9 = vld [vmem:[%s21421_s1 + $0x7e0] ss:$16 sps:$4 sm:$0xff]  }
  0xc2   :  { %9763 = vmatmul.mubr.bf16.vlgmr.msra.gmra.mrb[0].mxu0 %v11926_v12  ;;  %10788 = vmatmul.mubr.bf16.vlgmr.msra.gmra.mrb[0].mxu1 %v11926_v12  ;;  %v14265_v12 = vld [vmem:[%s21421_s1 + $0x804] ss:$16 sps:$4 sm:$0xff]  }
  0xc3   :  { %9772 = vmatpush1.bf16.msra.mxu0 %v14165_v10  ;;  %10797 = vmatpush1.bf16.msra.mxu1 %v14168_v13  ;;  %v14258_v10 = vld [vmem:[%s21421_s1 + $0x7e8] ss:$16 sps:$4 sm:$0xff]   ;;  %v14268_v13 = vld [vmem:[%s21421_s1 + $0x80c] ss:$16 sps:$4 sm:$0xff]  }
  0xc4   :  { %9773 = vmatprep.subr.bf16.mxu0 %v14173_v15  ;;  %10798 = vmatprep.subr.bf16.mxu1 %v14176_v11  ;;  %v14263_v15 = vld [vmem:[%s21421_s1 + $0x800] ss:$16 sps:$4 sm:$0xff]   ;;  %v11928_v11 = vcombine.low %v16915_v14, %v16915_v14  ;;  %v14274_v14 = vld [vmem:[%s21421_s1 + $0x82c] ss:$16 sps:$4 sm:$0xff]  }
  0xc5   :  { %9803 = vmatprep.mubr.bf16.mxu0 %v11929_v16  ;;  %10828 = vmatprep.mubr.bf16.mxu1 %v11929_v16  ;;  %v17113_v16 = vld [vmem:[%s21422_s0 + $0x20] sm:$0xff] }
  0xc7   :  { %9774 = vmatpush1.bf16.msra.mxu0 %v14171_v17  ;;  %10799 = vmatpush1.bf16.msra.mxu1 %v14174_v18  ;;  %v14266_v17 = vld [vmem:[%s21421_s1 + $0x808] ss:$16 sps:$4 sm:$0xff]   ;;  %v14271_v18 = vld [vmem:[%s21421_s1 + $0x824] ss:$16 sps:$4 sm:$0xff]  }
  0xc8   :  { %9775 = vmatprep.subr.bf16.mxu0 %v14179_v19  ;;  %10800 = vmatprep.subr.bf16.mxu1 %v14182_v20  ;;  %v11931_v19 = vcombine.high %v17113_v16, %v17113_v16  ;;  %v14269_v20 = vld [vmem:[%s21421_s1 + $0x820] ss:$16 sps:$4 sm:$0xff]  }
  0xcb   :  { %9776 = vmatpush1.bf16.msra.mxu0 %v14177_v21  ;;  %10801 = vmatpush1.bf16.msra.mxu1 %v14180_v22  ;;  %v14272_v21 = vld [vmem:[%s21421_s1 + $0x828] ss:$16 sps:$4 sm:$0xff]   ;;  %v14277_v22 = vld [vmem:[%s21421_s1 + $0x844] ss:$16 sps:$4 sm:$0xff]  }
  0xcc   :  { %9777 = vmatprep.subr.bf16.mxu0 %v14185_v23  ;;  %10802 = vmatprep.subr.bf16.mxu1 %v14188_v24  ;;  %v14280_v23 = vld [vmem:[%s21421_s1 + $0x84c] ss:$16 sps:$4 sm:$0xff]   ;;  %v14275_v24 = vld [vmem:[%s21421_s1 + $0x840] ss:$16 sps:$4 sm:$0xff]  }
  0xcf   :  { %9778 = vmatpush1.bf16.msra.mxu0 %v14183_v25  ;;  %10803 = vmatpush1.bf16.msra.mxu1 %v14186_v26  ;;  %v14278_v25 = vld [vmem:[%s21421_s1 + $0x848] ss:$16 sps:$4 sm:$0xff]   ;;  %v14283_v26 = vld [vmem:[%s21421_s1 + $0x864] ss:$16 sps:$4 sm:$0xff]  }
  0xd0   :  { %9779 = vmatprep.subr.bf16.mxu0 %v14191_v27  ;;  %10804 = vmatprep.subr.bf16.mxu1 %v14194_v28  ;;  %v14286_v27 = vld [vmem:[%s21421_s1 + $0x86c] ss:$16 sps:$4 sm:$0xff]   ;;  %v14281_v28 = vld [vmem:[%s21421_s1 + $0x860] ss:$16 sps:$4 sm:$0xff]  }
  0xd3   :  { %9780 = vmatpush1.bf16.msra.mxu0 %v14189_v29  ;;  %10805 = vmatpush1.bf16.msra.mxu1 %v14192_v30  ;;  %v14284_v29 = vld [vmem:[%s21421_s1 + $0x868] ss:$16 sps:$4 sm:$0xff]   ;;  %v14289_v30 = vld [vmem:[%s21421_s1 + $0x884] ss:$16 sps:$4 sm:$0xff]  }
  0xd4   :  { %9781 = vmatprep.subr.bf16.mxu0 %v14197_v31  ;;  %10806 = vmatprep.subr.bf16.mxu1 %v14200_v32  ;;  %v14292_v31 = vld [vmem:[%s21421_s1 + $0x88c] ss:$16 sps:$4 sm:$0xff]   ;;  %v14287_v32 = vld [vmem:[%s21421_s1 + $0x880] ss:$16 sps:$4 sm:$0xff]  }
  0xd7   :  { %9782 = vmatpush1.bf16.msra.mxu0 %v14195_v33  ;;  %10807 = vmatpush1.bf16.msra.mxu1 %v14198_v34  ;;  %v14290_v33 = vld [vmem:[%s21421_s1 + $0x888] ss:$16 sps:$4 sm:$0xff]   ;;  %v14295_v34 = vld [vmem:[%s21421_s1 + $0x8a4] ss:$16 sps:$4 sm:$0xff]  }
  0xd8   :  { %9783 = vmatprep.subr.bf16.mxu0 %v14203_v35  ;;  %10808 = vmatprep.subr.bf16.mxu1 %v14206_v36  ;;  %v14298_v35 = vld [vmem:[%s21421_s1 + $0x8ac] ss:$16 sps:$4 sm:$0xff]   ;;  %v14293_v36 = vld [vmem:[%s21421_s1 + $0x8a0] ss:$16 sps:$4 sm:$0xff]  }
  0xdb   :  { %9784 = vmatpush1.bf16.msra.mxu0 %v14201_v37  ;;  %10809 = vmatpush1.bf16.msra.mxu1 %v14204_v38  ;;  %v14296_v37 = vld [vmem:[%s21421_s1 + $0x8a8] ss:$16 sps:$4 sm:$0xff]   ;;  %v14301_v38 = vld [vmem:[%s21421_s1 + $0x8c4] ss:$16 sps:$4 sm:$0xff]  }
  0xdc   :  { %9785 = vmatprep.subr.bf16.mxu0 %v14209_v39  ;;  %10810 = vmatprep.subr.bf16.mxu1 %v14212_v40  ;;  %v14304_v39 = vld [vmem:[%s21421_s1 + $0x8cc] ss:$16 sps:$4 sm:$0xff]   ;;  %v14299_v40 = vld [vmem:[%s21421_s1 + $0x8c0] ss:$16 sps:$4 sm:$0xff]  }
  0xdf   :  { %9786 = vmatpush1.bf16.msra.mxu0 %v14207_v41  ;;  %10811 = vmatpush1.bf16.msra.mxu1 %v14210_v42  ;;  %v14302_v41 = vld [vmem:[%s21421_s1 + $0x8c8] ss:$16 sps:$4 sm:$0xff]   ;;  %v14307_v42 = vld [vmem:[%s21421_s1 + $0x8e4] ss:$16 sps:$4 sm:$0xff]  }
  0xe0   :  { %9787 = vmatprep.subr.bf16.mxu0 %v14215_v43  ;;  %10812 = vmatprep.subr.bf16.mxu1 %v14218_v44  ;;  %v14310_v43 = vld [vmem:[%s21421_s1 + $0x8ec] ss:$16 sps:$4 sm:$0xff]   ;;  %v14305_v44 = vld [vmem:[%s21421_s1 + $0x8e0] ss:$16 sps:$4 sm:$0xff]  }
  0xe3   :  { %9788 = vmatpush1.bf16.msra.mxu0 %v14213_v45  ;;  %10813 = vmatpush1.bf16.msra.mxu1 %v14216_v46  ;;  %v14308_v45 = vld [vmem:[%s21421_s1 + $0x8e8] ss:$16 sps:$4 sm:$0xff]   ;;  %v14313_v46 = vld [vmem:[%s21421_s1 + $0x904] ss:$16 sps:$4 sm:$0xff]  }
  0xe4   :  { %9789 = vmatprep.subr.bf16.mxu0 %v14221_v47  ;;  %10814 = vmatprep.subr.bf16.mxu1 %v14224_v48  ;;  %v14316_v47 = vld [vmem:[%s21421_s1 + $0x90c] ss:$16 sps:$4 sm:$0xff]   ;;  %v14311_v48 = vld [vmem:[%s21421_s1 + $0x900] ss:$16 sps:$4 sm:$0xff]  }
  0xe7   :  { %9790 = vmatpush1.bf16.msra.mxu0 %v14219_v49  ;;  %10815 = vmatpush1.bf16.msra.mxu1 %v14222_v50  ;;  %v14314_v49 = vld [vmem:[%s21421_s1 + $0x908] ss:$16 sps:$4 sm:$0xff]   ;;  %v14319_v50 = vld [vmem:[%s21421_s1 + $0x924] ss:$16 sps:$4 sm:$0xff]  }
  0xe8   :  { %9791 = vmatprep.subr.bf16.mxu0 %v14227_v51  ;;  %10816 = vmatprep.subr.bf16.mxu1 %v14230_v52  ;;  %v14322_v51 = vld [vmem:[%s21421_s1 + $0x92c] ss:$16 sps:$4 sm:$0xff]   ;;  %v14317_v52 = vld [vmem:[%s21421_s1 + $0x920] ss:$16 sps:$4 sm:$0xff]  }
  0xeb   :  { %9792 = vmatpush1.bf16.msra.mxu0 %v14225_v53  ;;  %10817 = vmatpush1.bf16.msra.mxu1 %v14228_v54  ;;  %v14320_v53 = vld [vmem:[%s21421_s1 + $0x928] ss:$16 sps:$4 sm:$0xff]   ;;  %v14325_v54 = vld [vmem:[%s21421_s1 + $0x944] ss:$16 sps:$4 sm:$0xff]  }
  0xec   :  { %9793 = vmatprep.subr.bf16.mxu0 %v14233_v55  ;;  %10818 = vmatprep.subr.bf16.mxu1 %v14236_v56  ;;  %v14328_v55 = vld [vmem:[%s21421_s1 + $0x94c] ss:$16 sps:$4 sm:$0xff]   ;;  %v14323_v56 = vld [vmem:[%s21421_s1 + $0x940] ss:$16 sps:$4 sm:$0xff]  }
  0xef   :  { %9794 = vmatpush1.bf16.msra.mxu0 %v14231_v57  ;;  %10819 = vmatpush1.bf16.msra.mxu1 %v14234_v58  ;;  %v14326_v57 = vld [vmem:[%s21421_s1 + $0x948] ss:$16 sps:$4 sm:$0xff]   ;;  %v14331_v58 = vld [vmem:[%s21421_s1 + $0x964] ss:$16 sps:$4 sm:$0xff]  }
  0xf0   :  { %9795 = vmatprep.subr.bf16.mxu0 %v14239_v59  ;;  %10820 = vmatprep.subr.bf16.mxu1 %v14242_v60  ;;  %v14334_v59 = vld [vmem:[%s21421_s1 + $0x96c] ss:$16 sps:$4 sm:$0xff]   ;;  %v14329_v60 = vld [vmem:[%s21421_s1 + $0x960] ss:$16 sps:$4 sm:$0xff]  }
  0xf3   :  { %9796 = vmatpush1.bf16.msra.mxu0 %v14237_v61  ;;  %10821 = vmatpush1.bf16.msra.mxu1 %v14240_v62  ;;  %v14332_v61 = vld [vmem:[%s21421_s1 + $0x968] ss:$16 sps:$4 sm:$0xff]   ;;  %v14337_v62 = vld [vmem:[%s21421_s1 + $0x984] ss:$16 sps:$4 sm:$0xff]  }
  0xf4   :  { %9797 = vmatprep.subr.bf16.mxu0 %v14245_v63  ;;  %10822 = vmatprep.subr.bf16.mxu1 %v14248_v0  ;;  %v14340_v63 = vld [vmem:[%s21421_s1 + $0x98c] ss:$16 sps:$4 sm:$0xff]   ;;  %v14335_v0 = vld [vmem:[%s21421_s1 + $0x980] ss:$16 sps:$4 sm:$0xff]  }
  0xf7   :  { %9798 = vmatpush1.bf16.msra.mxu0 %v14243_v1  ;;  %10823 = vmatpush1.bf16.msra.mxu1 %v14246_v2  ;;  %v14338_v1 = vld [vmem:[%s21421_s1 + $0x988] ss:$16 sps:$4 sm:$0xff]   ;;  %v14343_v2 = vld [vmem:[%s21421_s1 + $0x9a4] ss:$16 sps:$4 sm:$0xff]  }
  0xf8   :  { %9799 = vmatprep.subr.bf16.mxu0 %v14251_v3  ;;  %10824 = vmatprep.subr.bf16.mxu1 %v14254_v4  ;;  %v14346_v3 = vld [vmem:[%s21421_s1 + $0x9ac] ss:$16 sps:$4 sm:$0xff]   ;;  %v14341_v4 = vld [vmem:[%s21421_s1 + $0x9a0] ss:$16 sps:$4 sm:$0xff]  }
  0xfb   :  { %9800 = vmatpush1.bf16.msra.mxu0 %v14249_v5  ;;  %10825 = vmatpush1.bf16.msra.mxu1 %v14252_v6  ;;  %v14344_v5 = vld [vmem:[%s21421_s1 + $0x9a8] ss:$16 sps:$4 sm:$0xff]   ;;  %v14349_v6 = vld [vmem:[%s21421_s1 + $0x9c4] ss:$16 sps:$4 sm:$0xff]  }
  0xfc   :  { %9801 = vmatprep.subr.bf16.mxu0 %v14257_v7  ;;  %10826 = vmatprep.subr.bf16.mxu1 %v14260_v8  ;;  %v14352_v7 = vld [vmem:[%s21421_s1 + $0x9cc] ss:$16 sps:$4 sm:$0xff]   ;;  %v14347_v8 = vld [vmem:[%s21421_s1 + $0x9c0] ss:$16 sps:$4 sm:$0xff]  }
  0xff   :  { %9802 = vmatpush1.bf16.msra.mxu0 %v14255_v9  ;;  %10827 = vmatpush1.bf16.msra.mxu1 %v14258_v10  ;;  %v14350_v9 = vld [vmem:[%s21421_s1 + $0x9c8] ss:$16 sps:$4 sm:$0xff]   ;;  %v14355_v10 = vld [vmem:[%s21421_s1 + $0x9e4] ss:$16 sps:$4 sm:$0xff]  }
 0x100   :  { %9812 = vmatprep.subr.bf16.mxu0 %v14265_v12  ;;  %10837 = vmatprep.subr.bf16.mxu1 %v14268_v13  ;;  %v14358_v12 = vld [vmem:[%s21421_s1 + $0x9ec] ss:$16 sps:$4 sm:$0xff]   ;;  %v14353_v13 = vld [vmem:[%s21421_s1 + $0x9e0] ss:$16 sps:$4 sm:$0xff]  }
 0x102   :  { %9804 = vmatmul.mubr.bf16.vlgmr.msra.gmra.mrb[0].mxu0 %v11928_v11  ;;  %10829 = vmatmul.mubr.bf16.vlgmr.msra.gmra.mrb[0].mxu1 %v11928_v11  ;;  %v14363_v11 = vld [vmem:[%s21421_s1 + $0xa04] ss:$16 sps:$4 sm:$0xff]  }
 0x103   :  { %9813 = vmatpush1.bf16.msra.mxu0 %v14263_v15  ;;  %10838 = vmatpush1.bf16.msra.mxu1 %v14266_v17  ;;  %v14356_v15 = vld [vmem:[%s21421_s1 + $0x9e8] ss:$16 sps:$4 sm:$0xff]   ;;  %v14366_v17 = vld [vmem:[%s21421_s1 + $0xa0c] ss:$16 sps:$4 sm:$0xff]  }
 0x104   :  { %9814 = vmatprep.subr.bf16.mxu0 %v14271_v18  ;;  %10839 = vmatprep.subr.bf16.mxu1 %v14274_v14  ;;  %v17309_v18 = vld [vmem:[%s21422_s0 + $0x28] sm:$0xff]  ;;  %v11930_v14 = vcombine.low %v17113_v16, %v17113_v16 }
 0x105   :  { %9844 = vmatprep.mubr.bf16.mxu0 %v11931_v19  ;;  %10869 = vmatprep.mubr.bf16.mxu1 %v11931_v19  ;;  %v14361_v19 = vld [vmem:[%s21421_s1 + $0xa00] ss:$16 sps:$4 sm:$0xff]   ;;  %v14372_v16 = vld [vmem:[%s21421_s1 + $0xa2c] ss:$16 sps:$4 sm:$0xff]  }
 0x107   :  { %9815 = vmatpush1.bf16.msra.mxu0 %v14269_v20  ;;  %10840 = vmatpush1.bf16.msra.mxu1 %v14272_v21  ;;  %v14364_v20 = vld [vmem:[%s21421_s1 + $0xa08] ss:$16 sps:$4 sm:$0xff]   ;;  %v14369_v21 = vld [vmem:[%s21421_s1 + $0xa24] ss:$16 sps:$4 sm:$0xff]  }
 0x108   :  { %9816 = vmatprep.subr.bf16.mxu0 %v14277_v22  ;;  %10841 = vmatprep.subr.bf16.mxu1 %v14280_v23  ;;  %v11933_v22 = vcombine.high %v17309_v18, %v17309_v18  ;;  %v14367_v23 = vld [vmem:[%s21421_s1 + $0xa20] ss:$16 sps:$4 sm:$0xff]  }
 0x10b   :  { %9817 = vmatpush1.bf16.msra.mxu0 %v14275_v24  ;;  %10842 = vmatpush1.bf16.msra.mxu1 %v14278_v25  ;;  %v14370_v24 = vld [vmem:[%s21421_s1 + $0xa28] ss:$16 sps:$4 sm:$0xff]   ;;  %v14375_v25 = vld [vmem:[%s21421_s1 + $0xa44] ss:$16 sps:$4 sm:$0xff]  }
 0x10c   :  { %9818 = vmatprep.subr.bf16.mxu0 %v14283_v26  ;;  %10843 = vmatprep.subr.bf16.mxu1 %v14286_v27  ;;  %v14378_v26 = vld [vmem:[%s21421_s1 + $0xa4c] ss:$16 sps:$4 sm:$0xff]   ;;  %v14373_v27 = vld [vmem:[%s21421_s1 + $0xa40] ss:$16 sps:$4 sm:$0xff]  }
 0x10f   :  { %9819 = vmatpush1.bf16.msra.mxu0 %v14281_v28  ;;  %10844 = vmatpush1.bf16.msra.mxu1 %v14284_v29  ;;  %v14376_v28 = vld [vmem:[%s21421_s1 + $0xa48] ss:$16 sps:$4 sm:$0xff]   ;;  %v14381_v29 = vld [vmem:[%s21421_s1 + $0xa64] ss:$16 sps:$4 sm:$0xff]  }
 0x110   :  { %9820 = vmatprep.subr.bf16.mxu0 %v14289_v30  ;;  %10845 = vmatprep.subr.bf16.mxu1 %v14292_v31  ;;  %v14384_v30 = vld [vmem:[%s21421_s1 + $0xa6c] ss:$16 sps:$4 sm:$0xff]   ;;  %v14379_v31 = vld [vmem:[%s21421_s1 + $0xa60] ss:$16 sps:$4 sm:$0xff]  }
 0x113   :  { %9821 = vmatpush1.bf16.msra.mxu0 %v14287_v32  ;;  %10846 = vmatpush1.bf16.msra.mxu1 %v14290_v33  ;;  %v14382_v32 = vld [vmem:[%s21421_s1 + $0xa68] ss:$16 sps:$4 sm:$0xff]   ;;  %v14387_v33 = vld [vmem:[%s21421_s1 + $0xa84] ss:$16 sps:$4 sm:$0xff]  }
 0x114   :  { %9822 = vmatprep.subr.bf16.mxu0 %v14295_v34  ;;  %10847 = vmatprep.subr.bf16.mxu1 %v14298_v35  ;;  %v14390_v34 = vld [vmem:[%s21421_s1 + $0xa8c] ss:$16 sps:$4 sm:$0xff]   ;;  %v14385_v35 = vld [vmem:[%s21421_s1 + $0xa80] ss:$16 sps:$4 sm:$0xff]  }
 0x117   :  { %9823 = vmatpush1.bf16.msra.mxu0 %v14293_v36  ;;  %10848 = vmatpush1.bf16.msra.mxu1 %v14296_v37  ;;  %v14388_v36 = vld [vmem:[%s21421_s1 + $0xa88] ss:$16 sps:$4 sm:$0xff]   ;;  %v14393_v37 = vld [vmem:[%s21421_s1 + $0xaa4] ss:$16 sps:$4 sm:$0xff]  }
 0x118   :  { %9824 = vmatprep.subr.bf16.mxu0 %v14301_v38  ;;  %10849 = vmatprep.subr.bf16.mxu1 %v14304_v39  ;;  %v14396_v38 = vld [vmem:[%s21421_s1 + $0xaac] ss:$16 sps:$4 sm:$0xff]   ;;  %v14391_v39 = vld [vmem:[%s21421_s1 + $0xaa0] ss:$16 sps:$4 sm:$0xff]  }
 0x11b   :  { %9825 = vmatpush1.bf16.msra.mxu0 %v14299_v40  ;;  %10850 = vmatpush1.bf16.msra.mxu1 %v14302_v41  ;;  %v14394_v40 = vld [vmem:[%s21421_s1 + $0xaa8] ss:$16 sps:$4 sm:$0xff]   ;;  %v14399_v41 = vld [vmem:[%s21421_s1 + $0xac4] ss:$16 sps:$4 sm:$0xff]  }
 0x11c   :  { %9826 = vmatprep.subr.bf16.mxu0 %v14307_v42  ;;  %10851 = vmatprep.subr.bf16.mxu1 %v14310_v43  ;;  %v14402_v42 = vld [vmem:[%s21421_s1 + $0xacc] ss:$16 sps:$4 sm:$0xff]   ;;  %v14397_v43 = vld [vmem:[%s21421_s1 + $0xac0] ss:$16 sps:$4 sm:$0xff]  }
 0x11f   :  { %9827 = vmatpush1.bf16.msra.mxu0 %v14305_v44  ;;  %10852 = vmatpush1.bf16.msra.mxu1 %v14308_v45  ;;  %v14400_v44 = vld [vmem:[%s21421_s1 + $0xac8] ss:$16 sps:$4 sm:$0xff]   ;;  %v14405_v45 = vld [vmem:[%s21421_s1 + $0xae4] ss:$16 sps:$4 sm:$0xff]  }
 0x120   :  { %9828 = vmatprep.subr.bf16.mxu0 %v14313_v46  ;;  %10853 = vmatprep.subr.bf16.mxu1 %v14316_v47  ;;  %v14408_v46 = vld [vmem:[%s21421_s1 + $0xaec] ss:$16 sps:$4 sm:$0xff]   ;;  %v14403_v47 = vld [vmem:[%s21421_s1 + $0xae0] ss:$16 sps:$4 sm:$0xff]  }
 0x123   :  { %9829 = vmatpush1.bf16.msra.mxu0 %v14311_v48  ;;  %10854 = vmatpush1.bf16.msra.mxu1 %v14314_v49  ;;  %v14406_v48 = vld [vmem:[%s21421_s1 + $0xae8] ss:$16 sps:$4 sm:$0xff]   ;;  %v14411_v49 = vld [vmem:[%s21421_s1 + $0xb04] ss:$16 sps:$4 sm:$0xff]  }
 0x124   :  { %9830 = vmatprep.subr.bf16.mxu0 %v14319_v50  ;;  %10855 = vmatprep.subr.bf16.mxu1 %v14322_v51  ;;  %v14414_v50 = vld [vmem:[%s21421_s1 + $0xb0c] ss:$16 sps:$4 sm:$0xff]   ;;  %v14409_v51 = vld [vmem:[%s21421_s1 + $0xb00] ss:$16 sps:$4 sm:$0xff]  }
 0x127   :  { %9831 = vmatpush1.bf16.msra.mxu0 %v14317_v52  ;;  %10856 = vmatpush1.bf16.msra.mxu1 %v14320_v53  ;;  %v14412_v52 = vld [vmem:[%s21421_s1 + $0xb08] ss:$16 sps:$4 sm:$0xff]   ;;  %v14417_v53 = vld [vmem:[%s21421_s1 + $0xb24] ss:$16 sps:$4 sm:$0xff]  }
 0x128   :  { %9832 = vmatprep.subr.bf16.mxu0 %v14325_v54  ;;  %10857 = vmatprep.subr.bf16.mxu1 %v14328_v55  ;;  %v14420_v54 = vld [vmem:[%s21421_s1 + $0xb2c] ss:$16 sps:$4 sm:$0xff]   ;;  %v14415_v55 = vld [vmem:[%s21421_s1 + $0xb20] ss:$16 sps:$4 sm:$0xff]  }
 0x12b   :  { %9833 = vmatpush1.bf16.msra.mxu0 %v14323_v56  ;;  %10858 = vmatpush1.bf16.msra.mxu1 %v14326_v57  ;;  %v14418_v56 = vld [vmem:[%s21421_s1 + $0xb28] ss:$16 sps:$4 sm:$0xff]   ;;  %v14423_v57 = vld [vmem:[%s21421_s1 + $0xb44] ss:$16 sps:$4 sm:$0xff]  }
 0x12c   :  { %9834 = vmatprep.subr.bf16.mxu0 %v14331_v58  ;;  %10859 = vmatprep.subr.bf16.mxu1 %v14334_v59  ;;  %v14426_v58 = vld [vmem:[%s21421_s1 + $0xb4c] ss:$16 sps:$4 sm:$0xff]   ;;  %v14421_v59 = vld [vmem:[%s21421_s1 + $0xb40] ss:$16 sps:$4 sm:$0xff]  }
 0x12f   :  { %9835 = vmatpush1.bf16.msra.mxu0 %v14329_v60  ;;  %10860 = vmatpush1.bf16.msra.mxu1 %v14332_v61  ;;  %v14424_v60 = vld [vmem:[%s21421_s1 + $0xb48] ss:$16 sps:$4 sm:$0xff]   ;;  %v14429_v61 = vld [vmem:[%s21421_s1 + $0xb64] ss:$16 sps:$4 sm:$0xff]  }
 0x130   :  { %9836 = vmatprep.subr.bf16.mxu0 %v14337_v62  ;;  %10861 = vmatprep.subr.bf16.mxu1 %v14340_v63  ;;  %v14432_v62 = vld [vmem:[%s21421_s1 + $0xb6c] ss:$16 sps:$4 sm:$0xff]   ;;  %v14427_v63 = vld [vmem:[%s21421_s1 + $0xb60] ss:$16 sps:$4 sm:$0xff]  }
 0x133   :  { %9837 = vmatpush1.bf16.msra.mxu0 %v14335_v0  ;;  %10862 = vmatpush1.bf16.msra.mxu1 %v14338_v1  ;;  %v14430_v0 = vld [vmem:[%s21421_s1 + $0xb68] ss:$16 sps:$4 sm:$0xff]   ;;  %v14435_v1 = vld [vmem:[%s21421_s1 + $0xb84] ss:$16 sps:$4 sm:$0xff]  }
 0x134   :  { %9838 = vmatprep.subr.bf16.mxu0 %v14343_v2  ;;  %10863 = vmatprep.subr.bf16.mxu1 %v14346_v3  ;;  %v14438_v2 = vld [vmem:[%s21421_s1 + $0xb8c] ss:$16 sps:$4 sm:$0xff]   ;;  %v14433_v3 = vld [vmem:[%s21421_s1 + $0xb80] ss:$16 sps:$4 sm:$0xff]  }
 0x137   :  { %9839 = vmatpush1.bf16.msra.mxu0 %v14341_v4  ;;  %10864 = vmatpush1.bf16.msra.mxu1 %v14344_v5  ;;  %v14436_v4 = vld [vmem:[%s21421_s1 + $0xb88] ss:$16 sps:$4 sm:$0xff]   ;;  %v14441_v5 = vld [vmem:[%s21421_s1 + $0xba4] ss:$16 sps:$4 sm:$0xff]  }
 0x138   :  { %9840 = vmatprep.subr.bf16.mxu0 %v14349_v6  ;;  %10865 = vmatprep.subr.bf16.mxu1 %v14352_v7  ;;  %v14444_v6 = vld [vmem:[%s21421_s1 + $0xbac] ss:$16 sps:$4 sm:$0xff]   ;;  %v14439_v7 = vld [vmem:[%s21421_s1 + $0xba0] ss:$16 sps:$4 sm:$0xff]  }
 0x13b   :  { %9841 = vmatpush1.bf16.msra.mxu0 %v14347_v8  ;;  %10866 = vmatpush1.bf16.msra.mxu1 %v14350_v9  ;;  %v14442_v8 = vld [vmem:[%s21421_s1 + $0xba8] ss:$16 sps:$4 sm:$0xff]   ;;  %v14447_v9 = vld [vmem:[%s21421_s1 + $0xbc4] ss:$16 sps:$4 sm:$0xff]  }
 0x13c   :  { %9842 = vmatprep.subr.bf16.mxu0 %v14355_v10  ;;  %10867 = vmatprep.subr.bf16.mxu1 %v14358_v12  ;;  %v14450_v10 = vld [vmem:[%s21421_s1 + $0xbcc] ss:$16 sps:$4 sm:$0xff]   ;;  %v14445_v12 = vld [vmem:[%s21421_s1 + $0xbc0] ss:$16 sps:$4 sm:$0xff]  }
 0x13f   :  { %9843 = vmatpush1.bf16.msra.mxu0 %v14353_v13  ;;  %10868 = vmatpush1.bf16.msra.mxu1 %v14356_v15  ;;  %v14448_v13 = vld [vmem:[%s21421_s1 + $0xbc8] ss:$16 sps:$4 sm:$0xff]   ;;  %v14453_v15 = vld [vmem:[%s21421_s1 + $0xbe4] ss:$16 sps:$4 sm:$0xff]  }
 0x140   :  { %9853 = vmatprep.subr.bf16.mxu0 %v14363_v11  ;;  %10878 = vmatprep.subr.bf16.mxu1 %v14366_v17  ;;  %v14456_v11 = vld [vmem:[%s21421_s1 + $0xbec] ss:$16 sps:$4 sm:$0xff]   ;;  %v14451_v17 = vld [vmem:[%s21421_s1 + $0xbe0] ss:$16 sps:$4 sm:$0xff]  }
 0x142   :  { %9845 = vmatmul.mubr.bf16.vlgmr.msra.gmra.mrb[0].mxu0 %v11930_v14  ;;  %10870 = vmatmul.mubr.bf16.vlgmr.msra.gmra.mrb[0].mxu1 %v11930_v14  ;;  %v14454_v14 = vld [vmem:[%s21421_s1 + $0xbe8] ss:$16 sps:$4 sm:$0xff]  }
 0x143   :  { %9854 = vmatpush1.bf16.msra.mxu0 %v14361_v19  ;;  %10879 = vmatpush1.bf16.msra.mxu1 %v14364_v20  ;;  %v14461_v19 = vld [vmem:[%s21421_s1 + $0xc04] ss:$16 sps:$4 sm:$0xff]   ;;  %v14464_v20 = vld [vmem:[%s21421_s1 + $0xc0c] ss:$16 sps:$4 sm:$0xff]  }
 0x144   :  { %9855 = vmatprep.subr.bf16.mxu0 %v14369_v21  ;;  %10880 = vmatprep.subr.bf16.mxu1 %v14372_v16  ;;  %v17510_v21 = vld [vmem:[%s21422_s0 + $0x30] sm:$0xff]  ;;  %v11932_v16 = vcombine.low %v17309_v18, %v17309_v18  ;;  %v14470_v18 = vld [vmem:[%s21421_s1 + $0xc2c] ss:$16 sps:$4 sm:$0xff]  }
 0x145   :  { %9885 = vmatprep.mubr.bf16.mxu0 %v11933_v22  ;;  %10910 = vmatprep.mubr.bf16.mxu1 %v11933_v22  ;;  %v14459_v22 = vld [vmem:[%s21421_s1 + $0xc00] ss:$16 sps:$4 sm:$0xff]  }
 0x147   :  { %9856 = vmatpush1.bf16.msra.mxu0 %v14367_v23  ;;  %10881 = vmatpush1.bf16.msra.mxu1 %v14370_v24  ;;  %v14462_v23 = vld [vmem:[%s21421_s1 + $0xc08] ss:$16 sps:$4 sm:$0xff]   ;;  %v14467_v24 = vld [vmem:[%s21421_s1 + $0xc24] ss:$16 sps:$4 sm:$0xff]  }
 0x148   :  { %9857 = vmatprep.subr.bf16.mxu0 %v14375_v25  ;;  %10882 = vmatprep.subr.bf16.mxu1 %v14378_v26  ;;  %v11935_v25 = vcombine.high %v17510_v21, %v17510_v21  ;;  %v14465_v26 = vld [vmem:[%s21421_s1 + $0xc20] ss:$16 sps:$4 sm:$0xff]  }
 0x14b   :  { %9858 = vmatpush1.bf16.msra.mxu0 %v14373_v27  ;;  %10883 = vmatpush1.bf16.msra.mxu1 %v14376_v28  ;;  %v14468_v27 = vld [vmem:[%s21421_s1 + $0xc28] ss:$16 sps:$4 sm:$0xff]   ;;  %v14473_v28 = vld [vmem:[%s21421_s1 + $0xc44] ss:$16 sps:$4 sm:$0xff]  }
 0x14c   :  { %9859 = vmatprep.subr.bf16.mxu0 %v14381_v29  ;;  %10884 = vmatprep.subr.bf16.mxu1 %v14384_v30  ;;  %v14476_v29 = vld [vmem:[%s21421_s1 + $0xc4c] ss:$16 sps:$4 sm:$0xff]   ;;  %v14471_v30 = vld [vmem:[%s21421_s1 + $0xc40] ss:$16 sps:$4 sm:$0xff]  }
 0x14f   :  { %9860 = vmatpush1.bf16.msra.mxu0 %v14379_v31  ;;  %10885 = vmatpush1.bf16.msra.mxu1 %v14382_v32  ;;  %v14474_v31 = vld [vmem:[%s21421_s1 + $0xc48] ss:$16 sps:$4 sm:$0xff]   ;;  %v14479_v32 = vld [vmem:[%s21421_s1 + $0xc64] ss:$16 sps:$4 sm:$0xff]  }
 0x150   :  { %9861 = vmatprep.subr.bf16.mxu0 %v14387_v33  ;;  %10886 = vmatprep.subr.bf16.mxu1 %v14390_v34  ;;  %v14482_v33 = vld [vmem:[%s21421_s1 + $0xc6c] ss:$16 sps:$4 sm:$0xff]   ;;  %v14477_v34 = vld [vmem:[%s21421_s1 + $0xc60] ss:$16 sps:$4 sm:$0xff]  }
 0x153   :  { %9862 = vmatpush1.bf16.msra.mxu0 %v14385_v35  ;;  %10887 = vmatpush1.bf16.msra.mxu1 %v14388_v36  ;;  %v14480_v35 = vld [vmem:[%s21421_s1 + $0xc68] ss:$16 sps:$4 sm:$0xff]   ;;  %v14485_v36 = vld [vmem:[%s21421_s1 + $0xc84] ss:$16 sps:$4 sm:$0xff]  }
 0x154   :  { %9863 = vmatprep.subr.bf16.mxu0 %v14393_v37  ;;  %10888 = vmatprep.subr.bf16.mxu1 %v14396_v38  ;;  %v14488_v37 = vld [vmem:[%s21421_s1 + $0xc8c] ss:$16 sps:$4 sm:$0xff]   ;;  %v14483_v38 = vld [vmem:[%s21421_s1 + $0xc80] ss:$16 sps:$4 sm:$0xff]  }
 0x157   :  { %9864 = vmatpush1.bf16.msra.mxu0 %v14391_v39  ;;  %10889 = vmatpush1.bf16.msra.mxu1 %v14394_v40  ;;  %v14486_v39 = vld [vmem:[%s21421_s1 + $0xc88] ss:$16 sps:$4 sm:$0xff]   ;;  %v14491_v40 = vld [vmem:[%s21421_s1 + $0xca4] ss:$16 sps:$4 sm:$0xff]  }
 0x158   :  { %9865 = vmatprep.subr.bf16.mxu0 %v14399_v41  ;;  %10890 = vmatprep.subr.bf16.mxu1 %v14402_v42  ;;  %v14494_v41 = vld [vmem:[%s21421_s1 + $0xcac] ss:$16 sps:$4 sm:$0xff]   ;;  %v14489_v42 = vld [vmem:[%s21421_s1 + $0xca0] ss:$16 sps:$4 sm:$0xff]  }
 0x15b   :  { %9866 = vmatpush1.bf16.msra.mxu0 %v14397_v43  ;;  %10891 = vmatpush1.bf16.msra.mxu1 %v14400_v44  ;;  %v14492_v43 = vld [vmem:[%s21421_s1 + $0xca8] ss:$16 sps:$4 sm:$0xff]   ;;  %v14497_v44 = vld [vmem:[%s21421_s1 + $0xcc4] ss:$16 sps:$4 sm:$0xff]  }
 0x15c   :  { %9867 = vmatprep.subr.bf16.mxu0 %v14405_v45  ;;  %10892 = vmatprep.subr.bf16.mxu1 %v14408_v46  ;;  %v14500_v45 = vld [vmem:[%s21421_s1 + $0xccc] ss:$16 sps:$4 sm:$0xff]   ;;  %v14495_v46 = vld [vmem:[%s21421_s1 + $0xcc0] ss:$16 sps:$4 sm:$0xff]  }
 0x15f   :  { %9868 = vmatpush1.bf16.msra.mxu0 %v14403_v47  ;;  %10893 = vmatpush1.bf16.msra.mxu1 %v14406_v48  ;;  %v14498_v47 = vld [vmem:[%s21421_s1 + $0xcc8] ss:$16 sps:$4 sm:$0xff]   ;;  %v14503_v48 = vld [vmem:[%s21421_s1 + $0xce4] ss:$16 sps:$4 sm:$0xff]  }
 0x160   :  { %9869 = vmatprep.subr.bf16.mxu0 %v14411_v49  ;;  %10894 = vmatprep.subr.bf16.mxu1 %v14414_v50  ;;  %v14506_v49 = vld [vmem:[%s21421_s1 + $0xcec] ss:$16 sps:$4 sm:$0xff]   ;;  %v14501_v50 = vld [vmem:[%s21421_s1 + $0xce0] ss:$16 sps:$4 sm:$0xff]  }
 0x163   :  { %9870 = vmatpush1.bf16.msra.mxu0 %v14409_v51  ;;  %10895 = vmatpush1.bf16.msra.mxu1 %v14412_v52  ;;  %v14504_v51 = vld [vmem:[%s21421_s1 + $0xce8] ss:$16 sps:$4 sm:$0xff]   ;;  %v14509_v52 = vld [vmem:[%s21421_s1 + $0xd04] ss:$16 sps:$4 sm:$0xff]  }
 0x164   :  { %9871 = vmatprep.subr.bf16.mxu0 %v14417_v53  ;;  %10896 = vmatprep.subr.bf16.mxu1 %v14420_v54  ;;  %v14512_v53 = vld [vmem:[%s21421_s1 + $0xd0c] ss:$16 sps:$4 sm:$0xff]   ;;  %v14507_v54 = vld [vmem:[%s21421_s1 + $0xd00] ss:$16 sps:$4 sm:$0xff]  }
 0x167   :  { %9872 = vmatpush1.bf16.msra.mxu0 %v14415_v55  ;;  %10897 = vmatpush1.bf16.msra.mxu1 %v14418_v56  ;;  %v14510_v55 = vld [vmem:[%s21421_s1 + $0xd08] ss:$16 sps:$4 sm:$0xff]   ;;  %v14515_v56 = vld [vmem:[%s21421_s1 + $0xd24] ss:$16 sps:$4 sm:$0xff]  }
 0x168   :  { %9873 = vmatprep.subr.bf16.mxu0 %v14423_v57  ;;  %10898 = vmatprep.subr.bf16.mxu1 %v14426_v58  ;;  %v14518_v57 = vld [vmem:[%s21421_s1 + $0xd2c] ss:$16 sps:$4 sm:$0xff]   ;;  %v14513_v58 = vld [vmem:[%s21421_s1 + $0xd20] ss:$16 sps:$4 sm:$0xff]  }
 0x16b   :  { %9874 = vmatpush1.bf16.msra.mxu0 %v14421_v59  ;;  %10899 = vmatpush1.bf16.msra.mxu1 %v14424_v60  ;;  %v14516_v59 = vld [vmem:[%s21421_s1 + $0xd28] ss:$16 sps:$4 sm:$0xff]   ;;  %v14521_v60 = vld [vmem:[%s21421_s1 + $0xd44] ss:$16 sps:$4 sm:$0xff]  }
 0x16c   :  { %9875 = vmatprep.subr.bf16.mxu0 %v14429_v61  ;;  %10900 = vmatprep.subr.bf16.mxu1 %v14432_v62  ;;  %v14524_v61 = vld [vmem:[%s21421_s1 + $0xd4c] ss:$16 sps:$4 sm:$0xff]   ;;  %v14519_v62 = vld [vmem:[%s21421_s1 + $0xd40] ss:$16 sps:$4 sm:$0xff]  }
 0x16f   :  { %9876 = vmatpush1.bf16.msra.mxu0 %v14427_v63  ;;  %10901 = vmatpush1.bf16.msra.mxu1 %v14430_v0  ;;  %v14522_v63 = vld [vmem:[%s21421_s1 + $0xd48] ss:$16 sps:$4 sm:$0xff]   ;;  %v14527_v0 = vld [vmem:[%s21421_s1 + $0xd64] ss:$16 sps:$4 sm:$0xff]  }
 0x170   :  { %9877 = vmatprep.subr.bf16.mxu0 %v14435_v1  ;;  %10902 = vmatprep.subr.bf16.mxu1 %v14438_v2  ;;  %v14530_v1 = vld [vmem:[%s21421_s1 + $0xd6c] ss:$16 sps:$4 sm:$0xff]   ;;  %v14525_v2 = vld [vmem:[%s21421_s1 + $0xd60] ss:$16 sps:$4 sm:$0xff]  }
 0x173   :  { %9878 = vmatpush1.bf16.msra.mxu0 %v14433_v3  ;;  %10903 = vmatpush1.bf16.msra.mxu1 %v14436_v4  ;;  %v14528_v3 = vld [vmem:[%s21421_s1 + $0xd68] ss:$16 sps:$4 sm:$0xff]   ;;  %v14533_v4 = vld [vmem:[%s21421_s1 + $0xd84] ss:$16 sps:$4 sm:$0xff]  }
 0x174   :  { %9879 = vmatprep.subr.bf16.mxu0 %v14441_v5  ;;  %10904 = vmatprep.subr.bf16.mxu1 %v14444_v6  ;;  %v14536_v5 = vld [vmem:[%s21421_s1 + $0xd8c] ss:$16 sps:$4 sm:$0xff]   ;;  %v14531_v6 = vld [vmem:[%s21421_s1 + $0xd80] ss:$16 sps:$4 sm:$0xff]  }
 0x177   :  { %9880 = vmatpush1.bf16.msra.mxu0 %v14439_v7  ;;  %10905 = vmatpush1.bf16.msra.mxu1 %v14442_v8  ;;  %v14534_v7 = vld [vmem:[%s21421_s1 + $0xd88] ss:$16 sps:$4 sm:$0xff]   ;;  %v14539_v8 = vld [vmem:[%s21421_s1 + $0xda4] ss:$16 sps:$4 sm:$0xff]  }
 0x178   :  { %9881 = vmatprep.subr.bf16.mxu0 %v14447_v9  ;;  %10906 = vmatprep.subr.bf16.mxu1 %v14450_v10  ;;  %v14542_v9 = vld [vmem:[%s21421_s1 + $0xdac] ss:$16 sps:$4 sm:$0xff]   ;;  %v14537_v10 = vld [vmem:[%s21421_s1 + $0xda0] ss:$16 sps:$4 sm:$0xff]  }
 0x17b   :  { %9882 = vmatpush1.bf16.msra.mxu0 %v14445_v12  ;;  %10907 = vmatpush1.bf16.msra.mxu1 %v14448_v13  ;;  %v14540_v12 = vld [vmem:[%s21421_s1 + $0xda8] ss:$16 sps:$4 sm:$0xff]   ;;  %v14545_v13 = vld [vmem:[%s21421_s1 + $0xdc4] ss:$16 sps:$4 sm:$0xff]  }
 0x17c   :  { %9883 = vmatprep.subr.bf16.mxu0 %v14453_v15  ;;  %10908 = vmatprep.subr.bf16.mxu1 %v14456_v11  ;;  %v14548_v15 = vld [vmem:[%s21421_s1 + $0xdcc] ss:$16 sps:$4 sm:$0xff]   ;;  %v14543_v11 = vld [vmem:[%s21421_s1 + $0xdc0] ss:$16 sps:$4 sm:$0xff]  }
 0x17f   :  { %9884 = vmatpush1.bf16.msra.mxu0 %v14451_v17  ;;  %10909 = vmatpush1.bf16.msra.mxu1 %v14454_v14  ;;  %v14546_v17 = vld [vmem:[%s21421_s1 + $0xdc8] ss:$16 sps:$4 sm:$0xff]   ;;  %v14551_v14 = vld [vmem:[%s21421_s1 + $0xde4] ss:$16 sps:$4 sm:$0xff]  }
 0x180   :  { %9894 = vmatprep.subr.bf16.mxu0 %v14461_v19  ;;  %10919 = vmatprep.subr.bf16.mxu1 %v14464_v20  ;;  %v14554_v19 = vld [vmem:[%s21421_s1 + $0xdec] ss:$16 sps:$4 sm:$0xff]   ;;  %v14549_v20 = vld [vmem:[%s21421_s1 + $0xde0] ss:$16 sps:$4 sm:$0xff]  }
 0x182   :  { %9886 = vmatmul.mubr.bf16.vlgmr.msra.gmra.mrb[0].mxu0 %v11932_v16  ;;  %10911 = vmatmul.mubr.bf16.vlgmr.msra.gmra.mrb[0].mxu1 %v11932_v16  ;;  %v14552_v16 = vld [vmem:[%s21421_s1 + $0xde8] ss:$16 sps:$4 sm:$0xff]  }
 0x183   :  { %9895 = vmatpush1.bf16.msra.mxu0 %v14459_v22  ;;  %10920 = vmatpush1.bf16.msra.mxu1 %v14462_v23  ;;  %v14559_v22 = vld [vmem:[%s21421_s1 + $0xe04] ss:$16 sps:$4 sm:$0xff]   ;;  %v14562_v23 = vld [vmem:[%s21421_s1 + $0xe0c] ss:$16 sps:$4 sm:$0xff]  }
 0x184   :  { %9896 = vmatprep.subr.bf16.mxu0 %v14467_v24  ;;  %10921 = vmatprep.subr.bf16.mxu1 %v14470_v18  ;;  %v17711_v24 = vld [vmem:[%s21422_s0 + $0x38] sm:$0xff]  ;;  %v11934_v18 = vcombine.low %v17510_v21, %v17510_v21 }
 0x185   :  { %9926 = vmatprep.mubr.bf16.mxu0 %v11935_v25  ;;  %10951 = vmatprep.mubr.bf16.mxu1 %v11935_v25  ;;  %v14557_v25 = vld [vmem:[%s21421_s1 + $0xe00] ss:$16 sps:$4 sm:$0xff]   ;;  %v14568_v21 = vld [vmem:[%s21421_s1 + $0xe2c] ss:$16 sps:$4 sm:$0xff]  }
 0x187   :  { %9897 = vmatpush1.bf16.msra.mxu0 %v14465_v26  ;;  %10922 = vmatpush1.bf16.msra.mxu1 %v14468_v27  ;;  %v14560_v26 = vld [vmem:[%s21421_s1 + $0xe08] ss:$16 sps:$4 sm:$0xff]   ;;  %v14565_v27 = vld [vmem:[%s21421_s1 + $0xe24] ss:$16 sps:$4 sm:$0xff]  }
 0x188   :  { %9898 = vmatprep.subr.bf16.mxu0 %v14473_v28  ;;  %10923 = vmatprep.subr.bf16.mxu1 %v14476_v29  ;;  %v11937_v28 = vcombine.high %v17711_v24, %v17711_v24  ;;  %v14563_v29 = vld [vmem:[%s21421_s1 + $0xe20] ss:$16 sps:$4 sm:$0xff]  }
 0x18b   :  { %9899 = vmatpush1.bf16.msra.mxu0 %v14471_v30  ;;  %10924 = vmatpush1.bf16.msra.mxu1 %v14474_v31  ;;  %v14566_v30 = vld [vmem:[%s21421_s1 + $0xe28] ss:$16 sps:$4 sm:$0xff]   ;;  %v14571_v31 = vld [vmem:[%s21421_s1 + $0xe44] ss:$16 sps:$4 sm:$0xff]  }
 0x18c   :  { %9900 = vmatprep.subr.bf16.mxu0 %v14479_v32  ;;  %10925 = vmatprep.subr.bf16.mxu1 %v14482_v33  ;;  %v14574_v32 = vld [vmem:[%s21421_s1 + $0xe4c] ss:$16 sps:$4 sm:$0xff]   ;;  %v14569_v33 = vld [vmem:[%s21421_s1 + $0xe40] ss:$16 sps:$4 sm:$0xff]  }
 0x18f   :  { %9901 = vmatpush1.bf16.msra.mxu0 %v14477_v34  ;;  %10926 = vmatpush1.bf16.msra.mxu1 %v14480_v35  ;;  %v14572_v34 = vld [vmem:[%s21421_s1 + $0xe48] ss:$16 sps:$4 sm:$0xff]   ;;  %v14577_v35 = vld [vmem:[%s21421_s1 + $0xe64] ss:$16 sps:$4 sm:$0xff]  }
 0x190   :  { %9902 = vmatprep.subr.bf16.mxu0 %v14485_v36  ;;  %10927 = vmatprep.subr.bf16.mxu1 %v14488_v37  ;;  %v14580_v36 = vld [vmem:[%s21421_s1 + $0xe6c] ss:$16 sps:$4 sm:$0xff]   ;;  %v14575_v37 = vld [vmem:[%s21421_s1 + $0xe60] ss:$16 sps:$4 sm:$0xff]  }
 0x193   :  { %9903 = vmatpush1.bf16.msra.mxu0 %v14483_v38  ;;  %10928 = vmatpush1.bf16.msra.mxu1 %v14486_v39  ;;  %v14578_v38 = vld [vmem:[%s21421_s1 + $0xe68] ss:$16 sps:$4 sm:$0xff]   ;;  %v14583_v39 = vld [vmem:[%s21421_s1 + $0xe84] ss:$16 sps:$4 sm:$0xff]  }
 0x194   :  { %9904 = vmatprep.subr.bf16.mxu0 %v14491_v40  ;;  %10929 = vmatprep.subr.bf16.mxu1 %v14494_v41  ;;  %v14586_v40 = vld [vmem:[%s21421_s1 + $0xe8c] ss:$16 sps:$4 sm:$0xff]   ;;  %v14581_v41 = vld [vmem:[%s21421_s1 + $0xe80] ss:$16 sps:$4 sm:$0xff]  }
 0x197   :  { %9905 = vmatpush1.bf16.msra.mxu0 %v14489_v42  ;;  %10930 = vmatpush1.bf16.msra.mxu1 %v14492_v43  ;;  %v14584_v42 = vld [vmem:[%s21421_s1 + $0xe88] ss:$16 sps:$4 sm:$0xff]   ;;  %v14589_v43 = vld [vmem:[%s21421_s1 + $0xea4] ss:$16 sps:$4 sm:$0xff]  }
 0x198   :  { %9906 = vmatprep.subr.bf16.mxu0 %v14497_v44  ;;  %10931 = vmatprep.subr.bf16.mxu1 %v14500_v45  ;;  %v14592_v44 = vld [vmem:[%s21421_s1 + $0xeac] ss:$16 sps:$4 sm:$0xff]   ;;  %v14587_v45 = vld [vmem:[%s21421_s1 + $0xea0] ss:$16 sps:$4 sm:$0xff]  }
 0x19b   :  { %9907 = vmatpush1.bf16.msra.mxu0 %v14495_v46  ;;  %10932 = vmatpush1.bf16.msra.mxu1 %v14498_v47  ;;  %v14590_v46 = vld [vmem:[%s21421_s1 + $0xea8] ss:$16 sps:$4 sm:$0xff]   ;;  %v14595_v47 = vld [vmem:[%s21421_s1 + $0xec4] ss:$16 sps:$4 sm:$0xff]  }
 0x19c   :  { %9908 = vmatprep.subr.bf16.mxu0 %v14503_v48  ;;  %10933 = vmatprep.subr.bf16.mxu1 %v14506_v49  ;;  %v14598_v48 = vld [vmem:[%s21421_s1 + $0xecc] ss:$16 sps:$4 sm:$0xff]   ;;  %v14593_v49 = vld [vmem:[%s21421_s1 + $0xec0] ss:$16 sps:$4 sm:$0xff]  }
 0x19f   :  { %9909 = vmatpush1.bf16.msra.mxu0 %v14501_v50  ;;  %10934 = vmatpush1.bf16.msra.mxu1 %v14504_v51  ;;  %v14596_v50 = vld [vmem:[%s21421_s1 + $0xec8] ss:$16 sps:$4 sm:$0xff]   ;;  %v14601_v51 = vld [vmem:[%s21421_s1 + $0xee4] ss:$16 sps:$4 sm:$0xff]  }
 0x1a0   :  { %9910 = vmatprep.subr.bf16.mxu0 %v14509_v52  ;;  %10935 = vmatprep.subr.bf16.mxu1 %v14512_v53  ;;  %v14604_v52 = vld [vmem:[%s21421_s1 + $0xeec] ss:$16 sps:$4 sm:$0xff]   ;;  %v14599_v53 = vld [vmem:[%s21421_s1 + $0xee0] ss:$16 sps:$4 sm:$0xff]  }
 0x1a3   :  { %9911 = vmatpush1.bf16.msra.mxu0 %v14507_v54  ;;  %10936 = vmatpush1.bf16.msra.mxu1 %v14510_v55  ;;  %v14602_v54 = vld [vmem:[%s21421_s1 + $0xee8] ss:$16 sps:$4 sm:$0xff]   ;;  %v14607_v55 = vld [vmem:[%s21421_s1 + $0xf04] ss:$16 sps:$4 sm:$0xff]  }
 0x1a4   :  { %9912 = vmatprep.subr.bf16.mxu0 %v14515_v56  ;;  %10937 = vmatprep.subr.bf16.mxu1 %v14518_v57  ;;  %v14610_v56 = vld [vmem:[%s21421_s1 + $0xf0c] ss:$16 sps:$4 sm:$0xff]   ;;  %v14605_v57 = vld [vmem:[%s21421_s1 + $0xf00] ss:$16 sps:$4 sm:$0xff]  }
 0x1a7   :  { %9913 = vmatpush1.bf16.msra.mxu0 %v14513_v58  ;;  %10938 = vmatpush1.bf16.msra.mxu1 %v14516_v59  ;;  %v14608_v58 = vld [vmem:[%s21421_s1 + $0xf08] ss:$16 sps:$4 sm:$0xff]   ;;  %v14613_v59 = vld [vmem:[%s21421_s1 + $0xf24] ss:$16 sps:$4 sm:$0xff]  }
 0x1a8   :  { %9914 = vmatprep.subr.bf16.mxu0 %v14521_v60  ;;  %10939 = vmatprep.subr.bf16.mxu1 %v14524_v61  ;;  %v14616_v60 = vld [vmem:[%s21421_s1 + $0xf2c] ss:$16 sps:$4 sm:$0xff]   ;;  %v14611_v61 = vld [vmem:[%s21421_s1 + $0xf20] ss:$16 sps:$4 sm:$0xff]  }
 0x1ab   :  { %9915 = vmatpush1.bf16.msra.mxu0 %v14519_v62  ;;  %10940 = vmatpush1.bf16.msra.mxu1 %v14522_v63  ;;  %v14614_v62 = vld [vmem:[%s21421_s1 + $0xf28] ss:$16 sps:$4 sm:$0xff]   ;;  %v14619_v63 = vld [vmem:[%s21421_s1 + $0xf44] ss:$16 sps:$4 sm:$0xff]  }
 0x1ac   :  { %9916 = vmatprep.subr.bf16.mxu0 %v14527_v0  ;;  %10941 = vmatprep.subr.bf16.mxu1 %v14530_v1  ;;  %v14622_v0 = vld [vmem:[%s21421_s1 + $0xf4c] ss:$16 sps:$4 sm:$0xff]   ;;  %v14617_v1 = vld [vmem:[%s21421_s1 + $0xf40] ss:$16 sps:$4 sm:$0xff]  }
 0x1af   :  { %9917 = vmatpush1.bf16.msra.mxu0 %v14525_v2  ;;  %10942 = vmatpush1.bf16.msra.mxu1 %v14528_v3  ;;  %v14620_v2 = vld [vmem:[%s21421_s1 + $0xf48] ss:$16 sps:$4 sm:$0xff]   ;;  %v14625_v3 = vld [vmem:[%s21421_s1 + $0xf64] ss:$16 sps:$4 sm:$0xff]  }
 0x1b0   :  { %9918 = vmatprep.subr.bf16.mxu0 %v14533_v4  ;;  %10943 = vmatprep.subr.bf16.mxu1 %v14536_v5  ;;  %v14628_v4 = vld [vmem:[%s21421_s1 + $0xf6c] ss:$16 sps:$4 sm:$0xff]   ;;  %v14623_v5 = vld [vmem:[%s21421_s1 + $0xf60] ss:$16 sps:$4 sm:$0xff]  }
 0x1b3   :  { %9919 = vmatpush1.bf16.msra.mxu0 %v14531_v6  ;;  %10944 = vmatpush1.bf16.msra.mxu1 %v14534_v7  ;;  %v14626_v6 = vld [vmem:[%s21421_s1 + $0xf68] ss:$16 sps:$4 sm:$0xff]   ;;  %v14631_v7 = vld [vmem:[%s21421_s1 + $0xf84] ss:$16 sps:$4 sm:$0xff]  }
 0x1b4   :  { %9920 = vmatprep.subr.bf16.mxu0 %v14539_v8  ;;  %10945 = vmatprep.subr.bf16.mxu1 %v14542_v9  ;;  %v14634_v8 = vld [vmem:[%s21421_s1 + $0xf8c] ss:$16 sps:$4 sm:$0xff]   ;;  %v14629_v9 = vld [vmem:[%s21421_s1 + $0xf80] ss:$16 sps:$4 sm:$0xff]  }
 0x1b7   :  { %9921 = vmatpush1.bf16.msra.mxu0 %v14537_v10  ;;  %10946 = vmatpush1.bf16.msra.mxu1 %v14540_v12  ;;  %v14632_v10 = vld [vmem:[%s21421_s1 + $0xf88] ss:$16 sps:$4 sm:$0xff]   ;;  %v14637_v12 = vld [vmem:[%s21421_s1 + $0xfa4] ss:$16 sps:$4 sm:$0xff]  }
 0x1b8   :  { %9922 = vmatprep.subr.bf16.mxu0 %v14545_v13  ;;  %10947 = vmatprep.subr.bf16.mxu1 %v14548_v15  ;;  %v14640_v13 = vld [vmem:[%s21421_s1 + $0xfac] ss:$16 sps:$4 sm:$0xff]   ;;  %v14635_v15 = vld [vmem:[%s21421_s1 + $0xfa0] ss:$16 sps:$4 sm:$0xff]  }
 0x1bb   :  { %9923 = vmatpush1.bf16.msra.mxu0 %v14543_v11  ;;  %10948 = vmatpush1.bf16.msra.mxu1 %v14546_v17  ;;  %v14638_v11 = vld [vmem:[%s21421_s1 + $0xfa8] ss:$16 sps:$4 sm:$0xff]   ;;  %v14643_v17 = vld [vmem:[%s21421_s1 + $0xfc4] ss:$16 sps:$4 sm:$0xff]  }
 0x1bc   :  { %9924 = vmatprep.subr.bf16.mxu0 %v14551_v14  ;;  %10949 = vmatprep.subr.bf16.mxu1 %v14554_v19  ;;  %v14646_v14 = vld [vmem:[%s21421_s1 + $0xfcc] ss:$16 sps:$4 sm:$0xff]   ;;  %v14641_v19 = vld [vmem:[%s21421_s1 + $0xfc0] ss:$16 sps:$4 sm:$0xff]  }
 0x1bf   :  { %9925 = vmatpush1.bf16.msra.mxu0 %v14549_v20  ;;  %10950 = vmatpush1.bf16.msra.mxu1 %v14552_v16  ;;  %v14644_v20 = vld [vmem:[%s21421_s1 + $0xfc8] ss:$16 sps:$4 sm:$0xff]   ;;  %v14649_v16 = vld [vmem:[%s21421_s1 + $0xfe4] ss:$16 sps:$4 sm:$0xff]  }
 0x1c0   :  { %9935 = vmatprep.subr.bf16.mxu0 %v14559_v22  ;;  %10960 = vmatprep.subr.bf16.mxu1 %v14562_v23  ;;  %v14652_v22 = vld [vmem:[%s21421_s1 + $0xfec] ss:$16 sps:$4 sm:$0xff]   ;;  %v14647_v23 = vld [vmem:[%s21421_s1 + $0xfe0] ss:$16 sps:$4 sm:$0xff]  }
 0x1c2   :  { %9927 = vmatmul.mubr.bf16.vlgmr.msra.gmra.mrb[0].mxu0 %v11934_v18  ;;  %10952 = vmatmul.mubr.bf16.vlgmr.msra.gmra.mrb[0].mxu1 %v11934_v18  ;;  %v14650_v18 = vld [vmem:[%s21421_s1 + $0xfe8] ss:$16 sps:$4 sm:$0xff]  }
 0x1c3   :  { %9936 = vmatpush1.bf16.msra.mxu0 %v14557_v25  ;;  %10961 = vmatpush1.bf16.msra.mxu1 %v14560_v26  ;;  %v14657_v25 = vld [vmem:[%s21421_s1 + $0x1004] ss:$16 sps:$4 sm:$0xff]   ;;  %v14660_v26 = vld [vmem:[%s21421_s1 + $0x100c] ss:$16 sps:$4 sm:$0xff]  }
 0x1c4   :  { %9937 = vmatprep.subr.bf16.mxu0 %v14565_v27  ;;  %10962 = vmatprep.subr.bf16.mxu1 %v14568_v21  ;;  %v17912_v27 = vld [vmem:[%s21422_s0 + $0x40] sm:$0xff]  ;;  %v11936_v21 = vcombine.low %v17711_v24, %v17711_v24  ;;  %v14666_v24 = vld [vmem:[%s21421_s1 + $0x102c] ss:$16 sps:$4 sm:$0xff]  }
 0x1c5   :  { %9967 = vmatprep.mubr.bf16.mxu0 %v11937_v28  ;;  %10992 = vmatprep.mubr.bf16.mxu1 %v11937_v28  ;;  %v14655_v28 = vld [vmem:[%s21421_s1 + $0x1000] ss:$16 sps:$4 sm:$0xff]  }
 0x1c7   :  { %9938 = vmatpush1.bf16.msra.mxu0 %v14563_v29  ;;  %10963 = vmatpush1.bf16.msra.mxu1 %v14566_v30  ;;  %v14658_v29 = vld [vmem:[%s21421_s1 + $0x1008] ss:$16 sps:$4 sm:$0xff]   ;;  %v14663_v30 = vld [vmem:[%s21421_s1 + $0x1024] ss:$16 sps:$4 sm:$0xff]  }
 0x1c8   :  { %9939 = vmatprep.subr.bf16.mxu0 %v14571_v31  ;;  %10964 = vmatprep.subr.bf16.mxu1 %v14574_v32  ;;  %v11939_v31 = vcombine.high %v17912_v27, %v17912_v27  ;;  %v14661_v32 = vld [vmem:[%s21421_s1 + $0x1020] ss:$16 sps:$4 sm:$0xff]  }
 0x1cb   :  { %9940 = vmatpush1.bf16.msra.mxu0 %v14569_v33  ;;  %10965 = vmatpush1.bf16.msra.mxu1 %v14572_v34  ;;  %v14664_v33 = vld [vmem:[%s21421_s1 + $0x1028] ss:$16 sps:$4 sm:$0xff]   ;;  %v14669_v34 = vld [vmem:[%s21421_s1 + $0x1044] ss:$16 sps:$4 sm:$0xff]  }
 0x1cc   :  { %9941 = vmatprep.subr.bf16.mxu0 %v14577_v35  ;;  %10966 = vmatprep.subr.bf16.mxu1 %v14580_v36  ;;  %v14672_v35 = vld [vmem:[%s21421_s1 + $0x104c] ss:$16 sps:$4 sm:$0xff]   ;;  %v14667_v36 = vld [vmem:[%s21421_s1 + $0x1040] ss:$16 sps:$4 sm:$0xff]  }
 0x1cf   :  { %9942 = vmatpush1.bf16.msra.mxu0 %v14575_v37  ;;  %10967 = vmatpush1.bf16.msra.mxu1 %v14578_v38  ;;  %v14670_v37 = vld [vmem:[%s21421_s1 + $0x1048] ss:$16 sps:$4 sm:$0xff]   ;;  %v14675_v38 = vld [vmem:[%s21421_s1 + $0x1064] ss:$16 sps:$4 sm:$0xff]  }
 0x1d0   :  { %9943 = vmatprep.subr.bf16.mxu0 %v14583_v39  ;;  %10968 = vmatprep.subr.bf16.mxu1 %v14586_v40  ;;  %v14678_v39 = vld [vmem:[%s21421_s1 + $0x106c] ss:$16 sps:$4 sm:$0xff]   ;;  %v14673_v40 = vld [vmem:[%s21421_s1 + $0x1060] ss:$16 sps:$4 sm:$0xff]  }
 0x1d3   :  { %9944 = vmatpush1.bf16.msra.mxu0 %v14581_v41  ;;  %10969 = vmatpush1.bf16.msra.mxu1 %v14584_v42  ;;  %v14676_v41 = vld [vmem:[%s21421_s1 + $0x1068] ss:$16 sps:$4 sm:$0xff]   ;;  %v14681_v42 = vld [vmem:[%s21421_s1 + $0x1084] ss:$16 sps:$4 sm:$0xff]  }
 0x1d4   :  { %9945 = vmatprep.subr.bf16.mxu0 %v14589_v43  ;;  %10970 = vmatprep.subr.bf16.mxu1 %v14592_v44  ;;  %v14684_v43 = vld [vmem:[%s21421_s1 + $0x108c] ss:$16 sps:$4 sm:$0xff]   ;;  %v14679_v44 = vld [vmem:[%s21421_s1 + $0x1080] ss:$16 sps:$4 sm:$0xff]  }
 0x1d7   :  { %9946 = vmatpush1.bf16.msra.mxu0 %v14587_v45  ;;  %10971 = vmatpush1.bf16.msra.mxu1 %v14590_v46  ;;  %v14682_v45 = vld [vmem:[%s21421_s1 + $0x1088] ss:$16 sps:$4 sm:$0xff]   ;;  %v14687_v46 = vld [vmem:[%s21421_s1 + $0x10a4] ss:$16 sps:$4 sm:$0xff]  }
 0x1d8   :  { %9947 = vmatprep.subr.bf16.mxu0 %v14595_v47  ;;  %10972 = vmatprep.subr.bf16.mxu1 %v14598_v48  ;;  %v14690_v47 = vld [vmem:[%s21421_s1 + $0x10ac] ss:$16 sps:$4 sm:$0xff]   ;;  %v14685_v48 = vld [vmem:[%s21421_s1 + $0x10a0] ss:$16 sps:$4 sm:$0xff]  }
 0x1db   :  { %9948 = vmatpush1.bf16.msra.mxu0 %v14593_v49  ;;  %10973 = vmatpush1.bf16.msra.mxu1 %v14596_v50  ;;  %v14688_v49 = vld [vmem:[%s21421_s1 + $0x10a8] ss:$16 sps:$4 sm:$0xff]   ;;  %v14693_v50 = vld [vmem:[%s21421_s1 + $0x10c4] ss:$16 sps:$4 sm:$0xff]  }
 0x1dc   :  { %9949 = vmatprep.subr.bf16.mxu0 %v14601_v51  ;;  %10974 = vmatprep.subr.bf16.mxu1 %v14604_v52  ;;  %v14696_v51 = vld [vmem:[%s21421_s1 + $0x10cc] ss:$16 sps:$4 sm:$0xff]   ;;  %v14691_v52 = vld [vmem:[%s21421_s1 + $0x10c0] ss:$16 sps:$4 sm:$0xff]  }
 0x1df   :  { %9950 = vmatpush1.bf16.msra.mxu0 %v14599_v53  ;;  %10975 = vmatpush1.bf16.msra.mxu1 %v14602_v54  ;;  %v14694_v53 = vld [vmem:[%s21421_s1 + $0x10c8] ss:$16 sps:$4 sm:$0xff]   ;;  %v14699_v54 = vld [vmem:[%s21421_s1 + $0x10e4] ss:$16 sps:$4 sm:$0xff]  }
 0x1e0   :  { %9951 = vmatprep.subr.bf16.mxu0 %v14607_v55  ;;  %10976 = vmatprep.subr.bf16.mxu1 %v14610_v56  ;;  %v14702_v55 = vld [vmem:[%s21421_s1 + $0x10ec] ss:$16 sps:$4 sm:$0xff]   ;;  %v14697_v56 = vld [vmem:[%s21421_s1 + $0x10e0] ss:$16 sps:$4 sm:$0xff]  }
 0x1e3   :  { %9952 = vmatpush1.bf16.msra.mxu0 %v14605_v57  ;;  %10977 = vmatpush1.bf16.msra.mxu1 %v14608_v58  ;;  %v14700_v57 = vld [vmem:[%s21421_s1 + $0x10e8] ss:$16 sps:$4 sm:$0xff]   ;;  %v14705_v58 = vld [vmem:[%s21421_s1 + $0x1104] ss:$16 sps:$4 sm:$0xff]  }
 0x1e4   :  { %9953 = vmatprep.subr.bf16.mxu0 %v14613_v59  ;;  %10978 = vmatprep.subr.bf16.mxu1 %v14616_v60  ;;  %v14708_v59 = vld [vmem:[%s21421_s1 + $0x110c] ss:$16 sps:$4 sm:$0xff]   ;;  %v14703_v60 = vld [vmem:[%s21421_s1 + $0x1100] ss:$16 sps:$4 sm:$0xff]  }
 0x1e7   :  { %9954 = vmatpush1.bf16.msra.mxu0 %v14611_v61  ;;  %10979 = vmatpush1.bf16.msra.mxu1 %v14614_v62  ;;  %v14706_v61 = vld [vmem:[%s21421_s1 + $0x1108] ss:$16 sps:$4 sm:$0xff]   ;;  %v14711_v62 = vld [vmem:[%s21421_s1 + $0x1124] ss:$16 sps:$4 sm:$0xff]  }
 0x1e8   :  { %9955 = vmatprep.subr.bf16.mxu0 %v14619_v63  ;;  %10980 = vmatprep.subr.bf16.mxu1 %v14622_v0  ;;  %v14714_v63 = vld [vmem:[%s21421_s1 + $0x112c] ss:$16 sps:$4 sm:$0xff]   ;;  %v14709_v0 = vld [vmem:[%s21421_s1 + $0x1120] ss:$16 sps:$4 sm:$0xff]  }
 0x1eb   :  { %9956 = vmatpush1.bf16.msra.mxu0 %v14617_v1  ;;  %10981 = vmatpush1.bf16.msra.mxu1 %v14620_v2  ;;  %v14712_v1 = vld [vmem:[%s21421_s1 + $0x1128] ss:$16 sps:$4 sm:$0xff]   ;;  %v14717_v2 = vld [vmem:[%s21421_s1 + $0x1144] ss:$16 sps:$4 sm:$0xff]  }
 0x1ec   :  { %9957 = vmatprep.subr.bf16.mxu0 %v14625_v3  ;;  %10982 = vmatprep.subr.bf16.mxu1 %v14628_v4  ;;  %v14720_v3 = vld [vmem:[%s21421_s1 + $0x114c] ss:$16 sps:$4 sm:$0xff]   ;;  %v14715_v4 = vld [vmem:[%s21421_s1 + $0x1140] ss:$16 sps:$4 sm:$0xff]  }
 0x1ef   :  { %9958 = vmatpush1.bf16.msra.mxu0 %v14623_v5  ;;  %10983 = vmatpush1.bf16.msra.mxu1 %v14626_v6  ;;  %v14718_v5 = vld [vmem:[%s21421_s1 + $0x1148] ss:$16 sps:$4 sm:$0xff]   ;;  %v14723_v6 = vld [vmem:[%s21421_s1 + $0x1164] ss:$16 sps:$4 sm:$0xff]  }
 0x1f0   :  { %9959 = vmatprep.subr.bf16.mxu0 %v14631_v7  ;;  %10984 = vmatprep.subr.bf16.mxu1 %v14634_v8  ;;  %v14726_v7 = vld [vmem:[%s21421_s1 + $0x116c] ss:$16 sps:$4 sm:$0xff]   ;;  %v14721_v8 = vld [vmem:[%s21421_s1 + $0x1160] ss:$16 sps:$4 sm:$0xff]  }
 0x1f3   :  { %9960 = vmatpush1.bf16.msra.mxu0 %v14629_v9  ;;  %10985 = vmatpush1.bf16.msra.mxu1 %v14632_v10  ;;  %v14724_v9 = vld [vmem:[%s21421_s1 + $0x1168] ss:$16 sps:$4 sm:$0xff]   ;;  %v14729_v10 = vld [vmem:[%s21421_s1 + $0x1184] ss:$16 sps:$4 sm:$0xff]  }
 0x1f4   :  { %9961 = vmatprep.subr.bf16.mxu0 %v14637_v12  ;;  %10986 = vmatprep.subr.bf16.mxu1 %v14640_v13  ;;  %v14732_v12 = vld [vmem:[%s21421_s1 + $0x118c] ss:$16 sps:$4 sm:$0xff]   ;;  %v14727_v13 = vld [vmem:[%s21421_s1 + $0x1180] ss:$16 sps:$4 sm:$0xff]  }
 0x1f7   :  { %9962 = vmatpush1.bf16.msra.mxu0 %v14635_v15  ;;  %10987 = vmatpush1.bf16.msra.mxu1 %v14638_v11  ;;  %v14730_v15 = vld [vmem:[%s21421_s1 + $0x1188] ss:$16 sps:$4 sm:$0xff]   ;;  %v14735_v11 = vld [vmem:[%s21421_s1 + $0x11a4] ss:$16 sps:$4 sm:$0xff]  }
 0x1f8   :  { %9963 = vmatprep.subr.bf16.mxu0 %v14643_v17  ;;  %10988 = vmatprep.subr.bf16.mxu1 %v14646_v14  ;;  %v14738_v17 = vld [vmem:[%s21421_s1 + $0x11ac] ss:$16 sps:$4 sm:$0xff]   ;;  %v14733_v14 = vld [vmem:[%s21421_s1 + $0x11a0] ss:$16 sps:$4 sm:$0xff]  }
 0x1fb   :  { %9964 = vmatpush1.bf16.msra.mxu0 %v14641_v19  ;;  %10989 = vmatpush1.bf16.msra.mxu1 %v14644_v20  ;;  %v14736_v19 = vld [vmem:[%s21421_s1 + $0x11a8] ss:$16 sps:$4 sm:$0xff]   ;;  %v14741_v20 = vld [vmem:[%s21421_s1 + $0x11c4] ss:$16 sps:$4 sm:$0xff]  }
 0x1fc   :  { %9965 = vmatprep.subr.bf16.mxu0 %v14649_v16  ;;  %10990 = vmatprep.subr.bf16.mxu1 %v14652_v22  ;;  %v14744_v16 = vld [vmem:[%s21421_s1 + $0x11cc] ss:$16 sps:$4 sm:$0xff]   ;;  %v14739_v22 = vld [vmem:[%s21421_s1 + $0x11c0] ss:$16 sps:$4 sm:$0xff]  }
 0x1ff   :  { %9966 = vmatpush1.bf16.msra.mxu0 %v14647_v23  ;;  %10991 = vmatpush1.bf16.msra.mxu1 %v14650_v18  ;;  %v14742_v23 = vld [vmem:[%s21421_s1 + $0x11c8] ss:$16 sps:$4 sm:$0xff]   ;;  %v14747_v18 = vld [vmem:[%s21421_s1 + $0x11e4] ss:$16 sps:$4 sm:$0xff]  }
 0x200   :  { %9976 = vmatprep.subr.bf16.mxu0 %v14657_v25  ;;  %11001 = vmatprep.subr.bf16.mxu1 %v14660_v26  ;;  %v14750_v25 = vld [vmem:[%s21421_s1 + $0x11ec] ss:$16 sps:$4 sm:$0xff]   ;;  %v14745_v26 = vld [vmem:[%s21421_s1 + $0x11e0] ss:$16 sps:$4 sm:$0xff]  }
 0x202   :  { %9968 = vmatmul.mubr.bf16.vlgmr.msra.gmra.mrb[0].mxu0 %v11936_v21  ;;  %10993 = vmatmul.mubr.bf16.vlgmr.msra.gmra.mrb[0].mxu1 %v11936_v21  ;;  %v14748_v21 = vld [vmem:[%s21421_s1 + $0x11e8] ss:$16 sps:$4 sm:$0xff]  }
 0x203   :  { %9977 = vmatpush1.bf16.msra.mxu0 %v14655_v28  ;;  %11002 = vmatpush1.bf16.msra.mxu1 %v14658_v29  ;;  %v14755_v28 = vld [vmem:[%s21421_s1 + $0x1204] ss:$16 sps:$4 sm:$0xff]   ;;  %v14758_v29 = vld [vmem:[%s21421_s1 + $0x120c] ss:$16 sps:$4 sm:$0xff]  }
 0x204   :  { %9978 = vmatprep.subr.bf16.mxu0 %v14663_v30  ;;  %11003 = vmatprep.subr.bf16.mxu1 %v14666_v24  ;;  %v18113_v30 = vld [vmem:[%s21422_s0 + $0x48] sm:$0xff]  ;;  %v11938_v24 = vcombine.low %v17912_v27, %v17912_v27 }
 0x205   :  { %10008 = vmatprep.mubr.bf16.mxu0 %v11939_v31  ;;  %11033 = vmatprep.mubr.bf16.mxu1 %v11939_v31  ;;  %v14753_v31 = vld [vmem:[%s21421_s1 + $0x1200] ss:$16 sps:$4 sm:$0xff]   ;;  %v14764_v27 = vld [vmem:[%s21421_s1 + $0x122c] ss:$16 sps:$4 sm:$0xff]  }
 0x207   :  { %9979 = vmatpush1.bf16.msra.mxu0 %v14661_v32  ;;  %11004 = vmatpush1.bf16.msra.mxu1 %v14664_v33  ;;  %v14756_v32 = vld [vmem:[%s21421_s1 + $0x1208] ss:$16 sps:$4 sm:$0xff]   ;;  %v14761_v33 = vld [vmem:[%s21421_s1 + $0x1224] ss:$16 sps:$4 sm:$0xff]  }
 0x208   :  { %9980 = vmatprep.subr.bf16.mxu0 %v14669_v34  ;;  %11005 = vmatprep.subr.bf16.mxu1 %v14672_v35  ;;  %v11941_v34 = vcombine.high %v18113_v30, %v18113_v30  ;;  %v14759_v35 = vld [vmem:[%s21421_s1 + $0x1220] ss:$16 sps:$4 sm:$0xff]  }
 0x20b   :  { %9981 = vmatpush1.bf16.msra.mxu0 %v14667_v36  ;;  %11006 = vmatpush1.bf16.msra.mxu1 %v14670_v37  ;;  %v14762_v36 = vld [vmem:[%s21421_s1 + $0x1228] ss:$16 sps:$4 sm:$0xff]   ;;  %v14767_v37 = vld [vmem:[%s21421_s1 + $0x1244] ss:$16 sps:$4 sm:$0xff]  }
 0x20c   :  { %9982 = vmatprep.subr.bf16.mxu0 %v14675_v38  ;;  %11007 = vmatprep.subr.bf16.mxu1 %v14678_v39  ;;  %v14770_v38 = vld [vmem:[%s21421_s1 + $0x124c] ss:$16 sps:$4 sm:$0xff]   ;;  %v14765_v39 = vld [vmem:[%s21421_s1 + $0x1240] ss:$16 sps:$4 sm:$0xff]  }
 0x20f   :  { %9983 = vmatpush1.bf16.msra.mxu0 %v14673_v40  ;;  %11008 = vmatpush1.bf16.msra.mxu1 %v14676_v41  ;;  %v14768_v40 = vld [vmem:[%s21421_s1 + $0x1248] ss:$16 sps:$4 sm:$0xff]   ;;  %v14773_v41 = vld [vmem:[%s21421_s1 + $0x1264] ss:$16 sps:$4 sm:$0xff]  }
 0x210   :  { %9984 = vmatprep.subr.bf16.mxu0 %v14681_v42  ;;  %11009 = vmatprep.subr.bf16.mxu1 %v14684_v43  ;;  %v14776_v42 = vld [vmem:[%s21421_s1 + $0x126c] ss:$16 sps:$4 sm:$0xff]   ;;  %v14771_v43 = vld [vmem:[%s21421_s1 + $0x1260] ss:$16 sps:$4 sm:$0xff]  }
 0x213   :  { %9985 = vmatpush1.bf16.msra.mxu0 %v14679_v44  ;;  %11010 = vmatpush1.bf16.msra.mxu1 %v14682_v45  ;;  %v14774_v44 = vld [vmem:[%s21421_s1 + $0x1268] ss:$16 sps:$4 sm:$0xff]   ;;  %v14779_v45 = vld [vmem:[%s21421_s1 + $0x1284] ss:$16 sps:$4 sm:$0xff]  }
 0x214   :  { %9986 = vmatprep.subr.bf16.mxu0 %v14687_v46  ;;  %11011 = vmatprep.subr.bf16.mxu1 %v14690_v47  ;;  %v14782_v46 = vld [vmem:[%s21421_s1 + $0x128c] ss:$16 sps:$4 sm:$0xff]   ;;  %v14777_v47 = vld [vmem:[%s21421_s1 + $0x1280] ss:$16 sps:$4 sm:$0xff]  }
 0x217   :  { %9987 = vmatpush1.bf16.msra.mxu0 %v14685_v48  ;;  %11012 = vmatpush1.bf16.msra.mxu1 %v14688_v49  ;;  %v14780_v48 = vld [vmem:[%s21421_s1 + $0x1288] ss:$16 sps:$4 sm:$0xff]   ;;  %v14785_v49 = vld [vmem:[%s21421_s1 + $0x12a4] ss:$16 sps:$4 sm:$0xff]  }
 0x218   :  { %9988 = vmatprep.subr.bf16.mxu0 %v14693_v50  ;;  %11013 = vmatprep.subr.bf16.mxu1 %v14696_v51  ;;  %v14788_v50 = vld [vmem:[%s21421_s1 + $0x12ac] ss:$16 sps:$4 sm:$0xff]   ;;  %v14783_v51 = vld [vmem:[%s21421_s1 + $0x12a0] ss:$16 sps:$4 sm:$0xff]  }
 0x21b   :  { %9989 = vmatpush1.bf16.msra.mxu0 %v14691_v52  ;;  %11014 = vmatpush1.bf16.msra.mxu1 %v14694_v53  ;;  %v14786_v52 = vld [vmem:[%s21421_s1 + $0x12a8] ss:$16 sps:$4 sm:$0xff]   ;;  %v14791_v53 = vld [vmem:[%s21421_s1 + $0x12c4] ss:$16 sps:$4 sm:$0xff]  }
 0x21c   :  { %9990 = vmatprep.subr.bf16.mxu0 %v14699_v54  ;;  %11015 = vmatprep.subr.bf16.mxu1 %v14702_v55  ;;  %v14794_v54 = vld [vmem:[%s21421_s1 + $0x12cc] ss:$16 sps:$4 sm:$0xff]   ;;  %v14789_v55 = vld [vmem:[%s21421_s1 + $0x12c0] ss:$16 sps:$4 sm:$0xff]  }
 0x21f   :  { %9991 = vmatpush1.bf16.msra.mxu0 %v14697_v56  ;;  %11016 = vmatpush1.bf16.msra.mxu1 %v14700_v57  ;;  %v14792_v56 = vld [vmem:[%s21421_s1 + $0x12c8] ss:$16 sps:$4 sm:$0xff]   ;;  %v14797_v57 = vld [vmem:[%s21421_s1 + $0x12e4] ss:$16 sps:$4 sm:$0xff]  }
 0x220   :  { %9992 = vmatprep.subr.bf16.mxu0 %v14705_v58  ;;  %11017 = vmatprep.subr.bf16.mxu1 %v14708_v59  ;;  %v14800_v58 = vld [vmem:[%s21421_s1 + $0x12ec] ss:$16 sps:$4 sm:$0xff]   ;;  %v14795_v59 = vld [vmem:[%s21421_s1 + $0x12e0] ss:$16 sps:$4 sm:$0xff]  }
 0x223   :  { %9993 = vmatpush1.bf16.msra.mxu0 %v14703_v60  ;;  %11018 = vmatpush1.bf16.msra.mxu1 %v14706_v61  ;;  %v14798_v60 = vld [vmem:[%s21421_s1 + $0x12e8] ss:$16 sps:$4 sm:$0xff]   ;;  %v14803_v61 = vld [vmem:[%s21421_s1 + $0x1304] ss:$16 sps:$4 sm:$0xff]  }
 0x224   :  { %9994 = vmatprep.subr.bf16.mxu0 %v14711_v62  ;;  %11019 = vmatprep.subr.bf16.mxu1 %v14714_v63  ;;  %v14806_v62 = vld [vmem:[%s21421_s1 + $0x130c] ss:$16 sps:$4 sm:$0xff]   ;;  %v14801_v63 = vld [vmem:[%s21421_s1 + $0x1300] ss:$16 sps:$4 sm:$0xff]  }
 0x227   :  { %9995 = vmatpush1.bf16.msra.mxu0 %v14709_v0  ;;  %11020 = vmatpush1.bf16.msra.mxu1 %v14712_v1  ;;  %v14804_v0 = vld [vmem:[%s21421_s1 + $0x1308] ss:$16 sps:$4 sm:$0xff]   ;;  %v14809_v1 = vld [vmem:[%s21421_s1 + $0x1324] ss:$16 sps:$4 sm:$0xff]  }
 0x228   :  { %9996 = vmatprep.subr.bf16.mxu0 %v14717_v2  ;;  %11021 = vmatprep.subr.bf16.mxu1 %v14720_v3  ;;  %v14812_v2 = vld [vmem:[%s21421_s1 + $0x132c] ss:$16 sps:$4 sm:$0xff]   ;;  %v14807_v3 = vld [vmem:[%s21421_s1 + $0x1320] ss:$16 sps:$4 sm:$0xff]  }
 0x22b   :  { %9997 = vmatpush1.bf16.msra.mxu0 %v14715_v4  ;;  %11022 = vmatpush1.bf16.msra.mxu1 %v14718_v5  ;;  %v14810_v4 = vld [vmem:[%s21421_s1 + $0x1328] ss:$16 sps:$4 sm:$0xff]   ;;  %v14815_v5 = vld [vmem:[%s21421_s1 + $0x1344] ss:$16 sps:$4 sm:$0xff]  }
 0x22c   :  { %9998 = vmatprep.subr.bf16.mxu0 %v14723_v6  ;;  %11023 = vmatprep.subr.bf16.mxu1 %v14726_v7  ;;  %v14818_v6 = vld [vmem:[%s21421_s1 + $0x134c] ss:$16 sps:$4 sm:$0xff]   ;;  %v14813_v7 = vld [vmem:[%s21421_s1 + $0x1340] ss:$16 sps:$4 sm:$0xff]  }
 0x22f   :  { %9999 = vmatpush1.bf16.msra.mxu0 %v14721_v8  ;;  %11024 = vmatpush1.bf16.msra.mxu1 %v14724_v9  ;;  %v14816_v8 = vld [vmem:[%s21421_s1 + $0x1348] ss:$16 sps:$4 sm:$0xff]   ;;  %v14821_v9 = vld [vmem:[%s21421_s1 + $0x1364] ss:$16 sps:$4 sm:$0xff]  }
 0x230   :  { %10000 = vmatprep.subr.bf16.mxu0 %v14729_v10  ;;  %11025 = vmatprep.subr.bf16.mxu1 %v14732_v12  ;;  %v14824_v10 = vld [vmem:[%s21421_s1 + $0x136c] ss:$16 sps:$4 sm:$0xff]   ;;  %v14819_v12 = vld [vmem:[%s21421_s1 + $0x1360] ss:$16 sps:$4 sm:$0xff]  }
 0x233   :  { %10001 = vmatpush1.bf16.msra.mxu0 %v14727_v13  ;;  %11026 = vmatpush1.bf16.msra.mxu1 %v14730_v15  ;;  %v14822_v13 = vld [vmem:[%s21421_s1 + $0x1368] ss:$16 sps:$4 sm:$0xff]   ;;  %v14827_v15 = vld [vmem:[%s21421_s1 + $0x1384] ss:$16 sps:$4 sm:$0xff]  }
 0x234   :  { %10002 = vmatprep.subr.bf16.mxu0 %v14735_v11  ;;  %11027 = vmatprep.subr.bf16.mxu1 %v14738_v17  ;;  %v14830_v11 = vld [vmem:[%s21421_s1 + $0x138c] ss:$16 sps:$4 sm:$0xff]   ;;  %v14825_v17 = vld [vmem:[%s21421_s1 + $0x1380] ss:$16 sps:$4 sm:$0xff]  }
 0x237   :  { %10003 = vmatpush1.bf16.msra.mxu0 %v14733_v14  ;;  %11028 = vmatpush1.bf16.msra.mxu1 %v14736_v19  ;;  %v14828_v14 = vld [vmem:[%s21421_s1 + $0x1388] ss:$16 sps:$4 sm:$0xff]   ;;  %v14833_v19 = vld [vmem:[%s21421_s1 + $0x13a4] ss:$16 sps:$4 sm:$0xff]  }
 0x238   :  { %10004 = vmatprep.subr.bf16.mxu0 %v14741_v20  ;;  %11029 = vmatprep.subr.bf16.mxu1 %v14744_v16  ;;  %v14836_v20 = vld [vmem:[%s21421_s1 + $0x13ac] ss:$16 sps:$4 sm:$0xff]   ;;  %v14831_v16 = vld [vmem:[%s21421_s1 + $0x13a0] ss:$16 sps:$4 sm:$0xff]  }
 0x23b   :  { %10005 = vmatpush1.bf16.msra.mxu0 %v14739_v22  ;;  %11030 = vmatpush1.bf16.msra.mxu1 %v14742_v23  ;;  %v14834_v22 = vld [vmem:[%s21421_s1 + $0x13a8] ss:$16 sps:$4 sm:$0xff]   ;;  %v14839_v23 = vld [vmem:[%s21421_s1 + $0x13c4] ss:$16 sps:$4 sm:$0xff]  }
 0x23c   :  { %10006 = vmatprep.subr.bf16.mxu0 %v14747_v18  ;;  %11031 = vmatprep.subr.bf16.mxu1 %v14750_v25  ;;  %v14842_v18 = vld [vmem:[%s21421_s1 + $0x13cc] ss:$16 sps:$4 sm:$0xff]   ;;  %v14837_v25 = vld [vmem:[%s21421_s1 + $0x13c0] ss:$16 sps:$4 sm:$0xff]  }
 0x23f   :  { %10007 = vmatpush1.bf16.msra.mxu0 %v14745_v26  ;;  %11032 = vmatpush1.bf16.msra.mxu1 %v14748_v21  ;;  %v14840_v26 = vld [vmem:[%s21421_s1 + $0x13c8] ss:$16 sps:$4 sm:$0xff]   ;;  %v14845_v21 = vld [vmem:[%s21421_s1 + $0x13e4] ss:$16 sps:$4 sm:$0xff]  }
 0x240   :  { %10017 = vmatprep.subr.bf16.mxu0 %v14755_v28  ;;  %11042 = vmatprep.subr.bf16.mxu1 %v14758_v29  ;;  %v14848_v28 = vld [vmem:[%s21421_s1 + $0x13ec] ss:$16 sps:$4 sm:$0xff]   ;;  %v14843_v29 = vld [vmem:[%s21421_s1 + $0x13e0] ss:$16 sps:$4 sm:$0xff]  }
 0x242   :  { %10009 = vmatmul.mubr.bf16.vlgmr.msra.gmra.mrb[0].mxu0 %v11938_v24  ;;  %11034 = vmatmul.mubr.bf16.vlgmr.msra.gmra.mrb[0].mxu1 %v11938_v24  ;;  %v14846_v24 = vld [vmem:[%s21421_s1 + $0x13e8] ss:$16 sps:$4 sm:$0xff]  }
 0x243   :  { %10018 = vmatpush1.bf16.msra.mxu0 %v14753_v31  ;;  %11043 = vmatpush1.bf16.msra.mxu1 %v14756_v32  ;;  %v14853_v31 = vld [vmem:[%s21421_s1 + $0x1404] ss:$16 sps:$4 sm:$0xff]   ;;  %v14856_v32 = vld [vmem:[%s21421_s1 + $0x140c] ss:$16 sps:$4 sm:$0xff]  }
 0x244   :  { %10019 = vmatprep.subr.bf16.mxu0 %v14761_v33  ;;  %11044 = vmatprep.subr.bf16.mxu1 %v14764_v27  ;;  %v18314_v33 = vld [vmem:[%s21422_s0 + $0x50] sm:$0xff]  ;;  %v11940_v27 = vcombine.low %v18113_v30, %v18113_v30  ;;  %v14862_v30 = vld [vmem:[%s21421_s1 + $0x142c] ss:$16 sps:$4 sm:$0xff]  }
 0x245   :  { %10049 = vmatprep.mubr.bf16.mxu0 %v11941_v34  ;;  %11074 = vmatprep.mubr.bf16.mxu1 %v11941_v34  ;;  %v14851_v34 = vld [vmem:[%s21421_s1 + $0x1400] ss:$16 sps:$4 sm:$0xff]  }
 0x247   :  { %10020 = vmatpush1.bf16.msra.mxu0 %v14759_v35  ;;  %11045 = vmatpush1.bf16.msra.mxu1 %v14762_v36  ;;  %v14854_v35 = vld [vmem:[%s21421_s1 + $0x1408] ss:$16 sps:$4 sm:$0xff]   ;;  %v14859_v36 = vld [vmem:[%s21421_s1 + $0x1424] ss:$16 sps:$4 sm:$0xff]  }
 0x248   :  { %10021 = vmatprep.subr.bf16.mxu0 %v14767_v37  ;;  %11046 = vmatprep.subr.bf16.mxu1 %v14770_v38  ;;  %v11943_v37 = vcombine.high %v18314_v33, %v18314_v33  ;;  %v14857_v38 = vld [vmem:[%s21421_s1 + $0x1420] ss:$16 sps:$4 sm:$0xff]  }
 0x24b   :  { %10022 = vmatpush1.bf16.msra.mxu0 %v14765_v39  ;;  %11047 = vmatpush1.bf16.msra.mxu1 %v14768_v40  ;;  %v14860_v39 = vld [vmem:[%s21421_s1 + $0x1428] ss:$16 sps:$4 sm:$0xff]   ;;  %v14865_v40 = vld [vmem:[%s21421_s1 + $0x1444] ss:$16 sps:$4 sm:$0xff]  }
 0x24c   :  { %10023 = vmatprep.subr.bf16.mxu0 %v14773_v41  ;;  %11048 = vmatprep.subr.bf16.mxu1 %v14776_v42  ;;  %v14868_v41 = vld [vmem:[%s21421_s1 + $0x144c] ss:$16 sps:$4 sm:$0xff]   ;;  %v14863_v42 = vld [vmem:[%s21421_s1 + $0x1440] ss:$16 sps:$4 sm:$0xff]  }
 0x24f   :  { %10024 = vmatpush1.bf16.msra.mxu0 %v14771_v43  ;;  %11049 = vmatpush1.bf16.msra.mxu1 %v14774_v44  ;;  %v14866_v43 = vld [vmem:[%s21421_s1 + $0x1448] ss:$16 sps:$4 sm:$0xff]   ;;  %v14871_v44 = vld [vmem:[%s21421_s1 + $0x1464] ss:$16 sps:$4 sm:$0xff]  }
 0x250   :  { %10025 = vmatprep.subr.bf16.mxu0 %v14779_v45  ;;  %11050 = vmatprep.subr.bf16.mxu1 %v14782_v46  ;;  %v14874_v45 = vld [vmem:[%s21421_s1 + $0x146c] ss:$16 sps:$4 sm:$0xff]   ;;  %v14869_v46 = vld [vmem:[%s21421_s1 + $0x1460] ss:$16 sps:$4 sm:$0xff]  }
 0x253   :  { %10026 = vmatpush1.bf16.msra.mxu0 %v14777_v47  ;;  %11051 = vmatpush1.bf16.msra.mxu1 %v14780_v48  ;;  %v14872_v47 = vld [vmem:[%s21421_s1 + $0x1468] ss:$16 sps:$4 sm:$0xff]   ;;  %v14877_v48 = vld [vmem:[%s21421_s1 + $0x1484] ss:$16 sps:$4 sm:$0xff]  }
 0x254   :  { %10027 = vmatprep.subr.bf16.mxu0 %v14785_v49  ;;  %11052 = vmatprep.subr.bf16.mxu1 %v14788_v50  ;;  %v14880_v49 = vld [vmem:[%s21421_s1 + $0x148c] ss:$16 sps:$4 sm:$0xff]   ;;  %v14875_v50 = vld [vmem:[%s21421_s1 + $0x1480] ss:$16 sps:$4 sm:$0xff]  }
 0x257   :  { %10028 = vmatpush1.bf16.msra.mxu0 %v14783_v51  ;;  %11053 = vmatpush1.bf16.msra.mxu1 %v14786_v52  ;;  %v14878_v51 = vld [vmem:[%s21421_s1 + $0x1488] ss:$16 sps:$4 sm:$0xff]   ;;  %v14883_v52 = vld [vmem:[%s21421_s1 + $0x14a4] ss:$16 sps:$4 sm:$0xff]  }
 0x258   :  { %10029 = vmatprep.subr.bf16.mxu0 %v14791_v53  ;;  %11054 = vmatprep.subr.bf16.mxu1 %v14794_v54  ;;  %v14886_v53 = vld [vmem:[%s21421_s1 + $0x14ac] ss:$16 sps:$4 sm:$0xff]   ;;  %v14881_v54 = vld [vmem:[%s21421_s1 + $0x14a0] ss:$16 sps:$4 sm:$0xff]  }
 0x25b   :  { %10030 = vmatpush1.bf16.msra.mxu0 %v14789_v55  ;;  %11055 = vmatpush1.bf16.msra.mxu1 %v14792_v56  ;;  %v14884_v55 = vld [vmem:[%s21421_s1 + $0x14a8] ss:$16 sps:$4 sm:$0xff]   ;;  %v14889_v56 = vld [vmem:[%s21421_s1 + $0x14c4] ss:$16 sps:$4 sm:$0xff]  }
 0x25c   :  { %10031 = vmatprep.subr.bf16.mxu0 %v14797_v57  ;;  %11056 = vmatprep.subr.bf16.mxu1 %v14800_v58  ;;  %v14892_v57 = vld [vmem:[%s21421_s1 + $0x14cc] ss:$16 sps:$4 sm:$0xff]   ;;  %v14887_v58 = vld [vmem:[%s21421_s1 + $0x14c0] ss:$16 sps:$4 sm:$0xff]  }
 0x25f   :  { %10032 = vmatpush1.bf16.msra.mxu0 %v14795_v59  ;;  %11057 = vmatpush1.bf16.msra.mxu1 %v14798_v60  ;;  %v14890_v59 = vld [vmem:[%s21421_s1 + $0x14c8] ss:$16 sps:$4 sm:$0xff]   ;;  %v14895_v60 = vld [vmem:[%s21421_s1 + $0x14e4] ss:$16 sps:$4 sm:$0xff]  }
 0x260   :  { %10033 = vmatprep.subr.bf16.mxu0 %v14803_v61  ;;  %11058 = vmatprep.subr.bf16.mxu1 %v14806_v62  ;;  %v14898_v61 = vld [vmem:[%s21421_s1 + $0x14ec] ss:$16 sps:$4 sm:$0xff]   ;;  %v14893_v62 = vld [vmem:[%s21421_s1 + $0x14e0] ss:$16 sps:$4 sm:$0xff]  }
 0x263   :  { %10034 = vmatpush1.bf16.msra.mxu0 %v14801_v63  ;;  %11059 = vmatpush1.bf16.msra.mxu1 %v14804_v0  ;;  %v14896_v63 = vld [vmem:[%s21421_s1 + $0x14e8] ss:$16 sps:$4 sm:$0xff]   ;;  %v14901_v0 = vld [vmem:[%s21421_s1 + $0x1504] ss:$16 sps:$4 sm:$0xff]  }
 0x264   :  { %10035 = vmatprep.subr.bf16.mxu0 %v14809_v1  ;;  %11060 = vmatprep.subr.bf16.mxu1 %v14812_v2  ;;  %v14904_v1 = vld [vmem:[%s21421_s1 + $0x150c] ss:$16 sps:$4 sm:$0xff]   ;;  %v14899_v2 = vld [vmem:[%s21421_s1 + $0x1500] ss:$16 sps:$4 sm:$0xff]  }
 0x267   :  { %10036 = vmatpush1.bf16.msra.mxu0 %v14807_v3  ;;  %11061 = vmatpush1.bf16.msra.mxu1 %v14810_v4  ;;  %v14902_v3 = vld [vmem:[%s21421_s1 + $0x1508] ss:$16 sps:$4 sm:$0xff]   ;;  %v14907_v4 = vld [vmem:[%s21421_s1 + $0x1524] ss:$16 sps:$4 sm:$0xff]  }
 0x268   :  { %10037 = vmatprep.subr.bf16.mxu0 %v14815_v5  ;;  %11062 = vmatprep.subr.bf16.mxu1 %v14818_v6  ;;  %v14910_v5 = vld [vmem:[%s21421_s1 + $0x152c] ss:$16 sps:$4 sm:$0xff]   ;;  %v14905_v6 = vld [vmem:[%s21421_s1 + $0x1520] ss:$16 sps:$4 sm:$0xff]  }
 0x26b   :  { %10038 = vmatpush1.bf16.msra.mxu0 %v14813_v7  ;;  %11063 = vmatpush1.bf16.msra.mxu1 %v14816_v8  ;;  %v14908_v7 = vld [vmem:[%s21421_s1 + $0x1528] ss:$16 sps:$4 sm:$0xff]   ;;  %v14913_v8 = vld [vmem:[%s21421_s1 + $0x1544] ss:$16 sps:$4 sm:$0xff]  }
 0x26c   :  { %10039 = vmatprep.subr.bf16.mxu0 %v14821_v9  ;;  %11064 = vmatprep.subr.bf16.mxu1 %v14824_v10  ;;  %v14916_v9 = vld [vmem:[%s21421_s1 + $0x154c] ss:$16 sps:$4 sm:$0xff]   ;;  %v14911_v10 = vld [vmem:[%s21421_s1 + $0x1540] ss:$16 sps:$4 sm:$0xff]  }
 0x26f   :  { %10040 = vmatpush1.bf16.msra.mxu0 %v14819_v12  ;;  %11065 = vmatpush1.bf16.msra.mxu1 %v14822_v13  ;;  %v14914_v12 = vld [vmem:[%s21421_s1 + $0x1548] ss:$16 sps:$4 sm:$0xff]   ;;  %v14919_v13 = vld [vmem:[%s21421_s1 + $0x1564] ss:$16 sps:$4 sm:$0xff]  }
 0x270   :  { %10041 = vmatprep.subr.bf16.mxu0 %v14827_v15  ;;  %11066 = vmatprep.subr.bf16.mxu1 %v14830_v11  ;;  %v14922_v15 = vld [vmem:[%s21421_s1 + $0x156c] ss:$16 sps:$4 sm:$0xff]   ;;  %v14917_v11 = vld [vmem:[%s21421_s1 + $0x1560] ss:$16 sps:$4 sm:$0xff]  }
 0x273   :  { %10042 = vmatpush1.bf16.msra.mxu0 %v14825_v17  ;;  %11067 = vmatpush1.bf16.msra.mxu1 %v14828_v14  ;;  %v14920_v17 = vld [vmem:[%s21421_s1 + $0x1568] ss:$16 sps:$4 sm:$0xff]   ;;  %v14925_v14 = vld [vmem:[%s21421_s1 + $0x1584] ss:$16 sps:$4 sm:$0xff]  }
 0x274   :  { %10043 = vmatprep.subr.bf16.mxu0 %v14833_v19  ;;  %11068 = vmatprep.subr.bf16.mxu1 %v14836_v20  ;;  %v14928_v19 = vld [vmem:[%s21421_s1 + $0x158c] ss:$16 sps:$4 sm:$0xff]   ;;  %v14923_v20 = vld [vmem:[%s21421_s1 + $0x1580] ss:$16 sps:$4 sm:$0xff]  }
 0x277   :  { %10044 = vmatpush1.bf16.msra.mxu0 %v14831_v16  ;;  %11069 = vmatpush1.bf16.msra.mxu1 %v14834_v22  ;;  %v14926_v16 = vld [vmem:[%s21421_s1 + $0x1588] ss:$16 sps:$4 sm:$0xff]   ;;  %v14931_v22 = vld [vmem:[%s21421_s1 + $0x15a4] ss:$16 sps:$4 sm:$0xff]  }
 0x278   :  { %10045 = vmatprep.subr.bf16.mxu0 %v14839_v23  ;;  %11070 = vmatprep.subr.bf16.mxu1 %v14842_v18  ;;  %v14934_v23 = vld [vmem:[%s21421_s1 + $0x15ac] ss:$16 sps:$4 sm:$0xff]   ;;  %v14929_v18 = vld [vmem:[%s21421_s1 + $0x15a0] ss:$16 sps:$4 sm:$0xff]  }
 0x27b   :  { %10046 = vmatpush1.bf16.msra.mxu0 %v14837_v25  ;;  %11071 = vmatpush1.bf16.msra.mxu1 %v14840_v26  ;;  %v14932_v25 = vld [vmem:[%s21421_s1 + $0x15a8] ss:$16 sps:$4 sm:$0xff]   ;;  %v14937_v26 = vld [vmem:[%s21421_s1 + $0x15c4] ss:$16 sps:$4 sm:$0xff]  }
 0x27c   :  { %10047 = vmatprep.subr.bf16.mxu0 %v14845_v21  ;;  %11072 = vmatprep.subr.bf16.mxu1 %v14848_v28  ;;  %v14940_v21 = vld [vmem:[%s21421_s1 + $0x15cc] ss:$16 sps:$4 sm:$0xff]   ;;  %v14935_v28 = vld [vmem:[%s21421_s1 + $0x15c0] ss:$16 sps:$4 sm:$0xff]  }
 0x27f   :  { %10048 = vmatpush1.bf16.msra.mxu0 %v14843_v29  ;;  %11073 = vmatpush1.bf16.msra.mxu1 %v14846_v24  ;;  %v14938_v29 = vld [vmem:[%s21421_s1 + $0x15c8] ss:$16 sps:$4 sm:$0xff]   ;;  %v14943_v24 = vld [vmem:[%s21421_s1 + $0x15e4] ss:$16 sps:$4 sm:$0xff]  }
 0x280   :  { %10058 = vmatprep.subr.bf16.mxu0 %v14853_v31  ;;  %11083 = vmatprep.subr.bf16.mxu1 %v14856_v32  ;;  %v14946_v31 = vld [vmem:[%s21421_s1 + $0x15ec] ss:$16 sps:$4 sm:$0xff]   ;;  %v14941_v32 = vld [vmem:[%s21421_s1 + $0x15e0] ss:$16 sps:$4 sm:$0xff]  }
 0x282   :  { %10050 = vmatmul.mubr.bf16.vlgmr.msra.gmra.mrb[0].mxu0 %v11940_v27  ;;  %11075 = vmatmul.mubr.bf16.vlgmr.msra.gmra.mrb[0].mxu1 %v11940_v27  ;;  %v14944_v27 = vld [vmem:[%s21421_s1 + $0x15e8] ss:$16 sps:$4 sm:$0xff]  }
 0x283   :  { %10059 = vmatpush1.bf16.msra.mxu0 %v14851_v34  ;;  %11084 = vmatpush1.bf16.msra.mxu1 %v14854_v35  ;;  %v14951_v34 = vld [vmem:[%s21421_s1 + $0x1604] ss:$16 sps:$4 sm:$0xff]   ;;  %v14954_v35 = vld [vmem:[%s21421_s1 + $0x160c] ss:$16 sps:$4 sm:$0xff]  }
 0x284   :  { %10060 = vmatprep.subr.bf16.mxu0 %v14859_v36  ;;  %11085 = vmatprep.subr.bf16.mxu1 %v14862_v30  ;;  %v18515_v36 = vld [vmem:[%s21422_s0 + $0x58] sm:$0xff]  ;;  %v11942_v30 = vcombine.low %v18314_v33, %v18314_v33 }
 0x285   :  { %10090 = vmatprep.mubr.bf16.mxu0 %v11943_v37  ;;  %11115 = vmatprep.mubr.bf16.mxu1 %v11943_v37  ;;  %v14949_v37 = vld [vmem:[%s21421_s1 + $0x1600] ss:$16 sps:$4 sm:$0xff]   ;;  %v14960_v33 = vld [vmem:[%s21421_s1 + $0x162c] ss:$16 sps:$4 sm:$0xff]  }
 0x287   :  { %10061 = vmatpush1.bf16.msra.mxu0 %v14857_v38  ;;  %11086 = vmatpush1.bf16.msra.mxu1 %v14860_v39  ;;  %v14952_v38 = vld [vmem:[%s21421_s1 + $0x1608] ss:$16 sps:$4 sm:$0xff]   ;;  %v14957_v39 = vld [vmem:[%s21421_s1 + $0x1624] ss:$16 sps:$4 sm:$0xff]  }
 0x288   :  { %10062 = vmatprep.subr.bf16.mxu0 %v14865_v40  ;;  %11087 = vmatprep.subr.bf16.mxu1 %v14868_v41  ;;  %v11945_v40 = vcombine.high %v18515_v36, %v18515_v36  ;;  %v14955_v41 = vld [vmem:[%s21421_s1 + $0x1620] ss:$16 sps:$4 sm:$0xff]  }
 0x28b   :  { %10063 = vmatpush1.bf16.msra.mxu0 %v14863_v42  ;;  %11088 = vmatpush1.bf16.msra.mxu1 %v14866_v43  ;;  %v14958_v42 = vld [vmem:[%s21421_s1 + $0x1628] ss:$16 sps:$4 sm:$0xff]   ;;  %v14963_v43 = vld [vmem:[%s21421_s1 + $0x1644] ss:$16 sps:$4 sm:$0xff]  }
 0x28c   :  { %10064 = vmatprep.subr.bf16.mxu0 %v14871_v44  ;;  %11089 = vmatprep.subr.bf16.mxu1 %v14874_v45  ;;  %v14966_v44 = vld [vmem:[%s21421_s1 + $0x164c] ss:$16 sps:$4 sm:$0xff]   ;;  %v14961_v45 = vld [vmem:[%s21421_s1 + $0x1640] ss:$16 sps:$4 sm:$0xff]  }
 0x28f   :  { %10065 = vmatpush1.bf16.msra.mxu0 %v14869_v46  ;;  %11090 = vmatpush1.bf16.msra.mxu1 %v14872_v47  ;;  %v14964_v46 = vld [vmem:[%s21421_s1 + $0x1648] ss:$16 sps:$4 sm:$0xff]   ;;  %v14969_v47 = vld [vmem:[%s21421_s1 + $0x1664] ss:$16 sps:$4 sm:$0xff]  }
 0x290   :  { %10066 = vmatprep.subr.bf16.mxu0 %v14877_v48  ;;  %11091 = vmatprep.subr.bf16.mxu1 %v14880_v49  ;;  %v14972_v48 = vld [vmem:[%s21421_s1 + $0x166c] ss:$16 sps:$4 sm:$0xff]   ;;  %v14967_v49 = vld [vmem:[%s21421_s1 + $0x1660] ss:$16 sps:$4 sm:$0xff]  }
 0x293   :  { %10067 = vmatpush1.bf16.msra.mxu0 %v14875_v50  ;;  %11092 = vmatpush1.bf16.msra.mxu1 %v14878_v51  ;;  %v14970_v50 = vld [vmem:[%s21421_s1 + $0x1668] ss:$16 sps:$4 sm:$0xff]   ;;  %v14975_v51 = vld [vmem:[%s21421_s1 + $0x1684] ss:$16 sps:$4 sm:$0xff]  }
 0x294   :  { %10068 = vmatprep.subr.bf16.mxu0 %v14883_v52  ;;  %11093 = vmatprep.subr.bf16.mxu1 %v14886_v53  ;;  %v14978_v52 = vld [vmem:[%s21421_s1 + $0x168c] ss:$16 sps:$4 sm:$0xff]   ;;  %v14973_v53 = vld [vmem:[%s21421_s1 + $0x1680] ss:$16 sps:$4 sm:$0xff]  }
 0x297   :  { %10069 = vmatpush1.bf16.msra.mxu0 %v14881_v54  ;;  %11094 = vmatpush1.bf16.msra.mxu1 %v14884_v55  ;;  %v14976_v54 = vld [vmem:[%s21421_s1 + $0x1688] ss:$16 sps:$4 sm:$0xff]   ;;  %v14981_v55 = vld [vmem:[%s21421_s1 + $0x16a4] ss:$16 sps:$4 sm:$0xff]  }
 0x298   :  { %10070 = vmatprep.subr.bf16.mxu0 %v14889_v56  ;;  %11095 = vmatprep.subr.bf16.mxu1 %v14892_v57  ;;  %v14984_v56 = vld [vmem:[%s21421_s1 + $0x16ac] ss:$16 sps:$4 sm:$0xff]   ;;  %v14979_v57 = vld [vmem:[%s21421_s1 + $0x16a0] ss:$16 sps:$4 sm:$0xff]  }
 0x29b   :  { %10071 = vmatpush1.bf16.msra.mxu0 %v14887_v58  ;;  %11096 = vmatpush1.bf16.msra.mxu1 %v14890_v59  ;;  %v14982_v58 = vld [vmem:[%s21421_s1 + $0x16a8] ss:$16 sps:$4 sm:$0xff]   ;;  %v14987_v59 = vld [vmem:[%s21421_s1 + $0x16c4] ss:$16 sps:$4 sm:$0xff]  }
 0x29c   :  { %10072 = vmatprep.subr.bf16.mxu0 %v14895_v60  ;;  %11097 = vmatprep.subr.bf16.mxu1 %v14898_v61  ;;  %v14990_v60 = vld [vmem:[%s21421_s1 + $0x16cc] ss:$16 sps:$4 sm:$0xff]   ;;  %v14985_v61 = vld [vmem:[%s21421_s1 + $0x16c0] ss:$16 sps:$4 sm:$0xff]  }
 0x29f   :  { %10073 = vmatpush1.bf16.msra.mxu0 %v14893_v62  ;;  %11098 = vmatpush1.bf16.msra.mxu1 %v14896_v63  ;;  %v14988_v62 = vld [vmem:[%s21421_s1 + $0x16c8] ss:$16 sps:$4 sm:$0xff]   ;;  %v14993_v63 = vld [vmem:[%s21421_s1 + $0x16e4] ss:$16 sps:$4 sm:$0xff]  }
 0x2a0   :  { %10074 = vmatprep.subr.bf16.mxu0 %v14901_v0  ;;  %11099 = vmatprep.subr.bf16.mxu1 %v14904_v1  ;;  %v14996_v0 = vld [vmem:[%s21421_s1 + $0x16ec] ss:$16 sps:$4 sm:$0xff]   ;;  %v14991_v1 = vld [vmem:[%s21421_s1 + $0x16e0] ss:$16 sps:$4 sm:$0xff]  }
 0x2a3   :  { %10075 = vmatpush1.bf16.msra.mxu0 %v14899_v2  ;;  %11100 = vmatpush1.bf16.msra.mxu1 %v14902_v3  ;;  %v14994_v2 = vld [vmem:[%s21421_s1 + $0x16e8] ss:$16 sps:$4 sm:$0xff]   ;;  %v14999_v3 = vld [vmem:[%s21421_s1 + $0x1704] ss:$16 sps:$4 sm:$0xff]  }
 0x2a4   :  { %10076 = vmatprep.subr.bf16.mxu0 %v14907_v4  ;;  %11101 = vmatprep.subr.bf16.mxu1 %v14910_v5  ;;  %v15002_v4 = vld [vmem:[%s21421_s1 + $0x170c] ss:$16 sps:$4 sm:$0xff]   ;;  %v14997_v5 = vld [vmem:[%s21421_s1 + $0x1700] ss:$16 sps:$4 sm:$0xff]  }
 0x2a7   :  { %10077 = vmatpush1.bf16.msra.mxu0 %v14905_v6  ;;  %11102 = vmatpush1.bf16.msra.mxu1 %v14908_v7  ;;  %v15000_v6 = vld [vmem:[%s21421_s1 + $0x1708] ss:$16 sps:$4 sm:$0xff]   ;;  %v15005_v7 = vld [vmem:[%s21421_s1 + $0x1724] ss:$16 sps:$4 sm:$0xff]  }
 0x2a8   :  { %10078 = vmatprep.subr.bf16.mxu0 %v14913_v8  ;;  %11103 = vmatprep.subr.bf16.mxu1 %v14916_v9  ;;  %v15008_v8 = vld [vmem:[%s21421_s1 + $0x172c] ss:$16 sps:$4 sm:$0xff]   ;;  %v15003_v9 = vld [vmem:[%s21421_s1 + $0x1720] ss:$16 sps:$4 sm:$0xff]  }
 0x2ab   :  { %10079 = vmatpush1.bf16.msra.mxu0 %v14911_v10  ;;  %11104 = vmatpush1.bf16.msra.mxu1 %v14914_v12  ;;  %v15006_v10 = vld [vmem:[%s21421_s1 + $0x1728] ss:$16 sps:$4 sm:$0xff]   ;;  %v15011_v12 = vld [vmem:[%s21421_s1 + $0x1744] ss:$16 sps:$4 sm:$0xff]  }
 0x2ac   :  { %10080 = vmatprep.subr.bf16.mxu0 %v14919_v13  ;;  %11105 = vmatprep.subr.bf16.mxu1 %v14922_v15  ;;  %v15014_v13 = vld [vmem:[%s21421_s1 + $0x174c] ss:$16 sps:$4 sm:$0xff]   ;;  %v15009_v15 = vld [vmem:[%s21421_s1 + $0x1740] ss:$16 sps:$4 sm:$0xff]  }
 0x2af   :  { %10081 = vmatpush1.bf16.msra.mxu0 %v14917_v11  ;;  %11106 = vmatpush1.bf16.msra.mxu1 %v14920_v17  ;;  %v15012_v11 = vld [vmem:[%s21421_s1 + $0x1748] ss:$16 sps:$4 sm:$0xff]   ;;  %v15017_v17 = vld [vmem:[%s21421_s1 + $0x1764] ss:$16 sps:$4 sm:$0xff]  }
 0x2b0   :  { %10082 = vmatprep.subr.bf16.mxu0 %v14925_v14  ;;  %11107 = vmatprep.subr.bf16.mxu1 %v14928_v19  ;;  %v15020_v14 = vld [vmem:[%s21421_s1 + $0x176c] ss:$16 sps:$4 sm:$0xff]   ;;  %v15015_v19 = vld [vmem:[%s21421_s1 + $0x1760] ss:$16 sps:$4 sm:$0xff]  }
 0x2b3   :  { %10083 = vmatpush1.bf16.msra.mxu0 %v14923_v20  ;;  %11108 = vmatpush1.bf16.msra.mxu1 %v14926_v16  ;;  %v15018_v20 = vld [vmem:[%s21421_s1 + $0x1768] ss:$16 sps:$4 sm:$0xff]   ;;  %v15023_v16 = vld [vmem:[%s21421_s1 + $0x1784] ss:$16 sps:$4 sm:$0xff]  }
 0x2b4   :  { %10084 = vmatprep.subr.bf16.mxu0 %v14931_v22  ;;  %11109 = vmatprep.subr.bf16.mxu1 %v14934_v23  ;;  %v15026_v22 = vld [vmem:[%s21421_s1 + $0x178c] ss:$16 sps:$4 sm:$0xff]   ;;  %v15021_v23 = vld [vmem:[%s21421_s1 + $0x1780] ss:$16 sps:$4 sm:$0xff]  }
 0x2b7   :  { %10085 = vmatpush1.bf16.msra.mxu0 %v14929_v18  ;;  %11110 = vmatpush1.bf16.msra.mxu1 %v14932_v25  ;;  %v15024_v18 = vld [vmem:[%s21421_s1 + $0x1788] ss:$16 sps:$4 sm:$0xff]   ;;  %v15029_v25 = vld [vmem:[%s21421_s1 + $0x17a4] ss:$16 sps:$4 sm:$0xff]  }
 0x2b8   :  { %10086 = vmatprep.subr.bf16.mxu0 %v14937_v26  ;;  %11111 = vmatprep.subr.bf16.mxu1 %v14940_v21  ;;  %v15032_v26 = vld [vmem:[%s21421_s1 + $0x17ac] ss:$16 sps:$4 sm:$0xff]   ;;  %v15027_v21 = vld [vmem:[%s21421_s1 + $0x17a0] ss:$16 sps:$4 sm:$0xff]  }
 0x2bb   :  { %10087 = vmatpush1.bf16.msra.mxu0 %v14935_v28  ;;  %11112 = vmatpush1.bf16.msra.mxu1 %v14938_v29  ;;  %v15030_v28 = vld [vmem:[%s21421_s1 + $0x17a8] ss:$16 sps:$4 sm:$0xff]   ;;  %v15035_v29 = vld [vmem:[%s21421_s1 + $0x17c4] ss:$16 sps:$4 sm:$0xff]  }
 0x2bc   :  { %10088 = vmatprep.subr.bf16.mxu0 %v14943_v24  ;;  %11113 = vmatprep.subr.bf16.mxu1 %v14946_v31  ;;  %v15038_v24 = vld [vmem:[%s21421_s1 + $0x17cc] ss:$16 sps:$4 sm:$0xff]   ;;  %v15033_v31 = vld [vmem:[%s21421_s1 + $0x17c0] ss:$16 sps:$4 sm:$0xff]  }
 0x2bf   :  { %10089 = vmatpush1.bf16.msra.mxu0 %v14941_v32  ;;  %11114 = vmatpush1.bf16.msra.mxu1 %v14944_v27  ;;  %v15036_v32 = vld [vmem:[%s21421_s1 + $0x17c8] ss:$16 sps:$4 sm:$0xff]   ;;  %v15041_v27 = vld [vmem:[%s21421_s1 + $0x17e4] ss:$16 sps:$4 sm:$0xff]  }
 0x2c0   :  { %10099 = vmatprep.subr.bf16.mxu0 %v14951_v34  ;;  %11124 = vmatprep.subr.bf16.mxu1 %v14954_v35  ;;  %v15044_v34 = vld [vmem:[%s21421_s1 + $0x17ec] ss:$16 sps:$4 sm:$0xff]   ;;  %v15039_v35 = vld [vmem:[%s21421_s1 + $0x17e0] ss:$16 sps:$4 sm:$0xff]  }
 0x2c2   :  { %10091 = vmatmul.mubr.bf16.vlgmr.msra.gmra.mrb[0].mxu0 %v11942_v30  ;;  %11116 = vmatmul.mubr.bf16.vlgmr.msra.gmra.mrb[0].mxu1 %v11942_v30  ;;  %v15042_v30 = vld [vmem:[%s21421_s1 + $0x17e8] ss:$16 sps:$4 sm:$0xff]  }
 0x2c3   :  { %10100 = vmatpush1.bf16.msra.mxu0 %v14949_v37  ;;  %11125 = vmatpush1.bf16.msra.mxu1 %v14952_v38  ;;  %v15049_v37 = vld [vmem:[%s21421_s1 + $0x1804] ss:$16 sps:$4 sm:$0xff]   ;;  %v15052_v38 = vld [vmem:[%s21421_s1 + $0x180c] ss:$16 sps:$4 sm:$0xff]  }
 0x2c4   :  { %10101 = vmatprep.subr.bf16.mxu0 %v14957_v39  ;;  %11126 = vmatprep.subr.bf16.mxu1 %v14960_v33  ;;  %v18716_v39 = vld [vmem:[%s21422_s0 + $0x60] sm:$0xff]  ;;  %v11944_v33 = vcombine.low %v18515_v36, %v18515_v36  ;;  %v15058_v36 = vld [vmem:[%s21421_s1 + $0x182c] ss:$16 sps:$4 sm:$0xff]  }
 0x2c5   :  { %10131 = vmatprep.mubr.bf16.mxu0 %v11945_v40  ;;  %11156 = vmatprep.mubr.bf16.mxu1 %v11945_v40  ;;  %v15047_v40 = vld [vmem:[%s21421_s1 + $0x1800] ss:$16 sps:$4 sm:$0xff]  }
 0x2c7   :  { %10102 = vmatpush1.bf16.msra.mxu0 %v14955_v41  ;;  %11127 = vmatpush1.bf16.msra.mxu1 %v14958_v42  ;;  %v15050_v41 = vld [vmem:[%s21421_s1 + $0x1808] ss:$16 sps:$4 sm:$0xff]   ;;  %v15055_v42 = vld [vmem:[%s21421_s1 + $0x1824] ss:$16 sps:$4 sm:$0xff]  }
 0x2c8   :  { %10103 = vmatprep.subr.bf16.mxu0 %v14963_v43  ;;  %11128 = vmatprep.subr.bf16.mxu1 %v14966_v44  ;;  %v11947_v43 = vcombine.high %v18716_v39, %v18716_v39  ;;  %v15053_v44 = vld [vmem:[%s21421_s1 + $0x1820] ss:$16 sps:$4 sm:$0xff]  }
 0x2cb   :  { %10104 = vmatpush1.bf16.msra.mxu0 %v14961_v45  ;;  %11129 = vmatpush1.bf16.msra.mxu1 %v14964_v46  ;;  %v15056_v45 = vld [vmem:[%s21421_s1 + $0x1828] ss:$16 sps:$4 sm:$0xff]   ;;  %v15061_v46 = vld [vmem:[%s21421_s1 + $0x1844] ss:$16 sps:$4 sm:$0xff]  }
 0x2cc   :  { %10105 = vmatprep.subr.bf16.mxu0 %v14969_v47  ;;  %11130 = vmatprep.subr.bf16.mxu1 %v14972_v48  ;;  %v15064_v47 = vld [vmem:[%s21421_s1 + $0x184c] ss:$16 sps:$4 sm:$0xff]   ;;  %v15059_v48 = vld [vmem:[%s21421_s1 + $0x1840] ss:$16 sps:$4 sm:$0xff]  }
 0x2cf   :  { %10106 = vmatpush1.bf16.msra.mxu0 %v14967_v49  ;;  %11131 = vmatpush1.bf16.msra.mxu1 %v14970_v50  ;;  %v15062_v49 = vld [vmem:[%s21421_s1 + $0x1848] ss:$16 sps:$4 sm:$0xff]   ;;  %v15067_v50 = vld [vmem:[%s21421_s1 + $0x1864] ss:$16 sps:$4 sm:$0xff]  }
 0x2d0   :  { %10107 = vmatprep.subr.bf16.mxu0 %v14975_v51  ;;  %11132 = vmatprep.subr.bf16.mxu1 %v14978_v52  ;;  %v15070_v51 = vld [vmem:[%s21421_s1 + $0x186c] ss:$16 sps:$4 sm:$0xff]   ;;  %v15065_v52 = vld [vmem:[%s21421_s1 + $0x1860] ss:$16 sps:$4 sm:$0xff]  }
 0x2d3   :  { %10108 = vmatpush1.bf16.msra.mxu0 %v14973_v53  ;;  %11133 = vmatpush1.bf16.msra.mxu1 %v14976_v54  ;;  %v15068_v53 = vld [vmem:[%s21421_s1 + $0x1868] ss:$16 sps:$4 sm:$0xff]   ;;  %v15073_v54 = vld [vmem:[%s21421_s1 + $0x1884] ss:$16 sps:$4 sm:$0xff]  }
 0x2d4   :  { %10109 = vmatprep.subr.bf16.mxu0 %v14981_v55  ;;  %11134 = vmatprep.subr.bf16.mxu1 %v14984_v56  ;;  %v15076_v55 = vld [vmem:[%s21421_s1 + $0x188c] ss:$16 sps:$4 sm:$0xff]   ;;  %v15071_v56 = vld [vmem:[%s21421_s1 + $0x1880] ss:$16 sps:$4 sm:$0xff]  }
 0x2d7   :  { %10110 = vmatpush1.bf16.msra.mxu0 %v14979_v57  ;;  %11135 = vmatpush1.bf16.msra.mxu1 %v14982_v58  ;;  %v15074_v57 = vld [vmem:[%s21421_s1 + $0x1888] ss:$16 sps:$4 sm:$0xff]   ;;  %v15079_v58 = vld [vmem:[%s21421_s1 + $0x18a4] ss:$16 sps:$4 sm:$0xff]  }
 0x2d8   :  { %10111 = vmatprep.subr.bf16.mxu0 %v14987_v59  ;;  %11136 = vmatprep.subr.bf16.mxu1 %v14990_v60  ;;  %v15082_v59 = vld [vmem:[%s21421_s1 + $0x18ac] ss:$16 sps:$4 sm:$0xff]   ;;  %v15077_v60 = vld [vmem:[%s21421_s1 + $0x18a0] ss:$16 sps:$4 sm:$0xff]  }
 0x2db   :  { %10112 = vmatpush1.bf16.msra.mxu0 %v14985_v61  ;;  %11137 = vmatpush1.bf16.msra.mxu1 %v14988_v62  ;;  %v15080_v61 = vld [vmem:[%s21421_s1 + $0x18a8] ss:$16 sps:$4 sm:$0xff]   ;;  %v15085_v62 = vld [vmem:[%s21421_s1 + $0x18c4] ss:$16 sps:$4 sm:$0xff]  }
 0x2dc   :  { %10113 = vmatprep.subr.bf16.mxu0 %v14993_v63  ;;  %11138 = vmatprep.subr.bf16.mxu1 %v14996_v0  ;;  %v15088_v63 = vld [vmem:[%s21421_s1 + $0x18cc] ss:$16 sps:$4 sm:$0xff]   ;;  %v15083_v0 = vld [vmem:[%s21421_s1 + $0x18c0] ss:$16 sps:$4 sm:$0xff]  }
 0x2df   :  { %10114 = vmatpush1.bf16.msra.mxu0 %v14991_v1  ;;  %11139 = vmatpush1.bf16.msra.mxu1 %v14994_v2  ;;  %v15086_v1 = vld [vmem:[%s21421_s1 + $0x18c8] ss:$16 sps:$4 sm:$0xff]   ;;  %v15091_v2 = vld [vmem:[%s21421_s1 + $0x18e4] ss:$16 sps:$4 sm:$0xff]  }
 0x2e0   :  { %10115 = vmatprep.subr.bf16.mxu0 %v14999_v3  ;;  %11140 = vmatprep.subr.bf16.mxu1 %v15002_v4  ;;  %v15094_v3 = vld [vmem:[%s21421_s1 + $0x18ec] ss:$16 sps:$4 sm:$0xff]   ;;  %v15089_v4 = vld [vmem:[%s21421_s1 + $0x18e0] ss:$16 sps:$4 sm:$0xff]  }
 0x2e3   :  { %10116 = vmatpush1.bf16.msra.mxu0 %v14997_v5  ;;  %11141 = vmatpush1.bf16.msra.mxu1 %v15000_v6  ;;  %v15092_v5 = vld [vmem:[%s21421_s1 + $0x18e8] ss:$16 sps:$4 sm:$0xff]   ;;  %v15097_v6 = vld [vmem:[%s21421_s1 + $0x1904] ss:$16 sps:$4 sm:$0xff]  }
 0x2e4   :  { %10117 = vmatprep.subr.bf16.mxu0 %v15005_v7  ;;  %11142 = vmatprep.subr.bf16.mxu1 %v15008_v8  ;;  %v15100_v7 = vld [vmem:[%s21421_s1 + $0x190c] ss:$16 sps:$4 sm:$0xff]   ;;  %v15095_v8 = vld [vmem:[%s21421_s1 + $0x1900] ss:$16 sps:$4 sm:$0xff]  }
 0x2e7   :  { %10118 = vmatpush1.bf16.msra.mxu0 %v15003_v9  ;;  %11143 = vmatpush1.bf16.msra.mxu1 %v15006_v10  ;;  %v15098_v9 = vld [vmem:[%s21421_s1 + $0x1908] ss:$16 sps:$4 sm:$0xff]   ;;  %v15103_v10 = vld [vmem:[%s21421_s1 + $0x1924] ss:$16 sps:$4 sm:$0xff]  }
 0x2e8   :  { %10119 = vmatprep.subr.bf16.mxu0 %v15011_v12  ;;  %11144 = vmatprep.subr.bf16.mxu1 %v15014_v13  ;;  %v15106_v12 = vld [vmem:[%s21421_s1 + $0x192c] ss:$16 sps:$4 sm:$0xff]   ;;  %v15101_v13 = vld [vmem:[%s21421_s1 + $0x1920] ss:$16 sps:$4 sm:$0xff]  }
 0x2eb   :  { %10120 = vmatpush1.bf16.msra.mxu0 %v15009_v15  ;;  %11145 = vmatpush1.bf16.msra.mxu1 %v15012_v11  ;;  %v15104_v15 = vld [vmem:[%s21421_s1 + $0x1928] ss:$16 sps:$4 sm:$0xff]   ;;  %v15109_v11 = vld [vmem:[%s21421_s1 + $0x1944] ss:$16 sps:$4 sm:$0xff]  }
 0x2ec   :  { %10121 = vmatprep.subr.bf16.mxu0 %v15017_v17  ;;  %11146 = vmatprep.subr.bf16.mxu1 %v15020_v14  ;;  %v15112_v17 = vld [vmem:[%s21421_s1 + $0x194c] ss:$16 sps:$4 sm:$0xff]   ;;  %v15107_v14 = vld [vmem:[%s21421_s1 + $0x1940] ss:$16 sps:$4 sm:$0xff]  }
 0x2ef   :  { %10122 = vmatpush1.bf16.msra.mxu0 %v15015_v19  ;;  %11147 = vmatpush1.bf16.msra.mxu1 %v15018_v20  ;;  %v15110_v19 = vld [vmem:[%s21421_s1 + $0x1948] ss:$16 sps:$4 sm:$0xff]   ;;  %v15115_v20 = vld [vmem:[%s21421_s1 + $0x1964] ss:$16 sps:$4 sm:$0xff]  }
 0x2f0   :  { %10123 = vmatprep.subr.bf16.mxu0 %v15023_v16  ;;  %11148 = vmatprep.subr.bf16.mxu1 %v15026_v22  ;;  %v15118_v16 = vld [vmem:[%s21421_s1 + $0x196c] ss:$16 sps:$4 sm:$0xff]   ;;  %v15113_v22 = vld [vmem:[%s21421_s1 + $0x1960] ss:$16 sps:$4 sm:$0xff]  }
 0x2f3   :  { %10124 = vmatpush1.bf16.msra.mxu0 %v15021_v23  ;;  %11149 = vmatpush1.bf16.msra.mxu1 %v15024_v18  ;;  %v15116_v23 = vld [vmem:[%s21421_s1 + $0x1968] ss:$16 sps:$4 sm:$0xff]   ;;  %v15121_v18 = vld [vmem:[%s21421_s1 + $0x1984] ss:$16 sps:$4 sm:$0xff]  }
 0x2f4   :  { %10125 = vmatprep.subr.bf16.mxu0 %v15029_v25  ;;  %11150 = vmatprep.subr.bf16.mxu1 %v15032_v26  ;;  %v15124_v25 = vld [vmem:[%s21421_s1 + $0x198c] ss:$16 sps:$4 sm:$0xff]   ;;  %v15119_v26 = vld [vmem:[%s21421_s1 + $0x1980] ss:$16 sps:$4 sm:$0xff]  }
 0x2f7   :  { %10126 = vmatpush1.bf16.msra.mxu0 %v15027_v21  ;;  %11151 = vmatpush1.bf16.msra.mxu1 %v15030_v28  ;;  %v15122_v21 = vld [vmem:[%s21421_s1 + $0x1988] ss:$16 sps:$4 sm:$0xff]   ;;  %v15127_v28 = vld [vmem:[%s21421_s1 + $0x19a4] ss:$16 sps:$4 sm:$0xff]  }
 0x2f8   :  { %10127 = vmatprep.subr.bf16.mxu0 %v15035_v29  ;;  %11152 = vmatprep.subr.bf16.mxu1 %v15038_v24  ;;  %v15130_v29 = vld [vmem:[%s21421_s1 + $0x19ac] ss:$16 sps:$4 sm:$0xff]   ;;  %v15125_v24 = vld [vmem:[%s21421_s1 + $0x19a0] ss:$16 sps:$4 sm:$0xff]  }
 0x2fb   :  { %10128 = vmatpush1.bf16.msra.mxu0 %v15033_v31  ;;  %11153 = vmatpush1.bf16.msra.mxu1 %v15036_v32  ;;  %v15128_v31 = vld [vmem:[%s21421_s1 + $0x19a8] ss:$16 sps:$4 sm:$0xff]   ;;  %v15133_v32 = vld [vmem:[%s21421_s1 + $0x19c4] ss:$16 sps:$4 sm:$0xff]  }
 0x2fc   :  { %10129 = vmatprep.subr.bf16.mxu0 %v15041_v27  ;;  %11154 = vmatprep.subr.bf16.mxu1 %v15044_v34  ;;  %v15136_v27 = vld [vmem:[%s21421_s1 + $0x19cc] ss:$16 sps:$4 sm:$0xff]   ;;  %v15131_v34 = vld [vmem:[%s21421_s1 + $0x19c0] ss:$16 sps:$4 sm:$0xff]  }
 0x2ff   :  { %10130 = vmatpush1.bf16.msra.mxu0 %v15039_v35  ;;  %11155 = vmatpush1.bf16.msra.mxu1 %v15042_v30  ;;  %v15134_v35 = vld [vmem:[%s21421_s1 + $0x19c8] ss:$16 sps:$4 sm:$0xff]   ;;  %v15139_v30 = vld [vmem:[%s21421_s1 + $0x19e4] ss:$16 sps:$4 sm:$0xff]  }
 0x300   :  { %10140 = vmatprep.subr.bf16.mxu0 %v15049_v37  ;;  %11165 = vmatprep.subr.bf16.mxu1 %v15052_v38  ;;  %v15142_v37 = vld [vmem:[%s21421_s1 + $0x19ec] ss:$16 sps:$4 sm:$0xff]   ;;  %v15137_v38 = vld [vmem:[%s21421_s1 + $0x19e0] ss:$16 sps:$4 sm:$0xff]  }
 0x302   :  { %10132 = vmatmul.mubr.bf16.vlgmr.msra.gmra.mrb[0].mxu0 %v11944_v33  ;;  %11157 = vmatmul.mubr.bf16.vlgmr.msra.gmra.mrb[0].mxu1 %v11944_v33  ;;  %v15140_v33 = vld [vmem:[%s21421_s1 + $0x19e8] ss:$16 sps:$4 sm:$0xff]  }
 0x303   :  { %10141 = vmatpush1.bf16.msra.mxu0 %v15047_v40  ;;  %11166 = vmatpush1.bf16.msra.mxu1 %v15050_v41  ;;  %v15147_v40 = vld [vmem:[%s21421_s1 + $0x1a04] ss:$16 sps:$4 sm:$0xff]   ;;  %v15150_v41 = vld [vmem:[%s21421_s1 + $0x1a0c] ss:$16 sps:$4 sm:$0xff]  }
 0x304   :  { %10142 = vmatprep.subr.bf16.mxu0 %v15055_v42  ;;  %11167 = vmatprep.subr.bf16.mxu1 %v15058_v36  ;;  %v18917_v42 = vld [vmem:[%s21422_s0 + $0x68] sm:$0xff]  ;;  %v11946_v36 = vcombine.low %v18716_v39, %v18716_v39 }
 0x305   :  { %10172 = vmatprep.mubr.bf16.mxu0 %v11947_v43  ;;  %11197 = vmatprep.mubr.bf16.mxu1 %v11947_v43  ;;  %v15145_v43 = vld [vmem:[%s21421_s1 + $0x1a00] ss:$16 sps:$4 sm:$0xff]   ;;  %v15156_v39 = vld [vmem:[%s21421_s1 + $0x1a2c] ss:$16 sps:$4 sm:$0xff]  }
 0x307   :  { %10143 = vmatpush1.bf16.msra.mxu0 %v15053_v44  ;;  %11168 = vmatpush1.bf16.msra.mxu1 %v15056_v45  ;;  %v15148_v44 = vld [vmem:[%s21421_s1 + $0x1a08] ss:$16 sps:$4 sm:$0xff]   ;;  %v15153_v45 = vld [vmem:[%s21421_s1 + $0x1a24] ss:$16 sps:$4 sm:$0xff]  }
 0x308   :  { %10144 = vmatprep.subr.bf16.mxu0 %v15061_v46  ;;  %11169 = vmatprep.subr.bf16.mxu1 %v15064_v47  ;;  %v11949_v46 = vcombine.high %v18917_v42, %v18917_v42  ;;  %v15151_v47 = vld [vmem:[%s21421_s1 + $0x1a20] ss:$16 sps:$4 sm:$0xff]  }
 0x30b   :  { %10145 = vmatpush1.bf16.msra.mxu0 %v15059_v48  ;;  %11170 = vmatpush1.bf16.msra.mxu1 %v15062_v49  ;;  %v15154_v48 = vld [vmem:[%s21421_s1 + $0x1a28] ss:$16 sps:$4 sm:$0xff]   ;;  %v15159_v49 = vld [vmem:[%s21421_s1 + $0x1a44] ss:$16 sps:$4 sm:$0xff]  }
 0x30c   :  { %10146 = vmatprep.subr.bf16.mxu0 %v15067_v50  ;;  %11171 = vmatprep.subr.bf16.mxu1 %v15070_v51  ;;  %v15162_v50 = vld [vmem:[%s21421_s1 + $0x1a4c] ss:$16 sps:$4 sm:$0xff]   ;;  %v15157_v51 = vld [vmem:[%s21421_s1 + $0x1a40] ss:$16 sps:$4 sm:$0xff]  }
 0x30f   :  { %10147 = vmatpush1.bf16.msra.mxu0 %v15065_v52  ;;  %11172 = vmatpush1.bf16.msra.mxu1 %v15068_v53  ;;  %v15160_v52 = vld [vmem:[%s21421_s1 + $0x1a48] ss:$16 sps:$4 sm:$0xff]   ;;  %v15165_v53 = vld [vmem:[%s21421_s1 + $0x1a64] ss:$16 sps:$4 sm:$0xff]  }
 0x310   :  { %10148 = vmatprep.subr.bf16.mxu0 %v15073_v54  ;;  %11173 = vmatprep.subr.bf16.mxu1 %v15076_v55  ;;  %v15168_v54 = vld [vmem:[%s21421_s1 + $0x1a6c] ss:$16 sps:$4 sm:$0xff]   ;;  %v15163_v55 = vld [vmem:[%s21421_s1 + $0x1a60] ss:$16 sps:$4 sm:$0xff]  }
 0x313   :  { %10149 = vmatpush1.bf16.msra.mxu0 %v15071_v56  ;;  %11174 = vmatpush1.bf16.msra.mxu1 %v15074_v57  ;;  %v15166_v56 = vld [vmem:[%s21421_s1 + $0x1a68] ss:$16 sps:$4 sm:$0xff]   ;;  %v15171_v57 = vld [vmem:[%s21421_s1 + $0x1a84] ss:$16 sps:$4 sm:$0xff]  }
 0x314   :  { %10150 = vmatprep.subr.bf16.mxu0 %v15079_v58  ;;  %11175 = vmatprep.subr.bf16.mxu1 %v15082_v59  ;;  %v15174_v58 = vld [vmem:[%s21421_s1 + $0x1a8c] ss:$16 sps:$4 sm:$0xff]   ;;  %v15169_v59 = vld [vmem:[%s21421_s1 + $0x1a80] ss:$16 sps:$4 sm:$0xff]  }
 0x317   :  { %10151 = vmatpush1.bf16.msra.mxu0 %v15077_v60  ;;  %11176 = vmatpush1.bf16.msra.mxu1 %v15080_v61  ;;  %v15172_v60 = vld [vmem:[%s21421_s1 + $0x1a88] ss:$16 sps:$4 sm:$0xff]   ;;  %v15177_v61 = vld [vmem:[%s21421_s1 + $0x1aa4] ss:$16 sps:$4 sm:$0xff]  }
 0x318   :  { %10152 = vmatprep.subr.bf16.mxu0 %v15085_v62  ;;  %11177 = vmatprep.subr.bf16.mxu1 %v15088_v63  ;;  %v15180_v62 = vld [vmem:[%s21421_s1 + $0x1aac] ss:$16 sps:$4 sm:$0xff]   ;;  %v15175_v63 = vld [vmem:[%s21421_s1 + $0x1aa0] ss:$16 sps:$4 sm:$0xff]  }
 0x31b   :  { %10153 = vmatpush1.bf16.msra.mxu0 %v15083_v0  ;;  %11178 = vmatpush1.bf16.msra.mxu1 %v15086_v1  ;;  %v15178_v0 = vld [vmem:[%s21421_s1 + $0x1aa8] ss:$16 sps:$4 sm:$0xff]   ;;  %v15183_v1 = vld [vmem:[%s21421_s1 + $0x1ac4] ss:$16 sps:$4 sm:$0xff]  }
 0x31c   :  { %10154 = vmatprep.subr.bf16.mxu0 %v15091_v2  ;;  %11179 = vmatprep.subr.bf16.mxu1 %v15094_v3  ;;  %v15186_v2 = vld [vmem:[%s21421_s1 + $0x1acc] ss:$16 sps:$4 sm:$0xff]   ;;  %v15181_v3 = vld [vmem:[%s21421_s1 + $0x1ac0] ss:$16 sps:$4 sm:$0xff]  }
 0x31f   :  { %10155 = vmatpush1.bf16.msra.mxu0 %v15089_v4  ;;  %11180 = vmatpush1.bf16.msra.mxu1 %v15092_v5  ;;  %v15184_v4 = vld [vmem:[%s21421_s1 + $0x1ac8] ss:$16 sps:$4 sm:$0xff]   ;;  %v15189_v5 = vld [vmem:[%s21421_s1 + $0x1ae4] ss:$16 sps:$4 sm:$0xff]  }
 0x320   :  { %10156 = vmatprep.subr.bf16.mxu0 %v15097_v6  ;;  %11181 = vmatprep.subr.bf16.mxu1 %v15100_v7  ;;  %v15192_v6 = vld [vmem:[%s21421_s1 + $0x1aec] ss:$16 sps:$4 sm:$0xff]   ;;  %v15187_v7 = vld [vmem:[%s21421_s1 + $0x1ae0] ss:$16 sps:$4 sm:$0xff]  }
 0x323   :  { %10157 = vmatpush1.bf16.msra.mxu0 %v15095_v8  ;;  %11182 = vmatpush1.bf16.msra.mxu1 %v15098_v9  ;;  %v15190_v8 = vld [vmem:[%s21421_s1 + $0x1ae8] ss:$16 sps:$4 sm:$0xff]   ;;  %v15195_v9 = vld [vmem:[%s21421_s1 + $0x1b04] ss:$16 sps:$4 sm:$0xff]  }
 0x324   :  { %10158 = vmatprep.subr.bf16.mxu0 %v15103_v10  ;;  %11183 = vmatprep.subr.bf16.mxu1 %v15106_v12  ;;  %v15198_v10 = vld [vmem:[%s21421_s1 + $0x1b0c] ss:$16 sps:$4 sm:$0xff]   ;;  %v15193_v12 = vld [vmem:[%s21421_s1 + $0x1b00] ss:$16 sps:$4 sm:$0xff]  }
 0x327   :  { %10159 = vmatpush1.bf16.msra.mxu0 %v15101_v13  ;;  %11184 = vmatpush1.bf16.msra.mxu1 %v15104_v15  ;;  %v15196_v13 = vld [vmem:[%s21421_s1 + $0x1b08] ss:$16 sps:$4 sm:$0xff]   ;;  %v15201_v15 = vld [vmem:[%s21421_s1 + $0x1b24] ss:$16 sps:$4 sm:$0xff]  }
 0x328   :  { %10160 = vmatprep.subr.bf16.mxu0 %v15109_v11  ;;  %11185 = vmatprep.subr.bf16.mxu1 %v15112_v17  ;;  %v15204_v11 = vld [vmem:[%s21421_s1 + $0x1b2c] ss:$16 sps:$4 sm:$0xff]   ;;  %v15199_v17 = vld [vmem:[%s21421_s1 + $0x1b20] ss:$16 sps:$4 sm:$0xff]  }
 0x32b   :  { %10161 = vmatpush1.bf16.msra.mxu0 %v15107_v14  ;;  %11186 = vmatpush1.bf16.msra.mxu1 %v15110_v19  ;;  %v15202_v14 = vld [vmem:[%s21421_s1 + $0x1b28] ss:$16 sps:$4 sm:$0xff]   ;;  %v15207_v19 = vld [vmem:[%s21421_s1 + $0x1b44] ss:$16 sps:$4 sm:$0xff]  }
 0x32c   :  { %10162 = vmatprep.subr.bf16.mxu0 %v15115_v20  ;;  %11187 = vmatprep.subr.bf16.mxu1 %v15118_v16  ;;  %v15210_v20 = vld [vmem:[%s21421_s1 + $0x1b4c] ss:$16 sps:$4 sm:$0xff]   ;;  %v15205_v16 = vld [vmem:[%s21421_s1 + $0x1b40] ss:$16 sps:$4 sm:$0xff]  }
 0x32f   :  { %10163 = vmatpush1.bf16.msra.mxu0 %v15113_v22  ;;  %11188 = vmatpush1.bf16.msra.mxu1 %v15116_v23  ;;  %v15208_v22 = vld [vmem:[%s21421_s1 + $0x1b48] ss:$16 sps:$4 sm:$0xff]   ;;  %v15213_v23 = vld [vmem:[%s21421_s1 + $0x1b64] ss:$16 sps:$4 sm:$0xff]  }
 0x330   :  { %10164 = vmatprep.subr.bf16.mxu0 %v15121_v18  ;;  %11189 = vmatprep.subr.bf16.mxu1 %v15124_v25  ;;  %v15216_v18 = vld [vmem:[%s21421_s1 + $0x1b6c] ss:$16 sps:$4 sm:$0xff]   ;;  %v15211_v25 = vld [vmem:[%s21421_s1 + $0x1b60] ss:$16 sps:$4 sm:$0xff]  }
 0x333   :  { %10165 = vmatpush1.bf16.msra.mxu0 %v15119_v26  ;;  %11190 = vmatpush1.bf16.msra.mxu1 %v15122_v21  ;;  %v15214_v26 = vld [vmem:[%s21421_s1 + $0x1b68] ss:$16 sps:$4 sm:$0xff]   ;;  %v15219_v21 = vld [vmem:[%s21421_s1 + $0x1b84] ss:$16 sps:$4 sm:$0xff]  }
 0x334   :  { %10166 = vmatprep.subr.bf16.mxu0 %v15127_v28  ;;  %11191 = vmatprep.subr.bf16.mxu1 %v15130_v29  ;;  %v15222_v28 = vld [vmem:[%s21421_s1 + $0x1b8c] ss:$16 sps:$4 sm:$0xff]   ;;  %v15217_v29 = vld [vmem:[%s21421_s1 + $0x1b80] ss:$16 sps:$4 sm:$0xff]  }
 0x337   :  { %10167 = vmatpush1.bf16.msra.mxu0 %v15125_v24  ;;  %11192 = vmatpush1.bf16.msra.mxu1 %v15128_v31  ;;  %v15220_v24 = vld [vmem:[%s21421_s1 + $0x1b88] ss:$16 sps:$4 sm:$0xff]   ;;  %v15225_v31 = vld [vmem:[%s21421_s1 + $0x1ba4] ss:$16 sps:$4 sm:$0xff]  }
 0x338   :  { %10168 = vmatprep.subr.bf16.mxu0 %v15133_v32  ;;  %11193 = vmatprep.subr.bf16.mxu1 %v15136_v27  ;;  %v15228_v32 = vld [vmem:[%s21421_s1 + $0x1bac] ss:$16 sps:$4 sm:$0xff]   ;;  %v15223_v27 = vld [vmem:[%s21421_s1 + $0x1ba0] ss:$16 sps:$4 sm:$0xff]  }
 0x33b   :  { %10169 = vmatpush1.bf16.msra.mxu0 %v15131_v34  ;;  %11194 = vmatpush1.bf16.msra.mxu1 %v15134_v35  ;;  %v15226_v34 = vld [vmem:[%s21421_s1 + $0x1ba8] ss:$16 sps:$4 sm:$0xff]   ;;  %v15231_v35 = vld [vmem:[%s21421_s1 + $0x1bc4] ss:$16 sps:$4 sm:$0xff]  }
 0x33c   :  { %10170 = vmatprep.subr.bf16.mxu0 %v15139_v30  ;;  %11195 = vmatprep.subr.bf16.mxu1 %v15142_v37  ;;  %v15234_v30 = vld [vmem:[%s21421_s1 + $0x1bcc] ss:$16 sps:$4 sm:$0xff]   ;;  %v15229_v37 = vld [vmem:[%s21421_s1 + $0x1bc0] ss:$16 sps:$4 sm:$0xff]  }
 0x33f   :  { %10171 = vmatpush1.bf16.msra.mxu0 %v15137_v38  ;;  %11196 = vmatpush1.bf16.msra.mxu1 %v15140_v33  ;;  %v15232_v38 = vld [vmem:[%s21421_s1 + $0x1bc8] ss:$16 sps:$4 sm:$0xff]   ;;  %v15237_v33 = vld [vmem:[%s21421_s1 + $0x1be4] ss:$16 sps:$4 sm:$0xff]  }
 0x340   :  { %10181 = vmatprep.subr.bf16.mxu0 %v15147_v40  ;;  %11206 = vmatprep.subr.bf16.mxu1 %v15150_v41  ;;  %v15240_v40 = vld [vmem:[%s21421_s1 + $0x1bec] ss:$16 sps:$4 sm:$0xff]   ;;  %v15235_v41 = vld [vmem:[%s21421_s1 + $0x1be0] ss:$16 sps:$4 sm:$0xff]  }
 0x342   :  { %10173 = vmatmul.mubr.bf16.vlgmr.msra.gmra.mrb[0].mxu0 %v11946_v36  ;;  %11198 = vmatmul.mubr.bf16.vlgmr.msra.gmra.mrb[0].mxu1 %v11946_v36  ;;  %v15238_v36 = vld [vmem:[%s21421_s1 + $0x1be8] ss:$16 sps:$4 sm:$0xff]  }
 0x343   :  { %10182 = vmatpush1.bf16.msra.mxu0 %v15145_v43  ;;  %11207 = vmatpush1.bf16.msra.mxu1 %v15148_v44  ;;  %v15245_v43 = vld [vmem:[%s21421_s1 + $0x1c04] ss:$16 sps:$4 sm:$0xff]   ;;  %v15248_v44 = vld [vmem:[%s21421_s1 + $0x1c0c] ss:$16 sps:$4 sm:$0xff]  }
 0x344   :  { %10183 = vmatprep.subr.bf16.mxu0 %v15153_v45  ;;  %11208 = vmatprep.subr.bf16.mxu1 %v15156_v39  ;;  %v11948_v45 = vcombine.low %v18917_v42, %v18917_v42  ;;  %v19120_v39 = vld [vmem:[%s21422_s0 + $0x70] sm:$0xff] }
 0x345   :  { %10213 = vmatprep.mubr.bf16.mxu0 %v11949_v46  ;;  %11238 = vmatprep.mubr.bf16.mxu1 %v11949_v46  ;;  %v15243_v46 = vld [vmem:[%s21421_s1 + $0x1c00] ss:$16 sps:$4 sm:$0xff]   ;;  %v15251_v42 = vld [vmem:[%s21421_s1 + $0x1c24] ss:$16 sps:$4 sm:$0xff]  }
 0x347   :  { %10184 = vmatpush1.bf16.msra.mxu0 %v15151_v47  ;;  %11209 = vmatpush1.bf16.msra.mxu1 %v15154_v48  ;;  %v15246_v47 = vld [vmem:[%s21421_s1 + $0x1c08] ss:$16 sps:$4 sm:$0xff]   ;;  %v15254_v48 = vld [vmem:[%s21421_s1 + $0x1c2c] ss:$16 sps:$4 sm:$0xff]  }
 0x348   :  { %10185 = vmatprep.subr.bf16.mxu0 %v15159_v49  ;;  %11210 = vmatprep.subr.bf16.mxu1 %v15162_v50  ;;  %v11951_v49 = vcombine.high %v19120_v39, %v19120_v39  ;;  %v15249_v50 = vld [vmem:[%s21421_s1 + $0x1c20] ss:$16 sps:$4 sm:$0xff]  }
 0x34b   :  { %10186 = vmatpush1.bf16.msra.mxu0 %v15157_v51  ;;  %11211 = vmatpush1.bf16.msra.mxu1 %v15160_v52  ;;  %v15252_v51 = vld [vmem:[%s21421_s1 + $0x1c28] ss:$16 sps:$4 sm:$0xff]   ;;  %v15257_v52 = vld [vmem:[%s21421_s1 + $0x1c44] ss:$16 sps:$4 sm:$0xff]  }
 0x34c   :  { %10187 = vmatprep.subr.bf16.mxu0 %v15165_v53  ;;  %11212 = vmatprep.subr.bf16.mxu1 %v15168_v54  ;;  %v15260_v53 = vld [vmem:[%s21421_s1 + $0x1c4c] ss:$16 sps:$4 sm:$0xff]   ;;  %v15255_v54 = vld [vmem:[%s21421_s1 + $0x1c40] ss:$16 sps:$4 sm:$0xff]  }
 0x34f   :  { %10188 = vmatpush1.bf16.msra.mxu0 %v15163_v55  ;;  %11213 = vmatpush1.bf16.msra.mxu1 %v15166_v56  ;;  %v15258_v55 = vld [vmem:[%s21421_s1 + $0x1c48] ss:$16 sps:$4 sm:$0xff]   ;;  %v15263_v56 = vld [vmem:[%s21421_s1 + $0x1c64] ss:$16 sps:$4 sm:$0xff]  }
 0x350   :  { %10189 = vmatprep.subr.bf16.mxu0 %v15171_v57  ;;  %11214 = vmatprep.subr.bf16.mxu1 %v15174_v58  ;;  %v15266_v57 = vld [vmem:[%s21421_s1 + $0x1c6c] ss:$16 sps:$4 sm:$0xff]   ;;  %v15261_v58 = vld [vmem:[%s21421_s1 + $0x1c60] ss:$16 sps:$4 sm:$0xff]  }
 0x353   :  { %10190 = vmatpush1.bf16.msra.mxu0 %v15169_v59  ;;  %11215 = vmatpush1.bf16.msra.mxu1 %v15172_v60  ;;  %v15264_v59 = vld [vmem:[%s21421_s1 + $0x1c68] ss:$16 sps:$4 sm:$0xff]   ;;  %v15269_v60 = vld [vmem:[%s21421_s1 + $0x1c84] ss:$16 sps:$4 sm:$0xff]  }
 0x354   :  { %10191 = vmatprep.subr.bf16.mxu0 %v15177_v61  ;;  %11216 = vmatprep.subr.bf16.mxu1 %v15180_v62  ;;  %v15272_v61 = vld [vmem:[%s21421_s1 + $0x1c8c] ss:$16 sps:$4 sm:$0xff]   ;;  %v15267_v62 = vld [vmem:[%s21421_s1 + $0x1c80] ss:$16 sps:$4 sm:$0xff]  }
 0x357   :  { %10192 = vmatpush1.bf16.msra.mxu0 %v15175_v63  ;;  %11217 = vmatpush1.bf16.msra.mxu1 %v15178_v0  ;;  %v15270_v63 = vld [vmem:[%s21421_s1 + $0x1c88] ss:$16 sps:$4 sm:$0xff]   ;;  %v15275_v0 = vld [vmem:[%s21421_s1 + $0x1ca4] ss:$16 sps:$4 sm:$0xff]  }
 0x358   :  { %10193 = vmatprep.subr.bf16.mxu0 %v15183_v1  ;;  %11218 = vmatprep.subr.bf16.mxu1 %v15186_v2  ;;  %v15278_v1 = vld [vmem:[%s21421_s1 + $0x1cac] ss:$16 sps:$4 sm:$0xff]   ;;  %v15273_v2 = vld [vmem:[%s21421_s1 + $0x1ca0] ss:$16 sps:$4 sm:$0xff]  }
 0x35b   :  { %10194 = vmatpush1.bf16.msra.mxu0 %v15181_v3  ;;  %11219 = vmatpush1.bf16.msra.mxu1 %v15184_v4  ;;  %v15276_v3 = vld [vmem:[%s21421_s1 + $0x1ca8] ss:$16 sps:$4 sm:$0xff]   ;;  %v15281_v4 = vld [vmem:[%s21421_s1 + $0x1cc4] ss:$16 sps:$4 sm:$0xff]  }
 0x35c   :  { %10195 = vmatprep.subr.bf16.mxu0 %v15189_v5  ;;  %11220 = vmatprep.subr.bf16.mxu1 %v15192_v6  ;;  %v15284_v5 = vld [vmem:[%s21421_s1 + $0x1ccc] ss:$16 sps:$4 sm:$0xff]   ;;  %v15279_v6 = vld [vmem:[%s21421_s1 + $0x1cc0] ss:$16 sps:$4 sm:$0xff]  }
 0x35f   :  { %10196 = vmatpush1.bf16.msra.mxu0 %v15187_v7  ;;  %11221 = vmatpush1.bf16.msra.mxu1 %v15190_v8  ;;  %v15282_v7 = vld [vmem:[%s21421_s1 + $0x1cc8] ss:$16 sps:$4 sm:$0xff]   ;;  %v15287_v8 = vld [vmem:[%s21421_s1 + $0x1ce4] ss:$16 sps:$4 sm:$0xff]  }
 0x360   :  { %10197 = vmatprep.subr.bf16.mxu0 %v15195_v9  ;;  %11222 = vmatprep.subr.bf16.mxu1 %v15198_v10  ;;  %v15290_v9 = vld [vmem:[%s21421_s1 + $0x1cec] ss:$16 sps:$4 sm:$0xff]   ;;  %v15285_v10 = vld [vmem:[%s21421_s1 + $0x1ce0] ss:$16 sps:$4 sm:$0xff]  }
 0x363   :  { %10198 = vmatpush1.bf16.msra.mxu0 %v15193_v12  ;;  %11223 = vmatpush1.bf16.msra.mxu1 %v15196_v13  ;;  %v15288_v12 = vld [vmem:[%s21421_s1 + $0x1ce8] ss:$16 sps:$4 sm:$0xff]   ;;  %v15293_v13 = vld [vmem:[%s21421_s1 + $0x1d04] ss:$16 sps:$4 sm:$0xff]  }
 0x364   :  { %10199 = vmatprep.subr.bf16.mxu0 %v15201_v15  ;;  %11224 = vmatprep.subr.bf16.mxu1 %v15204_v11  ;;  %v15296_v15 = vld [vmem:[%s21421_s1 + $0x1d0c] ss:$16 sps:$4 sm:$0xff]   ;;  %v15291_v11 = vld [vmem:[%s21421_s1 + $0x1d00] ss:$16 sps:$4 sm:$0xff]  }
 0x367   :  { %10200 = vmatpush1.bf16.msra.mxu0 %v15199_v17  ;;  %11225 = vmatpush1.bf16.msra.mxu1 %v15202_v14  ;;  %v15294_v17 = vld [vmem:[%s21421_s1 + $0x1d08] ss:$16 sps:$4 sm:$0xff]   ;;  %v15299_v14 = vld [vmem:[%s21421_s1 + $0x1d24] ss:$16 sps:$4 sm:$0xff]  }
 0x368   :  { %10201 = vmatprep.subr.bf16.mxu0 %v15207_v19  ;;  %11226 = vmatprep.subr.bf16.mxu1 %v15210_v20  ;;  %v15302_v19 = vld [vmem:[%s21421_s1 + $0x1d2c] ss:$16 sps:$4 sm:$0xff]   ;;  %v15297_v20 = vld [vmem:[%s21421_s1 + $0x1d20] ss:$16 sps:$4 sm:$0xff]  }
 0x36b   :  { %10202 = vmatpush1.bf16.msra.mxu0 %v15205_v16  ;;  %11227 = vmatpush1.bf16.msra.mxu1 %v15208_v22  ;;  %v15300_v16 = vld [vmem:[%s21421_s1 + $0x1d28] ss:$16 sps:$4 sm:$0xff]   ;;  %v15305_v22 = vld [vmem:[%s21421_s1 + $0x1d44] ss:$16 sps:$4 sm:$0xff]  }
 0x36c   :  { %10203 = vmatprep.subr.bf16.mxu0 %v15213_v23  ;;  %11228 = vmatprep.subr.bf16.mxu1 %v15216_v18  ;;  %v15308_v23 = vld [vmem:[%s21421_s1 + $0x1d4c] ss:$16 sps:$4 sm:$0xff]   ;;  %v15303_v18 = vld [vmem:[%s21421_s1 + $0x1d40] ss:$16 sps:$4 sm:$0xff]  }
 0x36f   :  { %10204 = vmatpush1.bf16.msra.mxu0 %v15211_v25  ;;  %11229 = vmatpush1.bf16.msra.mxu1 %v15214_v26  ;;  %v15306_v25 = vld [vmem:[%s21421_s1 + $0x1d48] ss:$16 sps:$4 sm:$0xff]   ;;  %v15311_v26 = vld [vmem:[%s21421_s1 + $0x1d64] ss:$16 sps:$4 sm:$0xff]  }
 0x370   :  { %10205 = vmatprep.subr.bf16.mxu0 %v15219_v21  ;;  %11230 = vmatprep.subr.bf16.mxu1 %v15222_v28  ;;  %v15314_v21 = vld [vmem:[%s21421_s1 + $0x1d6c] ss:$16 sps:$4 sm:$0xff]   ;;  %v15309_v28 = vld [vmem:[%s21421_s1 + $0x1d60] ss:$16 sps:$4 sm:$0xff]  }
 0x373   :  { %10206 = vmatpush1.bf16.msra.mxu0 %v15217_v29  ;;  %11231 = vmatpush1.bf16.msra.mxu1 %v15220_v24  ;;  %v15312_v29 = vld [vmem:[%s21421_s1 + $0x1d68] ss:$16 sps:$4 sm:$0xff]   ;;  %v15317_v24 = vld [vmem:[%s21421_s1 + $0x1d84] ss:$16 sps:$4 sm:$0xff]  }
 0x374   :  { %10207 = vmatprep.subr.bf16.mxu0 %v15225_v31  ;;  %11232 = vmatprep.subr.bf16.mxu1 %v15228_v32  ;;  %v15320_v31 = vld [vmem:[%s21421_s1 + $0x1d8c] ss:$16 sps:$4 sm:$0xff]   ;;  %v15315_v32 = vld [vmem:[%s21421_s1 + $0x1d80] ss:$16 sps:$4 sm:$0xff]  }
 0x377   :  { %10208 = vmatpush1.bf16.msra.mxu0 %v15223_v27  ;;  %11233 = vmatpush1.bf16.msra.mxu1 %v15226_v34  ;;  %v15318_v27 = vld [vmem:[%s21421_s1 + $0x1d88] ss:$16 sps:$4 sm:$0xff]   ;;  %v15323_v34 = vld [vmem:[%s21421_s1 + $0x1da4] ss:$16 sps:$4 sm:$0xff]  }
 0x378   :  { %10209 = vmatprep.subr.bf16.mxu0 %v15231_v35  ;;  %11234 = vmatprep.subr.bf16.mxu1 %v15234_v30  ;;  %v15326_v35 = vld [vmem:[%s21421_s1 + $0x1dac] ss:$16 sps:$4 sm:$0xff]   ;;  %v15321_v30 = vld [vmem:[%s21421_s1 + $0x1da0] ss:$16 sps:$4 sm:$0xff]  }
 0x37b   :  { %10210 = vmatpush1.bf16.msra.mxu0 %v15229_v37  ;;  %11235 = vmatpush1.bf16.msra.mxu1 %v15232_v38  ;;  %v15324_v37 = vld [vmem:[%s21421_s1 + $0x1da8] ss:$16 sps:$4 sm:$0xff]   ;;  %v15329_v38 = vld [vmem:[%s21421_s1 + $0x1dc4] ss:$16 sps:$4 sm:$0xff]  }
 0x37c   :  { %10211 = vmatprep.subr.bf16.mxu0 %v15237_v33  ;;  %11236 = vmatprep.subr.bf16.mxu1 %v15240_v40  ;;  %v15332_v33 = vld [vmem:[%s21421_s1 + $0x1dcc] ss:$16 sps:$4 sm:$0xff]   ;;  %v15327_v40 = vld [vmem:[%s21421_s1 + $0x1dc0] ss:$16 sps:$4 sm:$0xff]  }
 0x37f   :  { %10212 = vmatpush1.bf16.msra.mxu0 %v15235_v41  ;;  %11237 = vmatpush1.bf16.msra.mxu1 %v15238_v36  ;;  %v15330_v41 = vld [vmem:[%s21421_s1 + $0x1dc8] ss:$16 sps:$4 sm:$0xff]   ;;  %v15335_v36 = vld [vmem:[%s21421_s1 + $0x1de4] ss:$16 sps:$4 sm:$0xff]  }
 0x380   :  { %10222 = vmatprep.subr.bf16.mxu0 %v15245_v43  ;;  %11247 = vmatprep.subr.bf16.mxu1 %v15248_v44  ;;  %v15338_v43 = vld [vmem:[%s21421_s1 + $0x1dec] ss:$16 sps:$4 sm:$0xff]   ;;  %v15333_v44 = vld [vmem:[%s21421_s1 + $0x1de0] ss:$16 sps:$4 sm:$0xff]  }
 0x382   :  { %10214 = vmatmul.mubr.bf16.vlgmr.msra.gmra.mrb[0].mxu0 %v11948_v45  ;;  %11239 = vmatmul.mubr.bf16.vlgmr.msra.gmra.mrb[0].mxu1 %v11948_v45  ;;  %v15336_v45 = vld [vmem:[%s21421_s1 + $0x1de8] ss:$16 sps:$4 sm:$0xff]  }
 0x383   :  { %10223 = vmatpush1.bf16.msra.mxu0 %v15243_v46  ;;  %11248 = vmatpush1.bf16.msra.mxu1 %v15246_v47  ;;  %v15343_v46 = vld [vmem:[%s21421_s1 + $0x1e04] ss:$16 sps:$4 sm:$0xff]   ;;  %v15346_v47 = vld [vmem:[%s21421_s1 + $0x1e0c] ss:$16 sps:$4 sm:$0xff]  }
 0x384   :  { %10224 = vmatprep.subr.bf16.mxu0 %v15251_v42  ;;  %11249 = vmatprep.subr.bf16.mxu1 %v15254_v48  ;;  %v11950_v42 = vcombine.low %v19120_v39, %v19120_v39  ;;  %v19321_v48 = vld [vmem:[%s21422_s0 + $0x78] sm:$0xff]  ;;  %v15349_v39 = vld [vmem:[%s21421_s1 + $0x1e24] ss:$16 sps:$4 sm:$0xff]  }
 0x385   :  { %10254 = vmatprep.mubr.bf16.mxu0 %v11951_v49  ;;  %11279 = vmatprep.mubr.bf16.mxu1 %v11951_v49  ;;  %v15341_v49 = vld [vmem:[%s21421_s1 + $0x1e00] ss:$16 sps:$4 sm:$0xff]  }
 0x387   :  { %10225 = vmatpush1.bf16.msra.mxu0 %v15249_v50  ;;  %11250 = vmatpush1.bf16.msra.mxu1 %v15252_v51  ;;  %v15344_v50 = vld [vmem:[%s21421_s1 + $0x1e08] ss:$16 sps:$4 sm:$0xff]   ;;  %v15352_v51 = vld [vmem:[%s21421_s1 + $0x1e2c] ss:$16 sps:$4 sm:$0xff]  }
 0x388   :  { %10226 = vmatprep.subr.bf16.mxu0 %v15257_v52  ;;  %11251 = vmatprep.subr.bf16.mxu1 %v15260_v53  ;;  %v11953_v52 = vcombine.high %v19321_v48, %v19321_v48  ;;  %v15347_v53 = vld [vmem:[%s21421_s1 + $0x1e20] ss:$16 sps:$4 sm:$0xff]  }
 0x38b   :  { %10227 = vmatpush1.bf16.msra.mxu0 %v15255_v54  ;;  %11252 = vmatpush1.bf16.msra.mxu1 %v15258_v55  ;;  %v15350_v54 = vld [vmem:[%s21421_s1 + $0x1e28] ss:$16 sps:$4 sm:$0xff]   ;;  %v15355_v55 = vld [vmem:[%s21421_s1 + $0x1e44] ss:$16 sps:$4 sm:$0xff]  }
 0x38c   :  { %10228 = vmatprep.subr.bf16.mxu0 %v15263_v56  ;;  %11253 = vmatprep.subr.bf16.mxu1 %v15266_v57  ;;  %v15358_v56 = vld [vmem:[%s21421_s1 + $0x1e4c] ss:$16 sps:$4 sm:$0xff]   ;;  %v15353_v57 = vld [vmem:[%s21421_s1 + $0x1e40] ss:$16 sps:$4 sm:$0xff]  }
 0x38f   :  { %10229 = vmatpush1.bf16.msra.mxu0 %v15261_v58  ;;  %11254 = vmatpush1.bf16.msra.mxu1 %v15264_v59  ;;  %v15356_v58 = vld [vmem:[%s21421_s1 + $0x1e48] ss:$16 sps:$4 sm:$0xff]   ;;  %v15361_v59 = vld [vmem:[%s21421_s1 + $0x1e64] ss:$16 sps:$4 sm:$0xff]  }
 0x390   :  { %10230 = vmatprep.subr.bf16.mxu0 %v15269_v60  ;;  %11255 = vmatprep.subr.bf16.mxu1 %v15272_v61  ;;  %v15364_v60 = vld [vmem:[%s21421_s1 + $0x1e6c] ss:$16 sps:$4 sm:$0xff]   ;;  %v15359_v61 = vld [vmem:[%s21421_s1 + $0x1e60] ss:$16 sps:$4 sm:$0xff]  }
 0x393   :  { %10231 = vmatpush1.bf16.msra.mxu0 %v15267_v62  ;;  %11256 = vmatpush1.bf16.msra.mxu1 %v15270_v63  ;;  %v15362_v62 = vld [vmem:[%s21421_s1 + $0x1e68] ss:$16 sps:$4 sm:$0xff]   ;;  %v15367_v63 = vld [vmem:[%s21421_s1 + $0x1e84] ss:$16 sps:$4 sm:$0xff]  }
 0x394   :  { %10232 = vmatprep.subr.bf16.mxu0 %v15275_v0  ;;  %11257 = vmatprep.subr.bf16.mxu1 %v15278_v1  ;;  %v15370_v0 = vld [vmem:[%s21421_s1 + $0x1e8c] ss:$16 sps:$4 sm:$0xff]   ;;  %v15365_v1 = vld [vmem:[%s21421_s1 + $0x1e80] ss:$16 sps:$4 sm:$0xff]  }
 0x397   :  { %10233 = vmatpush1.bf16.msra.mxu0 %v15273_v2  ;;  %11258 = vmatpush1.bf16.msra.mxu1 %v15276_v3  ;;  %v15368_v2 = vld [vmem:[%s21421_s1 + $0x1e88] ss:$16 sps:$4 sm:$0xff]   ;;  %v15373_v3 = vld [vmem:[%s21421_s1 + $0x1ea4] ss:$16 sps:$4 sm:$0xff]  }
 0x398   :  { %10234 = vmatprep.subr.bf16.mxu0 %v15281_v4  ;;  %11259 = vmatprep.subr.bf16.mxu1 %v15284_v5  ;;  %v15376_v4 = vld [vmem:[%s21421_s1 + $0x1eac] ss:$16 sps:$4 sm:$0xff]   ;;  %v15371_v5 = vld [vmem:[%s21421_s1 + $0x1ea0] ss:$16 sps:$4 sm:$0xff]  }
 0x39b   :  { %10235 = vmatpush1.bf16.msra.mxu0 %v15279_v6  ;;  %11260 = vmatpush1.bf16.msra.mxu1 %v15282_v7  ;;  %v15374_v6 = vld [vmem:[%s21421_s1 + $0x1ea8] ss:$16 sps:$4 sm:$0xff]   ;;  %v15379_v7 = vld [vmem:[%s21421_s1 + $0x1ec4] ss:$16 sps:$4 sm:$0xff]  }
 0x39c   :  { %10236 = vmatprep.subr.bf16.mxu0 %v15287_v8  ;;  %11261 = vmatprep.subr.bf16.mxu1 %v15290_v9  ;;  %v15382_v8 = vld [vmem:[%s21421_s1 + $0x1ecc] ss:$16 sps:$4 sm:$0xff]   ;;  %v15377_v9 = vld [vmem:[%s21421_s1 + $0x1ec0] ss:$16 sps:$4 sm:$0xff]  }
 0x39f   :  { %10237 = vmatpush1.bf16.msra.mxu0 %v15285_v10  ;;  %11262 = vmatpush1.bf16.msra.mxu1 %v15288_v12  ;;  %v15380_v10 = vld [vmem:[%s21421_s1 + $0x1ec8] ss:$16 sps:$4 sm:$0xff]   ;;  %v15385_v12 = vld [vmem:[%s21421_s1 + $0x1ee4] ss:$16 sps:$4 sm:$0xff]  }
 0x3a0   :  { %10238 = vmatprep.subr.bf16.mxu0 %v15293_v13  ;;  %11263 = vmatprep.subr.bf16.mxu1 %v15296_v15  ;;  %v15388_v13 = vld [vmem:[%s21421_s1 + $0x1eec] ss:$16 sps:$4 sm:$0xff]   ;;  %v15383_v15 = vld [vmem:[%s21421_s1 + $0x1ee0] ss:$16 sps:$4 sm:$0xff]  }
 0x3a3   :  { %10239 = vmatpush1.bf16.msra.mxu0 %v15291_v11  ;;  %11264 = vmatpush1.bf16.msra.mxu1 %v15294_v17  ;;  %v15386_v11 = vld [vmem:[%s21421_s1 + $0x1ee8] ss:$16 sps:$4 sm:$0xff]   ;;  %v15391_v17 = vld [vmem:[%s21421_s1 + $0x1f04] ss:$16 sps:$4 sm:$0xff]  }
 0x3a4   :  { %10240 = vmatprep.subr.bf16.mxu0 %v15299_v14  ;;  %11265 = vmatprep.subr.bf16.mxu1 %v15302_v19  ;;  %v15394_v14 = vld [vmem:[%s21421_s1 + $0x1f0c] ss:$16 sps:$4 sm:$0xff]   ;;  %v15389_v19 = vld [vmem:[%s21421_s1 + $0x1f00] ss:$16 sps:$4 sm:$0xff]  }
 0x3a7   :  { %10241 = vmatpush1.bf16.msra.mxu0 %v15297_v20  ;;  %11266 = vmatpush1.bf16.msra.mxu1 %v15300_v16  ;;  %v15392_v20 = vld [vmem:[%s21421_s1 + $0x1f08] ss:$16 sps:$4 sm:$0xff]   ;;  %v15397_v16 = vld [vmem:[%s21421_s1 + $0x1f24] ss:$16 sps:$4 sm:$0xff]  }
 0x3a8   :  { %10242 = vmatprep.subr.bf16.mxu0 %v15305_v22  ;;  %11267 = vmatprep.subr.bf16.mxu1 %v15308_v23  ;;  %v15400_v22 = vld [vmem:[%s21421_s1 + $0x1f2c] ss:$16 sps:$4 sm:$0xff]   ;;  %v15395_v23 = vld [vmem:[%s21421_s1 + $0x1f20] ss:$16 sps:$4 sm:$0xff]  }
 0x3ab   :  { %10243 = vmatpush1.bf16.msra.mxu0 %v15303_v18  ;;  %11268 = vmatpush1.bf16.msra.mxu1 %v15306_v25  ;;  %v15398_v18 = vld [vmem:[%s21421_s1 + $0x1f28] ss:$16 sps:$4 sm:$0xff]   ;;  %v15403_v25 = vld [vmem:[%s21421_s1 + $0x1f44] ss:$16 sps:$4 sm:$0xff]  }
 0x3ac   :  { %10244 = vmatprep.subr.bf16.mxu0 %v15311_v26  ;;  %11269 = vmatprep.subr.bf16.mxu1 %v15314_v21  ;;  %v15406_v26 = vld [vmem:[%s21421_s1 + $0x1f4c] ss:$16 sps:$4 sm:$0xff]   ;;  %v15401_v21 = vld [vmem:[%s21421_s1 + $0x1f40] ss:$16 sps:$4 sm:$0xff]  }
 0x3af   :  { %10245 = vmatpush1.bf16.msra.mxu0 %v15309_v28  ;;  %11270 = vmatpush1.bf16.msra.mxu1 %v15312_v29  ;;  %v15404_v28 = vld [vmem:[%s21421_s1 + $0x1f48] ss:$16 sps:$4 sm:$0xff]   ;;  %v15409_v29 = vld [vmem:[%s21421_s1 + $0x1f64] ss:$16 sps:$4 sm:$0xff]  }
 0x3b0   :  { %10246 = vmatprep.subr.bf16.mxu0 %v15317_v24  ;;  %11271 = vmatprep.subr.bf16.mxu1 %v15320_v31  ;;  %v15412_v24 = vld [vmem:[%s21421_s1 + $0x1f6c] ss:$16 sps:$4 sm:$0xff]   ;;  %v15407_v31 = vld [vmem:[%s21421_s1 + $0x1f60] ss:$16 sps:$4 sm:$0xff]  }
 0x3b3   :  { %10247 = vmatpush1.bf16.msra.mxu0 %v15315_v32  ;;  %11272 = vmatpush1.bf16.msra.mxu1 %v15318_v27  ;;  %v15410_v32 = vld [vmem:[%s21421_s1 + $0x1f68] ss:$16 sps:$4 sm:$0xff]   ;;  %v15415_v27 = vld [vmem:[%s21421_s1 + $0x1f84] ss:$16 sps:$4 sm:$0xff]  }
 0x3b4   :  { %10248 = vmatprep.subr.bf16.mxu0 %v15323_v34  ;;  %11273 = vmatprep.subr.bf16.mxu1 %v15326_v35  ;;  %v15418_v34 = vld [vmem:[%s21421_s1 + $0x1f8c] ss:$16 sps:$4 sm:$0xff]   ;;  %v15413_v35 = vld [vmem:[%s21421_s1 + $0x1f80] ss:$16 sps:$4 sm:$0xff]  }
 0x3b7   :  { %10249 = vmatpush1.bf16.msra.mxu0 %v15321_v30  ;;  %11274 = vmatpush1.bf16.msra.mxu1 %v15324_v37  ;;  %v15416_v30 = vld [vmem:[%s21421_s1 + $0x1f88] ss:$16 sps:$4 sm:$0xff]   ;;  %v15421_v37 = vld [vmem:[%s21421_s1 + $0x1fa4] ss:$16 sps:$4 sm:$0xff]  }
 0x3b8   :  { %10250 = vmatprep.subr.bf16.mxu0 %v15329_v38  ;;  %11275 = vmatprep.subr.bf16.mxu1 %v15332_v33  ;;  %v15424_v38 = vld [vmem:[%s21421_s1 + $0x1fac] ss:$16 sps:$4 sm:$0xff]   ;;  %v15419_v33 = vld [vmem:[%s21421_s1 + $0x1fa0] ss:$16 sps:$4 sm:$0xff]  }
 0x3bb   :  { %10251 = vmatpush1.bf16.msra.mxu0 %v15327_v40  ;;  %11276 = vmatpush1.bf16.msra.mxu1 %v15330_v41  ;;  %v15422_v40 = vld [vmem:[%s21421_s1 + $0x1fa8] ss:$16 sps:$4 sm:$0xff]   ;;  %v15427_v41 = vld [vmem:[%s21421_s1 + $0x1fc4] ss:$16 sps:$4 sm:$0xff]  }
 0x3bc   :  { %10252 = vmatprep.subr.bf16.mxu0 %v15335_v36  ;;  %11277 = vmatprep.subr.bf16.mxu1 %v15338_v43  ;;  %v15430_v36 = vld [vmem:[%s21421_s1 + $0x1fcc] ss:$16 sps:$4 sm:$0xff]   ;;  %v15425_v43 = vld [vmem:[%s21421_s1 + $0x1fc0] ss:$16 sps:$4 sm:$0xff]  }
 0x3bf   :  { %10253 = vmatpush1.bf16.msra.mxu0 %v15333_v44  ;;  %11278 = vmatpush1.bf16.msra.mxu1 %v15336_v45  ;;  %v15428_v44 = vld [vmem:[%s21421_s1 + $0x1fc8] ss:$16 sps:$4 sm:$0xff]   ;;  %v15433_v45 = vld [vmem:[%s21421_s1 + $0x1fe4] ss:$16 sps:$4 sm:$0xff]  }
 0x3c0   :  { %10263 = vmatprep.subr.bf16.mxu0 %v15343_v46  ;;  %11288 = vmatprep.subr.bf16.mxu1 %v15346_v47  ;;  %v15436_v46 = vld [vmem:[%s21421_s1 + $0x1fec] ss:$16 sps:$4 sm:$0xff]   ;;  %v15431_v47 = vld [vmem:[%s21421_s1 + $0x1fe0] ss:$16 sps:$4 sm:$0xff]  }
 0x3c2   :  { %10255 = vmatmul.mubr.bf16.vlgmr.msra.gmra.mrb[0].mxu0 %v11950_v42  ;;  %11280 = vmatmul.mubr.bf16.vlgmr.msra.gmra.mrb[0].mxu1 %v11950_v42  ;;  %v15434_v42 = vld [vmem:[%s21421_s1 + $0x1fe8] ss:$16 sps:$4 sm:$0xff]  }
 0x3c3   :  { %10264 = vmatpush1.bf16.msra.mxu0 %v15341_v49  ;;  %11289 = vmatpush1.bf16.msra.mxu1 %v15344_v50  ;;  %v15441_v49 = vld [vmem:[%s21421_s1 + $0x2004] ss:$16 sps:$4 sm:$0xff]   ;;  %v15444_v50 = vld [vmem:[%s21421_s1 + $0x200c] ss:$16 sps:$4 sm:$0xff]  }
 0x3c4   :  { %10265 = vmatprep.subr.bf16.mxu0 %v15349_v39  ;;  %11290 = vmatprep.subr.bf16.mxu1 %v15352_v51  ;;  %v11952_v39 = vcombine.low %v19321_v48, %v19321_v48  ;;  %v19522_v51 = vld [vmem:[%s21422_s0 + $0x80] sm:$0xff] }
 0x3c5   :  { %10295 = vmatprep.mubr.bf16.mxu0 %v11953_v52  ;;  %11320 = vmatprep.mubr.bf16.mxu1 %v11953_v52  ;;  %v15439_v52 = vld [vmem:[%s21421_s1 + $0x2000] ss:$16 sps:$4 sm:$0xff]   ;;  %v15447_v48 = vld [vmem:[%s21421_s1 + $0x2024] ss:$16 sps:$4 sm:$0xff]  }
 0x3c7   :  { %10266 = vmatpush1.bf16.msra.mxu0 %v15347_v53  ;;  %11291 = vmatpush1.bf16.msra.mxu1 %v15350_v54  ;;  %v15442_v53 = vld [vmem:[%s21421_s1 + $0x2008] ss:$16 sps:$4 sm:$0xff]   ;;  %v15450_v54 = vld [vmem:[%s21421_s1 + $0x202c] ss:$16 sps:$4 sm:$0xff]  }
 0x3c8   :  { %10267 = vmatprep.subr.bf16.mxu0 %v15355_v55  ;;  %11292 = vmatprep.subr.bf16.mxu1 %v15358_v56  ;;  %v11955_v55 = vcombine.high %v19522_v51, %v19522_v51  ;;  %v15445_v56 = vld [vmem:[%s21421_s1 + $0x2020] ss:$16 sps:$4 sm:$0xff]  }
 0x3cb   :  { %10268 = vmatpush1.bf16.msra.mxu0 %v15353_v57  ;;  %11293 = vmatpush1.bf16.msra.mxu1 %v15356_v58  ;;  %v15448_v57 = vld [vmem:[%s21421_s1 + $0x2028] ss:$16 sps:$4 sm:$0xff]   ;;  %v15453_v58 = vld [vmem:[%s21421_s1 + $0x2044] ss:$16 sps:$4 sm:$0xff]  }
 0x3cc   :  { %10269 = vmatprep.subr.bf16.mxu0 %v15361_v59  ;;  %11294 = vmatprep.subr.bf16.mxu1 %v15364_v60  ;;  %v15456_v59 = vld [vmem:[%s21421_s1 + $0x204c] ss:$16 sps:$4 sm:$0xff]   ;;  %v15451_v60 = vld [vmem:[%s21421_s1 + $0x2040] ss:$16 sps:$4 sm:$0xff]  }
 0x3cf   :  { %10270 = vmatpush1.bf16.msra.mxu0 %v15359_v61  ;;  %11295 = vmatpush1.bf16.msra.mxu1 %v15362_v62  ;;  %v15454_v61 = vld [vmem:[%s21421_s1 + $0x2048] ss:$16 sps:$4 sm:$0xff]   ;;  %v15459_v62 = vld [vmem:[%s21421_s1 + $0x2064] ss:$16 sps:$4 sm:$0xff]  }
 0x3d0   :  { %10271 = vmatprep.subr.bf16.mxu0 %v15367_v63  ;;  %11296 = vmatprep.subr.bf16.mxu1 %v15370_v0  ;;  %v15462_v63 = vld [vmem:[%s21421_s1 + $0x206c] ss:$16 sps:$4 sm:$0xff]   ;;  %v15457_v0 = vld [vmem:[%s21421_s1 + $0x2060] ss:$16 sps:$4 sm:$0xff]  }
 0x3d3   :  { %10272 = vmatpush1.bf16.msra.mxu0 %v15365_v1  ;;  %11297 = vmatpush1.bf16.msra.mxu1 %v15368_v2  ;;  %v15460_v1 = vld [vmem:[%s21421_s1 + $0x2068] ss:$16 sps:$4 sm:$0xff]   ;;  %v15465_v2 = vld [vmem:[%s21421_s1 + $0x2084] ss:$16 sps:$4 sm:$0xff]  }
 0x3d4   :  { %10273 = vmatprep.subr.bf16.mxu0 %v15373_v3  ;;  %11298 = vmatprep.subr.bf16.mxu1 %v15376_v4  ;;  %v15468_v3 = vld [vmem:[%s21421_s1 + $0x208c] ss:$16 sps:$4 sm:$0xff]   ;;  %v15463_v4 = vld [vmem:[%s21421_s1 + $0x2080] ss:$16 sps:$4 sm:$0xff]  }
 0x3d7   :  { %10274 = vmatpush1.bf16.msra.mxu0 %v15371_v5  ;;  %11299 = vmatpush1.bf16.msra.mxu1 %v15374_v6  ;;  %v15466_v5 = vld [vmem:[%s21421_s1 + $0x2088] ss:$16 sps:$4 sm:$0xff]   ;;  %v15471_v6 = vld [vmem:[%s21421_s1 + $0x20a4] ss:$16 sps:$4 sm:$0xff]  }
 0x3d8   :  { %10275 = vmatprep.subr.bf16.mxu0 %v15379_v7  ;;  %11300 = vmatprep.subr.bf16.mxu1 %v15382_v8  ;;  %v15474_v7 = vld [vmem:[%s21421_s1 + $0x20ac] ss:$16 sps:$4 sm:$0xff]   ;;  %v15469_v8 = vld [vmem:[%s21421_s1 + $0x20a0] ss:$16 sps:$4 sm:$0xff]  }
 0x3db   :  { %10276 = vmatpush1.bf16.msra.mxu0 %v15377_v9  ;;  %11301 = vmatpush1.bf16.msra.mxu1 %v15380_v10  ;;  %v15472_v9 = vld [vmem:[%s21421_s1 + $0x20a8] ss:$16 sps:$4 sm:$0xff]   ;;  %v15477_v10 = vld [vmem:[%s21421_s1 + $0x20c4] ss:$16 sps:$4 sm:$0xff]  }
 0x3dc   :  { %10277 = vmatprep.subr.bf16.mxu0 %v15385_v12  ;;  %11302 = vmatprep.subr.bf16.mxu1 %v15388_v13  ;;  %v15480_v12 = vld [vmem:[%s21421_s1 + $0x20cc] ss:$16 sps:$4 sm:$0xff]   ;;  %v15475_v13 = vld [vmem:[%s21421_s1 + $0x20c0] ss:$16 sps:$4 sm:$0xff]  }
 0x3df   :  { %10278 = vmatpush1.bf16.msra.mxu0 %v15383_v15  ;;  %11303 = vmatpush1.bf16.msra.mxu1 %v15386_v11  ;;  %v15478_v15 = vld [vmem:[%s21421_s1 + $0x20c8] ss:$16 sps:$4 sm:$0xff]   ;;  %v15483_v11 = vld [vmem:[%s21421_s1 + $0x20e4] ss:$16 sps:$4 sm:$0xff]  }
 0x3e0   :  { %10279 = vmatprep.subr.bf16.mxu0 %v15391_v17  ;;  %11304 = vmatprep.subr.bf16.mxu1 %v15394_v14  ;;  %v15486_v17 = vld [vmem:[%s21421_s1 + $0x20ec] ss:$16 sps:$4 sm:$0xff]   ;;  %v15481_v14 = vld [vmem:[%s21421_s1 + $0x20e0] ss:$16 sps:$4 sm:$0xff]  }
 0x3e3   :  { %10280 = vmatpush1.bf16.msra.mxu0 %v15389_v19  ;;  %11305 = vmatpush1.bf16.msra.mxu1 %v15392_v20  ;;  %v15484_v19 = vld [vmem:[%s21421_s1 + $0x20e8] ss:$16 sps:$4 sm:$0xff]   ;;  %v15489_v20 = vld [vmem:[%s21421_s1 + $0x2104] ss:$16 sps:$4 sm:$0xff]  }
 0x3e4   :  { %10281 = vmatprep.subr.bf16.mxu0 %v15397_v16  ;;  %11306 = vmatprep.subr.bf16.mxu1 %v15400_v22  ;;  %v15492_v16 = vld [vmem:[%s21421_s1 + $0x210c] ss:$16 sps:$4 sm:$0xff]   ;;  %v15487_v22 = vld [vmem:[%s21421_s1 + $0x2100] ss:$16 sps:$4 sm:$0xff]  }
 0x3e7   :  { %10282 = vmatpush1.bf16.msra.mxu0 %v15395_v23  ;;  %11307 = vmatpush1.bf16.msra.mxu1 %v15398_v18  ;;  %v15490_v23 = vld [vmem:[%s21421_s1 + $0x2108] ss:$16 sps:$4 sm:$0xff]   ;;  %v15495_v18 = vld [vmem:[%s21421_s1 + $0x2124] ss:$16 sps:$4 sm:$0xff]  }
 0x3e8   :  { %10283 = vmatprep.subr.bf16.mxu0 %v15403_v25  ;;  %11308 = vmatprep.subr.bf16.mxu1 %v15406_v26  ;;  %v15498_v25 = vld [vmem:[%s21421_s1 + $0x212c] ss:$16 sps:$4 sm:$0xff]   ;;  %v15493_v26 = vld [vmem:[%s21421_s1 + $0x2120] ss:$16 sps:$4 sm:$0xff]  }
 0x3eb   :  { %10284 = vmatpush1.bf16.msra.mxu0 %v15401_v21  ;;  %11309 = vmatpush1.bf16.msra.mxu1 %v15404_v28  ;;  %v15496_v21 = vld [vmem:[%s21421_s1 + $0x2128] ss:$16 sps:$4 sm:$0xff]   ;;  %v15501_v28 = vld [vmem:[%s21421_s1 + $0x2144] ss:$16 sps:$4 sm:$0xff]  }
 0x3ec   :  { %10285 = vmatprep.subr.bf16.mxu0 %v15409_v29  ;;  %11310 = vmatprep.subr.bf16.mxu1 %v15412_v24  ;;  %v15504_v29 = vld [vmem:[%s21421_s1 + $0x214c] ss:$16 sps:$4 sm:$0xff]   ;;  %v15499_v24 = vld [vmem:[%s21421_s1 + $0x2140] ss:$16 sps:$4 sm:$0xff]  }
 0x3ef   :  { %10286 = vmatpush1.bf16.msra.mxu0 %v15407_v31  ;;  %11311 = vmatpush1.bf16.msra.mxu1 %v15410_v32  ;;  %v15502_v31 = vld [vmem:[%s21421_s1 + $0x2148] ss:$16 sps:$4 sm:$0xff]   ;;  %v15507_v32 = vld [vmem:[%s21421_s1 + $0x2164] ss:$16 sps:$4 sm:$0xff]  }
 0x3f0   :  { %10287 = vmatprep.subr.bf16.mxu0 %v15415_v27  ;;  %11312 = vmatprep.subr.bf16.mxu1 %v15418_v34  ;;  %v15510_v27 = vld [vmem:[%s21421_s1 + $0x216c] ss:$16 sps:$4 sm:$0xff]   ;;  %v15505_v34 = vld [vmem:[%s21421_s1 + $0x2160] ss:$16 sps:$4 sm:$0xff]  }
 0x3f3   :  { %10288 = vmatpush1.bf16.msra.mxu0 %v15413_v35  ;;  %11313 = vmatpush1.bf16.msra.mxu1 %v15416_v30  ;;  %v15508_v35 = vld [vmem:[%s21421_s1 + $0x2168] ss:$16 sps:$4 sm:$0xff]   ;;  %v15513_v30 = vld [vmem:[%s21421_s1 + $0x2184] ss:$16 sps:$4 sm:$0xff]  }
 0x3f4   :  { %10289 = vmatprep.subr.bf16.mxu0 %v15421_v37  ;;  %11314 = vmatprep.subr.bf16.mxu1 %v15424_v38  ;;  %v15516_v37 = vld [vmem:[%s21421_s1 + $0x218c] ss:$16 sps:$4 sm:$0xff]   ;;  %v15511_v38 = vld [vmem:[%s21421_s1 + $0x2180] ss:$16 sps:$4 sm:$0xff]  }
 0x3f7   :  { %10290 = vmatpush1.bf16.msra.mxu0 %v15419_v33  ;;  %11315 = vmatpush1.bf16.msra.mxu1 %v15422_v40  ;;  %v15514_v33 = vld [vmem:[%s21421_s1 + $0x2188] ss:$16 sps:$4 sm:$0xff]   ;;  %v15519_v40 = vld [vmem:[%s21421_s1 + $0x21a4] ss:$16 sps:$4 sm:$0xff]  }
 0x3f8   :  { %10291 = vmatprep.subr.bf16.mxu0 %v15427_v41  ;;  %11316 = vmatprep.subr.bf16.mxu1 %v15430_v36  ;;  %v15522_v41 = vld [vmem:[%s21421_s1 + $0x21ac] ss:$16 sps:$4 sm:$0xff]   ;;  %v15517_v36 = vld [vmem:[%s21421_s1 + $0x21a0] ss:$16 sps:$4 sm:$0xff]  }
 0x3fb   :  { %10292 = vmatpush1.bf16.msra.mxu0 %v15425_v43  ;;  %11317 = vmatpush1.bf16.msra.mxu1 %v15428_v44  ;;  %v15520_v43 = vld [vmem:[%s21421_s1 + $0x21a8] ss:$16 sps:$4 sm:$0xff]   ;;  %v15525_v44 = vld [vmem:[%s21421_s1 + $0x21c4] ss:$16 sps:$4 sm:$0xff]  }
 0x3fc   :  { %10293 = vmatprep.subr.bf16.mxu0 %v15433_v45  ;;  %11318 = vmatprep.subr.bf16.mxu1 %v15436_v46  ;;  %v15528_v45 = vld [vmem:[%s21421_s1 + $0x21cc] ss:$16 sps:$4 sm:$0xff]   ;;  %v15523_v46 = vld [vmem:[%s21421_s1 + $0x21c0] ss:$16 sps:$4 sm:$0xff]  }
 0x3ff   :  { %10294 = vmatpush1.bf16.msra.mxu0 %v15431_v47  ;;  %11319 = vmatpush1.bf16.msra.mxu1 %v15434_v42  ;;  %v15526_v47 = vld [vmem:[%s21421_s1 + $0x21c8] ss:$16 sps:$4 sm:$0xff]   ;;  %v15531_v42 = vld [vmem:[%s21421_s1 + $0x21e4] ss:$16 sps:$4 sm:$0xff]  }
 0x400   :  { %10304 = vmatprep.subr.bf16.mxu0 %v15441_v49  ;;  %11329 = vmatprep.subr.bf16.mxu1 %v15444_v50  ;;  %v15534_v49 = vld [vmem:[%s21421_s1 + $0x21ec] ss:$16 sps:$4 sm:$0xff]   ;;  %v15529_v50 = vld [vmem:[%s21421_s1 + $0x21e0] ss:$16 sps:$4 sm:$0xff]  }
 0x402   :  { %10296 = vmatmul.mubr.bf16.vlgmr.msra.gmra.mrb[0].mxu0 %v11952_v39  ;;  %11321 = vmatmul.mubr.bf16.vlgmr.msra.gmra.mrb[0].mxu1 %v11952_v39  ;;  %v15532_v39 = vld [vmem:[%s21421_s1 + $0x21e8] ss:$16 sps:$4 sm:$0xff]  }
 0x403   :  { %10305 = vmatpush1.bf16.msra.mxu0 %v15439_v52  ;;  %11330 = vmatpush1.bf16.msra.mxu1 %v15442_v53  ;;  %v15539_v52 = vld [vmem:[%s21421_s1 + $0x2204] ss:$16 sps:$4 sm:$0xff]   ;;  %v15542_v53 = vld [vmem:[%s21421_s1 + $0x220c] ss:$16 sps:$4 sm:$0xff]  }
 0x404   :  { %10306 = vmatprep.subr.bf16.mxu0 %v15447_v48  ;;  %11331 = vmatprep.subr.bf16.mxu1 %v15450_v54  ;;  %v11954_v48 = vcombine.low %v19522_v51, %v19522_v51  ;;  %v19723_v54 = vld [vmem:[%s21422_s0 + $0x88] sm:$0xff]  ;;  %v15545_v51 = vld [vmem:[%s21421_s1 + $0x2224] ss:$16 sps:$4 sm:$0xff]  }
 0x405   :  { %10336 = vmatprep.mubr.bf16.mxu0 %v11955_v55  ;;  %11361 = vmatprep.mubr.bf16.mxu1 %v11955_v55  ;;  %v15537_v55 = vld [vmem:[%s21421_s1 + $0x2200] ss:$16 sps:$4 sm:$0xff]  }
 0x407   :  { %10307 = vmatpush1.bf16.msra.mxu0 %v15445_v56  ;;  %11332 = vmatpush1.bf16.msra.mxu1 %v15448_v57  ;;  %v15540_v56 = vld [vmem:[%s21421_s1 + $0x2208] ss:$16 sps:$4 sm:$0xff]   ;;  %v15548_v57 = vld [vmem:[%s21421_s1 + $0x222c] ss:$16 sps:$4 sm:$0xff]  }
 0x408   :  { %10308 = vmatprep.subr.bf16.mxu0 %v15453_v58  ;;  %11333 = vmatprep.subr.bf16.mxu1 %v15456_v59  ;;  %v11957_v58 = vcombine.high %v19723_v54, %v19723_v54  ;;  %v15543_v59 = vld [vmem:[%s21421_s1 + $0x2220] ss:$16 sps:$4 sm:$0xff]  }
 0x40b   :  { %10309 = vmatpush1.bf16.msra.mxu0 %v15451_v60  ;;  %11334 = vmatpush1.bf16.msra.mxu1 %v15454_v61  ;;  %v15546_v60 = vld [vmem:[%s21421_s1 + $0x2228] ss:$16 sps:$4 sm:$0xff]   ;;  %v15551_v61 = vld [vmem:[%s21421_s1 + $0x2244] ss:$16 sps:$4 sm:$0xff]  }
 0x40c   :  { %10310 = vmatprep.subr.bf16.mxu0 %v15459_v62  ;;  %11335 = vmatprep.subr.bf16.mxu1 %v15462_v63  ;;  %v15554_v62 = vld [vmem:[%s21421_s1 + $0x224c] ss:$16 sps:$4 sm:$0xff]   ;;  %v15549_v63 = vld [vmem:[%s21421_s1 + $0x2240] ss:$16 sps:$4 sm:$0xff]  }
 0x40f   :  { %10311 = vmatpush1.bf16.msra.mxu0 %v15457_v0  ;;  %11336 = vmatpush1.bf16.msra.mxu1 %v15460_v1  ;;  %v15552_v0 = vld [vmem:[%s21421_s1 + $0x2248] ss:$16 sps:$4 sm:$0xff]   ;;  %v15557_v1 = vld [vmem:[%s21421_s1 + $0x2264] ss:$16 sps:$4 sm:$0xff]  }
 0x410   :  { %10312 = vmatprep.subr.bf16.mxu0 %v15465_v2  ;;  %11337 = vmatprep.subr.bf16.mxu1 %v15468_v3  ;;  %v15560_v2 = vld [vmem:[%s21421_s1 + $0x226c] ss:$16 sps:$4 sm:$0xff]   ;;  %v15555_v3 = vld [vmem:[%s21421_s1 + $0x2260] ss:$16 sps:$4 sm:$0xff]  }
 0x413   :  { %10313 = vmatpush1.bf16.msra.mxu0 %v15463_v4  ;;  %11338 = vmatpush1.bf16.msra.mxu1 %v15466_v5  ;;  %v15558_v4 = vld [vmem:[%s21421_s1 + $0x2268] ss:$16 sps:$4 sm:$0xff]   ;;  %v15563_v5 = vld [vmem:[%s21421_s1 + $0x2284] ss:$16 sps:$4 sm:$0xff]  }
 0x414   :  { %10314 = vmatprep.subr.bf16.mxu0 %v15471_v6  ;;  %11339 = vmatprep.subr.bf16.mxu1 %v15474_v7  ;;  %v15566_v6 = vld [vmem:[%s21421_s1 + $0x228c] ss:$16 sps:$4 sm:$0xff]   ;;  %v15561_v7 = vld [vmem:[%s21421_s1 + $0x2280] ss:$16 sps:$4 sm:$0xff]  }
 0x417   :  { %10315 = vmatpush1.bf16.msra.mxu0 %v15469_v8  ;;  %11340 = vmatpush1.bf16.msra.mxu1 %v15472_v9  ;;  %v15564_v8 = vld [vmem:[%s21421_s1 + $0x2288] ss:$16 sps:$4 sm:$0xff]   ;;  %v15569_v9 = vld [vmem:[%s21421_s1 + $0x22a4] ss:$16 sps:$4 sm:$0xff]  }
 0x418   :  { %10316 = vmatprep.subr.bf16.mxu0 %v15477_v10  ;;  %11341 = vmatprep.subr.bf16.mxu1 %v15480_v12  ;;  %v15572_v10 = vld [vmem:[%s21421_s1 + $0x22ac] ss:$16 sps:$4 sm:$0xff]   ;;  %v15567_v12 = vld [vmem:[%s21421_s1 + $0x22a0] ss:$16 sps:$4 sm:$0xff]  }
 0x41b   :  { %10317 = vmatpush1.bf16.msra.mxu0 %v15475_v13  ;;  %11342 = vmatpush1.bf16.msra.mxu1 %v15478_v15  ;;  %v15570_v13 = vld [vmem:[%s21421_s1 + $0x22a8] ss:$16 sps:$4 sm:$0xff]   ;;  %v15575_v15 = vld [vmem:[%s21421_s1 + $0x22c4] ss:$16 sps:$4 sm:$0xff]  }
 0x41c   :  { %10318 = vmatprep.subr.bf16.mxu0 %v15483_v11  ;;  %11343 = vmatprep.subr.bf16.mxu1 %v15486_v17  ;;  %v15578_v11 = vld [vmem:[%s21421_s1 + $0x22cc] ss:$16 sps:$4 sm:$0xff]   ;;  %v15573_v17 = vld [vmem:[%s21421_s1 + $0x22c0] ss:$16 sps:$4 sm:$0xff]  }
 0x41f   :  { %10319 = vmatpush1.bf16.msra.mxu0 %v15481_v14  ;;  %11344 = vmatpush1.bf16.msra.mxu1 %v15484_v19  ;;  %v15576_v14 = vld [vmem:[%s21421_s1 + $0x22c8] ss:$16 sps:$4 sm:$0xff]   ;;  %v15581_v19 = vld [vmem:[%s21421_s1 + $0x22e4] ss:$16 sps:$4 sm:$0xff]  }
 0x420   :  { %10320 = vmatprep.subr.bf16.mxu0 %v15489_v20  ;;  %11345 = vmatprep.subr.bf16.mxu1 %v15492_v16  ;;  %v15584_v20 = vld [vmem:[%s21421_s1 + $0x22ec] ss:$16 sps:$4 sm:$0xff]   ;;  %v15579_v16 = vld [vmem:[%s21421_s1 + $0x22e0] ss:$16 sps:$4 sm:$0xff]  }
 0x423   :  { %10321 = vmatpush1.bf16.msra.mxu0 %v15487_v22  ;;  %11346 = vmatpush1.bf16.msra.mxu1 %v15490_v23  ;;  %v15582_v22 = vld [vmem:[%s21421_s1 + $0x22e8] ss:$16 sps:$4 sm:$0xff]   ;;  %v15587_v23 = vld [vmem:[%s21421_s1 + $0x2304] ss:$16 sps:$4 sm:$0xff]  }
 0x424   :  { %10322 = vmatprep.subr.bf16.mxu0 %v15495_v18  ;;  %11347 = vmatprep.subr.bf16.mxu1 %v15498_v25  ;;  %v15590_v18 = vld [vmem:[%s21421_s1 + $0x230c] ss:$16 sps:$4 sm:$0xff]   ;;  %v15585_v25 = vld [vmem:[%s21421_s1 + $0x2300] ss:$16 sps:$4 sm:$0xff]  }
 0x427   :  { %10323 = vmatpush1.bf16.msra.mxu0 %v15493_v26  ;;  %11348 = vmatpush1.bf16.msra.mxu1 %v15496_v21  ;;  %v15588_v26 = vld [vmem:[%s21421_s1 + $0x2308] ss:$16 sps:$4 sm:$0xff]   ;;  %v15593_v21 = vld [vmem:[%s21421_s1 + $0x2324] ss:$16 sps:$4 sm:$0xff]  }
 0x428   :  { %10324 = vmatprep.subr.bf16.mxu0 %v15501_v28  ;;  %11349 = vmatprep.subr.bf16.mxu1 %v15504_v29  ;;  %v15596_v28 = vld [vmem:[%s21421_s1 + $0x232c] ss:$16 sps:$4 sm:$0xff]   ;;  %v15591_v29 = vld [vmem:[%s21421_s1 + $0x2320] ss:$16 sps:$4 sm:$0xff]  }
 0x42b   :  { %10325 = vmatpush1.bf16.msra.mxu0 %v15499_v24  ;;  %11350 = vmatpush1.bf16.msra.mxu1 %v15502_v31  ;;  %v15594_v24 = vld [vmem:[%s21421_s1 + $0x2328] ss:$16 sps:$4 sm:$0xff]   ;;  %v15599_v31 = vld [vmem:[%s21421_s1 + $0x2344] ss:$16 sps:$4 sm:$0xff]  }
 0x42c   :  { %10326 = vmatprep.subr.bf16.mxu0 %v15507_v32  ;;  %11351 = vmatprep.subr.bf16.mxu1 %v15510_v27  ;;  %v15602_v32 = vld [vmem:[%s21421_s1 + $0x234c] ss:$16 sps:$4 sm:$0xff]   ;;  %v15597_v27 = vld [vmem:[%s21421_s1 + $0x2340] ss:$16 sps:$4 sm:$0xff]  }
 0x42f   :  { %10327 = vmatpush1.bf16.msra.mxu0 %v15505_v34  ;;  %11352 = vmatpush1.bf16.msra.mxu1 %v15508_v35  ;;  %v15600_v34 = vld [vmem:[%s21421_s1 + $0x2348] ss:$16 sps:$4 sm:$0xff]   ;;  %v15605_v35 = vld [vmem:[%s21421_s1 + $0x2364] ss:$16 sps:$4 sm:$0xff]  }
 0x430   :  { %10328 = vmatprep.subr.bf16.mxu0 %v15513_v30  ;;  %11353 = vmatprep.subr.bf16.mxu1 %v15516_v37  ;;  %v15608_v30 = vld [vmem:[%s21421_s1 + $0x236c] ss:$16 sps:$4 sm:$0xff]   ;;  %v15603_v37 = vld [vmem:[%s21421_s1 + $0x2360] ss:$16 sps:$4 sm:$0xff]  }
 0x433   :  { %10329 = vmatpush1.bf16.msra.mxu0 %v15511_v38  ;;  %11354 = vmatpush1.bf16.msra.mxu1 %v15514_v33  ;;  %v15606_v38 = vld [vmem:[%s21421_s1 + $0x2368] ss:$16 sps:$4 sm:$0xff]   ;;  %v15611_v33 = vld [vmem:[%s21421_s1 + $0x2384] ss:$16 sps:$4 sm:$0xff]  }
 0x434   :  { %10330 = vmatprep.subr.bf16.mxu0 %v15519_v40  ;;  %11355 = vmatprep.subr.bf16.mxu1 %v15522_v41  ;;  %v15614_v40 = vld [vmem:[%s21421_s1 + $0x238c] ss:$16 sps:$4 sm:$0xff]   ;;  %v15609_v41 = vld [vmem:[%s21421_s1 + $0x2380] ss:$16 sps:$4 sm:$0xff]  }
 0x437   :  { %10331 = vmatpush1.bf16.msra.mxu0 %v15517_v36  ;;  %11356 = vmatpush1.bf16.msra.mxu1 %v15520_v43  ;;  %v15612_v36 = vld [vmem:[%s21421_s1 + $0x2388] ss:$16 sps:$4 sm:$0xff]   ;;  %v15617_v43 = vld [vmem:[%s21421_s1 + $0x23a4] ss:$16 sps:$4 sm:$0xff]  }
 0x438   :  { %10332 = vmatprep.subr.bf16.mxu0 %v15525_v44  ;;  %11357 = vmatprep.subr.bf16.mxu1 %v15528_v45  ;;  %v15620_v44 = vld [vmem:[%s21421_s1 + $0x23ac] ss:$16 sps:$4 sm:$0xff]   ;;  %v15615_v45 = vld [vmem:[%s21421_s1 + $0x23a0] ss:$16 sps:$4 sm:$0xff]  }
 0x43b   :  { %10333 = vmatpush1.bf16.msra.mxu0 %v15523_v46  ;;  %11358 = vmatpush1.bf16.msra.mxu1 %v15526_v47  ;;  %v15618_v46 = vld [vmem:[%s21421_s1 + $0x23a8] ss:$16 sps:$4 sm:$0xff]   ;;  %v15623_v47 = vld [vmem:[%s21421_s1 + $0x23c4] ss:$16 sps:$4 sm:$0xff]  }
 0x43c   :  { %10334 = vmatprep.subr.bf16.mxu0 %v15531_v42  ;;  %11359 = vmatprep.subr.bf16.mxu1 %v15534_v49  ;;  %v15626_v42 = vld [vmem:[%s21421_s1 + $0x23cc] ss:$16 sps:$4 sm:$0xff]   ;;  %v15621_v49 = vld [vmem:[%s21421_s1 + $0x23c0] ss:$16 sps:$4 sm:$0xff]  }
 0x43f   :  { %10335 = vmatpush1.bf16.msra.mxu0 %v15529_v50  ;;  %11360 = vmatpush1.bf16.msra.mxu1 %v15532_v39  ;;  %v15624_v50 = vld [vmem:[%s21421_s1 + $0x23c8] ss:$16 sps:$4 sm:$0xff]   ;;  %v15629_v39 = vld [vmem:[%s21421_s1 + $0x23e4] ss:$16 sps:$4 sm:$0xff]  }
 0x440   :  { %10345 = vmatprep.subr.bf16.mxu0 %v15539_v52  ;;  %11370 = vmatprep.subr.bf16.mxu1 %v15542_v53  ;;  %v15632_v52 = vld [vmem:[%s21421_s1 + $0x23ec] ss:$16 sps:$4 sm:$0xff]   ;;  %v15627_v53 = vld [vmem:[%s21421_s1 + $0x23e0] ss:$16 sps:$4 sm:$0xff]  }
 0x442   :  { %10337 = vmatmul.mubr.bf16.vlgmr.msra.gmra.mrb[0].mxu0 %v11954_v48  ;;  %11362 = vmatmul.mubr.bf16.vlgmr.msra.gmra.mrb[0].mxu1 %v11954_v48  ;;  %v15630_v48 = vld [vmem:[%s21421_s1 + $0x23e8] ss:$16 sps:$4 sm:$0xff]  }
 0x443   :  { %10346 = vmatpush1.bf16.msra.mxu0 %v15537_v55  ;;  %11371 = vmatpush1.bf16.msra.mxu1 %v15540_v56  ;;  %v15637_v55 = vld [vmem:[%s21421_s1 + $0x2404] ss:$16 sps:$4 sm:$0xff]   ;;  %v15640_v56 = vld [vmem:[%s21421_s1 + $0x240c] ss:$16 sps:$4 sm:$0xff]  }
 0x444   :  { %10347 = vmatprep.subr.bf16.mxu0 %v15545_v51  ;;  %11372 = vmatprep.subr.bf16.mxu1 %v15548_v57  ;;  %v11956_v51 = vcombine.low %v19723_v54, %v19723_v54  ;;  %v19924_v57 = vld [vmem:[%s21422_s0 + $0x90] sm:$0xff] }
 0x445   :  { %10377 = vmatprep.mubr.bf16.mxu0 %v11957_v58  ;;  %11402 = vmatprep.mubr.bf16.mxu1 %v11957_v58  ;;  %v15635_v58 = vld [vmem:[%s21421_s1 + $0x2400] ss:$16 sps:$4 sm:$0xff]   ;;  %v15643_v54 = vld [vmem:[%s21421_s1 + $0x2424] ss:$16 sps:$4 sm:$0xff]  }
 0x447   :  { %10348 = vmatpush1.bf16.msra.mxu0 %v15543_v59  ;;  %11373 = vmatpush1.bf16.msra.mxu1 %v15546_v60  ;;  %v15638_v59 = vld [vmem:[%s21421_s1 + $0x2408] ss:$16 sps:$4 sm:$0xff]   ;;  %v15646_v60 = vld [vmem:[%s21421_s1 + $0x242c] ss:$16 sps:$4 sm:$0xff]  }
 0x448   :  { %10349 = vmatprep.subr.bf16.mxu0 %v15551_v61  ;;  %11374 = vmatprep.subr.bf16.mxu1 %v15554_v62  ;;  %v11959_v61 = vcombine.high %v19924_v57, %v19924_v57  ;;  %v15641_v62 = vld [vmem:[%s21421_s1 + $0x2420] ss:$16 sps:$4 sm:$0xff]  }
 0x44b   :  { %10350 = vmatpush1.bf16.msra.mxu0 %v15549_v63  ;;  %11375 = vmatpush1.bf16.msra.mxu1 %v15552_v0  ;;  %v15644_v63 = vld [vmem:[%s21421_s1 + $0x2428] ss:$16 sps:$4 sm:$0xff]   ;;  %v15649_v0 = vld [vmem:[%s21421_s1 + $0x2444] ss:$16 sps:$4 sm:$0xff]  }
 0x44c   :  { %10351 = vmatprep.subr.bf16.mxu0 %v15557_v1  ;;  %11376 = vmatprep.subr.bf16.mxu1 %v15560_v2  ;;  %v15652_v1 = vld [vmem:[%s21421_s1 + $0x244c] ss:$16 sps:$4 sm:$0xff]   ;;  %v15647_v2 = vld [vmem:[%s21421_s1 + $0x2440] ss:$16 sps:$4 sm:$0xff]  }
 0x44f   :  { %10352 = vmatpush1.bf16.msra.mxu0 %v15555_v3  ;;  %11377 = vmatpush1.bf16.msra.mxu1 %v15558_v4  ;;  %v15650_v3 = vld [vmem:[%s21421_s1 + $0x2448] ss:$16 sps:$4 sm:$0xff]   ;;  %v15655_v4 = vld [vmem:[%s21421_s1 + $0x2464] ss:$16 sps:$4 sm:$0xff]  }
 0x450   :  { %10353 = vmatprep.subr.bf16.mxu0 %v15563_v5  ;;  %11378 = vmatprep.subr.bf16.mxu1 %v15566_v6  ;;  %v15658_v5 = vld [vmem:[%s21421_s1 + $0x246c] ss:$16 sps:$4 sm:$0xff]   ;;  %v15653_v6 = vld [vmem:[%s21421_s1 + $0x2460] ss:$16 sps:$4 sm:$0xff]  }
 0x453   :  { %10354 = vmatpush1.bf16.msra.mxu0 %v15561_v7  ;;  %11379 = vmatpush1.bf16.msra.mxu1 %v15564_v8  ;;  %v15656_v7 = vld [vmem:[%s21421_s1 + $0x2468] ss:$16 sps:$4 sm:$0xff]   ;;  %v15661_v8 = vld [vmem:[%s21421_s1 + $0x2484] ss:$16 sps:$4 sm:$0xff]  }
 0x454   :  { %10355 = vmatprep.subr.bf16.mxu0 %v15569_v9  ;;  %11380 = vmatprep.subr.bf16.mxu1 %v15572_v10  ;;  %v15664_v9 = vld [vmem:[%s21421_s1 + $0x248c] ss:$16 sps:$4 sm:$0xff]   ;;  %v15659_v10 = vld [vmem:[%s21421_s1 + $0x2480] ss:$16 sps:$4 sm:$0xff]  }
 0x457   :  { %10356 = vmatpush1.bf16.msra.mxu0 %v15567_v12  ;;  %11381 = vmatpush1.bf16.msra.mxu1 %v15570_v13  ;;  %v15662_v12 = vld [vmem:[%s21421_s1 + $0x2488] ss:$16 sps:$4 sm:$0xff]   ;;  %v15667_v13 = vld [vmem:[%s21421_s1 + $0x24a4] ss:$16 sps:$4 sm:$0xff]  }
 0x458   :  { %10357 = vmatprep.subr.bf16.mxu0 %v15575_v15  ;;  %11382 = vmatprep.subr.bf16.mxu1 %v15578_v11  ;;  %v15670_v15 = vld [vmem:[%s21421_s1 + $0x24ac] ss:$16 sps:$4 sm:$0xff]   ;;  %v15665_v11 = vld [vmem:[%s21421_s1 + $0x24a0] ss:$16 sps:$4 sm:$0xff]  }
 0x45b   :  { %10358 = vmatpush1.bf16.msra.mxu0 %v15573_v17  ;;  %11383 = vmatpush1.bf16.msra.mxu1 %v15576_v14  ;;  %v15668_v17 = vld [vmem:[%s21421_s1 + $0x24a8] ss:$16 sps:$4 sm:$0xff]   ;;  %v15673_v14 = vld [vmem:[%s21421_s1 + $0x24c4] ss:$16 sps:$4 sm:$0xff]  }
 0x45c   :  { %10359 = vmatprep.subr.bf16.mxu0 %v15581_v19  ;;  %11384 = vmatprep.subr.bf16.mxu1 %v15584_v20  ;;  %v15676_v19 = vld [vmem:[%s21421_s1 + $0x24cc] ss:$16 sps:$4 sm:$0xff]   ;;  %v15671_v20 = vld [vmem:[%s21421_s1 + $0x24c0] ss:$16 sps:$4 sm:$0xff]  }
 0x45f   :  { %10360 = vmatpush1.bf16.msra.mxu0 %v15579_v16  ;;  %11385 = vmatpush1.bf16.msra.mxu1 %v15582_v22  ;;  %v15674_v16 = vld [vmem:[%s21421_s1 + $0x24c8] ss:$16 sps:$4 sm:$0xff]   ;;  %v15679_v22 = vld [vmem:[%s21421_s1 + $0x24e4] ss:$16 sps:$4 sm:$0xff]  }
 0x460   :  { %10361 = vmatprep.subr.bf16.mxu0 %v15587_v23  ;;  %11386 = vmatprep.subr.bf16.mxu1 %v15590_v18  ;;  %v15682_v23 = vld [vmem:[%s21421_s1 + $0x24ec] ss:$16 sps:$4 sm:$0xff]   ;;  %v15677_v18 = vld [vmem:[%s21421_s1 + $0x24e0] ss:$16 sps:$4 sm:$0xff]  }
 0x463   :  { %10362 = vmatpush1.bf16.msra.mxu0 %v15585_v25  ;;  %11387 = vmatpush1.bf16.msra.mxu1 %v15588_v26  ;;  %v15680_v25 = vld [vmem:[%s21421_s1 + $0x24e8] ss:$16 sps:$4 sm:$0xff]   ;;  %v15685_v26 = vld [vmem:[%s21421_s1 + $0x2504] ss:$16 sps:$4 sm:$0xff]  }
 0x464   :  { %10363 = vmatprep.subr.bf16.mxu0 %v15593_v21  ;;  %11388 = vmatprep.subr.bf16.mxu1 %v15596_v28  ;;  %v15688_v21 = vld [vmem:[%s21421_s1 + $0x250c] ss:$16 sps:$4 sm:$0xff]   ;;  %v15683_v28 = vld [vmem:[%s21421_s1 + $0x2500] ss:$16 sps:$4 sm:$0xff]  }
 0x467   :  { %10364 = vmatpush1.bf16.msra.mxu0 %v15591_v29  ;;  %11389 = vmatpush1.bf16.msra.mxu1 %v15594_v24  ;;  %v15686_v29 = vld [vmem:[%s21421_s1 + $0x2508] ss:$16 sps:$4 sm:$0xff]   ;;  %v15691_v24 = vld [vmem:[%s21421_s1 + $0x2524] ss:$16 sps:$4 sm:$0xff]  }
 0x468   :  { %10365 = vmatprep.subr.bf16.mxu0 %v15599_v31  ;;  %11390 = vmatprep.subr.bf16.mxu1 %v15602_v32  ;;  %v15694_v31 = vld [vmem:[%s21421_s1 + $0x252c] ss:$16 sps:$4 sm:$0xff]   ;;  %v15689_v32 = vld [vmem:[%s21421_s1 + $0x2520] ss:$16 sps:$4 sm:$0xff]  }
 0x46b   :  { %10366 = vmatpush1.bf16.msra.mxu0 %v15597_v27  ;;  %11391 = vmatpush1.bf16.msra.mxu1 %v15600_v34  ;;  %v15692_v27 = vld [vmem:[%s21421_s1 + $0x2528] ss:$16 sps:$4 sm:$0xff]   ;;  %v15697_v34 = vld [vmem:[%s21421_s1 + $0x2544] ss:$16 sps:$4 sm:$0xff]  }
 0x46c   :  { %10367 = vmatprep.subr.bf16.mxu0 %v15605_v35  ;;  %11392 = vmatprep.subr.bf16.mxu1 %v15608_v30  ;;  %v15700_v35 = vld [vmem:[%s21421_s1 + $0x254c] ss:$16 sps:$4 sm:$0xff]   ;;  %v15695_v30 = vld [vmem:[%s21421_s1 + $0x2540] ss:$16 sps:$4 sm:$0xff]  }
 0x46f   :  { %10368 = vmatpush1.bf16.msra.mxu0 %v15603_v37  ;;  %11393 = vmatpush1.bf16.msra.mxu1 %v15606_v38  ;;  %v15698_v37 = vld [vmem:[%s21421_s1 + $0x2548] ss:$16 sps:$4 sm:$0xff]   ;;  %v15703_v38 = vld [vmem:[%s21421_s1 + $0x2564] ss:$16 sps:$4 sm:$0xff]  }
 0x470   :  { %10369 = vmatprep.subr.bf16.mxu0 %v15611_v33  ;;  %11394 = vmatprep.subr.bf16.mxu1 %v15614_v40  ;;  %v15706_v33 = vld [vmem:[%s21421_s1 + $0x256c] ss:$16 sps:$4 sm:$0xff]   ;;  %v15701_v40 = vld [vmem:[%s21421_s1 + $0x2560] ss:$16 sps:$4 sm:$0xff]  }
 0x473   :  { %10370 = vmatpush1.bf16.msra.mxu0 %v15609_v41  ;;  %11395 = vmatpush1.bf16.msra.mxu1 %v15612_v36  ;;  %v15704_v41 = vld [vmem:[%s21421_s1 + $0x2568] ss:$16 sps:$4 sm:$0xff]   ;;  %v15709_v36 = vld [vmem:[%s21421_s1 + $0x2584] ss:$16 sps:$4 sm:$0xff]  }
 0x474   :  { %10371 = vmatprep.subr.bf16.mxu0 %v15617_v43  ;;  %11396 = vmatprep.subr.bf16.mxu1 %v15620_v44  ;;  %v15712_v43 = vld [vmem:[%s21421_s1 + $0x258c] ss:$16 sps:$4 sm:$0xff]   ;;  %v15707_v44 = vld [vmem:[%s21421_s1 + $0x2580] ss:$16 sps:$4 sm:$0xff]  }
 0x477   :  { %10372 = vmatpush1.bf16.msra.mxu0 %v15615_v45  ;;  %11397 = vmatpush1.bf16.msra.mxu1 %v15618_v46  ;;  %v15710_v45 = vld [vmem:[%s21421_s1 + $0x2588] ss:$16 sps:$4 sm:$0xff]   ;;  %v15715_v46 = vld [vmem:[%s21421_s1 + $0x25a4] ss:$16 sps:$4 sm:$0xff]  }
 0x478   :  { %10373 = vmatprep.subr.bf16.mxu0 %v15623_v47  ;;  %11398 = vmatprep.subr.bf16.mxu1 %v15626_v42  ;;  %v15718_v47 = vld [vmem:[%s21421_s1 + $0x25ac] ss:$16 sps:$4 sm:$0xff]   ;;  %v15713_v42 = vld [vmem:[%s21421_s1 + $0x25a0] ss:$16 sps:$4 sm:$0xff]  }
 0x47b   :  { %10374 = vmatpush1.bf16.msra.mxu0 %v15621_v49  ;;  %11399 = vmatpush1.bf16.msra.mxu1 %v15624_v50  ;;  %v15716_v49 = vld [vmem:[%s21421_s1 + $0x25a8] ss:$16 sps:$4 sm:$0xff]   ;;  %v15721_v50 = vld [vmem:[%s21421_s1 + $0x25c4] ss:$16 sps:$4 sm:$0xff]  }
 0x47c   :  { %10375 = vmatprep.subr.bf16.mxu0 %v15629_v39  ;;  %11400 = vmatprep.subr.bf16.mxu1 %v15632_v52  ;;  %v15724_v39 = vld [vmem:[%s21421_s1 + $0x25cc] ss:$16 sps:$4 sm:$0xff]   ;;  %v15719_v52 = vld [vmem:[%s21421_s1 + $0x25c0] ss:$16 sps:$4 sm:$0xff]  }
 0x47f   :  { %10376 = vmatpush1.bf16.msra.mxu0 %v15627_v53  ;;  %11401 = vmatpush1.bf16.msra.mxu1 %v15630_v48  ;;  %v15722_v53 = vld [vmem:[%s21421_s1 + $0x25c8] ss:$16 sps:$4 sm:$0xff]   ;;  %v15727_v48 = vld [vmem:[%s21421_s1 + $0x25e4] ss:$16 sps:$4 sm:$0xff]  }
 0x480   :  { %10386 = vmatprep.subr.bf16.mxu0 %v15637_v55  ;;  %11411 = vmatprep.subr.bf16.mxu1 %v15640_v56  ;;  %v15730_v55 = vld [vmem:[%s21421_s1 + $0x25ec] ss:$16 sps:$4 sm:$0xff]   ;;  %v15725_v56 = vld [vmem:[%s21421_s1 + $0x25e0] ss:$16 sps:$4 sm:$0xff]  }
 0x482   :  { %10378 = vmatmul.mubr.bf16.vlgmr.msra.gmra.mrb[0].mxu0 %v11956_v51  ;;  %11403 = vmatmul.mubr.bf16.vlgmr.msra.gmra.mrb[0].mxu1 %v11956_v51  ;;  %v15728_v51 = vld [vmem:[%s21421_s1 + $0x25e8] ss:$16 sps:$4 sm:$0xff]  }
 0x483   :  { %10387 = vmatpush1.bf16.msra.mxu0 %v15635_v58  ;;  %11412 = vmatpush1.bf16.msra.mxu1 %v15638_v59  ;;  %v15735_v58 = vld [vmem:[%s21421_s1 + $0x2604] ss:$16 sps:$4 sm:$0xff]   ;;  %v15738_v59 = vld [vmem:[%s21421_s1 + $0x260c] ss:$16 sps:$4 sm:$0xff]  }
 0x484   :  { %10388 = vmatprep.subr.bf16.mxu0 %v15643_v54  ;;  %11413 = vmatprep.subr.bf16.mxu1 %v15646_v60  ;;  %v11958_v54 = vcombine.low %v19924_v57, %v19924_v57  ;;  %v20125_v60 = vld [vmem:[%s21422_s0 + $0x98] sm:$0xff]  ;;  %v15741_v57 = vld [vmem:[%s21421_s1 + $0x2624] ss:$16 sps:$4 sm:$0xff]  }
 0x485   :  { %10418 = vmatprep.mubr.bf16.mxu0 %v11959_v61  ;;  %11443 = vmatprep.mubr.bf16.mxu1 %v11959_v61  ;;  %v15733_v61 = vld [vmem:[%s21421_s1 + $0x2600] ss:$16 sps:$4 sm:$0xff]  }
 0x487   :  { %10389 = vmatpush1.bf16.msra.mxu0 %v15641_v62  ;;  %11414 = vmatpush1.bf16.msra.mxu1 %v15644_v63  ;;  %v15736_v62 = vld [vmem:[%s21421_s1 + $0x2608] ss:$16 sps:$4 sm:$0xff]   ;;  %v15744_v63 = vld [vmem:[%s21421_s1 + $0x262c] ss:$16 sps:$4 sm:$0xff]  }
 0x488   :  { %10390 = vmatprep.subr.bf16.mxu0 %v15649_v0  ;;  %11415 = vmatprep.subr.bf16.mxu1 %v15652_v1  ;;  %v11961_v0 = vcombine.high %v20125_v60, %v20125_v60  ;;  %v15739_v1 = vld [vmem:[%s21421_s1 + $0x2620] ss:$16 sps:$4 sm:$0xff]  }
 0x48b   :  { %10391 = vmatpush1.bf16.msra.mxu0 %v15647_v2  ;;  %11416 = vmatpush1.bf16.msra.mxu1 %v15650_v3  ;;  %v15742_v2 = vld [vmem:[%s21421_s1 + $0x2628] ss:$16 sps:$4 sm:$0xff]   ;;  %v15747_v3 = vld [vmem:[%s21421_s1 + $0x2644] ss:$16 sps:$4 sm:$0xff]  }
 0x48c   :  { %10392 = vmatprep.subr.bf16.mxu0 %v15655_v4  ;;  %11417 = vmatprep.subr.bf16.mxu1 %v15658_v5  ;;  %v15750_v4 = vld [vmem:[%s21421_s1 + $0x264c] ss:$16 sps:$4 sm:$0xff]   ;;  %v15745_v5 = vld [vmem:[%s21421_s1 + $0x2640] ss:$16 sps:$4 sm:$0xff]  }
 0x48f   :  { %10393 = vmatpush1.bf16.msra.mxu0 %v15653_v6  ;;  %11418 = vmatpush1.bf16.msra.mxu1 %v15656_v7  ;;  %v15748_v6 = vld [vmem:[%s21421_s1 + $0x2648] ss:$16 sps:$4 sm:$0xff]   ;;  %v15753_v7 = vld [vmem:[%s21421_s1 + $0x2664] ss:$16 sps:$4 sm:$0xff]  }
 0x490   :  { %10394 = vmatprep.subr.bf16.mxu0 %v15661_v8  ;;  %11419 = vmatprep.subr.bf16.mxu1 %v15664_v9  ;;  %v15756_v8 = vld [vmem:[%s21421_s1 + $0x266c] ss:$16 sps:$4 sm:$0xff]   ;;  %v15751_v9 = vld [vmem:[%s21421_s1 + $0x2660] ss:$16 sps:$4 sm:$0xff]  }
 0x493   :  { %10395 = vmatpush1.bf16.msra.mxu0 %v15659_v10  ;;  %11420 = vmatpush1.bf16.msra.mxu1 %v15662_v12  ;;  %v15754_v10 = vld [vmem:[%s21421_s1 + $0x2668] ss:$16 sps:$4 sm:$0xff]   ;;  %v15759_v12 = vld [vmem:[%s21421_s1 + $0x2684] ss:$16 sps:$4 sm:$0xff]  }
 0x494   :  { %10396 = vmatprep.subr.bf16.mxu0 %v15667_v13  ;;  %11421 = vmatprep.subr.bf16.mxu1 %v15670_v15  ;;  %v15762_v13 = vld [vmem:[%s21421_s1 + $0x268c] ss:$16 sps:$4 sm:$0xff]   ;;  %v15757_v15 = vld [vmem:[%s21421_s1 + $0x2680] ss:$16 sps:$4 sm:$0xff]  }
 0x497   :  { %10397 = vmatpush1.bf16.msra.mxu0 %v15665_v11  ;;  %11422 = vmatpush1.bf16.msra.mxu1 %v15668_v17  ;;  %v15760_v11 = vld [vmem:[%s21421_s1 + $0x2688] ss:$16 sps:$4 sm:$0xff]   ;;  %v15765_v17 = vld [vmem:[%s21421_s1 + $0x26a4] ss:$16 sps:$4 sm:$0xff]  }
 0x498   :  { %10398 = vmatprep.subr.bf16.mxu0 %v15673_v14  ;;  %11423 = vmatprep.subr.bf16.mxu1 %v15676_v19  ;;  %v15768_v14 = vld [vmem:[%s21421_s1 + $0x26ac] ss:$16 sps:$4 sm:$0xff]   ;;  %v15763_v19 = vld [vmem:[%s21421_s1 + $0x26a0] ss:$16 sps:$4 sm:$0xff]  }
 0x49b   :  { %10399 = vmatpush1.bf16.msra.mxu0 %v15671_v20  ;;  %11424 = vmatpush1.bf16.msra.mxu1 %v15674_v16  ;;  %v15766_v20 = vld [vmem:[%s21421_s1 + $0x26a8] ss:$16 sps:$4 sm:$0xff]   ;;  %v15771_v16 = vld [vmem:[%s21421_s1 + $0x26c4] ss:$16 sps:$4 sm:$0xff]  }
 0x49c   :  { %10400 = vmatprep.subr.bf16.mxu0 %v15679_v22  ;;  %11425 = vmatprep.subr.bf16.mxu1 %v15682_v23  ;;  %v15774_v22 = vld [vmem:[%s21421_s1 + $0x26cc] ss:$16 sps:$4 sm:$0xff]   ;;  %v15769_v23 = vld [vmem:[%s21421_s1 + $0x26c0] ss:$16 sps:$4 sm:$0xff]  }
 0x49f   :  { %10401 = vmatpush1.bf16.msra.mxu0 %v15677_v18  ;;  %11426 = vmatpush1.bf16.msra.mxu1 %v15680_v25  ;;  %v15772_v18 = vld [vmem:[%s21421_s1 + $0x26c8] ss:$16 sps:$4 sm:$0xff]   ;;  %v15777_v25 = vld [vmem:[%s21421_s1 + $0x26e4] ss:$16 sps:$4 sm:$0xff]  }
 0x4a0   :  { %10402 = vmatprep.subr.bf16.mxu0 %v15685_v26  ;;  %11427 = vmatprep.subr.bf16.mxu1 %v15688_v21  ;;  %v15780_v26 = vld [vmem:[%s21421_s1 + $0x26ec] ss:$16 sps:$4 sm:$0xff]   ;;  %v15775_v21 = vld [vmem:[%s21421_s1 + $0x26e0] ss:$16 sps:$4 sm:$0xff]  }
 0x4a3   :  { %10403 = vmatpush1.bf16.msra.mxu0 %v15683_v28  ;;  %11428 = vmatpush1.bf16.msra.mxu1 %v15686_v29  ;;  %v15778_v28 = vld [vmem:[%s21421_s1 + $0x26e8] ss:$16 sps:$4 sm:$0xff]   ;;  %v15783_v29 = vld [vmem:[%s21421_s1 + $0x2704] ss:$16 sps:$4 sm:$0xff]  }
 0x4a4   :  { %10404 = vmatprep.subr.bf16.mxu0 %v15691_v24  ;;  %11429 = vmatprep.subr.bf16.mxu1 %v15694_v31  ;;  %v15786_v24 = vld [vmem:[%s21421_s1 + $0x270c] ss:$16 sps:$4 sm:$0xff]   ;;  %v15781_v31 = vld [vmem:[%s21421_s1 + $0x2700] ss:$16 sps:$4 sm:$0xff]  }
 0x4a7   :  { %10405 = vmatpush1.bf16.msra.mxu0 %v15689_v32  ;;  %11430 = vmatpush1.bf16.msra.mxu1 %v15692_v27  ;;  %v15784_v32 = vld [vmem:[%s21421_s1 + $0x2708] ss:$16 sps:$4 sm:$0xff]   ;;  %v15789_v27 = vld [vmem:[%s21421_s1 + $0x2724] ss:$16 sps:$4 sm:$0xff]  }
 0x4a8   :  { %10406 = vmatprep.subr.bf16.mxu0 %v15697_v34  ;;  %11431 = vmatprep.subr.bf16.mxu1 %v15700_v35  ;;  %v15792_v34 = vld [vmem:[%s21421_s1 + $0x272c] ss:$16 sps:$4 sm:$0xff]   ;;  %v15787_v35 = vld [vmem:[%s21421_s1 + $0x2720] ss:$16 sps:$4 sm:$0xff]  }
 0x4ab   :  { %10407 = vmatpush1.bf16.msra.mxu0 %v15695_v30  ;;  %11432 = vmatpush1.bf16.msra.mxu1 %v15698_v37  ;;  %v15790_v30 = vld [vmem:[%s21421_s1 + $0x2728] ss:$16 sps:$4 sm:$0xff]   ;;  %v15795_v37 = vld [vmem:[%s21421_s1 + $0x2744] ss:$16 sps:$4 sm:$0xff]  }
 0x4ac   :  { %10408 = vmatprep.subr.bf16.mxu0 %v15703_v38  ;;  %11433 = vmatprep.subr.bf16.mxu1 %v15706_v33  ;;  %v15798_v38 = vld [vmem:[%s21421_s1 + $0x274c] ss:$16 sps:$4 sm:$0xff]   ;;  %v15793_v33 = vld [vmem:[%s21421_s1 + $0x2740] ss:$16 sps:$4 sm:$0xff]  }
 0x4af   :  { %10409 = vmatpush1.bf16.msra.mxu0 %v15701_v40  ;;  %11434 = vmatpush1.bf16.msra.mxu1 %v15704_v41  ;;  %v15796_v40 = vld [vmem:[%s21421_s1 + $0x2748] ss:$16 sps:$4 sm:$0xff]   ;;  %v15801_v41 = vld [vmem:[%s21421_s1 + $0x2764] ss:$16 sps:$4 sm:$0xff]  }
 0x4b0   :  { %10410 = vmatprep.subr.bf16.mxu0 %v15709_v36  ;;  %11435 = vmatprep.subr.bf16.mxu1 %v15712_v43  ;;  %v15804_v36 = vld [vmem:[%s21421_s1 + $0x276c] ss:$16 sps:$4 sm:$0xff]   ;;  %v15799_v43 = vld [vmem:[%s21421_s1 + $0x2760] ss:$16 sps:$4 sm:$0xff]  }
 0x4b3   :  { %10411 = vmatpush1.bf16.msra.mxu0 %v15707_v44  ;;  %11436 = vmatpush1.bf16.msra.mxu1 %v15710_v45  ;;  %v15802_v44 = vld [vmem:[%s21421_s1 + $0x2768] ss:$16 sps:$4 sm:$0xff]   ;;  %v15807_v45 = vld [vmem:[%s21421_s1 + $0x2784] ss:$16 sps:$4 sm:$0xff]  }
 0x4b4   :  { %10412 = vmatprep.subr.bf16.mxu0 %v15715_v46  ;;  %11437 = vmatprep.subr.bf16.mxu1 %v15718_v47  ;;  %v15810_v46 = vld [vmem:[%s21421_s1 + $0x278c] ss:$16 sps:$4 sm:$0xff]   ;;  %v15805_v47 = vld [vmem:[%s21421_s1 + $0x2780] ss:$16 sps:$4 sm:$0xff]  }
 0x4b7   :  { %10413 = vmatpush1.bf16.msra.mxu0 %v15713_v42  ;;  %11438 = vmatpush1.bf16.msra.mxu1 %v15716_v49  ;;  %v15808_v42 = vld [vmem:[%s21421_s1 + $0x2788] ss:$16 sps:$4 sm:$0xff]   ;;  %v15813_v49 = vld [vmem:[%s21421_s1 + $0x27a4] ss:$16 sps:$4 sm:$0xff]  }
 0x4b8   :  { %10414 = vmatprep.subr.bf16.mxu0 %v15721_v50  ;;  %11439 = vmatprep.subr.bf16.mxu1 %v15724_v39  ;;  %v15816_v50 = vld [vmem:[%s21421_s1 + $0x27ac] ss:$16 sps:$4 sm:$0xff]   ;;  %v15811_v39 = vld [vmem:[%s21421_s1 + $0x27a0] ss:$16 sps:$4 sm:$0xff]  }
 0x4bb   :  { %10415 = vmatpush1.bf16.msra.mxu0 %v15719_v52  ;;  %11440 = vmatpush1.bf16.msra.mxu1 %v15722_v53  ;;  %v15814_v52 = vld [vmem:[%s21421_s1 + $0x27a8] ss:$16 sps:$4 sm:$0xff]   ;;  %v15819_v53 = vld [vmem:[%s21421_s1 + $0x27c4] ss:$16 sps:$4 sm:$0xff]  }
 0x4bc   :  { %10416 = vmatprep.subr.bf16.mxu0 %v15727_v48  ;;  %11441 = vmatprep.subr.bf16.mxu1 %v15730_v55  ;;  %v15822_v48 = vld [vmem:[%s21421_s1 + $0x27cc] ss:$16 sps:$4 sm:$0xff]   ;;  %v15817_v55 = vld [vmem:[%s21421_s1 + $0x27c0] ss:$16 sps:$4 sm:$0xff]  }
 0x4bf   :  { %10417 = vmatpush1.bf16.msra.mxu0 %v15725_v56  ;;  %11442 = vmatpush1.bf16.msra.mxu1 %v15728_v51  ;;  %v15820_v56 = vld [vmem:[%s21421_s1 + $0x27c8] ss:$16 sps:$4 sm:$0xff]   ;;  %v15825_v51 = vld [vmem:[%s21421_s1 + $0x27e4] ss:$16 sps:$4 sm:$0xff]  }
 0x4c0   :  { %10427 = vmatprep.subr.bf16.mxu0 %v15735_v58  ;;  %11452 = vmatprep.subr.bf16.mxu1 %v15738_v59  ;;  %v15828_v58 = vld [vmem:[%s21421_s1 + $0x27ec] ss:$16 sps:$4 sm:$0xff]   ;;  %v15823_v59 = vld [vmem:[%s21421_s1 + $0x27e0] ss:$16 sps:$4 sm:$0xff]  }
 0x4c2   :  { %10419 = vmatmul.mubr.bf16.vlgmr.msra.gmra.mrb[0].mxu0 %v11958_v54  ;;  %11444 = vmatmul.mubr.bf16.vlgmr.msra.gmra.mrb[0].mxu1 %v11958_v54  ;;  %v15826_v54 = vld [vmem:[%s21421_s1 + $0x27e8] ss:$16 sps:$4 sm:$0xff]  }
 0x4c3   :  { %10428 = vmatpush1.bf16.msra.mxu0 %v15733_v61  ;;  %11453 = vmatpush1.bf16.msra.mxu1 %v15736_v62  ;;  %v15833_v61 = vld [vmem:[%s21421_s1 + $0x2804] ss:$16 sps:$4 sm:$0xff]   ;;  %v15836_v62 = vld [vmem:[%s21421_s1 + $0x280c] ss:$16 sps:$4 sm:$0xff]  }
 0x4c4   :  { %10429 = vmatprep.subr.bf16.mxu0 %v15741_v57  ;;  %11454 = vmatprep.subr.bf16.mxu1 %v15744_v63  ;;  %v11960_v57 = vcombine.low %v20125_v60, %v20125_v60  ;;  %v20326_v63 = vld [vmem:[%s21422_s0 + $0xa0] sm:$0xff] }
 0x4c5   :  { %10459 = vmatprep.mubr.bf16.mxu0 %v11961_v0  ;;  %11484 = vmatprep.mubr.bf16.mxu1 %v11961_v0  ;;  %v15831_v0 = vld [vmem:[%s21421_s1 + $0x2800] ss:$16 sps:$4 sm:$0xff]   ;;  %v15839_v60 = vld [vmem:[%s21421_s1 + $0x2824] ss:$16 sps:$4 sm:$0xff]  }
 0x4c7   :  { %10430 = vmatpush1.bf16.msra.mxu0 %v15739_v1  ;;  %11455 = vmatpush1.bf16.msra.mxu1 %v15742_v2  ;;  %v15834_v1 = vld [vmem:[%s21421_s1 + $0x2808] ss:$16 sps:$4 sm:$0xff]   ;;  %v15842_v2 = vld [vmem:[%s21421_s1 + $0x282c] ss:$16 sps:$4 sm:$0xff]  }
 0x4c8   :  { %10431 = vmatprep.subr.bf16.mxu0 %v15747_v3  ;;  %11456 = vmatprep.subr.bf16.mxu1 %v15750_v4  ;;  %v11963_v3 = vcombine.high %v20326_v63, %v20326_v63  ;;  %v15837_v4 = vld [vmem:[%s21421_s1 + $0x2820] ss:$16 sps:$4 sm:$0xff]  }
 0x4cb   :  { %10432 = vmatpush1.bf16.msra.mxu0 %v15745_v5  ;;  %11457 = vmatpush1.bf16.msra.mxu1 %v15748_v6  ;;  %v15840_v5 = vld [vmem:[%s21421_s1 + $0x2828] ss:$16 sps:$4 sm:$0xff]   ;;  %v15845_v6 = vld [vmem:[%s21421_s1 + $0x2844] ss:$16 sps:$4 sm:$0xff]  }
 0x4cc   :  { %10433 = vmatprep.subr.bf16.mxu0 %v15753_v7  ;;  %11458 = vmatprep.subr.bf16.mxu1 %v15756_v8  ;;  %v15848_v7 = vld [vmem:[%s21421_s1 + $0x284c] ss:$16 sps:$4 sm:$0xff]   ;;  %v15843_v8 = vld [vmem:[%s21421_s1 + $0x2840] ss:$16 sps:$4 sm:$0xff]  }
 0x4cf   :  { %10434 = vmatpush1.bf16.msra.mxu0 %v15751_v9  ;;  %11459 = vmatpush1.bf16.msra.mxu1 %v15754_v10  ;;  %v15846_v9 = vld [vmem:[%s21421_s1 + $0x2848] ss:$16 sps:$4 sm:$0xff]   ;;  %v15851_v10 = vld [vmem:[%s21421_s1 + $0x2864] ss:$16 sps:$4 sm:$0xff]  }
 0x4d0   :  { %10435 = vmatprep.subr.bf16.mxu0 %v15759_v12  ;;  %11460 = vmatprep.subr.bf16.mxu1 %v15762_v13  ;;  %v15854_v12 = vld [vmem:[%s21421_s1 + $0x286c] ss:$16 sps:$4 sm:$0xff]   ;;  %v15849_v13 = vld [vmem:[%s21421_s1 + $0x2860] ss:$16 sps:$4 sm:$0xff]  }
 0x4d3   :  { %10436 = vmatpush1.bf16.msra.mxu0 %v15757_v15  ;;  %11461 = vmatpush1.bf16.msra.mxu1 %v15760_v11  ;;  %v15852_v15 = vld [vmem:[%s21421_s1 + $0x2868] ss:$16 sps:$4 sm:$0xff]   ;;  %v15857_v11 = vld [vmem:[%s21421_s1 + $0x2884] ss:$16 sps:$4 sm:$0xff]  }
 0x4d4   :  { %10437 = vmatprep.subr.bf16.mxu0 %v15765_v17  ;;  %11462 = vmatprep.subr.bf16.mxu1 %v15768_v14  ;;  %v15860_v17 = vld [vmem:[%s21421_s1 + $0x288c] ss:$16 sps:$4 sm:$0xff]   ;;  %v15855_v14 = vld [vmem:[%s21421_s1 + $0x2880] ss:$16 sps:$4 sm:$0xff]  }
 0x4d7   :  { %10438 = vmatpush1.bf16.msra.mxu0 %v15763_v19  ;;  %11463 = vmatpush1.bf16.msra.mxu1 %v15766_v20  ;;  %v15858_v19 = vld [vmem:[%s21421_s1 + $0x2888] ss:$16 sps:$4 sm:$0xff]   ;;  %v15863_v20 = vld [vmem:[%s21421_s1 + $0x28a4] ss:$16 sps:$4 sm:$0xff]  }
 0x4d8   :  { %10439 = vmatprep.subr.bf16.mxu0 %v15771_v16  ;;  %11464 = vmatprep.subr.bf16.mxu1 %v15774_v22  ;;  %v15866_v16 = vld [vmem:[%s21421_s1 + $0x28ac] ss:$16 sps:$4 sm:$0xff]   ;;  %v15861_v22 = vld [vmem:[%s21421_s1 + $0x28a0] ss:$16 sps:$4 sm:$0xff]  }
 0x4db   :  { %10440 = vmatpush1.bf16.msra.mxu0 %v15769_v23  ;;  %11465 = vmatpush1.bf16.msra.mxu1 %v15772_v18  ;;  %v15864_v23 = vld [vmem:[%s21421_s1 + $0x28a8] ss:$16 sps:$4 sm:$0xff]   ;;  %v15869_v18 = vld [vmem:[%s21421_s1 + $0x28c4] ss:$16 sps:$4 sm:$0xff]  }
 0x4dc   :  { %10441 = vmatprep.subr.bf16.mxu0 %v15777_v25  ;;  %11466 = vmatprep.subr.bf16.mxu1 %v15780_v26  ;;  %v15872_v25 = vld [vmem:[%s21421_s1 + $0x28cc] ss:$16 sps:$4 sm:$0xff]   ;;  %v15867_v26 = vld [vmem:[%s21421_s1 + $0x28c0] ss:$16 sps:$4 sm:$0xff]  }
 0x4df   :  { %10442 = vmatpush1.bf16.msra.mxu0 %v15775_v21  ;;  %11467 = vmatpush1.bf16.msra.mxu1 %v15778_v28  ;;  %v15870_v21 = vld [vmem:[%s21421_s1 + $0x28c8] ss:$16 sps:$4 sm:$0xff]   ;;  %v15875_v28 = vld [vmem:[%s21421_s1 + $0x28e4] ss:$16 sps:$4 sm:$0xff]  }
 0x4e0   :  { %10443 = vmatprep.subr.bf16.mxu0 %v15783_v29  ;;  %11468 = vmatprep.subr.bf16.mxu1 %v15786_v24  ;;  %v15878_v29 = vld [vmem:[%s21421_s1 + $0x28ec] ss:$16 sps:$4 sm:$0xff]   ;;  %v15873_v24 = vld [vmem:[%s21421_s1 + $0x28e0] ss:$16 sps:$4 sm:$0xff]  }
 0x4e3   :  { %10444 = vmatpush1.bf16.msra.mxu0 %v15781_v31  ;;  %11469 = vmatpush1.bf16.msra.mxu1 %v15784_v32  ;;  %v15876_v31 = vld [vmem:[%s21421_s1 + $0x28e8] ss:$16 sps:$4 sm:$0xff]   ;;  %v15881_v32 = vld [vmem:[%s21421_s1 + $0x2904] ss:$16 sps:$4 sm:$0xff]  }
 0x4e4   :  { %10445 = vmatprep.subr.bf16.mxu0 %v15789_v27  ;;  %11470 = vmatprep.subr.bf16.mxu1 %v15792_v34  ;;  %v15884_v27 = vld [vmem:[%s21421_s1 + $0x290c] ss:$16 sps:$4 sm:$0xff]   ;;  %v15879_v34 = vld [vmem:[%s21421_s1 + $0x2900] ss:$16 sps:$4 sm:$0xff]  }
 0x4e7   :  { %10446 = vmatpush1.bf16.msra.mxu0 %v15787_v35  ;;  %11471 = vmatpush1.bf16.msra.mxu1 %v15790_v30  ;;  %v15882_v35 = vld [vmem:[%s21421_s1 + $0x2908] ss:$16 sps:$4 sm:$0xff]   ;;  %v15887_v30 = vld [vmem:[%s21421_s1 + $0x2924] ss:$16 sps:$4 sm:$0xff]  }
 0x4e8   :  { %10447 = vmatprep.subr.bf16.mxu0 %v15795_v37  ;;  %11472 = vmatprep.subr.bf16.mxu1 %v15798_v38  ;;  %v15890_v37 = vld [vmem:[%s21421_s1 + $0x292c] ss:$16 sps:$4 sm:$0xff]   ;;  %v15885_v38 = vld [vmem:[%s21421_s1 + $0x2920] ss:$16 sps:$4 sm:$0xff]  }
 0x4eb   :  { %10448 = vmatpush1.bf16.msra.mxu0 %v15793_v33  ;;  %11473 = vmatpush1.bf16.msra.mxu1 %v15796_v40  ;;  %v15888_v33 = vld [vmem:[%s21421_s1 + $0x2928] ss:$16 sps:$4 sm:$0xff]   ;;  %v15893_v40 = vld [vmem:[%s21421_s1 + $0x2944] ss:$16 sps:$4 sm:$0xff]  }
 0x4ec   :  { %10449 = vmatprep.subr.bf16.mxu0 %v15801_v41  ;;  %11474 = vmatprep.subr.bf16.mxu1 %v15804_v36  ;;  %v15896_v41 = vld [vmem:[%s21421_s1 + $0x294c] ss:$16 sps:$4 sm:$0xff]   ;;  %v15891_v36 = vld [vmem:[%s21421_s1 + $0x2940] ss:$16 sps:$4 sm:$0xff]  }
 0x4ef   :  { %10450 = vmatpush1.bf16.msra.mxu0 %v15799_v43  ;;  %11475 = vmatpush1.bf16.msra.mxu1 %v15802_v44  ;;  %v15894_v43 = vld [vmem:[%s21421_s1 + $0x2948] ss:$16 sps:$4 sm:$0xff]   ;;  %v15899_v44 = vld [vmem:[%s21421_s1 + $0x2964] ss:$16 sps:$4 sm:$0xff]  }
 0x4f0   :  { %10451 = vmatprep.subr.bf16.mxu0 %v15807_v45  ;;  %11476 = vmatprep.subr.bf16.mxu1 %v15810_v46  ;;  %v15902_v45 = vld [vmem:[%s21421_s1 + $0x296c] ss:$16 sps:$4 sm:$0xff]   ;;  %v15897_v46 = vld [vmem:[%s21421_s1 + $0x2960] ss:$16 sps:$4 sm:$0xff]  }
 0x4f3   :  { %10452 = vmatpush1.bf16.msra.mxu0 %v15805_v47  ;;  %11477 = vmatpush1.bf16.msra.mxu1 %v15808_v42  ;;  %v15900_v47 = vld [vmem:[%s21421_s1 + $0x2968] ss:$16 sps:$4 sm:$0xff]   ;;  %v15905_v42 = vld [vmem:[%s21421_s1 + $0x2984] ss:$16 sps:$4 sm:$0xff]  }
 0x4f4   :  { %10453 = vmatprep.subr.bf16.mxu0 %v15813_v49  ;;  %11478 = vmatprep.subr.bf16.mxu1 %v15816_v50  ;;  %v15908_v49 = vld [vmem:[%s21421_s1 + $0x298c] ss:$16 sps:$4 sm:$0xff]   ;;  %v15903_v50 = vld [vmem:[%s21421_s1 + $0x2980] ss:$16 sps:$4 sm:$0xff]  }
 0x4f7   :  { %10454 = vmatpush1.bf16.msra.mxu0 %v15811_v39  ;;  %11479 = vmatpush1.bf16.msra.mxu1 %v15814_v52  ;;  %v15906_v39 = vld [vmem:[%s21421_s1 + $0x2988] ss:$16 sps:$4 sm:$0xff]   ;;  %v15911_v52 = vld [vmem:[%s21421_s1 + $0x29a4] ss:$16 sps:$4 sm:$0xff]  }
 0x4f8   :  { %10455 = vmatprep.subr.bf16.mxu0 %v15819_v53  ;;  %11480 = vmatprep.subr.bf16.mxu1 %v15822_v48  ;;  %v15914_v53 = vld [vmem:[%s21421_s1 + $0x29ac] ss:$16 sps:$4 sm:$0xff]   ;;  %v15909_v48 = vld [vmem:[%s21421_s1 + $0x29a0] ss:$16 sps:$4 sm:$0xff]  }
 0x4fb   :  { %10456 = vmatpush1.bf16.msra.mxu0 %v15817_v55  ;;  %11481 = vmatpush1.bf16.msra.mxu1 %v15820_v56  ;;  %v15912_v55 = vld [vmem:[%s21421_s1 + $0x29a8] ss:$16 sps:$4 sm:$0xff]   ;;  %v15917_v56 = vld [vmem:[%s21421_s1 + $0x29c4] ss:$16 sps:$4 sm:$0xff]  }
 0x4fc   :  { %10457 = vmatprep.subr.bf16.mxu0 %v15825_v51  ;;  %11482 = vmatprep.subr.bf16.mxu1 %v15828_v58  ;;  %v15920_v51 = vld [vmem:[%s21421_s1 + $0x29cc] ss:$16 sps:$4 sm:$0xff]   ;;  %v15915_v58 = vld [vmem:[%s21421_s1 + $0x29c0] ss:$16 sps:$4 sm:$0xff]  }
 0x4ff   :  { %10458 = vmatpush1.bf16.msra.mxu0 %v15823_v59  ;;  %11483 = vmatpush1.bf16.msra.mxu1 %v15826_v54  ;;  %v15918_v59 = vld [vmem:[%s21421_s1 + $0x29c8] ss:$16 sps:$4 sm:$0xff]   ;;  %v15923_v54 = vld [vmem:[%s21421_s1 + $0x29e4] ss:$16 sps:$4 sm:$0xff]  }
 0x500   :  { %10468 = vmatprep.subr.bf16.mxu0 %v15833_v61  ;;  %11493 = vmatprep.subr.bf16.mxu1 %v15836_v62  ;;  %v15926_v61 = vld [vmem:[%s21421_s1 + $0x29ec] ss:$16 sps:$4 sm:$0xff]   ;;  %v15921_v62 = vld [vmem:[%s21421_s1 + $0x29e0] ss:$16 sps:$4 sm:$0xff]  }
 0x502   :  { %10460 = vmatmul.mubr.bf16.vlgmr.msra.gmra.mrb[0].mxu0 %v11960_v57  ;;  %11485 = vmatmul.mubr.bf16.vlgmr.msra.gmra.mrb[0].mxu1 %v11960_v57  ;;  %v15924_v57 = vld [vmem:[%s21421_s1 + $0x29e8] ss:$16 sps:$4 sm:$0xff]  }
 0x503   :  { %10469 = vmatpush1.bf16.msra.mxu0 %v15831_v0  ;;  %11494 = vmatpush1.bf16.msra.mxu1 %v15834_v1  ;;  %v15931_v0 = vld [vmem:[%s21421_s1 + $0x2a04] ss:$16 sps:$4 sm:$0xff]   ;;  %v15934_v1 = vld [vmem:[%s21421_s1 + $0x2a0c] ss:$16 sps:$4 sm:$0xff]  }
 0x504   :  { %10470 = vmatprep.subr.bf16.mxu0 %v15839_v60  ;;  %11495 = vmatprep.subr.bf16.mxu1 %v15842_v2  ;;  %v11962_v60 = vcombine.low %v20326_v63, %v20326_v63  ;;  %v20527_v2 = vld [vmem:[%s21422_s0 + $0xa8] sm:$0xff]  ;;  %v15937_v63 = vld [vmem:[%s21421_s1 + $0x2a24] ss:$16 sps:$4 sm:$0xff]  }
 0x505   :  { %10500 = vmatprep.mubr.bf16.mxu0 %v11963_v3  ;;  %11525 = vmatprep.mubr.bf16.mxu1 %v11963_v3  ;;  %v15929_v3 = vld [vmem:[%s21421_s1 + $0x2a00] ss:$16 sps:$4 sm:$0xff]  }
 0x507   :  { %10471 = vmatpush1.bf16.msra.mxu0 %v15837_v4  ;;  %11496 = vmatpush1.bf16.msra.mxu1 %v15840_v5  ;;  %v15932_v4 = vld [vmem:[%s21421_s1 + $0x2a08] ss:$16 sps:$4 sm:$0xff]   ;;  %v15940_v5 = vld [vmem:[%s21421_s1 + $0x2a2c] ss:$16 sps:$4 sm:$0xff]  }
 0x508   :  { %10472 = vmatprep.subr.bf16.mxu0 %v15845_v6  ;;  %11497 = vmatprep.subr.bf16.mxu1 %v15848_v7  ;;  %v11965_v6 = vcombine.high %v20527_v2, %v20527_v2  ;;  %v15935_v7 = vld [vmem:[%s21421_s1 + $0x2a20] ss:$16 sps:$4 sm:$0xff]  }
 0x50b   :  { %10473 = vmatpush1.bf16.msra.mxu0 %v15843_v8  ;;  %11498 = vmatpush1.bf16.msra.mxu1 %v15846_v9  ;;  %v15938_v8 = vld [vmem:[%s21421_s1 + $0x2a28] ss:$16 sps:$4 sm:$0xff]   ;;  %v15943_v9 = vld [vmem:[%s21421_s1 + $0x2a44] ss:$16 sps:$4 sm:$0xff]  }
 0x50c   :  { %10474 = vmatprep.subr.bf16.mxu0 %v15851_v10  ;;  %11499 = vmatprep.subr.bf16.mxu1 %v15854_v12  ;;  %v15946_v10 = vld [vmem:[%s21421_s1 + $0x2a4c] ss:$16 sps:$4 sm:$0xff]   ;;  %v15941_v12 = vld [vmem:[%s21421_s1 + $0x2a40] ss:$16 sps:$4 sm:$0xff]  }
 0x50f   :  { %10475 = vmatpush1.bf16.msra.mxu0 %v15849_v13  ;;  %11500 = vmatpush1.bf16.msra.mxu1 %v15852_v15  ;;  %v15944_v13 = vld [vmem:[%s21421_s1 + $0x2a48] ss:$16 sps:$4 sm:$0xff]   ;;  %v15949_v15 = vld [vmem:[%s21421_s1 + $0x2a64] ss:$16 sps:$4 sm:$0xff]  }
 0x510   :  { %10476 = vmatprep.subr.bf16.mxu0 %v15857_v11  ;;  %11501 = vmatprep.subr.bf16.mxu1 %v15860_v17  ;;  %v15952_v11 = vld [vmem:[%s21421_s1 + $0x2a6c] ss:$16 sps:$4 sm:$0xff]   ;;  %v15947_v17 = vld [vmem:[%s21421_s1 + $0x2a60] ss:$16 sps:$4 sm:$0xff]  }
 0x513   :  { %10477 = vmatpush1.bf16.msra.mxu0 %v15855_v14  ;;  %11502 = vmatpush1.bf16.msra.mxu1 %v15858_v19  ;;  %v15950_v14 = vld [vmem:[%s21421_s1 + $0x2a68] ss:$16 sps:$4 sm:$0xff]   ;;  %v15955_v19 = vld [vmem:[%s21421_s1 + $0x2a84] ss:$16 sps:$4 sm:$0xff]  }
 0x514   :  { %10478 = vmatprep.subr.bf16.mxu0 %v15863_v20  ;;  %11503 = vmatprep.subr.bf16.mxu1 %v15866_v16  ;;  %v15958_v20 = vld [vmem:[%s21421_s1 + $0x2a8c] ss:$16 sps:$4 sm:$0xff]   ;;  %v15953_v16 = vld [vmem:[%s21421_s1 + $0x2a80] ss:$16 sps:$4 sm:$0xff]  }
 0x517   :  { %10479 = vmatpush1.bf16.msra.mxu0 %v15861_v22  ;;  %11504 = vmatpush1.bf16.msra.mxu1 %v15864_v23  ;;  %v15956_v22 = vld [vmem:[%s21421_s1 + $0x2a88] ss:$16 sps:$4 sm:$0xff]   ;;  %v15961_v23 = vld [vmem:[%s21421_s1 + $0x2aa4] ss:$16 sps:$4 sm:$0xff]  }
 0x518   :  { %10480 = vmatprep.subr.bf16.mxu0 %v15869_v18  ;;  %11505 = vmatprep.subr.bf16.mxu1 %v15872_v25  ;;  %v15964_v18 = vld [vmem:[%s21421_s1 + $0x2aac] ss:$16 sps:$4 sm:$0xff]   ;;  %v15959_v25 = vld [vmem:[%s21421_s1 + $0x2aa0] ss:$16 sps:$4 sm:$0xff]  }
 0x51b   :  { %10481 = vmatpush1.bf16.msra.mxu0 %v15867_v26  ;;  %11506 = vmatpush1.bf16.msra.mxu1 %v15870_v21  ;;  %v15962_v26 = vld [vmem:[%s21421_s1 + $0x2aa8] ss:$16 sps:$4 sm:$0xff]   ;;  %v15967_v21 = vld [vmem:[%s21421_s1 + $0x2ac4] ss:$16 sps:$4 sm:$0xff]  }
 0x51c   :  { %10482 = vmatprep.subr.bf16.mxu0 %v15875_v28  ;;  %11507 = vmatprep.subr.bf16.mxu1 %v15878_v29  ;;  %v15970_v28 = vld [vmem:[%s21421_s1 + $0x2acc] ss:$16 sps:$4 sm:$0xff]   ;;  %v15965_v29 = vld [vmem:[%s21421_s1 + $0x2ac0] ss:$16 sps:$4 sm:$0xff]  }
 0x51f   :  { %10483 = vmatpush1.bf16.msra.mxu0 %v15873_v24  ;;  %11508 = vmatpush1.bf16.msra.mxu1 %v15876_v31  ;;  %v15968_v24 = vld [vmem:[%s21421_s1 + $0x2ac8] ss:$16 sps:$4 sm:$0xff]   ;;  %v15973_v31 = vld [vmem:[%s21421_s1 + $0x2ae4] ss:$16 sps:$4 sm:$0xff]  }
 0x520   :  { %10484 = vmatprep.subr.bf16.mxu0 %v15881_v32  ;;  %11509 = vmatprep.subr.bf16.mxu1 %v15884_v27  ;;  %v15976_v32 = vld [vmem:[%s21421_s1 + $0x2aec] ss:$16 sps:$4 sm:$0xff]   ;;  %v15971_v27 = vld [vmem:[%s21421_s1 + $0x2ae0] ss:$16 sps:$4 sm:$0xff]  }
 0x523   :  { %10485 = vmatpush1.bf16.msra.mxu0 %v15879_v34  ;;  %11510 = vmatpush1.bf16.msra.mxu1 %v15882_v35  ;;  %v15974_v34 = vld [vmem:[%s21421_s1 + $0x2ae8] ss:$16 sps:$4 sm:$0xff]   ;;  %v15979_v35 = vld [vmem:[%s21421_s1 + $0x2b04] ss:$16 sps:$4 sm:$0xff]  }
 0x524   :  { %10486 = vmatprep.subr.bf16.mxu0 %v15887_v30  ;;  %11511 = vmatprep.subr.bf16.mxu1 %v15890_v37  ;;  %v15982_v30 = vld [vmem:[%s21421_s1 + $0x2b0c] ss:$16 sps:$4 sm:$0xff]   ;;  %v15977_v37 = vld [vmem:[%s21421_s1 + $0x2b00] ss:$16 sps:$4 sm:$0xff]  }
 0x527   :  { %10487 = vmatpush1.bf16.msra.mxu0 %v15885_v38  ;;  %11512 = vmatpush1.bf16.msra.mxu1 %v15888_v33  ;;  %v15980_v38 = vld [vmem:[%s21421_s1 + $0x2b08] ss:$16 sps:$4 sm:$0xff]   ;;  %v15985_v33 = vld [vmem:[%s21421_s1 + $0x2b24] ss:$16 sps:$4 sm:$0xff]  }
 0x528   :  { %10488 = vmatprep.subr.bf16.mxu0 %v15893_v40  ;;  %11513 = vmatprep.subr.bf16.mxu1 %v15896_v41  ;;  %v15988_v40 = vld [vmem:[%s21421_s1 + $0x2b2c] ss:$16 sps:$4 sm:$0xff]   ;;  %v15983_v41 = vld [vmem:[%s21421_s1 + $0x2b20] ss:$16 sps:$4 sm:$0xff]  }
 0x52b   :  { %10489 = vmatpush1.bf16.msra.mxu0 %v15891_v36  ;;  %11514 = vmatpush1.bf16.msra.mxu1 %v15894_v43  ;;  %v15986_v36 = vld [vmem:[%s21421_s1 + $0x2b28] ss:$16 sps:$4 sm:$0xff]   ;;  %v15991_v43 = vld [vmem:[%s21421_s1 + $0x2b44] ss:$16 sps:$4 sm:$0xff]  }
 0x52c   :  { %10490 = vmatprep.subr.bf16.mxu0 %v15899_v44  ;;  %11515 = vmatprep.subr.bf16.mxu1 %v15902_v45  ;;  %v15994_v44 = vld [vmem:[%s21421_s1 + $0x2b4c] ss:$16 sps:$4 sm:$0xff]   ;;  %v15989_v45 = vld [vmem:[%s21421_s1 + $0x2b40] ss:$16 sps:$4 sm:$0xff]  }
 0x52f   :  { %10491 = vmatpush1.bf16.msra.mxu0 %v15897_v46  ;;  %11516 = vmatpush1.bf16.msra.mxu1 %v15900_v47  ;;  %v15992_v46 = vld [vmem:[%s21421_s1 + $0x2b48] ss:$16 sps:$4 sm:$0xff]   ;;  %v15997_v47 = vld [vmem:[%s21421_s1 + $0x2b64] ss:$16 sps:$4 sm:$0xff]  }
 0x530   :  { %10492 = vmatprep.subr.bf16.mxu0 %v15905_v42  ;;  %11517 = vmatprep.subr.bf16.mxu1 %v15908_v49  ;;  %v16000_v42 = vld [vmem:[%s21421_s1 + $0x2b6c] ss:$16 sps:$4 sm:$0xff]   ;;  %v15995_v49 = vld [vmem:[%s21421_s1 + $0x2b60] ss:$16 sps:$4 sm:$0xff]  }
 0x533   :  { %10493 = vmatpush1.bf16.msra.mxu0 %v15903_v50  ;;  %11518 = vmatpush1.bf16.msra.mxu1 %v15906_v39  ;;  %v15998_v50 = vld [vmem:[%s21421_s1 + $0x2b68] ss:$16 sps:$4 sm:$0xff]   ;;  %v16003_v39 = vld [vmem:[%s21421_s1 + $0x2b84] ss:$16 sps:$4 sm:$0xff]  }
 0x534   :  { %10494 = vmatprep.subr.bf16.mxu0 %v15911_v52  ;;  %11519 = vmatprep.subr.bf16.mxu1 %v15914_v53  ;;  %v16006_v52 = vld [vmem:[%s21421_s1 + $0x2b8c] ss:$16 sps:$4 sm:$0xff]   ;;  %v16001_v53 = vld [vmem:[%s21421_s1 + $0x2b80] ss:$16 sps:$4 sm:$0xff]  }
 0x537   :  { %10495 = vmatpush1.bf16.msra.mxu0 %v15909_v48  ;;  %11520 = vmatpush1.bf16.msra.mxu1 %v15912_v55  ;;  %v16004_v48 = vld [vmem:[%s21421_s1 + $0x2b88] ss:$16 sps:$4 sm:$0xff]   ;;  %v16009_v55 = vld [vmem:[%s21421_s1 + $0x2ba4] ss:$16 sps:$4 sm:$0xff]  }
 0x538   :  { %10496 = vmatprep.subr.bf16.mxu0 %v15917_v56  ;;  %11521 = vmatprep.subr.bf16.mxu1 %v15920_v51  ;;  %v16012_v56 = vld [vmem:[%s21421_s1 + $0x2bac] ss:$16 sps:$4 sm:$0xff]   ;;  %v16007_v51 = vld [vmem:[%s21421_s1 + $0x2ba0] ss:$16 sps:$4 sm:$0xff]  }
 0x53b   :  { %10497 = vmatpush1.bf16.msra.mxu0 %v15915_v58  ;;  %11522 = vmatpush1.bf16.msra.mxu1 %v15918_v59  ;;  %v16010_v58 = vld [vmem:[%s21421_s1 + $0x2ba8] ss:$16 sps:$4 sm:$0xff]   ;;  %v16015_v59 = vld [vmem:[%s21421_s1 + $0x2bc4] ss:$16 sps:$4 sm:$0xff]  }
 0x53c   :  { %10498 = vmatprep.subr.bf16.mxu0 %v15923_v54  ;;  %11523 = vmatprep.subr.bf16.mxu1 %v15926_v61  ;;  %v16018_v54 = vld [vmem:[%s21421_s1 + $0x2bcc] ss:$16 sps:$4 sm:$0xff]   ;;  %v16013_v61 = vld [vmem:[%s21421_s1 + $0x2bc0] ss:$16 sps:$4 sm:$0xff]  }
 0x53f   :  { %10499 = vmatpush1.bf16.msra.mxu0 %v15921_v62  ;;  %11524 = vmatpush1.bf16.msra.mxu1 %v15924_v57  ;;  %v16016_v62 = vld [vmem:[%s21421_s1 + $0x2bc8] ss:$16 sps:$4 sm:$0xff]   ;;  %v16021_v57 = vld [vmem:[%s21421_s1 + $0x2be4] ss:$16 sps:$4 sm:$0xff]  }
 0x540   :  { %10509 = vmatprep.subr.bf16.mxu0 %v15931_v0  ;;  %11534 = vmatprep.subr.bf16.mxu1 %v15934_v1  ;;  %v16024_v0 = vld [vmem:[%s21421_s1 + $0x2bec] ss:$16 sps:$4 sm:$0xff]   ;;  %v16019_v1 = vld [vmem:[%s21421_s1 + $0x2be0] ss:$16 sps:$4 sm:$0xff]  }
 0x542   :  { %10501 = vmatmul.mubr.bf16.vlgmr.msra.gmra.mrb[0].mxu0 %v11962_v60  ;;  %11526 = vmatmul.mubr.bf16.vlgmr.msra.gmra.mrb[0].mxu1 %v11962_v60  ;;  %v16022_v60 = vld [vmem:[%s21421_s1 + $0x2be8] ss:$16 sps:$4 sm:$0xff]  }
 0x543   :  { %10510 = vmatpush1.bf16.msra.mxu0 %v15929_v3  ;;  %11535 = vmatpush1.bf16.msra.mxu1 %v15932_v4  ;;  %v16029_v3 = vld [vmem:[%s21421_s1 + $0x2c04] ss:$16 sps:$4 sm:$0xff]   ;;  %v16032_v4 = vld [vmem:[%s21421_s1 + $0x2c0c] ss:$16 sps:$4 sm:$0xff]  }
 0x544   :  { %10511 = vmatprep.subr.bf16.mxu0 %v15937_v63  ;;  %11536 = vmatprep.subr.bf16.mxu1 %v15940_v5  ;;  %v11964_v63 = vcombine.low %v20527_v2, %v20527_v2  ;;  %v20728_v5 = vld [vmem:[%s21422_s0 + $0xb0] sm:$0xff] }
 0x545   :  { %10541 = vmatprep.mubr.bf16.mxu0 %v11965_v6  ;;  %11566 = vmatprep.mubr.bf16.mxu1 %v11965_v6  ;;  %v16027_v6 = vld [vmem:[%s21421_s1 + $0x2c00] ss:$16 sps:$4 sm:$0xff]   ;;  %v16035_v2 = vld [vmem:[%s21421_s1 + $0x2c24] ss:$16 sps:$4 sm:$0xff]  }
 0x547   :  { %10512 = vmatpush1.bf16.msra.mxu0 %v15935_v7  ;;  %11537 = vmatpush1.bf16.msra.mxu1 %v15938_v8  ;;  %v16030_v7 = vld [vmem:[%s21421_s1 + $0x2c08] ss:$16 sps:$4 sm:$0xff]   ;;  %v16038_v8 = vld [vmem:[%s21421_s1 + $0x2c2c] ss:$16 sps:$4 sm:$0xff]  }
 0x548   :  { %10513 = vmatprep.subr.bf16.mxu0 %v15943_v9  ;;  %11538 = vmatprep.subr.bf16.mxu1 %v15946_v10  ;;  %v11967_v9 = vcombine.high %v20728_v5, %v20728_v5  ;;  %v16033_v10 = vld [vmem:[%s21421_s1 + $0x2c20] ss:$16 sps:$4 sm:$0xff]  }
 0x54b   :  { %10514 = vmatpush1.bf16.msra.mxu0 %v15941_v12  ;;  %11539 = vmatpush1.bf16.msra.mxu1 %v15944_v13  ;;  %v16036_v12 = vld [vmem:[%s21421_s1 + $0x2c28] ss:$16 sps:$4 sm:$0xff]   ;;  %v16041_v13 = vld [vmem:[%s21421_s1 + $0x2c44] ss:$16 sps:$4 sm:$0xff]  }
 0x54c   :  { %10515 = vmatprep.subr.bf16.mxu0 %v15949_v15  ;;  %11540 = vmatprep.subr.bf16.mxu1 %v15952_v11  ;;  %v16044_v15 = vld [vmem:[%s21421_s1 + $0x2c4c] ss:$16 sps:$4 sm:$0xff]   ;;  %v16039_v11 = vld [vmem:[%s21421_s1 + $0x2c40] ss:$16 sps:$4 sm:$0xff]  }
 0x54f   :  { %10516 = vmatpush1.bf16.msra.mxu0 %v15947_v17  ;;  %11541 = vmatpush1.bf16.msra.mxu1 %v15950_v14  ;;  %v16042_v17 = vld [vmem:[%s21421_s1 + $0x2c48] ss:$16 sps:$4 sm:$0xff]   ;;  %v16047_v14 = vld [vmem:[%s21421_s1 + $0x2c64] ss:$16 sps:$4 sm:$0xff]  }
 0x550   :  { %10517 = vmatprep.subr.bf16.mxu0 %v15955_v19  ;;  %11542 = vmatprep.subr.bf16.mxu1 %v15958_v20  ;;  %v16050_v19 = vld [vmem:[%s21421_s1 + $0x2c6c] ss:$16 sps:$4 sm:$0xff]   ;;  %v16045_v20 = vld [vmem:[%s21421_s1 + $0x2c60] ss:$16 sps:$4 sm:$0xff]  }
 0x553   :  { %10518 = vmatpush1.bf16.msra.mxu0 %v15953_v16  ;;  %11543 = vmatpush1.bf16.msra.mxu1 %v15956_v22  ;;  %v16048_v16 = vld [vmem:[%s21421_s1 + $0x2c68] ss:$16 sps:$4 sm:$0xff]   ;;  %v16053_v22 = vld [vmem:[%s21421_s1 + $0x2c84] ss:$16 sps:$4 sm:$0xff]  }
 0x554   :  { %10519 = vmatprep.subr.bf16.mxu0 %v15961_v23  ;;  %11544 = vmatprep.subr.bf16.mxu1 %v15964_v18  ;;  %v16056_v23 = vld [vmem:[%s21421_s1 + $0x2c8c] ss:$16 sps:$4 sm:$0xff]   ;;  %v16051_v18 = vld [vmem:[%s21421_s1 + $0x2c80] ss:$16 sps:$4 sm:$0xff]  }
 0x557   :  { %10520 = vmatpush1.bf16.msra.mxu0 %v15959_v25  ;;  %11545 = vmatpush1.bf16.msra.mxu1 %v15962_v26  ;;  %v16054_v25 = vld [vmem:[%s21421_s1 + $0x2c88] ss:$16 sps:$4 sm:$0xff]   ;;  %v16059_v26 = vld [vmem:[%s21421_s1 + $0x2ca4] ss:$16 sps:$4 sm:$0xff]  }
 0x558   :  { %10521 = vmatprep.subr.bf16.mxu0 %v15967_v21  ;;  %11546 = vmatprep.subr.bf16.mxu1 %v15970_v28  ;;  %v16062_v21 = vld [vmem:[%s21421_s1 + $0x2cac] ss:$16 sps:$4 sm:$0xff]   ;;  %v16057_v28 = vld [vmem:[%s21421_s1 + $0x2ca0] ss:$16 sps:$4 sm:$0xff]  }
 0x55b   :  { %10522 = vmatpush1.bf16.msra.mxu0 %v15965_v29  ;;  %11547 = vmatpush1.bf16.msra.mxu1 %v15968_v24  ;;  %v16060_v29 = vld [vmem:[%s21421_s1 + $0x2ca8] ss:$16 sps:$4 sm:$0xff]   ;;  %v16065_v24 = vld [vmem:[%s21421_s1 + $0x2cc4] ss:$16 sps:$4 sm:$0xff]  }
 0x55c   :  { %10523 = vmatprep.subr.bf16.mxu0 %v15973_v31  ;;  %11548 = vmatprep.subr.bf16.mxu1 %v15976_v32  ;;  %v16068_v31 = vld [vmem:[%s21421_s1 + $0x2ccc] ss:$16 sps:$4 sm:$0xff]   ;;  %v16063_v32 = vld [vmem:[%s21421_s1 + $0x2cc0] ss:$16 sps:$4 sm:$0xff]  }
 0x55f   :  { %10524 = vmatpush1.bf16.msra.mxu0 %v15971_v27  ;;  %11549 = vmatpush1.bf16.msra.mxu1 %v15974_v34  ;;  %v16066_v27 = vld [vmem:[%s21421_s1 + $0x2cc8] ss:$16 sps:$4 sm:$0xff]   ;;  %v16071_v34 = vld [vmem:[%s21421_s1 + $0x2ce4] ss:$16 sps:$4 sm:$0xff]  }
 0x560   :  { %10525 = vmatprep.subr.bf16.mxu0 %v15979_v35  ;;  %11550 = vmatprep.subr.bf16.mxu1 %v15982_v30  ;;  %v16074_v35 = vld [vmem:[%s21421_s1 + $0x2cec] ss:$16 sps:$4 sm:$0xff]   ;;  %v16069_v30 = vld [vmem:[%s21421_s1 + $0x2ce0] ss:$16 sps:$4 sm:$0xff]  }
 0x563   :  { %10526 = vmatpush1.bf16.msra.mxu0 %v15977_v37  ;;  %11551 = vmatpush1.bf16.msra.mxu1 %v15980_v38  ;;  %v16072_v37 = vld [vmem:[%s21421_s1 + $0x2ce8] ss:$16 sps:$4 sm:$0xff]   ;;  %v16077_v38 = vld [vmem:[%s21421_s1 + $0x2d04] ss:$16 sps:$4 sm:$0xff]  }
 0x564   :  { %10527 = vmatprep.subr.bf16.mxu0 %v15985_v33  ;;  %11552 = vmatprep.subr.bf16.mxu1 %v15988_v40  ;;  %v16080_v33 = vld [vmem:[%s21421_s1 + $0x2d0c] ss:$16 sps:$4 sm:$0xff]   ;;  %v16075_v40 = vld [vmem:[%s21421_s1 + $0x2d00] ss:$16 sps:$4 sm:$0xff]  }
 0x567   :  { %10528 = vmatpush1.bf16.msra.mxu0 %v15983_v41  ;;  %11553 = vmatpush1.bf16.msra.mxu1 %v15986_v36  ;;  %v16078_v41 = vld [vmem:[%s21421_s1 + $0x2d08] ss:$16 sps:$4 sm:$0xff]   ;;  %v16083_v36 = vld [vmem:[%s21421_s1 + $0x2d24] ss:$16 sps:$4 sm:$0xff]  }
 0x568   :  { %10529 = vmatprep.subr.bf16.mxu0 %v15991_v43  ;;  %11554 = vmatprep.subr.bf16.mxu1 %v15994_v44  ;;  %v16086_v43 = vld [vmem:[%s21421_s1 + $0x2d2c] ss:$16 sps:$4 sm:$0xff]   ;;  %v16081_v44 = vld [vmem:[%s21421_s1 + $0x2d20] ss:$16 sps:$4 sm:$0xff]  }
 0x56b   :  { %10530 = vmatpush1.bf16.msra.mxu0 %v15989_v45  ;;  %11555 = vmatpush1.bf16.msra.mxu1 %v15992_v46  ;;  %v16084_v45 = vld [vmem:[%s21421_s1 + $0x2d28] ss:$16 sps:$4 sm:$0xff]   ;;  %v16089_v46 = vld [vmem:[%s21421_s1 + $0x2d44] ss:$16 sps:$4 sm:$0xff]  }
 0x56c   :  { %10531 = vmatprep.subr.bf16.mxu0 %v15997_v47  ;;  %11556 = vmatprep.subr.bf16.mxu1 %v16000_v42  ;;  %v16092_v47 = vld [vmem:[%s21421_s1 + $0x2d4c] ss:$16 sps:$4 sm:$0xff]   ;;  %v16087_v42 = vld [vmem:[%s21421_s1 + $0x2d40] ss:$16 sps:$4 sm:$0xff]  }
 0x56f   :  { %10532 = vmatpush1.bf16.msra.mxu0 %v15995_v49  ;;  %11557 = vmatpush1.bf16.msra.mxu1 %v15998_v50  ;;  %v16090_v49 = vld [vmem:[%s21421_s1 + $0x2d48] ss:$16 sps:$4 sm:$0xff]   ;;  %v16095_v50 = vld [vmem:[%s21421_s1 + $0x2d64] ss:$16 sps:$4 sm:$0xff]  }
 0x570   :  { %10533 = vmatprep.subr.bf16.mxu0 %v16003_v39  ;;  %11558 = vmatprep.subr.bf16.mxu1 %v16006_v52  ;;  %v16098_v39 = vld [vmem:[%s21421_s1 + $0x2d6c] ss:$16 sps:$4 sm:$0xff]   ;;  %v16093_v52 = vld [vmem:[%s21421_s1 + $0x2d60] ss:$16 sps:$4 sm:$0xff]  }
 0x573   :  { %10534 = vmatpush1.bf16.msra.mxu0 %v16001_v53  ;;  %11559 = vmatpush1.bf16.msra.mxu1 %v16004_v48  ;;  %v16096_v53 = vld [vmem:[%s21421_s1 + $0x2d68] ss:$16 sps:$4 sm:$0xff]   ;;  %v16101_v48 = vld [vmem:[%s21421_s1 + $0x2d84] ss:$16 sps:$4 sm:$0xff]  }
 0x574   :  { %10535 = vmatprep.subr.bf16.mxu0 %v16009_v55  ;;  %11560 = vmatprep.subr.bf16.mxu1 %v16012_v56  ;;  %v16104_v55 = vld [vmem:[%s21421_s1 + $0x2d8c] ss:$16 sps:$4 sm:$0xff]   ;;  %v16099_v56 = vld [vmem:[%s21421_s1 + $0x2d80] ss:$16 sps:$4 sm:$0xff]  }
 0x577   :  { %10536 = vmatpush1.bf16.msra.mxu0 %v16007_v51  ;;  %11561 = vmatpush1.bf16.msra.mxu1 %v16010_v58  ;;  %v16102_v51 = vld [vmem:[%s21421_s1 + $0x2d88] ss:$16 sps:$4 sm:$0xff]   ;;  %v16107_v58 = vld [vmem:[%s21421_s1 + $0x2da4] ss:$16 sps:$4 sm:$0xff]  }
 0x578   :  { %10537 = vmatprep.subr.bf16.mxu0 %v16015_v59  ;;  %11562 = vmatprep.subr.bf16.mxu1 %v16018_v54  ;;  %v16110_v59 = vld [vmem:[%s21421_s1 + $0x2dac] ss:$16 sps:$4 sm:$0xff]   ;;  %v16105_v54 = vld [vmem:[%s21421_s1 + $0x2da0] ss:$16 sps:$4 sm:$0xff]  }
 0x57b   :  { %10538 = vmatpush1.bf16.msra.mxu0 %v16013_v61  ;;  %11563 = vmatpush1.bf16.msra.mxu1 %v16016_v62  ;;  %v16108_v61 = vld [vmem:[%s21421_s1 + $0x2da8] ss:$16 sps:$4 sm:$0xff]   ;;  %v16113_v62 = vld [vmem:[%s21421_s1 + $0x2dc4] ss:$16 sps:$4 sm:$0xff]  }
 0x57c   :  { %10539 = vmatprep.subr.bf16.mxu0 %v16021_v57  ;;  %11564 = vmatprep.subr.bf16.mxu1 %v16024_v0  ;;  %v16116_v57 = vld [vmem:[%s21421_s1 + $0x2dcc] ss:$16 sps:$4 sm:$0xff]   ;;  %v16111_v0 = vld [vmem:[%s21421_s1 + $0x2dc0] ss:$16 sps:$4 sm:$0xff]  }
 0x57f   :  { %10540 = vmatpush1.bf16.msra.mxu0 %v16019_v1  ;;  %11565 = vmatpush1.bf16.msra.mxu1 %v16022_v60  ;;  %v16114_v1 = vld [vmem:[%s21421_s1 + $0x2dc8] ss:$16 sps:$4 sm:$0xff]   ;;  %v16119_v60 = vld [vmem:[%s21421_s1 + $0x2de4] ss:$16 sps:$4 sm:$0xff]  }
 0x580   :  { %10550 = vmatprep.subr.bf16.mxu0 %v16029_v3  ;;  %11575 = vmatprep.subr.bf16.mxu1 %v16032_v4  ;;  %v16122_v3 = vld [vmem:[%s21421_s1 + $0x2dec] ss:$16 sps:$4 sm:$0xff]   ;;  %v16117_v4 = vld [vmem:[%s21421_s1 + $0x2de0] ss:$16 sps:$4 sm:$0xff]  }
 0x582   :  { %10542 = vmatmul.mubr.bf16.vlgmr.msra.gmra.mrb[0].mxu0 %v11964_v63  ;;  %11567 = vmatmul.mubr.bf16.vlgmr.msra.gmra.mrb[0].mxu1 %v11964_v63  ;;  %v16120_v63 = vld [vmem:[%s21421_s1 + $0x2de8] ss:$16 sps:$4 sm:$0xff]  }
 0x583   :  { %10551 = vmatpush1.bf16.msra.mxu0 %v16027_v6  ;;  %11576 = vmatpush1.bf16.msra.mxu1 %v16030_v7  ;;  %v16127_v6 = vld [vmem:[%s21421_s1 + $0x2e04] ss:$16 sps:$4 sm:$0xff]   ;;  %v16130_v7 = vld [vmem:[%s21421_s1 + $0x2e0c] ss:$16 sps:$4 sm:$0xff]  }
 0x584   :  { %10552 = vmatprep.subr.bf16.mxu0 %v16035_v2  ;;  %11577 = vmatprep.subr.bf16.mxu1 %v16038_v8  ;;  %v11966_v2 = vcombine.low %v20728_v5, %v20728_v5  ;;  %v20929_v8 = vld [vmem:[%s21422_s0 + $0xb8] sm:$0xff]  ;;  %v16133_v5 = vld [vmem:[%s21421_s1 + $0x2e24] ss:$16 sps:$4 sm:$0xff]  }
 0x585   :  { %10582 = vmatprep.mubr.bf16.mxu0 %v11967_v9  ;;  %11607 = vmatprep.mubr.bf16.mxu1 %v11967_v9  ;;  %v16125_v9 = vld [vmem:[%s21421_s1 + $0x2e00] ss:$16 sps:$4 sm:$0xff]  }
 0x587   :  { %10553 = vmatpush1.bf16.msra.mxu0 %v16033_v10  ;;  %11578 = vmatpush1.bf16.msra.mxu1 %v16036_v12  ;;  %v16128_v10 = vld [vmem:[%s21421_s1 + $0x2e08] ss:$16 sps:$4 sm:$0xff]   ;;  %v16136_v12 = vld [vmem:[%s21421_s1 + $0x2e2c] ss:$16 sps:$4 sm:$0xff]  }
 0x588   :  { %10554 = vmatprep.subr.bf16.mxu0 %v16041_v13  ;;  %11579 = vmatprep.subr.bf16.mxu1 %v16044_v15  ;;  %v11969_v13 = vcombine.high %v20929_v8, %v20929_v8  ;;  %v16131_v15 = vld [vmem:[%s21421_s1 + $0x2e20] ss:$16 sps:$4 sm:$0xff]  }
 0x58b   :  { %10555 = vmatpush1.bf16.msra.mxu0 %v16039_v11  ;;  %11580 = vmatpush1.bf16.msra.mxu1 %v16042_v17  ;;  %v16134_v11 = vld [vmem:[%s21421_s1 + $0x2e28] ss:$16 sps:$4 sm:$0xff]   ;;  %v16139_v17 = vld [vmem:[%s21421_s1 + $0x2e44] ss:$16 sps:$4 sm:$0xff]  }
 0x58c   :  { %10556 = vmatprep.subr.bf16.mxu0 %v16047_v14  ;;  %11581 = vmatprep.subr.bf16.mxu1 %v16050_v19  ;;  %v16142_v14 = vld [vmem:[%s21421_s1 + $0x2e4c] ss:$16 sps:$4 sm:$0xff]   ;;  %v16137_v19 = vld [vmem:[%s21421_s1 + $0x2e40] ss:$16 sps:$4 sm:$0xff]  }
 0x58f   :  { %10557 = vmatpush1.bf16.msra.mxu0 %v16045_v20  ;;  %11582 = vmatpush1.bf16.msra.mxu1 %v16048_v16  ;;  %v16140_v20 = vld [vmem:[%s21421_s1 + $0x2e48] ss:$16 sps:$4 sm:$0xff]   ;;  %v16145_v16 = vld [vmem:[%s21421_s1 + $0x2e64] ss:$16 sps:$4 sm:$0xff]  }
 0x590   :  { %10558 = vmatprep.subr.bf16.mxu0 %v16053_v22  ;;  %11583 = vmatprep.subr.bf16.mxu1 %v16056_v23  ;;  %v16148_v22 = vld [vmem:[%s21421_s1 + $0x2e6c] ss:$16 sps:$4 sm:$0xff]   ;;  %v16143_v23 = vld [vmem:[%s21421_s1 + $0x2e60] ss:$16 sps:$4 sm:$0xff]  }
 0x593   :  { %10559 = vmatpush1.bf16.msra.mxu0 %v16051_v18  ;;  %11584 = vmatpush1.bf16.msra.mxu1 %v16054_v25  ;;  %v16146_v18 = vld [vmem:[%s21421_s1 + $0x2e68] ss:$16 sps:$4 sm:$0xff]   ;;  %v16151_v25 = vld [vmem:[%s21421_s1 + $0x2e84] ss:$16 sps:$4 sm:$0xff]  }
 0x594   :  { %10560 = vmatprep.subr.bf16.mxu0 %v16059_v26  ;;  %11585 = vmatprep.subr.bf16.mxu1 %v16062_v21  ;;  %v16154_v26 = vld [vmem:[%s21421_s1 + $0x2e8c] ss:$16 sps:$4 sm:$0xff]   ;;  %v16149_v21 = vld [vmem:[%s21421_s1 + $0x2e80] ss:$16 sps:$4 sm:$0xff]  }
 0x597   :  { %10561 = vmatpush1.bf16.msra.mxu0 %v16057_v28  ;;  %11586 = vmatpush1.bf16.msra.mxu1 %v16060_v29  ;;  %v16152_v28 = vld [vmem:[%s21421_s1 + $0x2e88] ss:$16 sps:$4 sm:$0xff]   ;;  %v16157_v29 = vld [vmem:[%s21421_s1 + $0x2ea4] ss:$16 sps:$4 sm:$0xff]  }
 0x598   :  { %10562 = vmatprep.subr.bf16.mxu0 %v16065_v24  ;;  %11587 = vmatprep.subr.bf16.mxu1 %v16068_v31  ;;  %v16160_v24 = vld [vmem:[%s21421_s1 + $0x2eac] ss:$16 sps:$4 sm:$0xff]   ;;  %v16155_v31 = vld [vmem:[%s21421_s1 + $0x2ea0] ss:$16 sps:$4 sm:$0xff]  }
 0x59b   :  { %10563 = vmatpush1.bf16.msra.mxu0 %v16063_v32  ;;  %11588 = vmatpush1.bf16.msra.mxu1 %v16066_v27  ;;  %v16158_v32 = vld [vmem:[%s21421_s1 + $0x2ea8] ss:$16 sps:$4 sm:$0xff]   ;;  %v16163_v27 = vld [vmem:[%s21421_s1 + $0x2ec4] ss:$16 sps:$4 sm:$0xff]  }
 0x59c   :  { %10564 = vmatprep.subr.bf16.mxu0 %v16071_v34  ;;  %11589 = vmatprep.subr.bf16.mxu1 %v16074_v35  ;;  %v16166_v34 = vld [vmem:[%s21421_s1 + $0x2ecc] ss:$16 sps:$4 sm:$0xff]   ;;  %v16161_v35 = vld [vmem:[%s21421_s1 + $0x2ec0] ss:$16 sps:$4 sm:$0xff]  }
 0x59f   :  { %10565 = vmatpush1.bf16.msra.mxu0 %v16069_v30  ;;  %11590 = vmatpush1.bf16.msra.mxu1 %v16072_v37  ;;  %v16164_v30 = vld [vmem:[%s21421_s1 + $0x2ec8] ss:$16 sps:$4 sm:$0xff]   ;;  %v16169_v37 = vld [vmem:[%s21421_s1 + $0x2ee4] ss:$16 sps:$4 sm:$0xff]  }
 0x5a0   :  { %10566 = vmatprep.subr.bf16.mxu0 %v16077_v38  ;;  %11591 = vmatprep.subr.bf16.mxu1 %v16080_v33  ;;  %v16172_v38 = vld [vmem:[%s21421_s1 + $0x2eec] ss:$16 sps:$4 sm:$0xff]   ;;  %v16167_v33 = vld [vmem:[%s21421_s1 + $0x2ee0] ss:$16 sps:$4 sm:$0xff]  }
 0x5a3   :  { %10567 = vmatpush1.bf16.msra.mxu0 %v16075_v40  ;;  %11592 = vmatpush1.bf16.msra.mxu1 %v16078_v41  ;;  %v16170_v40 = vld [vmem:[%s21421_s1 + $0x2ee8] ss:$16 sps:$4 sm:$0xff]   ;;  %v16175_v41 = vld [vmem:[%s21421_s1 + $0x2f04] ss:$16 sps:$4 sm:$0xff]  }
 0x5a4   :  { %10568 = vmatprep.subr.bf16.mxu0 %v16083_v36  ;;  %11593 = vmatprep.subr.bf16.mxu1 %v16086_v43  ;;  %v16178_v36 = vld [vmem:[%s21421_s1 + $0x2f0c] ss:$16 sps:$4 sm:$0xff]   ;;  %v16173_v43 = vld [vmem:[%s21421_s1 + $0x2f00] ss:$16 sps:$4 sm:$0xff]  }
 0x5a7   :  { %10569 = vmatpush1.bf16.msra.mxu0 %v16081_v44  ;;  %11594 = vmatpush1.bf16.msra.mxu1 %v16084_v45  ;;  %v16176_v44 = vld [vmem:[%s21421_s1 + $0x2f08] ss:$16 sps:$4 sm:$0xff]   ;;  %v16181_v45 = vld [vmem:[%s21421_s1 + $0x2f24] ss:$16 sps:$4 sm:$0xff]  }
 0x5a8   :  { %10570 = vmatprep.subr.bf16.mxu0 %v16089_v46  ;;  %11595 = vmatprep.subr.bf16.mxu1 %v16092_v47  ;;  %v16184_v46 = vld [vmem:[%s21421_s1 + $0x2f2c] ss:$16 sps:$4 sm:$0xff]   ;;  %v16179_v47 = vld [vmem:[%s21421_s1 + $0x2f20] ss:$16 sps:$4 sm:$0xff]  }
 0x5ab   :  { %10571 = vmatpush1.bf16.msra.mxu0 %v16087_v42  ;;  %11596 = vmatpush1.bf16.msra.mxu1 %v16090_v49  ;;  %v16182_v42 = vld [vmem:[%s21421_s1 + $0x2f28] ss:$16 sps:$4 sm:$0xff]   ;;  %v16187_v49 = vld [vmem:[%s21421_s1 + $0x2f44] ss:$16 sps:$4 sm:$0xff]  }
 0x5ac   :  { %10572 = vmatprep.subr.bf16.mxu0 %v16095_v50  ;;  %11597 = vmatprep.subr.bf16.mxu1 %v16098_v39  ;;  %v16190_v50 = vld [vmem:[%s21421_s1 + $0x2f4c] ss:$16 sps:$4 sm:$0xff]   ;;  %v16185_v39 = vld [vmem:[%s21421_s1 + $0x2f40] ss:$16 sps:$4 sm:$0xff]  }
 0x5af   :  { %10573 = vmatpush1.bf16.msra.mxu0 %v16093_v52  ;;  %11598 = vmatpush1.bf16.msra.mxu1 %v16096_v53  ;;  %v16188_v52 = vld [vmem:[%s21421_s1 + $0x2f48] ss:$16 sps:$4 sm:$0xff]   ;;  %v16193_v53 = vld [vmem:[%s21421_s1 + $0x2f64] ss:$16 sps:$4 sm:$0xff]  }
 0x5b0   :  { %10574 = vmatprep.subr.bf16.mxu0 %v16101_v48  ;;  %11599 = vmatprep.subr.bf16.mxu1 %v16104_v55  ;;  %v16196_v48 = vld [vmem:[%s21421_s1 + $0x2f6c] ss:$16 sps:$4 sm:$0xff]   ;;  %v16191_v55 = vld [vmem:[%s21421_s1 + $0x2f60] ss:$16 sps:$4 sm:$0xff]  }
 0x5b3   :  { %10575 = vmatpush1.bf16.msra.mxu0 %v16099_v56  ;;  %11600 = vmatpush1.bf16.msra.mxu1 %v16102_v51  ;;  %v16194_v56 = vld [vmem:[%s21421_s1 + $0x2f68] ss:$16 sps:$4 sm:$0xff]   ;;  %v16199_v51 = vld [vmem:[%s21421_s1 + $0x2f84] ss:$16 sps:$4 sm:$0xff]  }
 0x5b4   :  { %10576 = vmatprep.subr.bf16.mxu0 %v16107_v58  ;;  %11601 = vmatprep.subr.bf16.mxu1 %v16110_v59  ;;  %v16202_v58 = vld [vmem:[%s21421_s1 + $0x2f8c] ss:$16 sps:$4 sm:$0xff]   ;;  %v16197_v59 = vld [vmem:[%s21421_s1 + $0x2f80] ss:$16 sps:$4 sm:$0xff]  }
 0x5b7   :  { %10577 = vmatpush1.bf16.msra.mxu0 %v16105_v54  ;;  %11602 = vmatpush1.bf16.msra.mxu1 %v16108_v61  ;;  %v16200_v54 = vld [vmem:[%s21421_s1 + $0x2f88] ss:$16 sps:$4 sm:$0xff]   ;;  %v16205_v61 = vld [vmem:[%s21421_s1 + $0x2fa4] ss:$16 sps:$4 sm:$0xff]  }
 0x5b8   :  { %10578 = vmatprep.subr.bf16.mxu0 %v16113_v62  ;;  %11603 = vmatprep.subr.bf16.mxu1 %v16116_v57  ;;  %v16208_v62 = vld [vmem:[%s21421_s1 + $0x2fac] ss:$16 sps:$4 sm:$0xff]   ;;  %v16203_v57 = vld [vmem:[%s21421_s1 + $0x2fa0] ss:$16 sps:$4 sm:$0xff]  }
 0x5bb   :  { %10579 = vmatpush1.bf16.msra.mxu0 %v16111_v0  ;;  %11604 = vmatpush1.bf16.msra.mxu1 %v16114_v1  ;;  %v16206_v0 = vld [vmem:[%s21421_s1 + $0x2fa8] ss:$16 sps:$4 sm:$0xff]   ;;  %v16211_v1 = vld [vmem:[%s21421_s1 + $0x2fc4] ss:$16 sps:$4 sm:$0xff]  }
 0x5bc   :  { %10580 = vmatprep.subr.bf16.mxu0 %v16119_v60  ;;  %11605 = vmatprep.subr.bf16.mxu1 %v16122_v3  ;;  %v16214_v60 = vld [vmem:[%s21421_s1 + $0x2fcc] ss:$16 sps:$4 sm:$0xff]   ;;  %v16209_v3 = vld [vmem:[%s21421_s1 + $0x2fc0] ss:$16 sps:$4 sm:$0xff]  }
 0x5bf   :  { %10581 = vmatpush1.bf16.msra.mxu0 %v16117_v4  ;;  %11606 = vmatpush1.bf16.msra.mxu1 %v16120_v63  ;;  %v16212_v4 = vld [vmem:[%s21421_s1 + $0x2fc8] ss:$16 sps:$4 sm:$0xff]   ;;  %v16217_v63 = vld [vmem:[%s21421_s1 + $0x2fe4] ss:$16 sps:$4 sm:$0xff]  }
 0x5c0   :  { %10591 = vmatprep.subr.bf16.mxu0 %v16127_v6  ;;  %11616 = vmatprep.subr.bf16.mxu1 %v16130_v7  ;;  %v16220_v6 = vld [vmem:[%s21421_s1 + $0x2fec] ss:$16 sps:$4 sm:$0xff]   ;;  %v16215_v7 = vld [vmem:[%s21421_s1 + $0x2fe0] ss:$16 sps:$4 sm:$0xff]  }
 0x5c2   :  { %10583 = vmatmul.mubr.bf16.vlgmr.msra.gmra.mrb[0].mxu0 %v11966_v2  ;;  %11608 = vmatmul.mubr.bf16.vlgmr.msra.gmra.mrb[0].mxu1 %v11966_v2  ;;  %v16218_v2 = vld [vmem:[%s21421_s1 + $0x2fe8] ss:$16 sps:$4 sm:$0xff]  }
 0x5c3   :  { %10592 = vmatpush1.bf16.msra.mxu0 %v16125_v9  ;;  %11617 = vmatpush1.bf16.msra.mxu1 %v16128_v10  ;;  %v16225_v9 = vld [vmem:[%s21421_s1 + $0x3004] ss:$16 sps:$4 sm:$0xff]   ;;  %v16228_v10 = vld [vmem:[%s21421_s1 + $0x300c] ss:$16 sps:$4 sm:$0xff]  }
 0x5c4   :  { %10593 = vmatprep.subr.bf16.mxu0 %v16133_v5  ;;  %11618 = vmatprep.subr.bf16.mxu1 %v16136_v12  ;;  %v11968_v5 = vcombine.low %v20929_v8, %v20929_v8  ;;  %v16223_v12 = vld [vmem:[%s21421_s1 + $0x3000] ss:$16 sps:$4 sm:$0xff]   ;;  %v16234_v8 = vld [vmem:[%s21421_s1 + $0x302c] ss:$16 sps:$4 sm:$0xff]  }
 0x5c5   :  { %10623 = vmatprep.mubr.bf16.mxu0 %v11969_v13  ;;  %11648 = vmatprep.mubr.bf16.mxu1 %v11969_v13  ;;  %v16226_v13 = vld [vmem:[%s21421_s1 + $0x3008] ss:$16 sps:$4 sm:$0xff]  }
 0x5c7   :  { %10594 = vmatpush1.bf16.msra.mxu0 %v16131_v15  ;;  %11619 = vmatpush1.bf16.msra.mxu1 %v16134_v11  ;;  %v16231_v15 = vld [vmem:[%s21421_s1 + $0x3024] ss:$16 sps:$4 sm:$0xff]   ;;  %v16229_v11 = vld [vmem:[%s21421_s1 + $0x3020] ss:$16 sps:$4 sm:$0xff]  }
 0x5c8   :  { %10595 = vmatprep.subr.bf16.mxu0 %v16139_v17  ;;  %11620 = vmatprep.subr.bf16.mxu1 %v16142_v14  ;;  %v16232_v17 = vld [vmem:[%s21421_s1 + $0x3028] ss:$16 sps:$4 sm:$0xff]   ;;  %v16237_v14 = vld [vmem:[%s21421_s1 + $0x3044] ss:$16 sps:$4 sm:$0xff]  }
 0x5cb   :  { %10596 = vmatpush1.bf16.msra.mxu0 %v16137_v19  ;;  %11621 = vmatpush1.bf16.msra.mxu1 %v16140_v20  ;;  %v16240_v19 = vld [vmem:[%s21421_s1 + $0x304c] ss:$16 sps:$4 sm:$0xff]   ;;  %v16272_v20 = vmov 0  }
 0x5cc   :  { %10597 = vmatprep.subr.bf16.mxu0 %v16145_v16  ;;  %11622 = vmatprep.subr.bf16.mxu1 %v16148_v22  ;;  %v16235_v16 = vld [vmem:[%s21421_s1 + $0x3040] ss:$16 sps:$4 sm:$0xff]   ;;  %v16238_v22 = vld [vmem:[%s21421_s1 + $0x3048] ss:$16 sps:$4 sm:$0xff]  }
 0x5cf   :  { %10598 = vmatpush1.bf16.msra.mxu0 %v16143_v23  ;;  %11623 = vmatpush1.bf16.msra.mxu1 %v16146_v18  ;;  %v16243_v23 = vld [vmem:[%s21421_s1 + $0x3064] ss:$16 sps:$4 sm:$0xff]   ;;  %v16246_v18 = vld [vmem:[%s21421_s1 + $0x306c] ss:$16 sps:$4 sm:$0xff]  }
 0x5d0   :  { %10599 = vmatprep.subr.bf16.mxu0 %v16151_v25  ;;  %11624 = vmatprep.subr.bf16.mxu1 %v16154_v26  ;;  %v16241_v25 = vld [vmem:[%s21421_s1 + $0x3060] ss:$16 sps:$4 sm:$0xff]   ;;  %v16244_v26 = vld [vmem:[%s21421_s1 + $0x3068] ss:$16 sps:$4 sm:$0xff]  }
 0x5d3   :  { %10600 = vmatpush1.bf16.msra.mxu0 %v16149_v21  ;;  %11625 = vmatpush1.bf16.msra.mxu1 %v16152_v28  ;;  %v16249_v21 = vld [vmem:[%s21421_s1 + $0x3084] ss:$16 sps:$4 sm:$0xff]   ;;  %v16252_v28 = vld [vmem:[%s21421_s1 + $0x308c] ss:$16 sps:$4 sm:$0xff]  }
 0x5d4   :  { %10601 = vmatprep.subr.bf16.mxu0 %v16157_v29  ;;  %11626 = vmatprep.subr.bf16.mxu1 %v16160_v24  ;;  %v16247_v29 = vld [vmem:[%s21421_s1 + $0x3080] ss:$16 sps:$4 sm:$0xff]   ;;  %v16250_v24 = vld [vmem:[%s21421_s1 + $0x3088] ss:$16 sps:$4 sm:$0xff]  }
 0x5d7   :  { %10602 = vmatpush1.bf16.msra.mxu0 %v16155_v31  ;;  %11627 = vmatpush1.bf16.msra.mxu1 %v16158_v32  ;;  %v16255_v31 = vld [vmem:[%s21421_s1 + $0x30a4] ss:$16 sps:$4 sm:$0xff]   ;;  %v16258_v32 = vld [vmem:[%s21421_s1 + $0x30ac] ss:$16 sps:$4 sm:$0xff]  }
 0x5d8   :  { %10603 = vmatprep.subr.bf16.mxu0 %v16163_v27  ;;  %11628 = vmatprep.subr.bf16.mxu1 %v16166_v34  ;;  %v16253_v27 = vld [vmem:[%s21421_s1 + $0x30a0] ss:$16 sps:$4 sm:$0xff]   ;;  %v16256_v34 = vld [vmem:[%s21421_s1 + $0x30a8] ss:$16 sps:$4 sm:$0xff]  }
 0x5db   :  { %10604 = vmatpush1.bf16.msra.mxu0 %v16161_v35  ;;  %11629 = vmatpush1.bf16.msra.mxu1 %v16164_v30  ;;  %v16261_v35 = vld [vmem:[%s21421_s1 + $0x30c4] ss:$16 sps:$4 sm:$0xff]   ;;  %v16264_v30 = vld [vmem:[%s21421_s1 + $0x30cc] ss:$16 sps:$4 sm:$0xff]  }
 0x5dc   :  { %10605 = vmatprep.subr.bf16.mxu0 %v16169_v37  ;;  %11630 = vmatprep.subr.bf16.mxu1 %v16172_v38  ;;  %v16259_v37 = vld [vmem:[%s21421_s1 + $0x30c0] ss:$16 sps:$4 sm:$0xff]   ;;  %v16262_v38 = vld [vmem:[%s21421_s1 + $0x30c8] ss:$16 sps:$4 sm:$0xff]  }
 0x5df   :  { %10606 = vmatpush1.bf16.msra.mxu0 %v16167_v33  ;;  %11631 = vmatpush1.bf16.msra.mxu1 %v16170_v40  ;;  %v16267_v33 = vld [vmem:[%s21421_s1 + $0x30e4] ss:$16 sps:$4 sm:$0xff]   ;;  %v16270_v40 = vld [vmem:[%s21421_s1 + $0x30ec] ss:$16 sps:$4 sm:$0xff]  }
 0x5e0   :  { %10607 = vmatprep.subr.bf16.mxu0 %v16175_v41  ;;  %11632 = vmatprep.subr.bf16.mxu1 %v16178_v36  ;;  %v11722_v41 = vld [vmem:[%s21423_s3 + $0x80] sm:$0xff]  ;;  %v11723_v36 = vld [vmem:[%s21423_s3 + $0x88] sm:$0xff] }
 0x5e3   :  { %10608 = vmatpush1.bf16.msra.mxu0 %v16173_v43  ;;  %11633 = vmatpush1.bf16.msra.mxu1 %v16176_v44  ;;  %v11754_v43 = vld [vmem:[%s21423_s3 + $0x180] sm:$0xff]  ;;  %v11755_v44 = vld [vmem:[%s21423_s3 + $0x188] sm:$0xff] }
 0x5e4   :  { %10609 = vmatprep.subr.bf16.mxu0 %v16181_v45  ;;  %11634 = vmatprep.subr.bf16.mxu1 %v16184_v46  ;;  %v16265_v45 = vld [vmem:[%s21421_s1 + $0x30e0] ss:$16 sps:$4 sm:$0xff]   ;;  %v16268_v46 = vld [vmem:[%s21421_s1 + $0x30e8] ss:$16 sps:$4 sm:$0xff]  }
 0x5e7   :  { %10610 = vmatpush1.bf16.msra.mxu0 %v16179_v47  ;;  %11635 = vmatpush1.bf16.msra.mxu1 %v16182_v42  ;;  %v11706_v47 = vld [vmem:[%s21423_s3] sm:$0xff]  ;;  %v11707_v42 = vld [vmem:[%s21423_s3 + $0x8] sm:$0xff] }
 0x5e8   :  { %10611 = vmatprep.subr.bf16.mxu0 %v16187_v49  ;;  %11636 = vmatprep.subr.bf16.mxu1 %v16190_v50  ;;  %v13610_v49 = vpack.c.bf16 %v11723_v36, %v11722_v41  ;;  %v13642_v50 = vpack.c.bf16 %v11755_v44, %v11754_v43  ;;  %v11765_v41 = vld [vmem:[%s21423_s3 + $0x1d8] sm:$0xff]  ;;  %v11716_v44 = vld [vmem:[%s21423_s3 + $0x50] sm:$0xff] }
 0x5eb   :  { %10612 = vmatpush1.bf16.msra.mxu0 %v16185_v39  ;;  %11637 = vmatpush1.bf16.msra.mxu1 %v16188_v52  ;;  %v11738_v39 = vld [vmem:[%s21423_s3 + $0x100] sm:$0xff]  ;;  %v11739_v52 = vld [vmem:[%s21423_s3 + $0x108] sm:$0xff] }
 0x5ec   :  { %10613 = vmatprep.subr.bf16.mxu0 %v16193_v53  ;;  %11638 = vmatprep.subr.bf16.mxu1 %v16196_v48  ;;  %v11724_v53 = vld [vmem:[%s21423_s3 + $0x90] sm:$0xff]  ;;  %v11725_v48 = vld [vmem:[%s21423_s3 + $0x98] sm:$0xff] }
 0x5ef   :  { %10614 = vmatpush1.bf16.msra.mxu0 %v16191_v55  ;;  %11639 = vmatpush1.bf16.msra.mxu1 %v16194_v56  ;;  %v11756_v55 = vld [vmem:[%s21423_s3 + $0x190] sm:$0xff]  ;;  %v11757_v56 = vld [vmem:[%s21423_s3 + $0x198] sm:$0xff] }
 0x5f0   :  { %10615 = vmatprep.subr.bf16.mxu0 %v16199_v51  ;;  %11640 = vmatprep.subr.bf16.mxu1 %v16202_v58  ;;  %v16271_v51 = vld [vmem:[%s21422_s0 + $0xc0] ss:$0 sps:$4 sm:$0xff]   ;;  %v13612_v58 = vpack.c.bf16 %v11707_v42, %v11706_v47  ;;  %v11748_v42 = vld [vmem:[%s21423_s3 + $0x150] sm:$0xff] }
 0x5f3   :  { %10616 = vmatpush1.bf16.msra.mxu0 %v16197_v59  ;;  %11641 = vmatpush1.bf16.msra.mxu1 %v16200_v54  ;;  %v13644_v59 = vpack.c.bf16 %v11739_v52, %v11738_v39  ;;  %v11708_v54 = vld [vmem:[%s21423_s3 + $0x10] sm:$0xff]  ;;  %v11735_v39 = vld [vmem:[%s21423_s3 + $0xe8] sm:$0xff]  ;;  %v11766_v52 = vld [vmem:[%s21423_s3 + $0x1e0] sm:$0xff] }
 0x5f4   :  { %10617 = vmatprep.subr.bf16.mxu0 %v16205_v61  ;;  %11642 = vmatprep.subr.bf16.mxu1 %v16208_v62  ;;  %v11709_v61 = vld [vmem:[%s21423_s3 + $0x18] sm:$0xff]  ;;  %v13614_v62 = vpack.c.bf16 %v11725_v48, %v11724_v53  ;;  %v11767_v53 = vld [vmem:[%s21423_s3 + $0x1e8] sm:$0xff] }
 0x5f7   :  { %10618 = vmatpush1.bf16.msra.mxu0 %v16203_v57  ;;  %11643 = vmatpush1.bf16.msra.mxu1 %v16206_v0  ;;  %v13646_v57 = vpack.c.bf16 %v11757_v56, %v11756_v55  ;;  %v11740_v0 = vld [vmem:[%s21423_s3 + $0x110] sm:$0xff]  ;;  %v11718_v56 = vld [vmem:[%s21423_s3 + $0x60] sm:$0xff] }
 0x5f8   :  { %10619 = vmatprep.subr.bf16.mxu0 %v16211_v1  ;;  %11644 = vmatprep.subr.bf16.mxu1 %v16214_v60  ;;  %v11741_v1 = vld [vmem:[%s21423_s3 + $0x118] sm:$0xff]  ;;  %v11726_v60 = vld [vmem:[%s21423_s3 + $0xa0] sm:$0xff] }
 0x5fb   :  { %10620 = vmatpush1.bf16.msra.mxu0 %v16209_v3  ;;  %11645 = vmatpush1.bf16.msra.mxu1 %v16212_v4  ;;  %v11727_v3 = vld [vmem:[%s21423_s3 + $0xa8] sm:$0xff]  ;;  %v11758_v4 = vld [vmem:[%s21423_s3 + $0x1a0] sm:$0xff] }
 0x5fc   :  { %10621 = vmatprep.subr.bf16.mxu0 %v16217_v63  ;;  %11646 = vmatprep.subr.bf16.mxu1 %v16220_v6  ;;  %v11759_v63 = vld [vmem:[%s21423_s3 + $0x1a8] sm:$0xff]  ;;  %v13616_v6 = vpack.c.bf16 %v11709_v61, %v11708_v54  ;;  %v11750_v54 = vld [vmem:[%s21423_s3 + $0x160] sm:$0xff] }
 0x5fd   :  { %v11751_v61 = vld [vmem:[%s21423_s3 + $0x168] sm:$0xff] }
 0x5ff   :  { %10622 = vmatpush1.bf16.msra.mxu0 %v16215_v7  ;;  %11647 = vmatpush1.bf16.msra.mxu1 %v16218_v2  ;;  %v13648_v7 = vpack.c.bf16 %v11741_v1, %v11740_v0  ;;  %v11710_v2 = vld [vmem:[%s21423_s3 + $0x20] sm:$0xff]  ;;  %v11736_v0 = vld [vmem:[%s21423_s3 + $0xf0] sm:$0xff]  ;;  %v11737_v1 = vld [vmem:[%s21423_s3 + $0xf8] sm:$0xff] }
 0x600   :  { %10632 = vmatprep.subr.bf16.mxu0 %v16225_v9  ;;  %11657 = vmatprep.subr.bf16.mxu1 %v16228_v10  ;;  %v11711_v9 = vld [vmem:[%s21423_s3 + $0x28] sm:$0xff]  ;;  %v13618_v10 = vpack.c.bf16 %v11727_v3, %v11726_v60  ;;  %v11768_v60 = vld [vmem:[%s21423_s3 + $0x1f0] sm:$0xff]  ;;  %v13638_v3 = vpack.c.bf16 %v11737_v1, %v11736_v0 }
 0x602   :  { %10624 = vmatmul.mubr.bf16.vlgmr.msra.gmra.mrb[0].mxu0 %v11968_v5  ;;  %11649 = vmatmul.mubr.bf16.vlgmr.msra.gmra.mrb[0].mxu1 %v11968_v5  ;;  %v13650_v5 = vpack.c.bf16 %v11759_v63, %v11758_v4  ;;  %v11769_v4 = vld [vmem:[%s21423_s3 + $0x1f8] sm:$0xff]  ;;  %v11720_v63 = vld [vmem:[%s21423_s3 + $0x70] sm:$0xff] }
 0x603   :  { %10633 = vmatpush1.bf16.msra.mxu0 %v16223_v12  ;;  %11658 = vmatpush1.bf16.msra.mxu1 %v16226_v13  ;;  %v11742_v12 = vld [vmem:[%s21423_s3 + $0x120] sm:$0xff]  ;;  %v11743_v13 = vld [vmem:[%s21423_s3 + $0x128] sm:$0xff] }
 0x604   :  { %10634 = vmatprep.subr.bf16.mxu0 %v16231_v15  ;;  %11659 = vmatprep.subr.bf16.mxu1 %v16234_v8  ;;  %v11728_v15 = vld [vmem:[%s21423_s3 + $0xb0] sm:$0xff]  ;;  %v11729_v8 = vld [vmem:[%s21423_s3 + $0xb8] sm:$0xff] }
 0x605   :  { %10664 = vmatprep.mubr.bf16.mxu0 %v16272_v20  ;;  %11689 = vmatprep.mubr.bf16.mxu1 %v16272_v20  ;;  %v11712_v20 = vld [vmem:[%s21423_s3 + $0x30] sm:$0xff] }
 0x607   :  { %10635 = vmatpush1.bf16.msra.mxu0 %v16229_v11  ;;  %11660 = vmatpush1.bf16.msra.mxu1 %v16232_v17  ;;  %v11760_v11 = vld [vmem:[%s21423_s3 + $0x1b0] sm:$0xff]  ;;  %v11761_v17 = vld [vmem:[%s21423_s3 + $0x1b8] sm:$0xff] }
 0x608   :  { %10636 = vmatprep.subr.bf16.mxu0 %v16237_v14  ;;  %11661 = vmatprep.subr.bf16.mxu1 %v16240_v19  ;;  %v13620_v14 = vpack.c.bf16 %v11711_v9, %v11710_v2  ;;  %v13652_v19 = vpack.c.bf16 %v11743_v13, %v11742_v12  ;;  %v11752_v9 = vld [vmem:[%s21423_s3 + $0x170] sm:$0xff]  ;;  %v1616_v12 = vlaneseq }
 0x60a   :  { %v1617_v13 = vshrl.u32 %v1616_v12, 7 }
 0x60b   :  { %10637 = vmatpush1.bf16.msra.mxu0 %v16235_v16  ;;  %11662 = vmatpush1.bf16.msra.mxu1 %v16238_v22  ;;  %v11713_v16 = vld [vmem:[%s21423_s3 + $0x38] sm:$0xff]  ;;  %v13622_v22 = vpack.c.bf16 %v11729_v8, %v11728_v15 }
 0x60c   :  { %10638 = vmatprep.subr.bf16.mxu0 %v16243_v23  ;;  %11663 = vmatprep.subr.bf16.mxu1 %v16246_v18  ;;  %v13654_v23 = vpack.c.bf16 %v11761_v17, %v11760_v11  ;;  %v11744_v18 = vld [vmem:[%s21423_s3 + $0x130] sm:$0xff]  ;;  %v1622_v15 = vsub.s32 1, %v1617_v13  ;;  %v1630_v8 = vsub.s32 3, %v1617_v13  ;;  %v1614_v11 = vld [vmem:[%s21424_s2] sm:$0xf]  ;;  %v1618_v17 = vsub.s32 0, %v1617_v13 }
 0x60f   :  { %10639 = vmatpush1.bf16.msra.mxu0 %v16241_v25  ;;  %11664 = vmatpush1.bf16.msra.mxu1 %v16244_v26  ;;  %v11745_v25 = vld [vmem:[%s21423_s3 + $0x138] sm:$0xff]  ;;  %v11730_v26 = vld [vmem:[%s21423_s3 + $0xc0] sm:$0xff] }
 0x610   :  { %10640 = vmatprep.subr.bf16.mxu0 %v16249_v21  ;;  %11665 = vmatprep.subr.bf16.mxu1 %v16252_v28  ;;  %v11731_v21 = vld [vmem:[%s21423_s3 + $0xc8] sm:$0xff]  ;;  %v11762_v28 = vld [vmem:[%s21423_s3 + $0x1c0] sm:$0xff] }
 0x613   :  { %10641 = vmatpush1.bf16.msra.mxu0 %v16247_v29  ;;  %11666 = vmatpush1.bf16.msra.mxu1 %v16250_v24  ;;  %v11763_v29 = vld [vmem:[%s21423_s3 + $0x1c8] sm:$0xff]  ;;  %v13624_v24 = vpack.c.bf16 %v11713_v16, %v11712_v20  ;;  %v1631_v20 = vrot.slane %v1614_v11, %v1630_v8  ;;  %v1619_v16 = vrot.slane %v1614_v11, %v1618_v17 }
 0x614   :  { %10642 = vmatprep.subr.bf16.mxu0 %v16255_v31  ;;  %11667 = vmatprep.subr.bf16.mxu1 %v16258_v32  ;;  %v13656_v31 = vpack.c.bf16 %v11745_v25, %v11744_v18  ;;  %v11714_v32 = vld [vmem:[%s21423_s3 + $0x40] sm:$0xff] }
 0x617   :  { %10643 = vmatpush1.bf16.msra.mxu0 %v16253_v27  ;;  %11668 = vmatpush1.bf16.msra.mxu1 %v16256_v34  ;;  %v11715_v27 = vld [vmem:[%s21423_s3 + $0x48] sm:$0xff]  ;;  %v13626_v34 = vpack.c.bf16 %v11731_v21, %v11730_v26 }
 0x618   :  { %10644 = vmatprep.subr.bf16.mxu0 %v16261_v35  ;;  %11669 = vmatprep.subr.bf16.mxu1 %v16264_v30  ;;  %v13658_v35 = vpack.c.bf16 %v11763_v29, %v11762_v28  ;;  %v11746_v30 = vld [vmem:[%s21423_s3 + $0x140] sm:$0xff]  ;;  %v13628_v36 = vpack.c.bf16 %v11715_v27, %v11714_v32 }
 0x61b   :  { %10645 = vmatpush1.bf16.msra.mxu0 %v16259_v37  ;;  %11670 = vmatpush1.bf16.msra.mxu1 %v16262_v38  ;;  %v11747_v37 = vld [vmem:[%s21423_s3 + $0x148] sm:$0xff]  ;;  %v11732_v38 = vld [vmem:[%s21423_s3 + $0xd0] sm:$0xff] }
 0x61c   :  { %10646 = vmatprep.subr.bf16.mxu0 %v16267_v33  ;;  %11671 = vmatprep.subr.bf16.mxu1 %v16270_v40  ;;  %v11733_v33 = vld [vmem:[%s21423_s3 + $0xd8] sm:$0xff]  ;;  %v11764_v40 = vld [vmem:[%s21423_s3 + $0x1d0] sm:$0xff]  ;;  %v13660_v43 = vpack.c.bf16 %v11747_v37, %v11746_v30  ;;  %v13539_v37 = vld [vmem:[%s21425_s4] ss:$0 sm:$0xff] }
 0x61d   :  { %v13662_v47 = vpack.c.bf16 %v11765_v41, %v11764_v40 }
 0x61f   :  { %10647 = vmatpush1.bf16.msra.mxu0 %v16265_v45  ;;  %11672 = vmatpush1.bf16.msra.mxu1 %v16268_v46  ;;  %v11717_v45 = vld [vmem:[%s21423_s3 + $0x58] sm:$0xff]  ;;  %v13630_v46 = vpack.c.bf16 %v11733_v33, %v11732_v38 }
 0x620   :  { %13611 = vmatprep.subr.bf16.mxu0 %v13610_v49  ;;  %13643 = vmatprep.subr.bf16.mxu1 %v13642_v50  ;;  %v11749_v49 = vld [vmem:[%s21423_s3 + $0x158] sm:$0xff]  ;;  %v11734_v50 = vld [vmem:[%s21423_s3 + $0xe0] sm:$0xff]  ;;  %v13632_v48 = vpack.c.bf16 %v11717_v45, %v11716_v44 }
 0x621   :  { %v13664_v55 = vpack.c.bf16 %v11749_v49, %v11748_v42 }
 0x622   :  { %10665 = vmatmul.mubr.bf16.vlgmr.msra.gmra.mrb[0].mxu0 %v16271_v51  ;;  %11690 = vmatmul.mubr.bf16.vlgmr.msra.gmra.mrb[0].mxu1 %v16271_v51  ;;  %v13634_v51 = vpack.c.bf16 %v11735_v39, %v11734_v50 }
 0x623   :  { %13613 = vmatpush3.bf16.msra.mxu0 %v13612_v58  ;;  %13645 = vmatpush3.bf16.msra.mxu1 %v13644_v59  ;;  %v13666_v58 = vpack.c.bf16 %v11767_v53, %v11766_v52  ;;  %v11719_v59 = vld [vmem:[%s21423_s3 + $0x68] sm:$0xff] }
 0x624   :  { %13615 = vmatprep.subr.bf16.mxu0 %v13614_v62  ;;  %13647 = vmatprep.subr.bf16.mxu1 %v13646_v57  ;;  %v13636_v62 = vpack.c.bf16 %v11719_v59, %v11718_v56  ;;  %v13668_v57 = vpack.c.bf16 %v11751_v61, %v11750_v54 }
 0x627   :  { %13617 = vmatpush3.bf16.msra.mxu0 %v13616_v6  ;;  %13649 = vmatpush3.bf16.msra.mxu1 %v13648_v7  ;;  %v11721_v6 = vld [vmem:[%s21423_s3 + $0x78] sm:$0xff]  ;;  %v13670_v7 = vpack.c.bf16 %v11769_v4, %v11768_v60 }
 0x628   :  { %13619 = vmatprep.subr.bf16.mxu0 %v13618_v10  ;;  %13651 = vmatprep.subr.bf16.mxu1 %v13650_v5  ;;  %v13640_v2 = vpack.c.bf16 %v11721_v6, %v11720_v63  ;;  %v11753_v10 = vld [vmem:[%s21423_s3 + $0x178] sm:$0xff] }
 0x629   :  { %v13672_v5 = vpack.c.bf16 %v11753_v10, %v11752_v9 }
 0x62b   :  { %13621 = vmatpush3.bf16.msra.mxu0 %v13620_v14  ;;  %13653 = vmatpush3.bf16.msra.mxu1 %v13652_v19  ;;  %v1626_v14 = vsub.s32 2, %v1617_v13  ;;  %v1623_v19 = vrot.slane %v1614_v11, %v1622_v15 }
 0x62c   :  { %13623 = vmatprep.subr.bf16.mxu0 %v13622_v22  ;;  %13655 = vmatprep.subr.bf16.mxu1 %v13654_v23 }
 0x62d   :  { %v1627_v22 = vrot.slane %v1614_v11, %v1626_v14 }
 0x62f   :  { %13625 = vmatpush3.bf16.msra.mxu0 %v13624_v24  ;;  %13657 = vmatpush3.bf16.msra.mxu1 %v13656_v31 }
 0x630   :  { %13627 = vmatprep.subr.bf16.mxu0 %v13626_v34  ;;  %13659 = vmatprep.subr.bf16.mxu1 %v13658_v35 }
 0x633   :  { %13629 = vmatpush3.bf16.msra.mxu0 %v13628_v36  ;;  %13661 = vmatpush3.bf16.msra.mxu1 %v13660_v43 }
 0x634   :  { %13631 = vmatprep.subr.bf16.mxu0 %v13630_v46  ;;  %13663 = vmatprep.subr.bf16.mxu1 %v13662_v47 }
 0x637   :  { %13633 = vmatpush3.bf16.msra.mxu0 %v13632_v48  ;;  %13665 = vmatpush3.bf16.msra.mxu1 %v13664_v55 }
 0x638   :  { %13635 = vmatprep.subr.bf16.mxu0 %v13634_v51  ;;  %13667 = vmatprep.subr.bf16.mxu1 %v13666_v58 }
 0x63b   :  { %13637 = vmatpush3.bf16.msra.mxu0 %v13636_v62  ;;  %13669 = vmatpush3.bf16.msra.mxu1 %v13668_v57 }
 0x63c   :  { %13639 = vmatprep.subr.bf16.mxu0 %v13638_v3  ;;  %13671 = vmatprep.subr.bf16.mxu1 %v13670_v7 }
 0x63f   :  { %13641 = vmatpush3.bf16.msra.mxu0 %v13640_v2  ;;  %13673 = vmatpush3.bf16.msra.mxu1 %v13672_v5 }
 0x6f5   :  { %v10666_v23 = vpop.f32.mrb[0].mxu0  ;;  %v11691_v18 = vpop.f32.mrb[0].mxu1 }
 0x6f6   :  { %v10668_v25 = vpop.f32.mrb[1].mxu0  ;;  %v11693_v26 = vpop.f32.mrb[1].mxu1  ;;  %v13674_v31 = vadd.f32 %v10666_v23, %v1619_v16  ;;  %v13676_v32 = vadd.f32 %v11691_v18, %v1627_v22 }
 0x6f7   :  { %v13675_v21 = vadd.f32 %v10668_v25, %v1623_v19  ;;  %v13677_v28 = vadd.f32 %v11693_v26, %v1631_v20  ;;  %v10670_v29 = vpop.f32.mrb[2].mxu0  ;;  %v11695_v24 = vpop.f32.mrb[2].mxu1 }
 0x6f8   :  { %v10671_v27 = vpop.f32.mrb[3].mxu0  ;;  %v11696_v34 = vpop.f32.mrb[3].mxu1 }
 0x6f9   :  { %11841 = vmatprep.mubr.f32.mxu0 %v13675_v21  ;;  %11911 = vmatprep.mubr.f32.mxu1 %v13677_v28 }
 0x6fa   :  { %11842 = vmatmul.mubr.f32.vlgmr.msra.gmra.mrb[4].mxu0 %v13674_v31  ;;  %11912 = vmatmul.mubr.f32.vlgmr.msra.gmra.mrb[4].mxu1 %v13676_v32 }
 0x7cd   :  { %v13572_v35 = vpop.f32.mrb[4].mxu0  ;;  %v13607_v30 = vpop.f32.mrb[4].mxu1 }
 0x7ce   :  { %v13573_v38 = vpop.f32.mrb[5].mxu0  ;;  %v13608_v33 = vpop.f32.mrb[5].mxu1 }
 0x7cf   :  { %v13574_v40 = vadd.f32 %v13573_v38, %v13572_v35  ;;  %v13609_v41 = vadd.f32 %v13608_v33, %v13607_v30 }
 0x7d1   :  { %v11844_v36 = vadd.f32 %v13574_v40, %v13539_v37 }
 0x7d3   :  { %v11914_v43 = vadd.f32 %v13609_v41, %v11844_v36 }
 0x7d5   :  { %11917 = vst [vmem:[%s21426_s5] sm:$0xff] %v11914_v43 }

</bundles_post_ra>
